<compile_context>
chip_gen: v7x
topology: tpu7x:2x2x1
jax: 0.10.0
libtpu: 0.0.40
codegen_flags: <defaults>
</compile_context>

<pallas_src>
import numpy as np
import jax
import jax.numpy as jnp
from jax.experimental import pallas as pl
from jax.experimental.pallas import tpu as pltpu


# --------------------------------------------------------------------------
# In-kernel helpers
# --------------------------------------------------------------------------

def _conv3x3_acc(pad_ref, x_flat, w_ref, acc=None):
    """3x3 same-padding conv, accumulated into `acc` (f32).

    pad_ref: (H+2, W+2, Cin) f32 VMEM scratch (zeroed + interior-written here).
    x_flat : (H*W, Cin) f32 activations.
    w_ref  : (9, Cin, Cout) bf16 folded conv weights (taps in row-major order).
    Returns (H*W, Cout) f32.
    """
    Hp, Wp, Cin = pad_ref.shape
    H, W = Hp - 2, Wp - 2
    Cout = w_ref.shape[-1]

    # In-kernel zero padding: memset + interior store (VMEM only, no HBM).
    pad_ref[...] = jnp.zeros((Hp, Wp, Cin), jnp.float32)
    pad_ref[1:H + 1, 1:W + 1, :] = x_flat.reshape(H, W, Cin)

    if acc is None:
        acc = jnp.zeros((H * W, Cout), jnp.float32)
    for t in range(9):
        ky, kx = divmod(t, 3)
        patch = pad_ref[ky:ky + H, kx:kx + W, :].reshape(H * W, Cin)
        acc = acc + jnp.dot(patch.astype(jnp.bfloat16), w_ref[t],
                            preferred_element_type=jnp.float32)
    return acc


def _bias_elu(acc, b_ref):
    """Folded-BN bias add + ELU(alpha=1) in f32.  acc: (M, Cout), b: (1, Cout)."""
    y = acc + b_ref[...]
    return jnp.where(y > 0.0, y, jnp.exp(jnp.minimum(y, 0.0)) - 1.0)


# --------------------------------------------------------------------------
# Fused decoder kernel (one batch element per grid step)
# --------------------------------------------------------------------------

def _decoder_kernel(xs8_ref, x16_ref, m1_ref, m2_ref,
                    w_up3_ref, b_up3_ref,
                    w_i3x8_ref, b_i3x8_ref,
                    w_i3a_ref, w_i3b_ref, b_i3_ref,
                    w_up2_ref, b_up2_ref,
                    w_i2_ref, b_i2_ref,
                    w_fine_ref, b_fine_ref,
                    o_ref,
                    pad_a, pad_b, pad_c, pad_d, pad_e, pad_f):
    _, H8, W8, C_s8 = xs8_ref.shape
    _, H4, W4, C_fine = o_ref.shape

    # --- upconv3: bilinear x2 (single MXU matmul) then conv3x3 160 -> 64.
    x16 = x16_ref[0].astype(jnp.bfloat16)                       # (H16*W16, 160)
    xu = jnp.dot(m1_ref[...], x16, preferred_element_type=jnp.float32)
    acc = _conv3x3_acc(pad_a, xu, w_up3_ref)
    x_up3 = _bias_elu(acc, b_up3_ref)                           # (H8*W8, 64)

    # --- iconv3_x8 on the stride-8 skip features.
    xs8 = xs8_ref[0].reshape(H8 * W8, C_s8)
    acc = _conv3x3_acc(pad_b, xs8, w_i3x8_ref)
    x_s8o = _bias_elu(acc, b_i3x8_ref)                          # (H8*W8, 64)

    # --- iconv3 on concat([iconv3_x8(x_s8), upconv3(x_16)], channel):
    #     concat eliminated -- weights split along Cin, two accumulations.
    acc = _conv3x3_acc(pad_c, x_s8o, w_i3a_ref)
    acc = _conv3x3_acc(pad_d, x_up3, w_i3b_ref, acc=acc)
    x3 = _bias_elu(acc, b_i3_ref)                               # (H8*W8, 64)

    # --- upconv2: bilinear x2 then conv3x3 64 -> 48.
    xu2 = jnp.dot(m2_ref[...], x3.astype(jnp.bfloat16),
                  preferred_element_type=jnp.float32)           # (H4*W4, 64)
    acc = _conv3x3_acc(pad_e, xu2, w_up2_ref)
    x_up2 = _bias_elu(acc, b_up2_ref)                           # (H4*W4, 48)

    # --- iconv2 48 -> 48.
    acc = _conv3x3_acc(pad_f, x_up2, w_i2_ref)
    x2 = _bias_elu(acc, b_i2_ref)                               # (H4*W4, 48)

    # --- conv_fine 1x1 48 -> 128: lane-dense (C=128) and the only HBM store.
    acc = jnp.dot(x2.astype(jnp.bfloat16), w_fine_ref[...],
                  preferred_element_type=jnp.float32)
    y = _bias_elu(acc, b_fine_ref)
    o_ref[...] = y.reshape(1, H4, W4, C_fine).astype(o_ref.dtype)


# --------------------------------------------------------------------------
# Host-side helpers
# --------------------------------------------------------------------------

def _interp_matrix_1d(n_in, n_out):
    """Bilinear (align_corners=True) interpolation matrix, (n_out, n_in)."""
    m = np.zeros((n_out, n_in), dtype=np.float32)
    for i in range(n_out):
        src = i * (n_in - 1) / (n_out - 1) if n_out > 1 else 0.0
        i0 = min(int(np.floor(src)), n_in - 1)
        i1 = min(i0 + 1, n_in - 1)
        f = src - i0
        m[i, i0] += 1.0 - f
        m[i, i1] += f
    return m


def _bilinear_x2_matrix(h, w):
    """(2h*2w, h*w) matrix mapping a row-major flattened map to its x2 upsample."""
    return np.kron(_interp_matrix_1d(h, 2 * h), _interp_matrix_1d(w, 2 * w))


def init_conv_bn(key, Cin, Cout, K, eps=1e-5):
    """Conv weights + BN(eval, PyTorch default stats) folded into (w, b)."""
    kw, _ = jax.random.split(key)
    fan_in = Cin * K * K
    w = jax.random.normal(kw, (K, K, Cin, Cout), jnp.float32) * (2.0 / fan_in) ** 0.5
    b = jnp.zeros((Cout,), jnp.float32)
    gamma = jnp.ones((Cout,), jnp.float32)
    beta = jnp.zeros((Cout,), jnp.float32)
    mean = jnp.zeros((Cout,), jnp.float32)
    var = jnp.ones((Cout,), jnp.float32)
    scale = gamma / jnp.sqrt(var + eps)
    w_eff = w * scale            # per-output-channel scale (last axis)
    b_eff = (b - mean) * scale + beta
    return w_eff, b_eff


# --------------------------------------------------------------------------
# EfficientUNet decoder forward (single fused pallas_call)
# --------------------------------------------------------------------------

def efficient_unet_decoder(params, x_s8, x_16):
    """x_s8: (N, H8, W8, 64) stride-8 features; x_16: (N, H8/2, W8/2, 160)."""
    N, H8, W8, C_s8 = x_s8.shape
    _, H16, W16, C_16 = x_16.shape
    H4, W4 = 2 * H8, 2 * W8

    C_up3o = params['upconv3'][0].shape[-1]      # 64
    C_i3x8o = params['iconv3_x8'][0].shape[-1]   # 64
    C_i3o = params['iconv3'][0].shape[-1]        # 64
    C_up2o = params['upconv2'][0].shape[-1]      # 48
    C_fine = params['conv_fine'][0].shape[-1]    # 128

    # Precomputed bilinear-x2 interpolation matrices (bf16 MXU operands).
    m1 = jnp.asarray(_bilinear_x2_matrix(H16, W16), jnp.bfloat16)  # (H8*W8, H16*W16)
    m2 = jnp.asarray(_bilinear_x2_matrix(H8, W8), jnp.bfloat16)    # (H4*W4, H8*W8)

    def prep(name, K):
        w, b = params[name]
        Cin, Cout = w.shape[2], w.shape[3]
        return (w.reshape(K * K, Cin, Cout).astype(jnp.bfloat16),
                b.reshape(1, Cout).astype(jnp.float32))

    w_up3, b_up3 = prep('upconv3', 3)
    w_i3x8, b_i3x8 = prep('iconv3_x8', 3)
    w_i3, b_i3 = prep('iconv3', 3)
    # concat([iconv3_x8(x_s8), upconv3(x_16)]) -> split iconv3 weights along Cin.
    w_i3a, w_i3b = w_i3[:, :C_i3x8o, :], w_i3[:, C_i3x8o:, :]
    w_up2, b_up2 = prep('upconv2', 3)
    w_i2, b_i2 = prep('iconv2', 3)
    w_fine3, b_fine = prep('conv_fine', 1)
    w_fine = w_fine3[0]                                           # (48, 128)

    # Flatten x_16 spatially host-side (avoids an in-kernel 4-sublane reshape).
    x_16f = x_16.reshape(N, H16 * W16, C_16)

    operands = [x_s8, x_16f, m1, m2,
                w_up3, b_up3, w_i3x8, b_i3x8,
                w_i3a, w_i3b, b_i3,
                w_up2, b_up2, w_i2, b_i2,
                w_fine, b_fine]

    def bspec(a):                    # batched operand: one image per grid step
        nd = a.ndim
        return pl.BlockSpec((1,) + a.shape[1:],
                            lambda n, _nd=nd: (n,) + (0,) * (_nd - 1))

    def fspec(a):                    # full (grid-invariant) operand
        nd = a.ndim
        return pl.BlockSpec(a.shape, lambda n, _nd=nd: (0,) * _nd)

    in_specs = [bspec(x_s8), bspec(x_16f)] + [fspec(a) for a in operands[2:]]

    scratch_shapes = [
        pltpu.VMEM((H8 + 2, W8 + 2, C_16), jnp.float32),    # pad_a: upsampled x_16
        pltpu.VMEM((H8 + 2, W8 + 2, C_s8), jnp.float32),    # pad_b: x_s8 skip
        pltpu.VMEM((H8 + 2, W8 + 2, C_i3x8o), jnp.float32),  # pad_c: iconv3_x8 out
        pltpu.VMEM((H8 + 2, W8 + 2, C_up3o), jnp.float32),   # pad_d: upconv3 out
        pltpu.VMEM((H4 + 2, W4 + 2, C_i3o), jnp.float32),    # pad_e: upsampled iconv3 out
        pltpu.VMEM((H4 + 2, W4 + 2, C_up2o), jnp.float32),   # pad_f: upconv2 out
    ]

    grid_spec = pltpu.PrefetchScalarGridSpec(
        num_scalar_prefetch=0,
        grid=(N,),
        in_specs=in_specs,
        out_specs=pl.BlockSpec((1, H4, W4, C_fine),
                               lambda n: (n, 0, 0, 0)),
        scratch_shapes=scratch_shapes,
    )

    return pl.pallas_call(
        _decoder_kernel,
        out_shape=jax.ShapeDtypeStruct((N, H4, W4, C_fine), jnp.float32),
        grid_spec=grid_spec,
        compiler_params=pltpu.CompilerParams(
            dimension_semantics=("parallel",)),
    )(*operands)


if __name__ == "__main__":
    key = jax.random.PRNGKey(0)
    N = 2
    H8, W8 = 8, 8                      # stride-8 feature map (64x64 input image)
    filters = [48, 64, 160]
    fine_out_ch = 128

    k_in, k_p = jax.random.split(key)
    k1, k2 = jax.random.split(k_in)
    # TODO(synk): backbone outputs synthesized (MagicPoint / efficientnet not provided).
    x_s8 = jax.random.normal(k1, (N, H8, W8, filters[1]), jnp.float32)
    x_16 = jax.random.normal(k2, (N, H8 // 2, W8 // 2, filters[2]), jnp.float32)

    keys = jax.random.split(k_p, 6)
    params = {
        'upconv3':   init_conv_bn(keys[0], filters[2], filters[1], 3),
        'iconv3_x8': init_conv_bn(keys[1], filters[1], filters[1], 3),
        'iconv3':    init_conv_bn(keys[2], filters[1] * 2, filters[1], 3),
        'upconv2':   init_conv_bn(keys[3], filters[1], filters[0], 3),
        'iconv2':    init_conv_bn(keys[4], filters[0], filters[0], 3),
        'conv_fine': init_conv_bn(keys[5], filters[0], fine_out_ch, 1),
    }

    descriptor = jax.jit(efficient_unet_decoder)(params, x_s8, x_16)
    jax.block_until_ready(descriptor)
    assert descriptor.shape == (N, 2 * H8, 2 * W8, fine_out_ch), descriptor.shape
    assert bool(jnp.isfinite(descriptor).all())
    print("KERNEL_OK")
</pallas_src>

<mosaic_0001>
module attributes {stable_mosaic.version = 11 : i64} {
  func.func @_decoder_kernel(%arg0: i32, %arg1: memref<1x8x8x64xf32, #tpu.memory_space<vmem>>, %arg2: memref<1x16x160xf32, #tpu.memory_space<vmem>>, %arg3: memref<64x16xbf16, #tpu.memory_space<vmem>>, %arg4: memref<256x64xbf16, #tpu.memory_space<vmem>>, %arg5: memref<9x160x64xbf16, #tpu.memory_space<vmem>>, %arg6: memref<1x64xf32, #tpu.memory_space<vmem>>, %arg7: memref<9x64x64xbf16, #tpu.memory_space<vmem>>, %arg8: memref<1x64xf32, #tpu.memory_space<vmem>>, %arg9: memref<9x64x64xbf16, #tpu.memory_space<vmem>>, %arg10: memref<9x64x64xbf16, #tpu.memory_space<vmem>>, %arg11: memref<1x64xf32, #tpu.memory_space<vmem>>, %arg12: memref<9x64x48xbf16, #tpu.memory_space<vmem>>, %arg13: memref<1x48xf32, #tpu.memory_space<vmem>>, %arg14: memref<9x48x48xbf16, #tpu.memory_space<vmem>>, %arg15: memref<1x48xf32, #tpu.memory_space<vmem>>, %arg16: memref<48x128xbf16, #tpu.memory_space<vmem>>, %arg17: memref<1x128xf32, #tpu.memory_space<vmem>>, %arg18: memref<1x16x16x128xf32, #tpu.memory_space<vmem>>, %arg19: memref<10x10x160xf32, #tpu.memory_space<vmem>>, %arg20: memref<10x10x64xf32, #tpu.memory_space<vmem>>, %arg21: memref<10x10x64xf32, #tpu.memory_space<vmem>>, %arg22: memref<10x10x64xf32, #tpu.memory_space<vmem>>, %arg23: memref<18x18x64xf32, #tpu.memory_space<vmem>>, %arg24: memref<18x18x48xf32, #tpu.memory_space<vmem>>) attributes {dimension_semantics = [#tpu.dimension_semantics<parallel>], iteration_bounds = array<i64: 2>, scalar_prefetch = 0 : i64, scratch_operands = 6 : i64, tpu.core_type = #tpu.core_type<tc>, window_params = [{transform_indices = @transform_0, window_bounds = array<i64: 1, 8, 8, 64>}, {transform_indices = @transform_1, window_bounds = array<i64: 1, 16, 160>}, {pipeline_mode = #tpu.pipeline_mode<synchronous>, transform_indices = @transform_2, window_bounds = array<i64: 64, 16>}, {pipeline_mode = #tpu.pipeline_mode<synchronous>, transform_indices = @transform_3, window_bounds = array<i64: 256, 64>}, {pipeline_mode = #tpu.pipeline_mode<synchronous>, transform_indices = @transform_4, window_bounds = array<i64: 9, 160, 64>}, {pipeline_mode = #tpu.pipeline_mode<synchronous>, transform_indices = @transform_5, window_bounds = array<i64: 1, 64>}, {pipeline_mode = #tpu.pipeline_mode<synchronous>, transform_indices = @transform_6, window_bounds = array<i64: 9, 64, 64>}, {pipeline_mode = #tpu.pipeline_mode<synchronous>, transform_indices = @transform_7, window_bounds = array<i64: 1, 64>}, {pipeline_mode = #tpu.pipeline_mode<synchronous>, transform_indices = @transform_8, window_bounds = array<i64: 9, 64, 64>}, {pipeline_mode = #tpu.pipeline_mode<synchronous>, transform_indices = @transform_9, window_bounds = array<i64: 9, 64, 64>}, {pipeline_mode = #tpu.pipeline_mode<synchronous>, transform_indices = @transform_10, window_bounds = array<i64: 1, 64>}, {pipeline_mode = #tpu.pipeline_mode<synchronous>, transform_indices = @transform_11, window_bounds = array<i64: 9, 64, 48>}, {pipeline_mode = #tpu.pipeline_mode<synchronous>, transform_indices = @transform_12, window_bounds = array<i64: 1, 48>}, {pipeline_mode = #tpu.pipeline_mode<synchronous>, transform_indices = @transform_13, window_bounds = array<i64: 9, 48, 48>}, {pipeline_mode = #tpu.pipeline_mode<synchronous>, transform_indices = @transform_14, window_bounds = array<i64: 1, 48>}, {pipeline_mode = #tpu.pipeline_mode<synchronous>, transform_indices = @transform_15, window_bounds = array<i64: 48, 128>}, {pipeline_mode = #tpu.pipeline_mode<synchronous>, transform_indices = @transform_16, window_bounds = array<i64: 1, 128>}, {transform_indices = @transform_17, window_bounds = array<i64: 1, 16, 16, 128>}]} {
    %c0 = arith.constant 0 : index
    %c0_0 = arith.constant 0 : index
    %c0_1 = arith.constant 0 : index
    %0 = vector.load %arg2[%c0, %c0_0, %c0_1] : memref<1x16x160xf32, #tpu.memory_space<vmem>>, vector<1x16x160xf32>
    %1 = vector.shape_cast %0 : vector<1x16x160xf32> to vector<16x160xf32>
    %2 = arith.truncf %1 : vector<16x160xf32> to vector<16x160xbf16>
    %c0_2 = arith.constant 0 : index
    %c0_3 = arith.constant 0 : index
    %3 = vector.load %arg3[%c0_2, %c0_3] : memref<64x16xbf16, #tpu.memory_space<vmem>>, vector<64x16xbf16>
    %cst = arith.constant dense<0.000000e+00> : vector<64x160xf32>
    %4 = tpu.matmul %3, %2, %cst {dimension_numbers = #tpu.dot_dimension_numbers<[1], [0], [0], [1], [0, 0, 1, 1], [], []>} : vector<64x16xbf16>, vector<16x160xbf16>, vector<64x160xf32> -> vector<64x160xf32>
    %cst_4 = arith.constant 0.000000e+00 : f32
    %5 = vector.broadcast %cst_4 : f32 to vector<10x10x160xf32>
    %c0_5 = arith.constant 0 : index
    %c0_6 = arith.constant 0 : index
    %c0_7 = arith.constant 0 : index
    %6 = vector.load %arg19[%c0_5, %c0_6, %c0_7] : memref<10x10x160xf32, #tpu.memory_space<vmem>>, vector<10x10x160xf32>
    tpu.vector_store %arg19[%c0_5, %c0_6, %c0_7], %5 {strides = array<i32>} : memref<10x10x160xf32, #tpu.memory_space<vmem>>, vector<10x10x160xf32>,
    %7 = vector.shape_cast %4 : vector<64x160xf32> to vector<8x8x160xf32>
    %c1 = arith.constant 1 : index
    %c1_8 = arith.constant 1 : index
    %c0_9 = arith.constant 0 : index
    %8 = vector.load %arg19[%c1, %c1_8, %c0_9] : memref<10x10x160xf32, #tpu.memory_space<vmem>>, vector<8x8x160xf32>
    tpu.vector_store %arg19[%c1, %c1_8, %c0_9], %7 {strides = array<i32>} : memref<10x10x160xf32, #tpu.memory_space<vmem>>, vector<8x8x160xf32>,
    %cst_10 = arith.constant 0.000000e+00 : f32
    %9 = vector.broadcast %cst_10 : f32 to vector<64x64xf32>
    %c0_11 = arith.constant 0 : index
    %c0_12 = arith.constant 0 : index
    %c0_13 = arith.constant 0 : index
    %10 = vector.load %arg19[%c0_11, %c0_12, %c0_13] : memref<10x10x160xf32, #tpu.memory_space<vmem>>, vector<8x8x160xf32>
    %11 = vector.shape_cast %10 : vector<8x8x160xf32> to vector<64x160xf32>
    %12 = arith.truncf %11 : vector<64x160xf32> to vector<64x160xbf16>
    %c0_14 = arith.constant 0 : index
    %c0_15 = arith.constant 0 : index
    %c0_16 = arith.constant 0 : index
    %13 = vector.load %arg5[%c0_14, %c0_15, %c0_16] : memref<9x160x64xbf16, #tpu.memory_space<vmem>>, vector<1x160x64xbf16>
    %14 = vector.shape_cast %13 : vector<1x160x64xbf16> to vector<160x64xbf16>
    %cst_17 = arith.constant dense<0.000000e+00> : vector<64x64xf32>
    %15 = tpu.matmul %12, %14, %cst_17 {dimension_numbers = #tpu.dot_dimension_numbers<[1], [0], [0], [1], [0, 0, 1, 1], [], []>} : vector<64x160xbf16>, vector<160x64xbf16>, vector<64x64xf32> -> vector<64x64xf32>
    %16 = arith.addf %9, %15 : vector<64x64xf32>
    %c0_18 = arith.constant 0 : index
    %c1_19 = arith.constant 1 : index
    %c0_20 = arith.constant 0 : index
    %17 = vector.load %arg19[%c0_18, %c1_19, %c0_20] : memref<10x10x160xf32, #tpu.memory_space<vmem>>, vector<8x8x160xf32>
    %18 = vector.shape_cast %17 : vector<8x8x160xf32> to vector<64x160xf32>
    %19 = arith.truncf %18 : vector<64x160xf32> to vector<64x160xbf16>
    %c1_21 = arith.constant 1 : index
    %c0_22 = arith.constant 0 : index
    %c0_23 = arith.constant 0 : index
    %20 = vector.load %arg5[%c1_21, %c0_22, %c0_23] : memref<9x160x64xbf16, #tpu.memory_space<vmem>>, vector<1x160x64xbf16>
    %21 = vector.shape_cast %20 : vector<1x160x64xbf16> to vector<160x64xbf16>
    %cst_24 = arith.constant dense<0.000000e+00> : vector<64x64xf32>
    %22 = tpu.matmul %19, %21, %cst_24 {dimension_numbers = #tpu.dot_dimension_numbers<[1], [0], [0], [1], [0, 0, 1, 1], [], []>} : vector<64x160xbf16>, vector<160x64xbf16>, vector<64x64xf32> -> vector<64x64xf32>
    %23 = arith.addf %16, %22 : vector<64x64xf32>
    %c0_25 = arith.constant 0 : index
    %c2 = arith.constant 2 : index
    %c0_26 = arith.constant 0 : index
    %24 = vector.load %arg19[%c0_25, %c2, %c0_26] : memref<10x10x160xf32, #tpu.memory_space<vmem>>, vector<8x8x160xf32>
    %25 = vector.shape_cast %24 : vector<8x8x160xf32> to vector<64x160xf32>
    %26 = arith.truncf %25 : vector<64x160xf32> to vector<64x160xbf16>
    %c2_27 = arith.constant 2 : index
    %c0_28 = arith.constant 0 : index
    %c0_29 = arith.constant 0 : index
    %27 = vector.load %arg5[%c2_27, %c0_28, %c0_29] : memref<9x160x64xbf16, #tpu.memory_space<vmem>>, vector<1x160x64xbf16>
    %28 = vector.shape_cast %27 : vector<1x160x64xbf16> to vector<160x64xbf16>
    %cst_30 = arith.constant dense<0.000000e+00> : vector<64x64xf32>
    %29 = tpu.matmul %26, %28, %cst_30 {dimension_numbers = #tpu.dot_dimension_numbers<[1], [0], [0], [1], [0, 0, 1, 1], [], []>} : vector<64x160xbf16>, vector<160x64xbf16>, vector<64x64xf32> -> vector<64x64xf32>
    %30 = arith.addf %23, %29 : vector<64x64xf32>
    %c1_31 = arith.constant 1 : index
    %c0_32 = arith.constant 0 : index
    %c0_33 = arith.constant 0 : index
    %31 = vector.load %arg19[%c1_31, %c0_32, %c0_33] : memref<10x10x160xf32, #tpu.memory_space<vmem>>, vector<8x8x160xf32>
    %32 = vector.shape_cast %31 : vector<8x8x160xf32> to vector<64x160xf32>
    %33 = arith.truncf %32 : vector<64x160xf32> to vector<64x160xbf16>
    %c3 = arith.constant 3 : index
    %c0_34 = arith.constant 0 : index
    %c0_35 = arith.constant 0 : index
    %34 = vector.load %arg5[%c3, %c0_34, %c0_35] : memref<9x160x64xbf16, #tpu.memory_space<vmem>>, vector<1x160x64xbf16>
    %35 = vector.shape_cast %34 : vector<1x160x64xbf16> to vector<160x64xbf16>
    %cst_36 = arith.constant dense<0.000000e+00> : vector<64x64xf32>
    %36 = tpu.matmul %33, %35, %cst_36 {dimension_numbers = #tpu.dot_dimension_numbers<[1], [0], [0], [1], [0, 0, 1, 1], [], []>} : vector<64x160xbf16>, vector<160x64xbf16>, vector<64x64xf32> -> vector<64x64xf32>
    %37 = arith.addf %30, %36 : vector<64x64xf32>
    %c1_37 = arith.constant 1 : index
    %c1_38 = arith.constant 1 : index
    %c0_39 = arith.constant 0 : index
    %38 = vector.load %arg19[%c1_37, %c1_38, %c0_39] : memref<10x10x160xf32, #tpu.memory_space<vmem>>, vector<8x8x160xf32>
    %39 = vector.shape_cast %38 : vector<8x8x160xf32> to vector<64x160xf32>
    %40 = arith.truncf %39 : vector<64x160xf32> to vector<64x160xbf16>
    %c4 = arith.constant 4 : index
    %c0_40 = arith.constant 0 : index
    %c0_41 = arith.constant 0 : index
    %41 = vector.load %arg5[%c4, %c0_40, %c0_41] : memref<9x160x64xbf16, #tpu.memory_space<vmem>>, vector<1x160x64xbf16>
    %42 = vector.shape_cast %41 : vector<1x160x64xbf16> to vector<160x64xbf16>
    %cst_42 = arith.constant dense<0.000000e+00> : vector<64x64xf32>
    %43 = tpu.matmul %40, %42, %cst_42 {dimension_numbers = #tpu.dot_dimension_numbers<[1], [0], [0], [1], [0, 0, 1, 1], [], []>} : vector<64x160xbf16>, vector<160x64xbf16>, vector<64x64xf32> -> vector<64x64xf32>
    %44 = arith.addf %37, %43 : vector<64x64xf32>
    %c1_43 = arith.constant 1 : index
    %c2_44 = arith.constant 2 : index
    %c0_45 = arith.constant 0 : index
    %45 = vector.load %arg19[%c1_43, %c2_44, %c0_45] : memref<10x10x160xf32, #tpu.memory_space<vmem>>, vector<8x8x160xf32>
    %46 = vector.shape_cast %45 : vector<8x8x160xf32> to vector<64x160xf32>
    %47 = arith.truncf %46 : vector<64x160xf32> to vector<64x160xbf16>
    %c5 = arith.constant 5 : index
    %c0_46 = arith.constant 0 : index
    %c0_47 = arith.constant 0 : index
    %48 = vector.load %arg5[%c5, %c0_46, %c0_47] : memref<9x160x64xbf16, #tpu.memory_space<vmem>>, vector<1x160x64xbf16>
    %49 = vector.shape_cast %48 : vector<1x160x64xbf16> to vector<160x64xbf16>
    %cst_48 = arith.constant dense<0.000000e+00> : vector<64x64xf32>
    %50 = tpu.matmul %47, %49, %cst_48 {dimension_numbers = #tpu.dot_dimension_numbers<[1], [0], [0], [1], [0, 0, 1, 1], [], []>} : vector<64x160xbf16>, vector<160x64xbf16>, vector<64x64xf32> -> vector<64x64xf32>
    %51 = arith.addf %44, %50 : vector<64x64xf32>
    %c2_49 = arith.constant 2 : index
    %c0_50 = arith.constant 0 : index
    %c0_51 = arith.constant 0 : index
    %52 = vector.load %arg19[%c2_49, %c0_50, %c0_51] : memref<10x10x160xf32, #tpu.memory_space<vmem>>, vector<8x8x160xf32>
    %53 = vector.shape_cast %52 : vector<8x8x160xf32> to vector<64x160xf32>
    %54 = arith.truncf %53 : vector<64x160xf32> to vector<64x160xbf16>
    %c6 = arith.constant 6 : index
    %c0_52 = arith.constant 0 : index
    %c0_53 = arith.constant 0 : index
    %55 = vector.load %arg5[%c6, %c0_52, %c0_53] : memref<9x160x64xbf16, #tpu.memory_space<vmem>>, vector<1x160x64xbf16>
    %56 = vector.shape_cast %55 : vector<1x160x64xbf16> to vector<160x64xbf16>
    %cst_54 = arith.constant dense<0.000000e+00> : vector<64x64xf32>
    %57 = tpu.matmul %54, %56, %cst_54 {dimension_numbers = #tpu.dot_dimension_numbers<[1], [0], [0], [1], [0, 0, 1, 1], [], []>} : vector<64x160xbf16>, vector<160x64xbf16>, vector<64x64xf32> -> vector<64x64xf32>
    %58 = arith.addf %51, %57 : vector<64x64xf32>
    %c2_55 = arith.constant 2 : index
    %c1_56 = arith.constant 1 : index
    %c0_57 = arith.constant 0 : index
    %59 = vector.load %arg19[%c2_55, %c1_56, %c0_57] : memref<10x10x160xf32, #tpu.memory_space<vmem>>, vector<8x8x160xf32>
    %60 = vector.shape_cast %59 : vector<8x8x160xf32> to vector<64x160xf32>
    %61 = arith.truncf %60 : vector<64x160xf32> to vector<64x160xbf16>
    %c7 = arith.constant 7 : index
    %c0_58 = arith.constant 0 : index
    %c0_59 = arith.constant 0 : index
    %62 = vector.load %arg5[%c7, %c0_58, %c0_59] : memref<9x160x64xbf16, #tpu.memory_space<vmem>>, vector<1x160x64xbf16>
    %63 = vector.shape_cast %62 : vector<1x160x64xbf16> to vector<160x64xbf16>
    %cst_60 = arith.constant dense<0.000000e+00> : vector<64x64xf32>
    %64 = tpu.matmul %61, %63, %cst_60 {dimension_numbers = #tpu.dot_dimension_numbers<[1], [0], [0], [1], [0, 0, 1, 1], [], []>} : vector<64x160xbf16>, vector<160x64xbf16>, vector<64x64xf32> -> vector<64x64xf32>
    %65 = arith.addf %58, %64 : vector<64x64xf32>
    %c2_61 = arith.constant 2 : index
    %c2_62 = arith.constant 2 : index
    %c0_63 = arith.constant 0 : index
    %66 = vector.load %arg19[%c2_61, %c2_62, %c0_63] : memref<10x10x160xf32, #tpu.memory_space<vmem>>, vector<8x8x160xf32>
    %67 = vector.shape_cast %66 : vector<8x8x160xf32> to vector<64x160xf32>
    %68 = arith.truncf %67 : vector<64x160xf32> to vector<64x160xbf16>
    %c8 = arith.constant 8 : index
    %c0_64 = arith.constant 0 : index
    %c0_65 = arith.constant 0 : index
    %69 = vector.load %arg5[%c8, %c0_64, %c0_65] : memref<9x160x64xbf16, #tpu.memory_space<vmem>>, vector<1x160x64xbf16>
    %70 = vector.shape_cast %69 : vector<1x160x64xbf16> to vector<160x64xbf16>
    %cst_66 = arith.constant dense<0.000000e+00> : vector<64x64xf32>
    %71 = tpu.matmul %68, %70, %cst_66 {dimension_numbers = #tpu.dot_dimension_numbers<[1], [0], [0], [1], [0, 0, 1, 1], [], []>} : vector<64x160xbf16>, vector<160x64xbf16>, vector<64x64xf32> -> vector<64x64xf32>
    %72 = arith.addf %65, %71 : vector<64x64xf32>
    %c0_67 = arith.constant 0 : index
    %c0_68 = arith.constant 0 : index
    %73 = vector.load %arg6[%c0_67, %c0_68] : memref<1x64xf32, #tpu.memory_space<vmem>>, vector<1x64xf32>
    %74 = vector.broadcast %73 : vector<1x64xf32> to vector<64x64xf32>
    %75 = arith.addf %72, %74 : vector<64x64xf32>
    %cst_69 = arith.constant 0.000000e+00 : f32
    %76 = vector.broadcast %cst_69 : f32 to vector<64x64xf32>
    %77 = arith.cmpf ogt, %75, %76 : vector<64x64xf32>
    %cst_70 = arith.constant 0.000000e+00 : f32
    %78 = vector.broadcast %cst_70 : f32 to vector<64x64xf32>
    %79 = arith.minimumf %75, %78 : vector<64x64xf32>
    %80 = math.exp %79 : vector<64x64xf32>
    %cst_71 = arith.constant 1.000000e+00 : f32
    %81 = vector.broadcast %cst_71 : f32 to vector<64x64xf32>
    %82 = arith.subf %80, %81 : vector<64x64xf32>
    %83 = arith.select %77, %75, %82 : vector<64x64xi1>, vector<64x64xf32>
    %c0_72 = arith.constant 0 : index
    %c0_73 = arith.constant 0 : index
    %c0_74 = arith.constant 0 : index
    %c0_75 = arith.constant 0 : index
    %84 = vector.load %arg1[%c0_72, %c0_73, %c0_74, %c0_75] : memref<1x8x8x64xf32, #tpu.memory_space<vmem>>, vector<1x8x8x64xf32>
    %85 = vector.shape_cast %84 : vector<1x8x8x64xf32> to vector<8x8x64xf32>
    %86 = vector.shape_cast %85 : vector<8x8x64xf32> to vector<64x64xf32>
    %cst_76 = arith.constant 0.000000e+00 : f32
    %87 = vector.broadcast %cst_76 : f32 to vector<10x10x64xf32>
    %c0_77 = arith.constant 0 : index
    %c0_78 = arith.constant 0 : index
    %c0_79 = arith.constant 0 : index
    %88 = vector.load %arg20[%c0_77, %c0_78, %c0_79] : memref<10x10x64xf32, #tpu.memory_space<vmem>>, vector<10x10x64xf32>
    tpu.vector_store %arg20[%c0_77, %c0_78, %c0_79], %87 {strides = array<i32>} : memref<10x10x64xf32, #tpu.memory_space<vmem>>, vector<10x10x64xf32>,
    %89 = vector.shape_cast %86 : vector<64x64xf32> to vector<8x8x64xf32>
    %c1_80 = arith.constant 1 : index
    %c1_81 = arith.constant 1 : index
    %c0_82 = arith.constant 0 : index
    %90 = vector.load %arg20[%c1_80, %c1_81, %c0_82] : memref<10x10x64xf32, #tpu.memory_space<vmem>>, vector<8x8x64xf32>
    tpu.vector_store %arg20[%c1_80, %c1_81, %c0_82], %89 {strides = array<i32>} : memref<10x10x64xf32, #tpu.memory_space<vmem>>, vector<8x8x64xf32>,
    %cst_83 = arith.constant 0.000000e+00 : f32
    %91 = vector.broadcast %cst_83 : f32 to vector<64x64xf32>
    %c0_84 = arith.constant 0 : index
    %c0_85 = arith.constant 0 : index
    %c0_86 = arith.constant 0 : index
    %92 = vector.load %arg20[%c0_84, %c0_85, %c0_86] : memref<10x10x64xf32, #tpu.memory_space<vmem>>, vector<8x8x64xf32>
    %93 = vector.shape_cast %92 : vector<8x8x64xf32> to vector<64x64xf32>
    %94 = arith.truncf %93 : vector<64x64xf32> to vector<64x64xbf16>
    %c0_87 = arith.constant 0 : index
    %c0_88 = arith.constant 0 : index
    %c0_89 = arith.constant 0 : index
    %95 = vector.load %arg7[%c0_87, %c0_88, %c0_89] : memref<9x64x64xbf16, #tpu.memory_space<vmem>>, vector<1x64x64xbf16>
    %96 = vector.shape_cast %95 : vector<1x64x64xbf16> to vector<64x64xbf16>
    %cst_90 = arith.constant dense<0.000000e+00> : vector<64x64xf32>
    %97 = tpu.matmul %94, %96, %cst_90 {dimension_numbers = #tpu.dot_dimension_numbers<[1], [0], [0], [1], [0, 0, 1, 1], [], []>} : vector<64x64xbf16>, vector<64x64xbf16>, vector<64x64xf32> -> vector<64x64xf32>
    %98 = arith.addf %91, %97 : vector<64x64xf32>
    %c0_91 = arith.constant 0 : index
    %c1_92 = arith.constant 1 : index
    %c0_93 = arith.constant 0 : index
    %99 = vector.load %arg20[%c0_91, %c1_92, %c0_93] : memref<10x10x64xf32, #tpu.memory_space<vmem>>, vector<8x8x64xf32>
    %100 = vector.shape_cast %99 : vector<8x8x64xf32> to vector<64x64xf32>
    %101 = arith.truncf %100 : vector<64x64xf32> to vector<64x64xbf16>
    %c1_94 = arith.constant 1 : index
    %c0_95 = arith.constant 0 : index
    %c0_96 = arith.constant 0 : index
    %102 = vector.load %arg7[%c1_94, %c0_95, %c0_96] : memref<9x64x64xbf16, #tpu.memory_space<vmem>>, vector<1x64x64xbf16>
    %103 = vector.shape_cast %102 : vector<1x64x64xbf16> to vector<64x64xbf16>
    %cst_97 = arith.constant dense<0.000000e+00> : vector<64x64xf32>
    %104 = tpu.matmul %101, %103, %cst_97 {dimension_numbers = #tpu.dot_dimension_numbers<[1], [0], [0], [1], [0, 0, 1, 1], [], []>} : vector<64x64xbf16>, vector<64x64xbf16>, vector<64x64xf32> -> vector<64x64xf32>
    %105 = arith.addf %98, %104 : vector<64x64xf32>
    %c0_98 = arith.constant 0 : index
    %c2_99 = arith.constant 2 : index
    %c0_100 = arith.constant 0 : index
    %106 = vector.load %arg20[%c0_98, %c2_99, %c0_100] : memref<10x10x64xf32, #tpu.memory_space<vmem>>, vector<8x8x64xf32>
    %107 = vector.shape_cast %106 : vector<8x8x64xf32> to vector<64x64xf32>
    %108 = arith.truncf %107 : vector<64x64xf32> to vector<64x64xbf16>
    %c2_101 = arith.constant 2 : index
    %c0_102 = arith.constant 0 : index
    %c0_103 = arith.constant 0 : index
    %109 = vector.load %arg7[%c2_101, %c0_102, %c0_103] : memref<9x64x64xbf16, #tpu.memory_space<vmem>>, vector<1x64x64xbf16>
    %110 = vector.shape_cast %109 : vector<1x64x64xbf16> to vector<64x64xbf16>
    %cst_104 = arith.constant dense<0.000000e+00> : vector<64x64xf32>
    %111 = tpu.matmul %108, %110, %cst_104 {dimension_numbers = #tpu.dot_dimension_numbers<[1], [0], [0], [1], [0, 0, 1, 1], [], []>} : vector<64x64xbf16>, vector<64x64xbf16>, vector<64x64xf32> -> vector<64x64xf32>
    %112 = arith.addf %105, %111 : vector<64x64xf32>
    %c1_105 = arith.constant 1 : index
    %c0_106 = arith.constant 0 : index
    %c0_107 = arith.constant 0 : index
    %113 = vector.load %arg20[%c1_105, %c0_106, %c0_107] : memref<10x10x64xf32, #tpu.memory_space<vmem>>, vector<8x8x64xf32>
    %114 = vector.shape_cast %113 : vector<8x8x64xf32> to vector<64x64xf32>
    %115 = arith.truncf %114 : vector<64x64xf32> to vector<64x64xbf16>
    %c3_108 = arith.constant 3 : index
    %c0_109 = arith.constant 0 : index
    %c0_110 = arith.constant 0 : index
    %116 = vector.load %arg7[%c3_108, %c0_109, %c0_110] : memref<9x64x64xbf16, #tpu.memory_space<vmem>>, vector<1x64x64xbf16>
    %117 = vector.shape_cast %116 : vector<1x64x64xbf16> to vector<64x64xbf16>
    %cst_111 = arith.constant dense<0.000000e+00> : vector<64x64xf32>
    %118 = tpu.matmul %115, %117, %cst_111 {dimension_numbers = #tpu.dot_dimension_numbers<[1], [0], [0], [1], [0, 0, 1, 1], [], []>} : vector<64x64xbf16>, vector<64x64xbf16>, vector<64x64xf32> -> vector<64x64xf32>
    %119 = arith.addf %112, %118 : vector<64x64xf32>
    %c1_112 = arith.constant 1 : index
    %c1_113 = arith.constant 1 : index
    %c0_114 = arith.constant 0 : index
    %120 = vector.load %arg20[%c1_112, %c1_113, %c0_114] : memref<10x10x64xf32, #tpu.memory_space<vmem>>, vector<8x8x64xf32>
    %121 = vector.shape_cast %120 : vector<8x8x64xf32> to vector<64x64xf32>
    %122 = arith.truncf %121 : vector<64x64xf32> to vector<64x64xbf16>
    %c4_115 = arith.constant 4 : index
    %c0_116 = arith.constant 0 : index
    %c0_117 = arith.constant 0 : index
    %123 = vector.load %arg7[%c4_115, %c0_116, %c0_117] : memref<9x64x64xbf16, #tpu.memory_space<vmem>>, vector<1x64x64xbf16>
    %124 = vector.shape_cast %123 : vector<1x64x64xbf16> to vector<64x64xbf16>
    %cst_118 = arith.constant dense<0.000000e+00> : vector<64x64xf32>
    %125 = tpu.matmul %122, %124, %cst_118 {dimension_numbers = #tpu.dot_dimension_numbers<[1], [0], [0], [1], [0, 0, 1, 1], [], []>} : vector<64x64xbf16>, vector<64x64xbf16>, vector<64x64xf32> -> vector<64x64xf32>
    %126 = arith.addf %119, %125 : vector<64x64xf32>
    %c1_119 = arith.constant 1 : index
    %c2_120 = arith.constant 2 : index
    %c0_121 = arith.constant 0 : index
    %127 = vector.load %arg20[%c1_119, %c2_120, %c0_121] : memref<10x10x64xf32, #tpu.memory_space<vmem>>, vector<8x8x64xf32>
    %128 = vector.shape_cast %127 : vector<8x8x64xf32> to vector<64x64xf32>
    %129 = arith.truncf %128 : vector<64x64xf32> to vector<64x64xbf16>
    %c5_122 = arith.constant 5 : index
    %c0_123 = arith.constant 0 : index
    %c0_124 = arith.constant 0 : index
    %130 = vector.load %arg7[%c5_122, %c0_123, %c0_124] : memref<9x64x64xbf16, #tpu.memory_space<vmem>>, vector<1x64x64xbf16>
    %131 = vector.shape_cast %130 : vector<1x64x64xbf16> to vector<64x64xbf16>
    %cst_125 = arith.constant dense<0.000000e+00> : vector<64x64xf32>
    %132 = tpu.matmul %129, %131, %cst_125 {dimension_numbers = #tpu.dot_dimension_numbers<[1], [0], [0], [1], [0, 0, 1, 1], [], []>} : vector<64x64xbf16>, vector<64x64xbf16>, vector<64x64xf32> -> vector<64x64xf32>
    %133 = arith.addf %126, %132 : vector<64x64xf32>
    %c2_126 = arith.constant 2 : index
    %c0_127 = arith.constant 0 : index
    %c0_128 = arith.constant 0 : index
    %134 = vector.load %arg20[%c2_126, %c0_127, %c0_128] : memref<10x10x64xf32, #tpu.memory_space<vmem>>, vector<8x8x64xf32>
    %135 = vector.shape_cast %134 : vector<8x8x64xf32> to vector<64x64xf32>
    %136 = arith.truncf %135 : vector<64x64xf32> to vector<64x64xbf16>
    %c6_129 = arith.constant 6 : index
    %c0_130 = arith.constant 0 : index
    %c0_131 = arith.constant 0 : index
    %137 = vector.load %arg7[%c6_129, %c0_130, %c0_131] : memref<9x64x64xbf16, #tpu.memory_space<vmem>>, vector<1x64x64xbf16>
    %138 = vector.shape_cast %137 : vector<1x64x64xbf16> to vector<64x64xbf16>
    %cst_132 = arith.constant dense<0.000000e+00> : vector<64x64xf32>
    %139 = tpu.matmul %136, %138, %cst_132 {dimension_numbers = #tpu.dot_dimension_numbers<[1], [0], [0], [1], [0, 0, 1, 1], [], []>} : vector<64x64xbf16>, vector<64x64xbf16>, vector<64x64xf32> -> vector<64x64xf32>
    %140 = arith.addf %133, %139 : vector<64x64xf32>
    %c2_133 = arith.constant 2 : index
    %c1_134 = arith.constant 1 : index
    %c0_135 = arith.constant 0 : index
    %141 = vector.load %arg20[%c2_133, %c1_134, %c0_135] : memref<10x10x64xf32, #tpu.memory_space<vmem>>, vector<8x8x64xf32>
    %142 = vector.shape_cast %141 : vector<8x8x64xf32> to vector<64x64xf32>
    %143 = arith.truncf %142 : vector<64x64xf32> to vector<64x64xbf16>
    %c7_136 = arith.constant 7 : index
    %c0_137 = arith.constant 0 : index
    %c0_138 = arith.constant 0 : index
    %144 = vector.load %arg7[%c7_136, %c0_137, %c0_138] : memref<9x64x64xbf16, #tpu.memory_space<vmem>>, vector<1x64x64xbf16>
    %145 = vector.shape_cast %144 : vector<1x64x64xbf16> to vector<64x64xbf16>
    %cst_139 = arith.constant dense<0.000000e+00> : vector<64x64xf32>
    %146 = tpu.matmul %143, %145, %cst_139 {dimension_numbers = #tpu.dot_dimension_numbers<[1], [0], [0], [1], [0, 0, 1, 1], [], []>} : vector<64x64xbf16>, vector<64x64xbf16>, vector<64x64xf32> -> vector<64x64xf32>
    %147 = arith.addf %140, %146 : vector<64x64xf32>
    %c2_140 = arith.constant 2 : index
    %c2_141 = arith.constant 2 : index
    %c0_142 = arith.constant 0 : index
    %148 = vector.load %arg20[%c2_140, %c2_141, %c0_142] : memref<10x10x64xf32, #tpu.memory_space<vmem>>, vector<8x8x64xf32>
    %149 = vector.shape_cast %148 : vector<8x8x64xf32> to vector<64x64xf32>
    %150 = arith.truncf %149 : vector<64x64xf32> to vector<64x64xbf16>
    %c8_143 = arith.constant 8 : index
    %c0_144 = arith.constant 0 : index
    %c0_145 = arith.constant 0 : index
    %151 = vector.load %arg7[%c8_143, %c0_144, %c0_145] : memref<9x64x64xbf16, #tpu.memory_space<vmem>>, vector<1x64x64xbf16>
    %152 = vector.shape_cast %151 : vector<1x64x64xbf16> to vector<64x64xbf16>
    %cst_146 = arith.constant dense<0.000000e+00> : vector<64x64xf32>
    %153 = tpu.matmul %150, %152, %cst_146 {dimension_numbers = #tpu.dot_dimension_numbers<[1], [0], [0], [1], [0, 0, 1, 1], [], []>} : vector<64x64xbf16>, vector<64x64xbf16>, vector<64x64xf32> -> vector<64x64xf32>
    %154 = arith.addf %147, %153 : vector<64x64xf32>
    %c0_147 = arith.constant 0 : index
    %c0_148 = arith.constant 0 : index
    %155 = vector.load %arg8[%c0_147, %c0_148] : memref<1x64xf32, #tpu.memory_space<vmem>>, vector<1x64xf32>
    %156 = vector.broadcast %155 : vector<1x64xf32> to vector<64x64xf32>
    %157 = arith.addf %154, %156 : vector<64x64xf32>
    %cst_149 = arith.constant 0.000000e+00 : f32
    %158 = vector.broadcast %cst_149 : f32 to vector<64x64xf32>
    %159 = arith.cmpf ogt, %157, %158 : vector<64x64xf32>
    %cst_150 = arith.constant 0.000000e+00 : f32
    %160 = vector.broadcast %cst_150 : f32 to vector<64x64xf32>
    %161 = arith.minimumf %157, %160 : vector<64x64xf32>
    %162 = math.exp %161 : vector<64x64xf32>
    %cst_151 = arith.constant 1.000000e+00 : f32
    %163 = vector.broadcast %cst_151 : f32 to vector<64x64xf32>
    %164 = arith.subf %162, %163 : vector<64x64xf32>
    %165 = arith.select %159, %157, %164 : vector<64x64xi1>, vector<64x64xf32>
    %cst_152 = arith.constant 0.000000e+00 : f32
    %166 = vector.broadcast %cst_152 : f32 to vector<10x10x64xf32>
    %c0_153 = arith.constant 0 : index
    %c0_154 = arith.constant 0 : index
    %c0_155 = arith.constant 0 : index
    %167 = vector.load %arg21[%c0_153, %c0_154, %c0_155] : memref<10x10x64xf32, #tpu.memory_space<vmem>>, vector<10x10x64xf32>
    tpu.vector_store %arg21[%c0_153, %c0_154, %c0_155], %166 {strides = array<i32>} : memref<10x10x64xf32, #tpu.memory_space<vmem>>, vector<10x10x64xf32>,
    %168 = vector.shape_cast %165 : vector<64x64xf32> to vector<8x8x64xf32>
    %c1_156 = arith.constant 1 : index
    %c1_157 = arith.constant 1 : index
    %c0_158 = arith.constant 0 : index
    %169 = vector.load %arg21[%c1_156, %c1_157, %c0_158] : memref<10x10x64xf32, #tpu.memory_space<vmem>>, vector<8x8x64xf32>
    tpu.vector_store %arg21[%c1_156, %c1_157, %c0_158], %168 {strides = array<i32>} : memref<10x10x64xf32, #tpu.memory_space<vmem>>, vector<8x8x64xf32>,
    %cst_159 = arith.constant 0.000000e+00 : f32
    %170 = vector.broadcast %cst_159 : f32 to vector<64x64xf32>
    %c0_160 = arith.constant 0 : index
    %c0_161 = arith.constant 0 : index
    %c0_162 = arith.constant 0 : index
    %171 = vector.load %arg21[%c0_160, %c0_161, %c0_162] : memref<10x10x64xf32, #tpu.memory_space<vmem>>, vector<8x8x64xf32>
    %172 = vector.shape_cast %171 : vector<8x8x64xf32> to vector<64x64xf32>
    %173 = arith.truncf %172 : vector<64x64xf32> to vector<64x64xbf16>
    %c0_163 = arith.constant 0 : index
    %c0_164 = arith.constant 0 : index
    %c0_165 = arith.constant 0 : index
    %174 = vector.load %arg9[%c0_163, %c0_164, %c0_165] : memref<9x64x64xbf16, #tpu.memory_space<vmem>>, vector<1x64x64xbf16>
    %175 = vector.shape_cast %174 : vector<1x64x64xbf16> to vector<64x64xbf16>
    %cst_166 = arith.constant dense<0.000000e+00> : vector<64x64xf32>
    %176 = tpu.matmul %173, %175, %cst_166 {dimension_numbers = #tpu.dot_dimension_numbers<[1], [0], [0], [1], [0, 0, 1, 1], [], []>} : vector<64x64xbf16>, vector<64x64xbf16>, vector<64x64xf32> -> vector<64x64xf32>
    %177 = arith.addf %170, %176 : vector<64x64xf32>
    %c0_167 = arith.constant 0 : index
    %c1_168 = arith.constant 1 : index
    %c0_169 = arith.constant 0 : index
    %178 = vector.load %arg21[%c0_167, %c1_168, %c0_169] : memref<10x10x64xf32, #tpu.memory_space<vmem>>, vector<8x8x64xf32>
    %179 = vector.shape_cast %178 : vector<8x8x64xf32> to vector<64x64xf32>
    %180 = arith.truncf %179 : vector<64x64xf32> to vector<64x64xbf16>
    %c1_170 = arith.constant 1 : index
    %c0_171 = arith.constant 0 : index
    %c0_172 = arith.constant 0 : index
    %181 = vector.load %arg9[%c1_170, %c0_171, %c0_172] : memref<9x64x64xbf16, #tpu.memory_space<vmem>>, vector<1x64x64xbf16>
    %182 = vector.shape_cast %181 : vector<1x64x64xbf16> to vector<64x64xbf16>
    %cst_173 = arith.constant dense<0.000000e+00> : vector<64x64xf32>
    %183 = tpu.matmul %180, %182, %cst_173 {dimension_numbers = #tpu.dot_dimension_numbers<[1], [0], [0], [1], [0, 0, 1, 1], [], []>} : vector<64x64xbf16>, vector<64x64xbf16>, vector<64x64xf32> -> vector<64x64xf32>
    %184 = arith.addf %177, %183 : vector<64x64xf32>
    %c0_174 = arith.constant 0 : index
    %c2_175 = arith.constant 2 : index
    %c0_176 = arith.constant 0 : index
    %185 = vector.load %arg21[%c0_174, %c2_175, %c0_176] : memref<10x10x64xf32, #tpu.memory_space<vmem>>, vector<8x8x64xf32>
    %186 = vector.shape_cast %185 : vector<8x8x64xf32> to vector<64x64xf32>
    %187 = arith.truncf %186 : vector<64x64xf32> to vector<64x64xbf16>
    %c2_177 = arith.constant 2 : index
    %c0_178 = arith.constant 0 : index
    %c0_179 = arith.constant 0 : index
    %188 = vector.load %arg9[%c2_177, %c0_178, %c0_179] : memref<9x64x64xbf16, #tpu.memory_space<vmem>>, vector<1x64x64xbf16>
    %189 = vector.shape_cast %188 : vector<1x64x64xbf16> to vector<64x64xbf16>
    %cst_180 = arith.constant dense<0.000000e+00> : vector<64x64xf32>
    %190 = tpu.matmul %187, %189, %cst_180 {dimension_numbers = #tpu.dot_dimension_numbers<[1], [0], [0], [1], [0, 0, 1, 1], [], []>} : vector<64x64xbf16>, vector<64x64xbf16>, vector<64x64xf32> -> vector<64x64xf32>
    %191 = arith.addf %184, %190 : vector<64x64xf32>
    %c1_181 = arith.constant 1 : index
    %c0_182 = arith.constant 0 : index
    %c0_183 = arith.constant 0 : index
    %192 = vector.load %arg21[%c1_181, %c0_182, %c0_183] : memref<10x10x64xf32, #tpu.memory_space<vmem>>, vector<8x8x64xf32>
    %193 = vector.shape_cast %192 : vector<8x8x64xf32> to vector<64x64xf32>
    %194 = arith.truncf %193 : vector<64x64xf32> to vector<64x64xbf16>
    %c3_184 = arith.constant 3 : index
    %c0_185 = arith.constant 0 : index
    %c0_186 = arith.constant 0 : index
    %195 = vector.load %arg9[%c3_184, %c0_185, %c0_186] : memref<9x64x64xbf16, #tpu.memory_space<vmem>>, vector<1x64x64xbf16>
    %196 = vector.shape_cast %195 : vector<1x64x64xbf16> to vector<64x64xbf16>
    %cst_187 = arith.constant dense<0.000000e+00> : vector<64x64xf32>
    %197 = tpu.matmul %194, %196, %cst_187 {dimension_numbers = #tpu.dot_dimension_numbers<[1], [0], [0], [1], [0, 0, 1, 1], [], []>} : vector<64x64xbf16>, vector<64x64xbf16>, vector<64x64xf32> -> vector<64x64xf32>
    %198 = arith.addf %191, %197 : vector<64x64xf32>
    %c1_188 = arith.constant 1 : index
    %c1_189 = arith.constant 1 : index
    %c0_190 = arith.constant 0 : index
    %199 = vector.load %arg21[%c1_188, %c1_189, %c0_190] : memref<10x10x64xf32, #tpu.memory_space<vmem>>, vector<8x8x64xf32>
    %200 = vector.shape_cast %199 : vector<8x8x64xf32> to vector<64x64xf32>
    %201 = arith.truncf %200 : vector<64x64xf32> to vector<64x64xbf16>
    %c4_191 = arith.constant 4 : index
    %c0_192 = arith.constant 0 : index
    %c0_193 = arith.constant 0 : index
    %202 = vector.load %arg9[%c4_191, %c0_192, %c0_193] : memref<9x64x64xbf16, #tpu.memory_space<vmem>>, vector<1x64x64xbf16>
    %203 = vector.shape_cast %202 : vector<1x64x64xbf16> to vector<64x64xbf16>
    %cst_194 = arith.constant dense<0.000000e+00> : vector<64x64xf32>
    %204 = tpu.matmul %201, %203, %cst_194 {dimension_numbers = #tpu.dot_dimension_numbers<[1], [0], [0], [1], [0, 0, 1, 1], [], []>} : vector<64x64xbf16>, vector<64x64xbf16>, vector<64x64xf32> -> vector<64x64xf32>
    %205 = arith.addf %198, %204 : vector<64x64xf32>
    %c1_195 = arith.constant 1 : index
    %c2_196 = arith.constant 2 : index
    %c0_197 = arith.constant 0 : index
    %206 = vector.load %arg21[%c1_195, %c2_196, %c0_197] : memref<10x10x64xf32, #tpu.memory_space<vmem>>, vector<8x8x64xf32>
    %207 = vector.shape_cast %206 : vector<8x8x64xf32> to vector<64x64xf32>
    %208 = arith.truncf %207 : vector<64x64xf32> to vector<64x64xbf16>
    %c5_198 = arith.constant 5 : index
    %c0_199 = arith.constant 0 : index
    %c0_200 = arith.constant 0 : index
    %209 = vector.load %arg9[%c5_198, %c0_199, %c0_200] : memref<9x64x64xbf16, #tpu.memory_space<vmem>>, vector<1x64x64xbf16>
    %210 = vector.shape_cast %209 : vector<1x64x64xbf16> to vector<64x64xbf16>
    %cst_201 = arith.constant dense<0.000000e+00> : vector<64x64xf32>
    %211 = tpu.matmul %208, %210, %cst_201 {dimension_numbers = #tpu.dot_dimension_numbers<[1], [0], [0], [1], [0, 0, 1, 1], [], []>} : vector<64x64xbf16>, vector<64x64xbf16>, vector<64x64xf32> -> vector<64x64xf32>
    %212 = arith.addf %205, %211 : vector<64x64xf32>
    %c2_202 = arith.constant 2 : index
    %c0_203 = arith.constant 0 : index
    %c0_204 = arith.constant 0 : index
    %213 = vector.load %arg21[%c2_202, %c0_203, %c0_204] : memref<10x10x64xf32, #tpu.memory_space<vmem>>, vector<8x8x64xf32>
    %214 = vector.shape_cast %213 : vector<8x8x64xf32> to vector<64x64xf32>
    %215 = arith.truncf %214 : vector<64x64xf32> to vector<64x64xbf16>
    %c6_205 = arith.constant 6 : index
    %c0_206 = arith.constant 0 : index
    %c0_207 = arith.constant 0 : index
    %216 = vector.load %arg9[%c6_205, %c0_206, %c0_207] : memref<9x64x64xbf16, #tpu.memory_space<vmem>>, vector<1x64x64xbf16>
    %217 = vector.shape_cast %216 : vector<1x64x64xbf16> to vector<64x64xbf16>
    %cst_208 = arith.constant dense<0.000000e+00> : vector<64x64xf32>
    %218 = tpu.matmul %215, %217, %cst_208 {dimension_numbers = #tpu.dot_dimension_numbers<[1], [0], [0], [1], [0, 0, 1, 1], [], []>} : vector<64x64xbf16>, vector<64x64xbf16>, vector<64x64xf32> -> vector<64x64xf32>
    %219 = arith.addf %212, %218 : vector<64x64xf32>
    %c2_209 = arith.constant 2 : index
    %c1_210 = arith.constant 1 : index
    %c0_211 = arith.constant 0 : index
    %220 = vector.load %arg21[%c2_209, %c1_210, %c0_211] : memref<10x10x64xf32, #tpu.memory_space<vmem>>, vector<8x8x64xf32>
    %221 = vector.shape_cast %220 : vector<8x8x64xf32> to vector<64x64xf32>
    %222 = arith.truncf %221 : vector<64x64xf32> to vector<64x64xbf16>
    %c7_212 = arith.constant 7 : index
    %c0_213 = arith.constant 0 : index
    %c0_214 = arith.constant 0 : index
    %223 = vector.load %arg9[%c7_212, %c0_213, %c0_214] : memref<9x64x64xbf16, #tpu.memory_space<vmem>>, vector<1x64x64xbf16>
    %224 = vector.shape_cast %223 : vector<1x64x64xbf16> to vector<64x64xbf16>
    %cst_215 = arith.constant dense<0.000000e+00> : vector<64x64xf32>
    %225 = tpu.matmul %222, %224, %cst_215 {dimension_numbers = #tpu.dot_dimension_numbers<[1], [0], [0], [1], [0, 0, 1, 1], [], []>} : vector<64x64xbf16>, vector<64x64xbf16>, vector<64x64xf32> -> vector<64x64xf32>
    %226 = arith.addf %219, %225 : vector<64x64xf32>
    %c2_216 = arith.constant 2 : index
    %c2_217 = arith.constant 2 : index
    %c0_218 = arith.constant 0 : index
    %227 = vector.load %arg21[%c2_216, %c2_217, %c0_218] : memref<10x10x64xf32, #tpu.memory_space<vmem>>, vector<8x8x64xf32>
    %228 = vector.shape_cast %227 : vector<8x8x64xf32> to vector<64x64xf32>
    %229 = arith.truncf %228 : vector<64x64xf32> to vector<64x64xbf16>
    %c8_219 = arith.constant 8 : index
    %c0_220 = arith.constant 0 : index
    %c0_221 = arith.constant 0 : index
    %230 = vector.load %arg9[%c8_219, %c0_220, %c0_221] : memref<9x64x64xbf16, #tpu.memory_space<vmem>>, vector<1x64x64xbf16>
    %231 = vector.shape_cast %230 : vector<1x64x64xbf16> to vector<64x64xbf16>
    %cst_222 = arith.constant dense<0.000000e+00> : vector<64x64xf32>
    %232 = tpu.matmul %229, %231, %cst_222 {dimension_numbers = #tpu.dot_dimension_numbers<[1], [0], [0], [1], [0, 0, 1, 1], [], []>} : vector<64x64xbf16>, vector<64x64xbf16>, vector<64x64xf32> -> vector<64x64xf32>
    %233 = arith.addf %226, %232 : vector<64x64xf32>
    %cst_223 = arith.constant 0.000000e+00 : f32
    %234 = vector.broadcast %cst_223 : f32 to vector<10x10x64xf32>
    %c0_224 = arith.constant 0 : index
    %c0_225 = arith.constant 0 : index
    %c0_226 = arith.constant 0 : index
    %235 = vector.load %arg22[%c0_224, %c0_225, %c0_226] : memref<10x10x64xf32, #tpu.memory_space<vmem>>, vector<10x10x64xf32>
    tpu.vector_store %arg22[%c0_224, %c0_225, %c0_226], %234 {strides = array<i32>} : memref<10x10x64xf32, #tpu.memory_space<vmem>>, vector<10x10x64xf32>,
    %236 = vector.shape_cast %83 : vector<64x64xf32> to vector<8x8x64xf32>
    %c1_227 = arith.constant 1 : index
    %c1_228 = arith.constant 1 : index
    %c0_229 = arith.constant 0 : index
    %237 = vector.load %arg22[%c1_227, %c1_228, %c0_229] : memref<10x10x64xf32, #tpu.memory_space<vmem>>, vector<8x8x64xf32>
    tpu.vector_store %arg22[%c1_227, %c1_228, %c0_229], %236 {strides = array<i32>} : memref<10x10x64xf32, #tpu.memory_space<vmem>>, vector<8x8x64xf32>,
    %c0_230 = arith.constant 0 : index
    %c0_231 = arith.constant 0 : index
    %c0_232 = arith.constant 0 : index
    %238 = vector.load %arg22[%c0_230, %c0_231, %c0_232] : memref<10x10x64xf32, #tpu.memory_space<vmem>>, vector<8x8x64xf32>
    %239 = vector.shape_cast %238 : vector<8x8x64xf32> to vector<64x64xf32>
    %240 = arith.truncf %239 : vector<64x64xf32> to vector<64x64xbf16>
    %c0_233 = arith.constant 0 : index
    %c0_234 = arith.constant 0 : index
    %c0_235 = arith.constant 0 : index
    %241 = vector.load %arg10[%c0_233, %c0_234, %c0_235] : memref<9x64x64xbf16, #tpu.memory_space<vmem>>, vector<1x64x64xbf16>
    %242 = vector.shape_cast %241 : vector<1x64x64xbf16> to vector<64x64xbf16>
    %cst_236 = arith.constant dense<0.000000e+00> : vector<64x64xf32>
    %243 = tpu.matmul %240, %242, %cst_236 {dimension_numbers = #tpu.dot_dimension_numbers<[1], [0], [0], [1], [0, 0, 1, 1], [], []>} : vector<64x64xbf16>, vector<64x64xbf16>, vector<64x64xf32> -> vector<64x64xf32>
    %244 = arith.addf %233, %243 : vector<64x64xf32>
    %c0_237 = arith.constant 0 : index
    %c1_238 = arith.constant 1 : index
    %c0_239 = arith.constant 0 : index
    %245 = vector.load %arg22[%c0_237, %c1_238, %c0_239] : memref<10x10x64xf32, #tpu.memory_space<vmem>>, vector<8x8x64xf32>
    %246 = vector.shape_cast %245 : vector<8x8x64xf32> to vector<64x64xf32>
    %247 = arith.truncf %246 : vector<64x64xf32> to vector<64x64xbf16>
    %c1_240 = arith.constant 1 : index
    %c0_241 = arith.constant 0 : index
    %c0_242 = arith.constant 0 : index
    %248 = vector.load %arg10[%c1_240, %c0_241, %c0_242] : memref<9x64x64xbf16, #tpu.memory_space<vmem>>, vector<1x64x64xbf16>
    %249 = vector.shape_cast %248 : vector<1x64x64xbf16> to vector<64x64xbf16>
    %cst_243 = arith.constant dense<0.000000e+00> : vector<64x64xf32>
    %250 = tpu.matmul %247, %249, %cst_243 {dimension_numbers = #tpu.dot_dimension_numbers<[1], [0], [0], [1], [0, 0, 1, 1], [], []>} : vector<64x64xbf16>, vector<64x64xbf16>, vector<64x64xf32> -> vector<64x64xf32>
    %251 = arith.addf %244, %250 : vector<64x64xf32>
    %c0_244 = arith.constant 0 : index
    %c2_245 = arith.constant 2 : index
    %c0_246 = arith.constant 0 : index
    %252 = vector.load %arg22[%c0_244, %c2_245, %c0_246] : memref<10x10x64xf32, #tpu.memory_space<vmem>>, vector<8x8x64xf32>
    %253 = vector.shape_cast %252 : vector<8x8x64xf32> to vector<64x64xf32>
    %254 = arith.truncf %253 : vector<64x64xf32> to vector<64x64xbf16>
    %c2_247 = arith.constant 2 : index
    %c0_248 = arith.constant 0 : index
    %c0_249 = arith.constant 0 : index
    %255 = vector.load %arg10[%c2_247, %c0_248, %c0_249] : memref<9x64x64xbf16, #tpu.memory_space<vmem>>, vector<1x64x64xbf16>
    %256 = vector.shape_cast %255 : vector<1x64x64xbf16> to vector<64x64xbf16>
    %cst_250 = arith.constant dense<0.000000e+00> : vector<64x64xf32>
    %257 = tpu.matmul %254, %256, %cst_250 {dimension_numbers = #tpu.dot_dimension_numbers<[1], [0], [0], [1], [0, 0, 1, 1], [], []>} : vector<64x64xbf16>, vector<64x64xbf16>, vector<64x64xf32> -> vector<64x64xf32>
    %258 = arith.addf %251, %257 : vector<64x64xf32>
    %c1_251 = arith.constant 1 : index
    %c0_252 = arith.constant 0 : index
    %c0_253 = arith.constant 0 : index
    %259 = vector.load %arg22[%c1_251, %c0_252, %c0_253] : memref<10x10x64xf32, #tpu.memory_space<vmem>>, vector<8x8x64xf32>
    %260 = vector.shape_cast %259 : vector<8x8x64xf32> to vector<64x64xf32>
    %261 = arith.truncf %260 : vector<64x64xf32> to vector<64x64xbf16>
    %c3_254 = arith.constant 3 : index
    %c0_255 = arith.constant 0 : index
    %c0_256 = arith.constant 0 : index
    %262 = vector.load %arg10[%c3_254, %c0_255, %c0_256] : memref<9x64x64xbf16, #tpu.memory_space<vmem>>, vector<1x64x64xbf16>
    %263 = vector.shape_cast %262 : vector<1x64x64xbf16> to vector<64x64xbf16>
    %cst_257 = arith.constant dense<0.000000e+00> : vector<64x64xf32>
    %264 = tpu.matmul %261, %263, %cst_257 {dimension_numbers = #tpu.dot_dimension_numbers<[1], [0], [0], [1], [0, 0, 1, 1], [], []>} : vector<64x64xbf16>, vector<64x64xbf16>, vector<64x64xf32> -> vector<64x64xf32>
    %265 = arith.addf %258, %264 : vector<64x64xf32>
    %c1_258 = arith.constant 1 : index
    %c1_259 = arith.constant 1 : index
    %c0_260 = arith.constant 0 : index
    %266 = vector.load %arg22[%c1_258, %c1_259, %c0_260] : memref<10x10x64xf32, #tpu.memory_space<vmem>>, vector<8x8x64xf32>
    %267 = vector.shape_cast %266 : vector<8x8x64xf32> to vector<64x64xf32>
    %268 = arith.truncf %267 : vector<64x64xf32> to vector<64x64xbf16>
    %c4_261 = arith.constant 4 : index
    %c0_262 = arith.constant 0 : index
    %c0_263 = arith.constant 0 : index
    %269 = vector.load %arg10[%c4_261, %c0_262, %c0_263] : memref<9x64x64xbf16, #tpu.memory_space<vmem>>, vector<1x64x64xbf16>
    %270 = vector.shape_cast %269 : vector<1x64x64xbf16> to vector<64x64xbf16>
    %cst_264 = arith.constant dense<0.000000e+00> : vector<64x64xf32>
    %271 = tpu.matmul %268, %270, %cst_264 {dimension_numbers = #tpu.dot_dimension_numbers<[1], [0], [0], [1], [0, 0, 1, 1], [], []>} : vector<64x64xbf16>, vector<64x64xbf16>, vector<64x64xf32> -> vector<64x64xf32>
    %272 = arith.addf %265, %271 : vector<64x64xf32>
    %c1_265 = arith.constant 1 : index
    %c2_266 = arith.constant 2 : index
    %c0_267 = arith.constant 0 : index
    %273 = vector.load %arg22[%c1_265, %c2_266, %c0_267] : memref<10x10x64xf32, #tpu.memory_space<vmem>>, vector<8x8x64xf32>
    %274 = vector.shape_cast %273 : vector<8x8x64xf32> to vector<64x64xf32>
    %275 = arith.truncf %274 : vector<64x64xf32> to vector<64x64xbf16>
    %c5_268 = arith.constant 5 : index
    %c0_269 = arith.constant 0 : index
    %c0_270 = arith.constant 0 : index
    %276 = vector.load %arg10[%c5_268, %c0_269, %c0_270] : memref<9x64x64xbf16, #tpu.memory_space<vmem>>, vector<1x64x64xbf16>
    %277 = vector.shape_cast %276 : vector<1x64x64xbf16> to vector<64x64xbf16>
    %cst_271 = arith.constant dense<0.000000e+00> : vector<64x64xf32>
    %278 = tpu.matmul %275, %277, %cst_271 {dimension_numbers = #tpu.dot_dimension_numbers<[1], [0], [0], [1], [0, 0, 1, 1], [], []>} : vector<64x64xbf16>, vector<64x64xbf16>, vector<64x64xf32> -> vector<64x64xf32>
    %279 = arith.addf %272, %278 : vector<64x64xf32>
    %c2_272 = arith.constant 2 : index
    %c0_273 = arith.constant 0 : index
    %c0_274 = arith.constant 0 : index
    %280 = vector.load %arg22[%c2_272, %c0_273, %c0_274] : memref<10x10x64xf32, #tpu.memory_space<vmem>>, vector<8x8x64xf32>
    %281 = vector.shape_cast %280 : vector<8x8x64xf32> to vector<64x64xf32>
    %282 = arith.truncf %281 : vector<64x64xf32> to vector<64x64xbf16>
    %c6_275 = arith.constant 6 : index
    %c0_276 = arith.constant 0 : index
    %c0_277 = arith.constant 0 : index
    %283 = vector.load %arg10[%c6_275, %c0_276, %c0_277] : memref<9x64x64xbf16, #tpu.memory_space<vmem>>, vector<1x64x64xbf16>
    %284 = vector.shape_cast %283 : vector<1x64x64xbf16> to vector<64x64xbf16>
    %cst_278 = arith.constant dense<0.000000e+00> : vector<64x64xf32>
    %285 = tpu.matmul %282, %284, %cst_278 {dimension_numbers = #tpu.dot_dimension_numbers<[1], [0], [0], [1], [0, 0, 1, 1], [], []>} : vector<64x64xbf16>, vector<64x64xbf16>, vector<64x64xf32> -> vector<64x64xf32>
    %286 = arith.addf %279, %285 : vector<64x64xf32>
    %c2_279 = arith.constant 2 : index
    %c1_280 = arith.constant 1 : index
    %c0_281 = arith.constant 0 : index
    %287 = vector.load %arg22[%c2_279, %c1_280, %c0_281] : memref<10x10x64xf32, #tpu.memory_space<vmem>>, vector<8x8x64xf32>
    %288 = vector.shape_cast %287 : vector<8x8x64xf32> to vector<64x64xf32>
    %289 = arith.truncf %288 : vector<64x64xf32> to vector<64x64xbf16>
    %c7_282 = arith.constant 7 : index
    %c0_283 = arith.constant 0 : index
    %c0_284 = arith.constant 0 : index
    %290 = vector.load %arg10[%c7_282, %c0_283, %c0_284] : memref<9x64x64xbf16, #tpu.memory_space<vmem>>, vector<1x64x64xbf16>
    %291 = vector.shape_cast %290 : vector<1x64x64xbf16> to vector<64x64xbf16>
    %cst_285 = arith.constant dense<0.000000e+00> : vector<64x64xf32>
    %292 = tpu.matmul %289, %291, %cst_285 {dimension_numbers = #tpu.dot_dimension_numbers<[1], [0], [0], [1], [0, 0, 1, 1], [], []>} : vector<64x64xbf16>, vector<64x64xbf16>, vector<64x64xf32> -> vector<64x64xf32>
    %293 = arith.addf %286, %292 : vector<64x64xf32>
    %c2_286 = arith.constant 2 : index
    %c2_287 = arith.constant 2 : index
    %c0_288 = arith.constant 0 : index
    %294 = vector.load %arg22[%c2_286, %c2_287, %c0_288] : memref<10x10x64xf32, #tpu.memory_space<vmem>>, vector<8x8x64xf32>
    %295 = vector.shape_cast %294 : vector<8x8x64xf32> to vector<64x64xf32>
    %296 = arith.truncf %295 : vector<64x64xf32> to vector<64x64xbf16>
    %c8_289 = arith.constant 8 : index
    %c0_290 = arith.constant 0 : index
    %c0_291 = arith.constant 0 : index
    %297 = vector.load %arg10[%c8_289, %c0_290, %c0_291] : memref<9x64x64xbf16, #tpu.memory_space<vmem>>, vector<1x64x64xbf16>
    %298 = vector.shape_cast %297 : vector<1x64x64xbf16> to vector<64x64xbf16>
    %cst_292 = arith.constant dense<0.000000e+00> : vector<64x64xf32>
    %299 = tpu.matmul %296, %298, %cst_292 {dimension_numbers = #tpu.dot_dimension_numbers<[1], [0], [0], [1], [0, 0, 1, 1], [], []>} : vector<64x64xbf16>, vector<64x64xbf16>, vector<64x64xf32> -> vector<64x64xf32>
    %300 = arith.addf %293, %299 : vector<64x64xf32>
    %c0_293 = arith.constant 0 : index
    %c0_294 = arith.constant 0 : index
    %301 = vector.load %arg11[%c0_293, %c0_294] : memref<1x64xf32, #tpu.memory_space<vmem>>, vector<1x64xf32>
    %302 = vector.broadcast %301 : vector<1x64xf32> to vector<64x64xf32>
    %303 = arith.addf %300, %302 : vector<64x64xf32>
    %cst_295 = arith.constant 0.000000e+00 : f32
    %304 = vector.broadcast %cst_295 : f32 to vector<64x64xf32>
    %305 = arith.cmpf ogt, %303, %304 : vector<64x64xf32>
    %cst_296 = arith.constant 0.000000e+00 : f32
    %306 = vector.broadcast %cst_296 : f32 to vector<64x64xf32>
    %307 = arith.minimumf %303, %306 : vector<64x64xf32>
    %308 = math.exp %307 : vector<64x64xf32>
    %cst_297 = arith.constant 1.000000e+00 : f32
    %309 = vector.broadcast %cst_297 : f32 to vector<64x64xf32>
    %310 = arith.subf %308, %309 : vector<64x64xf32>
    %311 = arith.select %305, %303, %310 : vector<64x64xi1>, vector<64x64xf32>
    %c0_298 = arith.constant 0 : index
    %c0_299 = arith.constant 0 : index
    %312 = vector.load %arg4[%c0_298, %c0_299] : memref<256x64xbf16, #tpu.memory_space<vmem>>, vector<256x64xbf16>
    %313 = arith.truncf %311 : vector<64x64xf32> to vector<64x64xbf16>
    %cst_300 = arith.constant dense<0.000000e+00> : vector<256x64xf32>
    %314 = tpu.matmul %312, %313, %cst_300 {dimension_numbers = #tpu.dot_dimension_numbers<[1], [0], [0], [1], [0, 0, 1, 1], [], []>} : vector<256x64xbf16>, vector<64x64xbf16>, vector<256x64xf32> -> vector<256x64xf32>
    %cst_301 = arith.constant 0.000000e+00 : f32
    %315 = vector.broadcast %cst_301 : f32 to vector<18x18x64xf32>
    %c0_302 = arith.constant 0 : index
    %c0_303 = arith.constant 0 : index
    %c0_304 = arith.constant 0 : index
    %316 = vector.load %arg23[%c0_302, %c0_303, %c0_304] : memref<18x18x64xf32, #tpu.memory_space<vmem>>, vector<18x18x64xf32>
    tpu.vector_store %arg23[%c0_302, %c0_303, %c0_304], %315 {strides = array<i32>} : memref<18x18x64xf32, #tpu.memory_space<vmem>>, vector<18x18x64xf32>,
    %317 = vector.shape_cast %314 : vector<256x64xf32> to vector<16x16x64xf32>
    %c1_305 = arith.constant 1 : index
    %c1_306 = arith.constant 1 : index
    %c0_307 = arith.constant 0 : index
    %318 = vector.load %arg23[%c1_305, %c1_306, %c0_307] : memref<18x18x64xf32, #tpu.memory_space<vmem>>, vector<16x16x64xf32>
    tpu.vector_store %arg23[%c1_305, %c1_306, %c0_307], %317 {strides = array<i32>} : memref<18x18x64xf32, #tpu.memory_space<vmem>>, vector<16x16x64xf32>,
    %cst_308 = arith.constant 0.000000e+00 : f32
    %319 = vector.broadcast %cst_308 : f32 to vector<256x48xf32>
    %c0_309 = arith.constant 0 : index
    %c0_310 = arith.constant 0 : index
    %c0_311 = arith.constant 0 : index
    %320 = vector.load %arg23[%c0_309, %c0_310, %c0_311] : memref<18x18x64xf32, #tpu.memory_space<vmem>>, vector<16x16x64xf32>
    %321 = vector.shape_cast %320 : vector<16x16x64xf32> to vector<256x64xf32>
    %322 = arith.truncf %321 : vector<256x64xf32> to vector<256x64xbf16>
    %c0_312 = arith.constant 0 : index
    %c0_313 = arith.constant 0 : index
    %c0_314 = arith.constant 0 : index
    %323 = vector.load %arg12[%c0_312, %c0_313, %c0_314] : memref<9x64x48xbf16, #tpu.memory_space<vmem>>, vector<1x64x48xbf16>
    %324 = vector.shape_cast %323 : vector<1x64x48xbf16> to vector<64x48xbf16>
    %cst_315 = arith.constant dense<0.000000e+00> : vector<256x48xf32>
    %325 = tpu.matmul %322, %324, %cst_315 {dimension_numbers = #tpu.dot_dimension_numbers<[1], [0], [0], [1], [0, 0, 1, 1], [], []>} : vector<256x64xbf16>, vector<64x48xbf16>, vector<256x48xf32> -> vector<256x48xf32>
    %326 = arith.addf %319, %325 : vector<256x48xf32>
    %c0_316 = arith.constant 0 : index
    %c1_317 = arith.constant 1 : index
    %c0_318 = arith.constant 0 : index
    %327 = vector.load %arg23[%c0_316, %c1_317, %c0_318] : memref<18x18x64xf32, #tpu.memory_space<vmem>>, vector<16x16x64xf32>
    %328 = vector.shape_cast %327 : vector<16x16x64xf32> to vector<256x64xf32>
    %329 = arith.truncf %328 : vector<256x64xf32> to vector<256x64xbf16>
    %c1_319 = arith.constant 1 : index
    %c0_320 = arith.constant 0 : index
    %c0_321 = arith.constant 0 : index
    %330 = vector.load %arg12[%c1_319, %c0_320, %c0_321] : memref<9x64x48xbf16, #tpu.memory_space<vmem>>, vector<1x64x48xbf16>
    %331 = vector.shape_cast %330 : vector<1x64x48xbf16> to vector<64x48xbf16>
    %cst_322 = arith.constant dense<0.000000e+00> : vector<256x48xf32>
    %332 = tpu.matmul %329, %331, %cst_322 {dimension_numbers = #tpu.dot_dimension_numbers<[1], [0], [0], [1], [0, 0, 1, 1], [], []>} : vector<256x64xbf16>, vector<64x48xbf16>, vector<256x48xf32> -> vector<256x48xf32>
    %333 = arith.addf %326, %332 : vector<256x48xf32>
    %c0_323 = arith.constant 0 : index
    %c2_324 = arith.constant 2 : index
    %c0_325 = arith.constant 0 : index
    %334 = vector.load %arg23[%c0_323, %c2_324, %c0_325] : memref<18x18x64xf32, #tpu.memory_space<vmem>>, vector<16x16x64xf32>
    %335 = vector.shape_cast %334 : vector<16x16x64xf32> to vector<256x64xf32>
    %336 = arith.truncf %335 : vector<256x64xf32> to vector<256x64xbf16>
    %c2_326 = arith.constant 2 : index
    %c0_327 = arith.constant 0 : index
    %c0_328 = arith.constant 0 : index
    %337 = vector.load %arg12[%c2_326, %c0_327, %c0_328] : memref<9x64x48xbf16, #tpu.memory_space<vmem>>, vector<1x64x48xbf16>
    %338 = vector.shape_cast %337 : vector<1x64x48xbf16> to vector<64x48xbf16>
    %cst_329 = arith.constant dense<0.000000e+00> : vector<256x48xf32>
    %339 = tpu.matmul %336, %338, %cst_329 {dimension_numbers = #tpu.dot_dimension_numbers<[1], [0], [0], [1], [0, 0, 1, 1], [], []>} : vector<256x64xbf16>, vector<64x48xbf16>, vector<256x48xf32> -> vector<256x48xf32>
    %340 = arith.addf %333, %339 : vector<256x48xf32>
    %c1_330 = arith.constant 1 : index
    %c0_331 = arith.constant 0 : index
    %c0_332 = arith.constant 0 : index
    %341 = vector.load %arg23[%c1_330, %c0_331, %c0_332] : memref<18x18x64xf32, #tpu.memory_space<vmem>>, vector<16x16x64xf32>
    %342 = vector.shape_cast %341 : vector<16x16x64xf32> to vector<256x64xf32>
    %343 = arith.truncf %342 : vector<256x64xf32> to vector<256x64xbf16>
    %c3_333 = arith.constant 3 : index
    %c0_334 = arith.constant 0 : index
    %c0_335 = arith.constant 0 : index
    %344 = vector.load %arg12[%c3_333, %c0_334, %c0_335] : memref<9x64x48xbf16, #tpu.memory_space<vmem>>, vector<1x64x48xbf16>
    %345 = vector.shape_cast %344 : vector<1x64x48xbf16> to vector<64x48xbf16>
    %cst_336 = arith.constant dense<0.000000e+00> : vector<256x48xf32>
    %346 = tpu.matmul %343, %345, %cst_336 {dimension_numbers = #tpu.dot_dimension_numbers<[1], [0], [0], [1], [0, 0, 1, 1], [], []>} : vector<256x64xbf16>, vector<64x48xbf16>, vector<256x48xf32> -> vector<256x48xf32>
    %347 = arith.addf %340, %346 : vector<256x48xf32>
    %c1_337 = arith.constant 1 : index
    %c1_338 = arith.constant 1 : index
    %c0_339 = arith.constant 0 : index
    %348 = vector.load %arg23[%c1_337, %c1_338, %c0_339] : memref<18x18x64xf32, #tpu.memory_space<vmem>>, vector<16x16x64xf32>
    %349 = vector.shape_cast %348 : vector<16x16x64xf32> to vector<256x64xf32>
    %350 = arith.truncf %349 : vector<256x64xf32> to vector<256x64xbf16>
    %c4_340 = arith.constant 4 : index
    %c0_341 = arith.constant 0 : index
    %c0_342 = arith.constant 0 : index
    %351 = vector.load %arg12[%c4_340, %c0_341, %c0_342] : memref<9x64x48xbf16, #tpu.memory_space<vmem>>, vector<1x64x48xbf16>
    %352 = vector.shape_cast %351 : vector<1x64x48xbf16> to vector<64x48xbf16>
    %cst_343 = arith.constant dense<0.000000e+00> : vector<256x48xf32>
    %353 = tpu.matmul %350, %352, %cst_343 {dimension_numbers = #tpu.dot_dimension_numbers<[1], [0], [0], [1], [0, 0, 1, 1], [], []>} : vector<256x64xbf16>, vector<64x48xbf16>, vector<256x48xf32> -> vector<256x48xf32>
    %354 = arith.addf %347, %353 : vector<256x48xf32>
    %c1_344 = arith.constant 1 : index
    %c2_345 = arith.constant 2 : index
    %c0_346 = arith.constant 0 : index
    %355 = vector.load %arg23[%c1_344, %c2_345, %c0_346] : memref<18x18x64xf32, #tpu.memory_space<vmem>>, vector<16x16x64xf32>
    %356 = vector.shape_cast %355 : vector<16x16x64xf32> to vector<256x64xf32>
    %357 = arith.truncf %356 : vector<256x64xf32> to vector<256x64xbf16>
    %c5_347 = arith.constant 5 : index
    %c0_348 = arith.constant 0 : index
    %c0_349 = arith.constant 0 : index
    %358 = vector.load %arg12[%c5_347, %c0_348, %c0_349] : memref<9x64x48xbf16, #tpu.memory_space<vmem>>, vector<1x64x48xbf16>
    %359 = vector.shape_cast %358 : vector<1x64x48xbf16> to vector<64x48xbf16>
    %cst_350 = arith.constant dense<0.000000e+00> : vector<256x48xf32>
    %360 = tpu.matmul %357, %359, %cst_350 {dimension_numbers = #tpu.dot_dimension_numbers<[1], [0], [0], [1], [0, 0, 1, 1], [], []>} : vector<256x64xbf16>, vector<64x48xbf16>, vector<256x48xf32> -> vector<256x48xf32>
    %361 = arith.addf %354, %360 : vector<256x48xf32>
    %c2_351 = arith.constant 2 : index
    %c0_352 = arith.constant 0 : index
    %c0_353 = arith.constant 0 : index
    %362 = vector.load %arg23[%c2_351, %c0_352, %c0_353] : memref<18x18x64xf32, #tpu.memory_space<vmem>>, vector<16x16x64xf32>
    %363 = vector.shape_cast %362 : vector<16x16x64xf32> to vector<256x64xf32>
    %364 = arith.truncf %363 : vector<256x64xf32> to vector<256x64xbf16>
    %c6_354 = arith.constant 6 : index
    %c0_355 = arith.constant 0 : index
    %c0_356 = arith.constant 0 : index
    %365 = vector.load %arg12[%c6_354, %c0_355, %c0_356] : memref<9x64x48xbf16, #tpu.memory_space<vmem>>, vector<1x64x48xbf16>
    %366 = vector.shape_cast %365 : vector<1x64x48xbf16> to vector<64x48xbf16>
    %cst_357 = arith.constant dense<0.000000e+00> : vector<256x48xf32>
    %367 = tpu.matmul %364, %366, %cst_357 {dimension_numbers = #tpu.dot_dimension_numbers<[1], [0], [0], [1], [0, 0, 1, 1], [], []>} : vector<256x64xbf16>, vector<64x48xbf16>, vector<256x48xf32> -> vector<256x48xf32>
    %368 = arith.addf %361, %367 : vector<256x48xf32>
    %c2_358 = arith.constant 2 : index
    %c1_359 = arith.constant 1 : index
    %c0_360 = arith.constant 0 : index
    %369 = vector.load %arg23[%c2_358, %c1_359, %c0_360] : memref<18x18x64xf32, #tpu.memory_space<vmem>>, vector<16x16x64xf32>
    %370 = vector.shape_cast %369 : vector<16x16x64xf32> to vector<256x64xf32>
    %371 = arith.truncf %370 : vector<256x64xf32> to vector<256x64xbf16>
    %c7_361 = arith.constant 7 : index
    %c0_362 = arith.constant 0 : index
    %c0_363 = arith.constant 0 : index
    %372 = vector.load %arg12[%c7_361, %c0_362, %c0_363] : memref<9x64x48xbf16, #tpu.memory_space<vmem>>, vector<1x64x48xbf16>
    %373 = vector.shape_cast %372 : vector<1x64x48xbf16> to vector<64x48xbf16>
    %cst_364 = arith.constant dense<0.000000e+00> : vector<256x48xf32>
    %374 = tpu.matmul %371, %373, %cst_364 {dimension_numbers = #tpu.dot_dimension_numbers<[1], [0], [0], [1], [0, 0, 1, 1], [], []>} : vector<256x64xbf16>, vector<64x48xbf16>, vector<256x48xf32> -> vector<256x48xf32>
    %375 = arith.addf %368, %374 : vector<256x48xf32>
    %c2_365 = arith.constant 2 : index
    %c2_366 = arith.constant 2 : index
    %c0_367 = arith.constant 0 : index
    %376 = vector.load %arg23[%c2_365, %c2_366, %c0_367] : memref<18x18x64xf32, #tpu.memory_space<vmem>>, vector<16x16x64xf32>
    %377 = vector.shape_cast %376 : vector<16x16x64xf32> to vector<256x64xf32>
    %378 = arith.truncf %377 : vector<256x64xf32> to vector<256x64xbf16>
    %c8_368 = arith.constant 8 : index
    %c0_369 = arith.constant 0 : index
    %c0_370 = arith.constant 0 : index
    %379 = vector.load %arg12[%c8_368, %c0_369, %c0_370] : memref<9x64x48xbf16, #tpu.memory_space<vmem>>, vector<1x64x48xbf16>
    %380 = vector.shape_cast %379 : vector<1x64x48xbf16> to vector<64x48xbf16>
    %cst_371 = arith.constant dense<0.000000e+00> : vector<256x48xf32>
    %381 = tpu.matmul %378, %380, %cst_371 {dimension_numbers = #tpu.dot_dimension_numbers<[1], [0], [0], [1], [0, 0, 1, 1], [], []>} : vector<256x64xbf16>, vector<64x48xbf16>, vector<256x48xf32> -> vector<256x48xf32>
    %382 = arith.addf %375, %381 : vector<256x48xf32>
    %c0_372 = arith.constant 0 : index
    %c0_373 = arith.constant 0 : index
    %383 = vector.load %arg13[%c0_372, %c0_373] : memref<1x48xf32, #tpu.memory_space<vmem>>, vector<1x48xf32>
    %384 = vector.broadcast %383 : vector<1x48xf32> to vector<256x48xf32>
    %385 = arith.addf %382, %384 : vector<256x48xf32>
    %cst_374 = arith.constant 0.000000e+00 : f32
    %386 = vector.broadcast %cst_374 : f32 to vector<256x48xf32>
    %387 = arith.cmpf ogt, %385, %386 : vector<256x48xf32>
    %cst_375 = arith.constant 0.000000e+00 : f32
    %388 = vector.broadcast %cst_375 : f32 to vector<256x48xf32>
    %389 = arith.minimumf %385, %388 : vector<256x48xf32>
    %390 = math.exp %389 : vector<256x48xf32>
    %cst_376 = arith.constant 1.000000e+00 : f32
    %391 = vector.broadcast %cst_376 : f32 to vector<256x48xf32>
    %392 = arith.subf %390, %391 : vector<256x48xf32>
    %393 = arith.select %387, %385, %392 : vector<256x48xi1>, vector<256x48xf32>
    %cst_377 = arith.constant 0.000000e+00 : f32
    %394 = vector.broadcast %cst_377 : f32 to vector<18x18x48xf32>
    %c0_378 = arith.constant 0 : index
    %c0_379 = arith.constant 0 : index
    %c0_380 = arith.constant 0 : index
    %395 = vector.load %arg24[%c0_378, %c0_379, %c0_380] : memref<18x18x48xf32, #tpu.memory_space<vmem>>, vector<18x18x48xf32>
    tpu.vector_store %arg24[%c0_378, %c0_379, %c0_380], %394 {strides = array<i32>} : memref<18x18x48xf32, #tpu.memory_space<vmem>>, vector<18x18x48xf32>,
    %396 = vector.shape_cast %393 : vector<256x48xf32> to vector<16x16x48xf32>
    %c1_381 = arith.constant 1 : index
    %c1_382 = arith.constant 1 : index
    %c0_383 = arith.constant 0 : index
    %397 = vector.load %arg24[%c1_381, %c1_382, %c0_383] : memref<18x18x48xf32, #tpu.memory_space<vmem>>, vector<16x16x48xf32>
    tpu.vector_store %arg24[%c1_381, %c1_382, %c0_383], %396 {strides = array<i32>} : memref<18x18x48xf32, #tpu.memory_space<vmem>>, vector<16x16x48xf32>,
    %cst_384 = arith.constant 0.000000e+00 : f32
    %398 = vector.broadcast %cst_384 : f32 to vector<256x48xf32>
    %c0_385 = arith.constant 0 : index
    %c0_386 = arith.constant 0 : index
    %c0_387 = arith.constant 0 : index
    %399 = vector.load %arg24[%c0_385, %c0_386, %c0_387] : memref<18x18x48xf32, #tpu.memory_space<vmem>>, vector<16x16x48xf32>
    %400 = vector.shape_cast %399 : vector<16x16x48xf32> to vector<256x48xf32>
    %401 = arith.truncf %400 : vector<256x48xf32> to vector<256x48xbf16>
    %c0_388 = arith.constant 0 : index
    %c0_389 = arith.constant 0 : index
    %c0_390 = arith.constant 0 : index
    %402 = vector.load %arg14[%c0_388, %c0_389, %c0_390] : memref<9x48x48xbf16, #tpu.memory_space<vmem>>, vector<1x48x48xbf16>
    %403 = vector.shape_cast %402 : vector<1x48x48xbf16> to vector<48x48xbf16>
    %cst_391 = arith.constant dense<0.000000e+00> : vector<256x48xf32>
    %404 = tpu.matmul %401, %403, %cst_391 {dimension_numbers = #tpu.dot_dimension_numbers<[1], [0], [0], [1], [0, 0, 1, 1], [], []>} : vector<256x48xbf16>, vector<48x48xbf16>, vector<256x48xf32> -> vector<256x48xf32>
    %405 = arith.addf %398, %404 : vector<256x48xf32>
    %c0_392 = arith.constant 0 : index
    %c1_393 = arith.constant 1 : index
    %c0_394 = arith.constant 0 : index
    %406 = vector.load %arg24[%c0_392, %c1_393, %c0_394] : memref<18x18x48xf32, #tpu.memory_space<vmem>>, vector<16x16x48xf32>
    %407 = vector.shape_cast %406 : vector<16x16x48xf32> to vector<256x48xf32>
    %408 = arith.truncf %407 : vector<256x48xf32> to vector<256x48xbf16>
    %c1_395 = arith.constant 1 : index
    %c0_396 = arith.constant 0 : index
    %c0_397 = arith.constant 0 : index
    %409 = vector.load %arg14[%c1_395, %c0_396, %c0_397] : memref<9x48x48xbf16, #tpu.memory_space<vmem>>, vector<1x48x48xbf16>
    %410 = vector.shape_cast %409 : vector<1x48x48xbf16> to vector<48x48xbf16>
    %cst_398 = arith.constant dense<0.000000e+00> : vector<256x48xf32>
    %411 = tpu.matmul %408, %410, %cst_398 {dimension_numbers = #tpu.dot_dimension_numbers<[1], [0], [0], [1], [0, 0, 1, 1], [], []>} : vector<256x48xbf16>, vector<48x48xbf16>, vector<256x48xf32> -> vector<256x48xf32>
    %412 = arith.addf %405, %411 : vector<256x48xf32>
    %c0_399 = arith.constant 0 : index
    %c2_400 = arith.constant 2 : index
    %c0_401 = arith.constant 0 : index
    %413 = vector.load %arg24[%c0_399, %c2_400, %c0_401] : memref<18x18x48xf32, #tpu.memory_space<vmem>>, vector<16x16x48xf32>
    %414 = vector.shape_cast %413 : vector<16x16x48xf32> to vector<256x48xf32>
    %415 = arith.truncf %414 : vector<256x48xf32> to vector<256x48xbf16>
    %c2_402 = arith.constant 2 : index
    %c0_403 = arith.constant 0 : index
    %c0_404 = arith.constant 0 : index
    %416 = vector.load %arg14[%c2_402, %c0_403, %c0_404] : memref<9x48x48xbf16, #tpu.memory_space<vmem>>, vector<1x48x48xbf16>
    %417 = vector.shape_cast %416 : vector<1x48x48xbf16> to vector<48x48xbf16>
    %cst_405 = arith.constant dense<0.000000e+00> : vector<256x48xf32>
    %418 = tpu.matmul %415, %417, %cst_405 {dimension_numbers = #tpu.dot_dimension_numbers<[1], [0], [0], [1], [0, 0, 1, 1], [], []>} : vector<256x48xbf16>, vector<48x48xbf16>, vector<256x48xf32> -> vector<256x48xf32>
    %419 = arith.addf %412, %418 : vector<256x48xf32>
    %c1_406 = arith.constant 1 : index
    %c0_407 = arith.constant 0 : index
    %c0_408 = arith.constant 0 : index
    %420 = vector.load %arg24[%c1_406, %c0_407, %c0_408] : memref<18x18x48xf32, #tpu.memory_space<vmem>>, vector<16x16x48xf32>
    %421 = vector.shape_cast %420 : vector<16x16x48xf32> to vector<256x48xf32>
    %422 = arith.truncf %421 : vector<256x48xf32> to vector<256x48xbf16>
    %c3_409 = arith.constant 3 : index
    %c0_410 = arith.constant 0 : index
    %c0_411 = arith.constant 0 : index
    %423 = vector.load %arg14[%c3_409, %c0_410, %c0_411] : memref<9x48x48xbf16, #tpu.memory_space<vmem>>, vector<1x48x48xbf16>
    %424 = vector.shape_cast %423 : vector<1x48x48xbf16> to vector<48x48xbf16>
    %cst_412 = arith.constant dense<0.000000e+00> : vector<256x48xf32>
    %425 = tpu.matmul %422, %424, %cst_412 {dimension_numbers = #tpu.dot_dimension_numbers<[1], [0], [0], [1], [0, 0, 1, 1], [], []>} : vector<256x48xbf16>, vector<48x48xbf16>, vector<256x48xf32> -> vector<256x48xf32>
    %426 = arith.addf %419, %425 : vector<256x48xf32>
    %c1_413 = arith.constant 1 : index
    %c1_414 = arith.constant 1 : index
    %c0_415 = arith.constant 0 : index
    %427 = vector.load %arg24[%c1_413, %c1_414, %c0_415] : memref<18x18x48xf32, #tpu.memory_space<vmem>>, vector<16x16x48xf32>
    %428 = vector.shape_cast %427 : vector<16x16x48xf32> to vector<256x48xf32>
    %429 = arith.truncf %428 : vector<256x48xf32> to vector<256x48xbf16>
    %c4_416 = arith.constant 4 : index
    %c0_417 = arith.constant 0 : index
    %c0_418 = arith.constant 0 : index
    %430 = vector.load %arg14[%c4_416, %c0_417, %c0_418] : memref<9x48x48xbf16, #tpu.memory_space<vmem>>, vector<1x48x48xbf16>
    %431 = vector.shape_cast %430 : vector<1x48x48xbf16> to vector<48x48xbf16>
    %cst_419 = arith.constant dense<0.000000e+00> : vector<256x48xf32>
    %432 = tpu.matmul %429, %431, %cst_419 {dimension_numbers = #tpu.dot_dimension_numbers<[1], [0], [0], [1], [0, 0, 1, 1], [], []>} : vector<256x48xbf16>, vector<48x48xbf16>, vector<256x48xf32> -> vector<256x48xf32>
    %433 = arith.addf %426, %432 : vector<256x48xf32>
    %c1_420 = arith.constant 1 : index
    %c2_421 = arith.constant 2 : index
    %c0_422 = arith.constant 0 : index
    %434 = vector.load %arg24[%c1_420, %c2_421, %c0_422] : memref<18x18x48xf32, #tpu.memory_space<vmem>>, vector<16x16x48xf32>
    %435 = vector.shape_cast %434 : vector<16x16x48xf32> to vector<256x48xf32>
    %436 = arith.truncf %435 : vector<256x48xf32> to vector<256x48xbf16>
    %c5_423 = arith.constant 5 : index
    %c0_424 = arith.constant 0 : index
    %c0_425 = arith.constant 0 : index
    %437 = vector.load %arg14[%c5_423, %c0_424, %c0_425] : memref<9x48x48xbf16, #tpu.memory_space<vmem>>, vector<1x48x48xbf16>
    %438 = vector.shape_cast %437 : vector<1x48x48xbf16> to vector<48x48xbf16>
    %cst_426 = arith.constant dense<0.000000e+00> : vector<256x48xf32>
    %439 = tpu.matmul %436, %438, %cst_426 {dimension_numbers = #tpu.dot_dimension_numbers<[1], [0], [0], [1], [0, 0, 1, 1], [], []>} : vector<256x48xbf16>, vector<48x48xbf16>, vector<256x48xf32> -> vector<256x48xf32>
    %440 = arith.addf %433, %439 : vector<256x48xf32>
    %c2_427 = arith.constant 2 : index
    %c0_428 = arith.constant 0 : index
    %c0_429 = arith.constant 0 : index
    %441 = vector.load %arg24[%c2_427, %c0_428, %c0_429] : memref<18x18x48xf32, #tpu.memory_space<vmem>>, vector<16x16x48xf32>
    %442 = vector.shape_cast %441 : vector<16x16x48xf32> to vector<256x48xf32>
    %443 = arith.truncf %442 : vector<256x48xf32> to vector<256x48xbf16>
    %c6_430 = arith.constant 6 : index
    %c0_431 = arith.constant 0 : index
    %c0_432 = arith.constant 0 : index
    %444 = vector.load %arg14[%c6_430, %c0_431, %c0_432] : memref<9x48x48xbf16, #tpu.memory_space<vmem>>, vector<1x48x48xbf16>
    %445 = vector.shape_cast %444 : vector<1x48x48xbf16> to vector<48x48xbf16>
    %cst_433 = arith.constant dense<0.000000e+00> : vector<256x48xf32>
    %446 = tpu.matmul %443, %445, %cst_433 {dimension_numbers = #tpu.dot_dimension_numbers<[1], [0], [0], [1], [0, 0, 1, 1], [], []>} : vector<256x48xbf16>, vector<48x48xbf16>, vector<256x48xf32> -> vector<256x48xf32>
    %447 = arith.addf %440, %446 : vector<256x48xf32>
    %c2_434 = arith.constant 2 : index
    %c1_435 = arith.constant 1 : index
    %c0_436 = arith.constant 0 : index
    %448 = vector.load %arg24[%c2_434, %c1_435, %c0_436] : memref<18x18x48xf32, #tpu.memory_space<vmem>>, vector<16x16x48xf32>
    %449 = vector.shape_cast %448 : vector<16x16x48xf32> to vector<256x48xf32>
    %450 = arith.truncf %449 : vector<256x48xf32> to vector<256x48xbf16>
    %c7_437 = arith.constant 7 : index
    %c0_438 = arith.constant 0 : index
    %c0_439 = arith.constant 0 : index
    %451 = vector.load %arg14[%c7_437, %c0_438, %c0_439] : memref<9x48x48xbf16, #tpu.memory_space<vmem>>, vector<1x48x48xbf16>
    %452 = vector.shape_cast %451 : vector<1x48x48xbf16> to vector<48x48xbf16>
    %cst_440 = arith.constant dense<0.000000e+00> : vector<256x48xf32>
    %453 = tpu.matmul %450, %452, %cst_440 {dimension_numbers = #tpu.dot_dimension_numbers<[1], [0], [0], [1], [0, 0, 1, 1], [], []>} : vector<256x48xbf16>, vector<48x48xbf16>, vector<256x48xf32> -> vector<256x48xf32>
    %454 = arith.addf %447, %453 : vector<256x48xf32>
    %c2_441 = arith.constant 2 : index
    %c2_442 = arith.constant 2 : index
    %c0_443 = arith.constant 0 : index
    %455 = vector.load %arg24[%c2_441, %c2_442, %c0_443] : memref<18x18x48xf32, #tpu.memory_space<vmem>>, vector<16x16x48xf32>
    %456 = vector.shape_cast %455 : vector<16x16x48xf32> to vector<256x48xf32>
    %457 = arith.truncf %456 : vector<256x48xf32> to vector<256x48xbf16>
    %c8_444 = arith.constant 8 : index
    %c0_445 = arith.constant 0 : index
    %c0_446 = arith.constant 0 : index
    %458 = vector.load %arg14[%c8_444, %c0_445, %c0_446] : memref<9x48x48xbf16, #tpu.memory_space<vmem>>, vector<1x48x48xbf16>
    %459 = vector.shape_cast %458 : vector<1x48x48xbf16> to vector<48x48xbf16>
    %cst_447 = arith.constant dense<0.000000e+00> : vector<256x48xf32>
    %460 = tpu.matmul %457, %459, %cst_447 {dimension_numbers = #tpu.dot_dimension_numbers<[1], [0], [0], [1], [0, 0, 1, 1], [], []>} : vector<256x48xbf16>, vector<48x48xbf16>, vector<256x48xf32> -> vector<256x48xf32>
    %461 = arith.addf %454, %460 : vector<256x48xf32>
    %c0_448 = arith.constant 0 : index
    %c0_449 = arith.constant 0 : index
    %462 = vector.load %arg15[%c0_448, %c0_449] : memref<1x48xf32, #tpu.memory_space<vmem>>, vector<1x48xf32>
    %463 = vector.broadcast %462 : vector<1x48xf32> to vector<256x48xf32>
    %464 = arith.addf %461, %463 : vector<256x48xf32>
    %cst_450 = arith.constant 0.000000e+00 : f32
    %465 = vector.broadcast %cst_450 : f32 to vector<256x48xf32>
    %466 = arith.cmpf ogt, %464, %465 : vector<256x48xf32>
    %cst_451 = arith.constant 0.000000e+00 : f32
    %467 = vector.broadcast %cst_451 : f32 to vector<256x48xf32>
    %468 = arith.minimumf %464, %467 : vector<256x48xf32>
    %469 = math.exp %468 : vector<256x48xf32>
    %cst_452 = arith.constant 1.000000e+00 : f32
    %470 = vector.broadcast %cst_452 : f32 to vector<256x48xf32>
    %471 = arith.subf %469, %470 : vector<256x48xf32>
    %472 = arith.select %466, %464, %471 : vector<256x48xi1>, vector<256x48xf32>
    %473 = arith.truncf %472 : vector<256x48xf32> to vector<256x48xbf16>
    %c0_453 = arith.constant 0 : index
    %c0_454 = arith.constant 0 : index
    %474 = vector.load %arg16[%c0_453, %c0_454] : memref<48x128xbf16, #tpu.memory_space<vmem>>, vector<48x128xbf16>
    %cst_455 = arith.constant dense<0.000000e+00> : vector<256x128xf32>
    %475 = tpu.matmul %473, %474, %cst_455 {dimension_numbers = #tpu.dot_dimension_numbers<[1], [0], [0], [1], [0, 0, 1, 1], [], []>} : vector<256x48xbf16>, vector<48x128xbf16>, vector<256x128xf32> -> vector<256x128xf32>
    %c0_456 = arith.constant 0 : index
    %c0_457 = arith.constant 0 : index
    %476 = vector.load %arg17[%c0_456, %c0_457] : memref<1x128xf32, #tpu.memory_space<vmem>>, vector<1x128xf32>
    %477 = vector.broadcast %476 : vector<1x128xf32> to vector<256x128xf32>
    %478 = arith.addf %475, %477 : vector<256x128xf32>
    %cst_458 = arith.constant 0.000000e+00 : f32
    %479 = vector.broadcast %cst_458 : f32 to vector<256x128xf32>
    %480 = arith.cmpf ogt, %478, %479 : vector<256x128xf32>
    %cst_459 = arith.constant 0.000000e+00 : f32
    %481 = vector.broadcast %cst_459 : f32 to vector<256x128xf32>
    %482 = arith.minimumf %478, %481 : vector<256x128xf32>
    %483 = math.exp %482 : vector<256x128xf32>
    %cst_460 = arith.constant 1.000000e+00 : f32
    %484 = vector.broadcast %cst_460 : f32 to vector<256x128xf32>
    %485 = arith.subf %483, %484 : vector<256x128xf32>
    %486 = arith.select %480, %478, %485 : vector<256x128xi1>, vector<256x128xf32>
    %487 = vector.shape_cast %486 : vector<256x128xf32> to vector<1x16x16x128xf32>
    %c0_461 = arith.constant 0 : index
    %c0_462 = arith.constant 0 : index
    %c0_463 = arith.constant 0 : index
    %c0_464 = arith.constant 0 : index
    %488 = vector.load %arg18[%c0_461, %c0_462, %c0_463, %c0_464] : memref<1x16x16x128xf32, #tpu.memory_space<vmem>>, vector<1x16x16x128xf32>
    tpu.vector_store %arg18[%c0_461, %c0_462, %c0_463, %c0_464], %487 {strides = array<i32>} : memref<1x16x16x128xf32, #tpu.memory_space<vmem>>, vector<1x16x16x128xf32>,
    return
  }
  func.func @transform_0(%arg0: i32) -> (i32, i32, i32, i32) {
    %c0_i32 = arith.constant 0 : i32
    %c0_i32_0 = arith.constant 0 : i32
    %c0_i32_1 = arith.constant 0 : i32
    %c0_i32_2 = arith.constant 0 : i32
    return %arg0, %c0_i32, %c0_i32_0, %c0_i32_1 : i32, i32, i32, i32
  }
  func.func @transform_1(%arg0: i32) -> (i32, i32, i32) {
    %c0_i32 = arith.constant 0 : i32
    %c0_i32_0 = arith.constant 0 : i32
    %c0_i32_1 = arith.constant 0 : i32
    return %arg0, %c0_i32, %c0_i32_0 : i32, i32, i32
  }
  func.func @transform_2(%arg0: i32) -> (i32, i32) {
    %c0_i32 = arith.constant 0 : i32
    %c0_i32_0 = arith.constant 0 : i32
    %c0_i32_1 = arith.constant 0 : i32
    return %c0_i32, %c0_i32_0 : i32, i32
  }
  func.func @transform_3(%arg0: i32) -> (i32, i32) {
    %c0_i32 = arith.constant 0 : i32
    %c0_i32_0 = arith.constant 0 : i32
    %c0_i32_1 = arith.constant 0 : i32
    return %c0_i32, %c0_i32_0 : i32, i32
  }
  func.func @transform_4(%arg0: i32) -> (i32, i32, i32) {
    %c0_i32 = arith.constant 0 : i32
    %c0_i32_0 = arith.constant 0 : i32
    %c0_i32_1 = arith.constant 0 : i32
    %c0_i32_2 = arith.constant 0 : i32
    return %c0_i32, %c0_i32_0, %c0_i32_1 : i32, i32, i32
  }
  func.func @transform_5(%arg0: i32) -> (i32, i32) {
    %c0_i32 = arith.constant 0 : i32
    %c0_i32_0 = arith.constant 0 : i32
    %c0_i32_1 = arith.constant 0 : i32
    return %c0_i32, %c0_i32_0 : i32, i32
  }
  func.func @transform_6(%arg0: i32) -> (i32, i32, i32) {
    %c0_i32 = arith.constant 0 : i32
    %c0_i32_0 = arith.constant 0 : i32
    %c0_i32_1 = arith.constant 0 : i32
    %c0_i32_2 = arith.constant 0 : i32
    return %c0_i32, %c0_i32_0, %c0_i32_1 : i32, i32, i32
  }
  func.func @transform_7(%arg0: i32) -> (i32, i32) {
    %c0_i32 = arith.constant 0 : i32
    %c0_i32_0 = arith.constant 0 : i32
    %c0_i32_1 = arith.constant 0 : i32
    return %c0_i32, %c0_i32_0 : i32, i32
  }
  func.func @transform_8(%arg0: i32) -> (i32, i32, i32) {
    %c0_i32 = arith.constant 0 : i32
    %c0_i32_0 = arith.constant 0 : i32
    %c0_i32_1 = arith.constant 0 : i32
    %c0_i32_2 = arith.constant 0 : i32
    return %c0_i32, %c0_i32_0, %c0_i32_1 : i32, i32, i32
  }
  func.func @transform_9(%arg0: i32) -> (i32, i32, i32) {
    %c0_i32 = arith.constant 0 : i32
    %c0_i32_0 = arith.constant 0 : i32
    %c0_i32_1 = arith.constant 0 : i32
    %c0_i32_2 = arith.constant 0 : i32
    return %c0_i32, %c0_i32_0, %c0_i32_1 : i32, i32, i32
  }
  func.func @transform_10(%arg0: i32) -> (i32, i32) {
    %c0_i32 = arith.constant 0 : i32
    %c0_i32_0 = arith.constant 0 : i32
    %c0_i32_1 = arith.constant 0 : i32
    return %c0_i32, %c0_i32_0 : i32, i32
  }
  func.func @transform_11(%arg0: i32) -> (i32, i32, i32) {
    %c0_i32 = arith.constant 0 : i32
    %c0_i32_0 = arith.constant 0 : i32
    %c0_i32_1 = arith.constant 0 : i32
    %c0_i32_2 = arith.constant 0 : i32
    return %c0_i32, %c0_i32_0, %c0_i32_1 : i32, i32, i32
  }
  func.func @transform_12(%arg0: i32) -> (i32, i32) {
    %c0_i32 = arith.constant 0 : i32
    %c0_i32_0 = arith.constant 0 : i32
    %c0_i32_1 = arith.constant 0 : i32
    return %c0_i32, %c0_i32_0 : i32, i32
  }
  func.func @transform_13(%arg0: i32) -> (i32, i32, i32) {
    %c0_i32 = arith.constant 0 : i32
    %c0_i32_0 = arith.constant 0 : i32
    %c0_i32_1 = arith.constant 0 : i32
    %c0_i32_2 = arith.constant 0 : i32
    return %c0_i32, %c0_i32_0, %c0_i32_1 : i32, i32, i32
  }
  func.func @transform_14(%arg0: i32) -> (i32, i32) {
    %c0_i32 = arith.constant 0 : i32
    %c0_i32_0 = arith.constant 0 : i32
    %c0_i32_1 = arith.constant 0 : i32
    return %c0_i32, %c0_i32_0 : i32, i32
  }
  func.func @transform_15(%arg0: i32) -> (i32, i32) {
    %c0_i32 = arith.constant 0 : i32
    %c0_i32_0 = arith.constant 0 : i32
    %c0_i32_1 = arith.constant 0 : i32
    return %c0_i32, %c0_i32_0 : i32, i32
  }
  func.func @transform_16(%arg0: i32) -> (i32, i32) {
    %c0_i32 = arith.constant 0 : i32
    %c0_i32_0 = arith.constant 0 : i32
    %c0_i32_1 = arith.constant 0 : i32
    return %c0_i32, %c0_i32_0 : i32, i32
  }
  func.func @transform_17(%arg0: i32) -> (i32, i32, i32, i32) {
    %c0_i32 = arith.constant 0 : i32
    %c0_i32_0 = arith.constant 0 : i32
    %c0_i32_1 = arith.constant 0 : i32
    %c0_i32_2 = arith.constant 0 : i32
    return %arg0, %c0_i32, %c0_i32_0, %c0_i32_1 : i32, i32, i32, i32
  }
}

</mosaic_0001>

<bundles_post_ra>
// kernel: efficient_unet_decoder.1
= control target key start
LH: loop header
LB: loop body
LE: loop exit
PB: predicated region body
PF: predicated region fallthrough
CT: control target
= control target key end

     0   :  { %s22413_s0 = inlined_call_operand.vmem [shape: f32[2,8,8,64], index: 0, kind: input, shape index: {}]   ;;  %s22414_s1 = inlined_call_operand.vmem [shape: f32[2,16,160], index: 1, kind: input, shape index: {}]   ;;  %s22415_s2 = inlined_call_operand.vmem [shape: bf16[64,16], index: 2, kind: input, shape index: {}]   ;;  %s22416_s3 = inlined_call_operand.vmem [shape: bf16[256,64], index: 3, kind: input, shape index: {}]   ;;  %s22417_s4 = inlined_call_operand.vmem [shape: bf16[9,160,64], index: 4, kind: input, shape index: {}]   ;;  %s22418_s5 = inlined_call_operand.vmem [shape: f32[1,64], index: 5, kind: input, shape index: {}]   ;;  %s22419_s6 = inlined_call_operand.vmem [shape: bf16[9,64,64], index: 6, kind: input, shape index: {}]   ;;  %s22420_s7 = inlined_call_operand.vmem [shape: f32[1,64], index: 7, kind: input, shape index: {}]   ;;  %s22421_s8 = inlined_call_operand.vmem [shape: bf16[9,64,64], index: 8, kind: input, shape index: {}]   ;;  %s22422_s9 = inlined_call_operand.vmem [shape: bf16[9,64,64], index: 9, kind: input, shape index: {}]   ;;  %s22423_s10 = inlined_call_operand.vmem [shape: f32[1,64], index: 10, kind: input, shape index: {}]   ;;  %s22424_s11 = inlined_call_operand.vmem [shape: bf16[9,64,48], index: 11, kind: input, shape index: {}]   ;;  %s22425_s12 = inlined_call_operand.vmem [shape: f32[1,48], index: 12, kind: input, shape index: {}]   ;;  %s22426_s13 = inlined_call_operand.vmem [shape: bf16[9,48,48], index: 13, kind: input, shape index: {}]   ;;  %s22427_s14 = inlined_call_operand.vmem [shape: f32[1,48], index: 14, kind: input, shape index: {}]   ;;  %s22428_s15 = inlined_call_operand.vmem [shape: bf16[48,128], index: 15, kind: input, shape index: {}]   ;;  %s22429_s16 = inlined_call_operand.vmem [shape: f32[1,128], index: 16, kind: input, shape index: {}]   ;;  %s22430_s17 = inlined_call_operand.hbm [shape: f32[2,16,16,128], index: 17, kind: output, shape index: {}]  }
   0x1   :  { %22436 = sst [smem:[#allocation16_spill]] %s22413_s0 }
   0x2   :  { %22437 = sst [smem:[#allocation17_spill]] %s22414_s1 }
   0x3   :  { %22 = vsyncpa [#allocation9], 0 }
   0x4   :  { %24 = vsyncpa [#allocation9 + $0x1], 0  ;;  %s18696_s24 = smov 0   ;;  %s18698_s25 = smov 0  }
   0x5   :  { %s18700_s26 = smov 0   ;;  %s18702_s27 = smov 0  }
   0x6 LB: > { %22438 = sst [smem:[#allocation11_spill]] %s18587_s24  ;;  %s18717_s28 = sadd.s32 4294967295, %s18599_s27   ;;  %s18599_s27 = sphi %s18702_s27, %s22449_s27   ;;  %s18595_s26 = sphi %s18700_s26, %s22451_s26   ;;  %s18591_s25 = sphi %s18698_s25, %s22453_s25   ;;  %s18587_s24 = sphi %s18696_s24, %s22452_s24  }
   0x7   : > { %22439 = sst [smem:[#allocation12_spill]] %s18595_s26  ;;  %s14072_s29 = sadd.s32 4294967294, %s18599_s27  }
   0x8   : > { %s18721_s0 = sadd.s32 1, %s18599_s27   ;;  %s404_s30 = sadd.s32 1, %s18595_s26 }
   0x9   : > { %22440 = sst [smem:[#allocation13_spill]] %s18721_s0  ;;  %s401_s18 = ssub.s32 %s18599_s27, %s18721_s0 }
   0xa   : > { %p414_p0 = scmp.ne.s32.totalorder %s18595_s26, %s18591_s25  ;;  %p402_p1 = scmp.eq.s32.totalorder %s401_s18, 0 }
   0xb   : > { %p415_p2 = scmp.eq.s32.totalorder %s18717_s28, 1  ;;  %p420_p3 = scmp.ne.s32.totalorder %s18591_s25, %s18587_s24 }
   0xc   : > { %p421_p4 = scmp.eq.s32.totalorder %s14072_s29, 1  ;;  %p14075_p7 = scmp.ge.s32.totalorder %s18599_s27, 1 }
   0xd   : > { %s18732_s19 = scalar_select %p402_p1, %s18595_s26, %s404_s30  }
   0xe   : > { %p18734_p5 = por %p415_p2, %p414_p0  ;;  %p18738_p6 = por %p421_p4, %p420_p3 }
   0xf   : > { %22441 = sst [smem:[#allocation14_spill]] %s18732_s19  ;;  %p500_p8 = scmp.lt.s32.totalorder %s18599_s27, 3 }
  0x10   : > { %s22443_s20 = scalar_select %p18738_p6, 1, 0 }
  0x11   : > { %p501_p9 = pnand %p14075_p7, %p500_p8 }
  0x12   : > { %22444 = sst [smem:[#allocation15_spill]] %s22443_s20  ;;  %p557_p10 = scmp.lt.s32.totalorder (!%p501_p9), %s18717_s28, 1  ;;  %vm3252_vm0 = vcmask (!%p501_p9), 523264   ;;  %vm3254_vm1 = vcmask (!%p501_p9), 517120   ;;  %v18601_v0 = vmov (!%p501_p9), 0.0   ;;  %v18602_v1 = vmov (!%p501_p9), 0  }
  0x13   : > { %504 = sbr.rel (%p501_p9) target bundleno = 3362 (0xd22), region = 88  ;;  %3256 = vst.msk [vmem:[#allocation3 + $0x10] sm:$0xff] (!%p501_p9), %vm3252_vm0, %v18601_v0  ;;  %3258 = vst.msk [vmem:[#allocation3 + $0x20] sm:$0xff] (!%p501_p9), %vm3252_vm0, %v18601_v0  ;;  %647 = vmatprep.mubr.bf16.mxu0 (!%p501_p9), %v18602_v1  ;;  %1087 = vmatprep.subr.bf16.mxu1 (!%p501_p9), %v18602_v1  ;;  %s22445_s18 = sld [smem:[#allocation16_spill]] (!%p501_p9)  ;;  %v18015_v16 = vld [vmem:[%s22417_s4 + $0x50] sm:$0xff] (!%p501_p9)   ;;  %v18010_v17 = vld [vmem:[%s22415_s2] sm:$0xff] (!%p501_p9)  }
  0x14   : > { %3257 = vst.msk [vmem:[#allocation3 + $0x18] sm:$0x3] (!%p501_p9), %vm3254_vm1, %v18601_v0  ;;  %3259 = vst.msk [vmem:[#allocation3 + $0x28] sm:$0x3] (!%p501_p9), %vm3254_vm1, %v18601_v0  ;;  %s22446_s20 = sld [smem:[#allocation17_spill]] (!%p501_p9)  ;;  %vm602_vm2 = vcmask (!%p501_p9), 130048   ;;  %1088 = vmatpush1.bf16.msra.mxu1 (!%p501_p9), %v18015_v16 }
  0x15   : > { %3260 = vst.msk [vmem:[#allocation3 + $0x30] sm:$0xff] (!%p501_p9), %vm3252_vm0, %v18601_v0  ;;  %3262 = vst.msk [vmem:[#allocation3 + $0x40] sm:$0xff] (!%p501_p9), %vm3252_vm0, %v18601_v0  ;;  %v18014_v18 = vld [vmem:[%s22417_s4] sm:$0xff] (!%p501_p9)   ;;  %1089 = vmatprep.subr.bf16.mxu1 (!%p501_p9), %v18602_v1  ;;  %v18017_v19 = vld [vmem:[%s22417_s4 + $0x58] sm:$0xff] (!%p501_p9)   ;;  %vm689_vm3 = vcmask (!%p501_p9), 261120   ;;  %vm692_vm4 = vcmask (!%p501_p9), 254976  }
  0x16   : > { %3261 = vst.msk [vmem:[#allocation3 + $0x38] sm:$0x3] (!%p501_p9), %vm3254_vm1, %v18601_v0  ;;  %3263 = vst.msk [vmem:[#allocation3 + $0x48] sm:$0x3] (!%p501_p9), %vm3254_vm1, %v18601_v0  ;;  %v18016_v20 = vld [vmem:[%s22417_s4 + $0x8] sm:$0xff] (!%p501_p9)   ;;  %v18019_v21 = vld [vmem:[%s22417_s4 + $0x60] sm:$0xff] (!%p501_p9)  }
  0x17   : > { %3264 = vst.msk [vmem:[#allocation3 + $0x50] sm:$0xff] (!%p501_p9), %vm3252_vm0, %v18601_v0  ;;  %3266 = vst.msk [vmem:[#allocation3 + $0x60] sm:$0xff] (!%p501_p9), %vm3252_vm0, %v18601_v0  ;;  %v18011_v22 = vld [vmem:[%s22415_s2 + $0x8] sm:$0xff] (!%p501_p9)   ;;  %v18018_v23 = vld [vmem:[%s22417_s4 + $0x10] sm:$0xff] (!%p501_p9)   ;;  %vm780_vm5 = vcmask (!%p501_p9), 261121   ;;  %vm783_vm6 = vcmask (!%p501_p9), 253952  }
  0x18   : > { %3265 = vst.msk [vmem:[#allocation3 + $0x58] sm:$0x3] (!%p501_p9), %vm3254_vm1, %v18601_v0  ;;  %3267 = vst.msk [vmem:[#allocation3 + $0x68] sm:$0x3] (!%p501_p9), %vm3254_vm1, %v18601_v0  ;;  %1090 = vmatpush1.bf16.msra.mxu1 (!%p501_p9), %v18017_v19  ;;  %v18021_v24 = vld [vmem:[%s22417_s4 + $0x68] sm:$0xff] (!%p501_p9)   ;;  %v18020_v25 = vld [vmem:[%s22417_s4 + $0x18] sm:$0xff] (!%p501_p9)  }
  0x19   : > { %3268 = vst.msk [vmem:[#allocation3 + $0x70] sm:$0xff] (!%p501_p9), %vm3252_vm0, %v18601_v0  ;;  %3270 = vst.msk [vmem:[#allocation3 + $0x80] sm:$0xff] (!%p501_p9), %vm3252_vm0, %v18601_v0  ;;  %1091 = vmatprep.subr.bf16.mxu1 (!%p501_p9), %v18602_v1  ;;  %v18023_v26 = vld [vmem:[%s22417_s4 + $0x70] sm:$0xff] (!%p501_p9)   ;;  %v18022_v28 = vld [vmem:[%s22417_s4 + $0x20] sm:$0xff] (!%p501_p9)   ;;  %vm921_vm7 = vcmask (!%p501_p9), 1046528   ;;  %vm1353_vm8 = vcmask (!%p501_p9), 1045504  }
  0x1a   : > { %3269 = vst.msk [vmem:[#allocation3 + $0x78] sm:$0x3] %vm3254_vm1, %v18601_v0  ;;  %3271 = vst.msk [vmem:[#allocation3 + $0x88] sm:$0x3] %vm3254_vm1, %v18601_v0  ;;  %s558_s21 = scalar_select %p557_p10, %s18717_s28, 1  ;;  %v18012_v27 = vld [vmem:[%s22415_s2 + $0x10] sm:$0xff]  }
  0x1b   : > { %688 = vst [vmem:[#allocation2] sm:$0xff] %v18601_v0  ;;  %691 = vst [vmem:[#allocation2 + $0x10] sm:$0x3] %v18601_v0  ;;  %v18025_v29 = vld [vmem:[%s22417_s4 + $0x78] sm:$0xff]   ;;  %v18024_v30 = vld [vmem:[%s22417_s4 + $0x28] sm:$0xff]   ;;  %s554_s29 = sand.u32 1, %s18591_s25  }
  0x1c   : > { %694 = vst [vmem:[#allocation2 + $0x20] sm:$0xff] %v18601_v0  ;;  %696 = vst [vmem:[#allocation2 + $0x30] sm:$0x3] %v18601_v0  ;;  %s15428_s22 = sshll.u32 %s558_s21, 6  ;;  %s15429_s23 = sshll.u32 %s558_s21, 5  ;;  %1092 = vmatpush1.bf16.msra.mxu1 %v18019_v21  ;;  %v18013_v31 = vld [vmem:[%s22415_s2 + $0x18] sm:$0xff]  }
  0x1d   : > { %698 = vst [vmem:[#allocation2 + $0x40] sm:$0xff] %v18601_v0  ;;  %700 = vst [vmem:[#allocation2 + $0x50] sm:$0x3] %v18601_v0  ;;  %s561_s19 = scalar_lea.vmem %s22445_s18, %s15428_s22  ;;  %s566_s24 = scalar_lea.vmem %s22446_s20, %s15429_s23  ;;  %1093 = vmatprep.subr.bf16.mxu1 %v18602_v1  ;;  %v18026_v32 = vld [vmem:[%s22417_s4 + $0x30] sm:$0xff]   ;;  %v18027_v33 = vld [vmem:[%s22417_s4 + $0x80] sm:$0xff]  }
  0x1e   : > { %702 = vst [vmem:[#allocation2 + $0x60] sm:$0xff] %v18601_v0  ;;  %704 = vst [vmem:[#allocation2 + $0x70] sm:$0x3] %v18601_v0  ;;  %v569_v2 = vld [vmem:[%s566_s24 + $0x8] sm:$0xff]  ;;  %v571_v3 = vld [vmem:[%s566_s24 + $0x18] sm:$0xff]  ;;  %s14076_s30 = sshll.u32 %s554_s29, 8 }
  0x1f   : > { %706 = vst [vmem:[#allocation2 + $0x80] sm:$0xff] %v18601_v0  ;;  %708 = vst [vmem:[#allocation2 + $0x90] sm:$0x3] %v18601_v0  ;;  %v3244_v4 = vld [vmem:[%s561_s19] sm:$0xff]  ;;  %v573_v5 = vpack.c.bf16 %v571_v3, %v569_v2  ;;  %v3245_v6 = vld [vmem:[%s561_s19 + $0x8] sm:$0xff]  ;;  %s22186_s18 = scalar_lea.vmem [#allocation8], %s14076_s30 }
  0x20   : > { %710 = vst [vmem:[#allocation2 + $0xa0] sm:$0xff] %v18601_v0  ;;  %712 = vst [vmem:[#allocation2 + $0xb0] sm:$0x3] %v18601_v0  ;;  %v3246_v7 = vld [vmem:[%s561_s19 + $0x10] sm:$0xff]  ;;  %v3247_v8 = vld [vmem:[%s561_s19 + $0x18] sm:$0xff]  ;;  %1094 = vmatpush1.bf16.msra.mxu1 %v18021_v24  ;;  %s15430_s26 = sshll.u32 %s18717_s28, 12 }
  0x21   : > { %714 = vst [vmem:[#allocation2 + $0xc0] sm:$0xff] %v18601_v0  ;;  %716 = vst [vmem:[#allocation2 + $0xd0] sm:$0x3] %v18601_v0  ;;  %v3248_v9 = vld [vmem:[%s561_s19 + $0x20] sm:$0xff]  ;;  %v3249_v10 = vld [vmem:[%s561_s19 + $0x28] sm:$0xff]  ;;  %615 = vmatprep.subr.bf16.mxu0 %v573_v5  ;;  %1095 = vmatprep.subr.bf16.mxu1 %v18602_v1  ;;  %s13998_s0 = sshll.u32 %s22186_s18, 4  ;;  %s22364_s28 = scalar_lea.hbm %s22430_s17, %s15430_s26  ;;  %s22366_s0 = int_to_ptr.vmem [resolvable:$true] %s13998_s0 }
  0x22   : > { %718 = vst [vmem:[#allocation2 + $0xe0] sm:$0xff] %v18601_v0  ;;  %720 = vst [vmem:[#allocation2 + $0xf0] sm:$0x3] %v18601_v0  ;;  %v3250_v11 = vld [vmem:[%s561_s19 + $0x30] sm:$0xff]  ;;  %v3251_v12 = vld [vmem:[%s561_s19 + $0x38] sm:$0xff]  ;;  %s22372_s19 = scalar_lea.sflag [#allocation9], %s554_s29 }
  0x23   : > { %722 = vst [vmem:[#allocation2 + $0x100] sm:$0xff] %v18601_v0  ;;  %724 = vst [vmem:[#allocation2 + $0x110] sm:$0x3] %v18601_v0  ;;  %v568_v13 = vld [vmem:[%s566_s24] sm:$0xff]  ;;  %v570_v14 = vld [vmem:[%s566_s24 + $0x10] sm:$0xff]  ;;  %s18537_s22 = scalar_lea.vmem %s22366_s0, 4096 }
  0x24   : > { %726 = vst [vmem:[#allocation2 + $0x120] sm:$0xff] %v18601_v0  ;;  %728 = vst [vmem:[#allocation2 + $0x130] sm:$0x3] %v18601_v0  ;;  %v572_v15 = vpack.c.bf16 %v570_v14, %v568_v13  ;;  %1096 = vmatpush1.bf16.msra.mxu1 %v18023_v26  ;;  %v18028_v34 = vld [vmem:[%s22417_s4 + $0x38] sm:$0xff]   ;;  %v18029_v35 = vld [vmem:[%s22417_s4 + $0x88] sm:$0xff]   ;;  %p18538_p11 = scmp.ne.s32.totalorder %s22366_s0, %s18537_s22  ;;  %s18603_s24 = smov [#allocation8]  }
  0x25   : > { %3253 = vst.msk [vmem:[#allocation3] sm:$0xff] %vm3252_vm0, %v18601_v0  ;;  %3272 = vst.msk [vmem:[#allocation3 + $0x90] sm:$0xff] %vm3252_vm0, %v18601_v0  ;;  %1097 = vmatprep.subr.bf16.mxu1 %v18602_v1  ;;  %v18030_v36 = vld [vmem:[%s22417_s4 + $0x40] sm:$0xff]   ;;  %v18031_v37 = vld [vmem:[%s22417_s4 + $0x90] sm:$0xff]   ;;  %s18541_s23 = sshll.u32 %s18603_s24, 4  ;;  %s18542_s23 = int_to_ptr.vmem [resolvable:$false] %s18541_s23 }
  0x26   : > { %3255 = vst.msk [vmem:[#allocation3 + $0x8] sm:$0x3] %vm3254_vm1, %v18601_v0  ;;  %3273 = vst.msk [vmem:[#allocation3 + $0x98] sm:$0x3] %vm3254_vm1, %v18601_v0  ;;  %616 = vmatpush1.bf16.msra.mxu0 %v572_v15  ;;  %v18032_v38 = vld [vmem:[%s22417_s4 + $0x48] sm:$0xff]   ;;  %v18033_v39 = vld [vmem:[%s22417_s4 + $0x98] sm:$0xff]   ;;  %p18539_p12 = pnand %p18538_p11, %p18734_p5  ;;  %p18544_p0 = scmp.lt.s32.totalorder %s22366_s0, %s18542_s23 }
  0x27   : > { %4500 = vst.msk [vmem:[#allocation4] sm:$0xff] %vm3252_vm0, %v18601_v0  ;;  %4502 = vst.msk [vmem:[#allocation4 + $0x10] sm:$0xff] %vm3252_vm0, %v18601_v0  ;;  %1224 = vmatprep.subr.bf16.mxu0 %v18602_v1  ;;  %v857_v48 = vld [vmem:[#allocation2] sm:$0xfe]  ;;  %v859_v51 = vld [vmem:[#allocation2 + $0x10] sm:$0x1] }
  0x28   : > { %4501 = vst.msk [vmem:[#allocation4 + $0x8] sm:$0x3] %vm3254_vm1, %v18601_v0  ;;  %4503 = vst.msk [vmem:[#allocation4 + $0x18] sm:$0x3] %vm3254_vm1, %v18601_v0  ;;  %1098 = vmatpush1.bf16.msra.mxu1 %v18025_v29  ;;  %v922_v58 = vrot.slane %v857_v48, 1  ;;  %v18034_v62 = vld [vmem:[%s22417_s4 + $0xf0] sm:$0xff]   ;;  %p18540_p13 = pneg %p18539_p12 }
  0x29   : > { %4504 = vst.msk [vmem:[#allocation4 + $0x20] sm:$0xff] %vm3252_vm0, %v18601_v0  ;;  %4506 = vst.msk [vmem:[#allocation4 + $0x30] sm:$0xff] %vm3252_vm0, %v18601_v0  ;;  %14085 = vmatmul.mubr.msk.bf16.vlgmr.msra.gmra.mrb[0].mxu0 %vm602_vm2, %v18010_v17  ;;  %1099 = vmatprep.subr.bf16.mxu1 %v18602_v1  ;;  %v18035_v26 = vld [vmem:[%s22417_s4 + $0xa0] sm:$0xff]   ;;  %s18543_s30 = scalar_lea.vmem %s18542_s23, 8192 }
  0x2a   : > { %4505 = vst.msk [vmem:[#allocation4 + $0x28] sm:$0x3] %vm3254_vm1, %v18601_v0  ;;  %4507 = vst.msk [vmem:[#allocation4 + $0x38] sm:$0x3] %vm3254_vm1, %v18601_v0  ;;  %657 = vmatprep.mubr.bf16.mxu0 %v18602_v1  ;;  %1225 = vmatpush1.bf16.msra.mxu0 %v18014_v18  ;;  %p18545_p1 = scmp.lt.s32.totalorder %s18543_s30, %s18537_s22 }
  0x2b   : > { %4508 = vst.msk [vmem:[#allocation4 + $0x40] sm:$0xff] %vm3252_vm0, %v18601_v0  ;;  %4510 = vst.msk [vmem:[#allocation4 + $0x50] sm:$0xff] %vm3252_vm0, %v18601_v0  ;;  %1226 = vmatprep.subr.bf16.mxu0 %v18602_v1 }
  0x2c   : > { %4509 = vst.msk [vmem:[#allocation4 + $0x48] sm:$0x3] %vm3254_vm1, %v18601_v0  ;;  %4511 = vst.msk [vmem:[#allocation4 + $0x58] sm:$0x3] %vm3254_vm1, %v18601_v0  ;;  %1100 = vmatpush1.bf16.msra.mxu1 %v18027_v33  ;;  %p18546_p2 = por %p18545_p1, %p18544_p0 }
  0x2d   : > { %4512 = vst.msk [vmem:[#allocation4 + $0x60] sm:$0xff] %vm3252_vm0, %v18601_v0  ;;  %4514 = vst.msk [vmem:[#allocation4 + $0x70] sm:$0xff] %vm3252_vm0, %v18601_v0  ;;  %1101 = vmatprep.subr.bf16.mxu1 %v18602_v1 }
  0x2e   : > { %4513 = vst.msk [vmem:[#allocation4 + $0x68] sm:$0x3] %vm3254_vm1, %v18601_v0  ;;  %4515 = vst.msk [vmem:[#allocation4 + $0x78] sm:$0x3] %vm3254_vm1, %v18601_v0  ;;  %1227 = vmatpush1.bf16.msra.mxu0 %v18016_v20  ;;  %p18547_p3 = pnand %p18546_p2, %p18540_p13 }
  0x2f   : > { %4516 = vst.msk [vmem:[#allocation4 + $0x80] sm:$0xff] %vm3252_vm0, %v18601_v0  ;;  %4518 = vst.msk [vmem:[#allocation4 + $0x90] sm:$0xff] %vm3252_vm0, %v18601_v0  ;;  %1228 = vmatprep.subr.bf16.mxu0 %v18602_v1 }
  0x30   : > { %4517 = vst.msk [vmem:[#allocation4 + $0x88] sm:$0x3] %vm3254_vm1, %v18601_v0  ;;  %4519 = vst.msk [vmem:[#allocation4 + $0x98] sm:$0x3] %vm3254_vm1, %v18601_v0  ;;  %1102 = vmatpush1.bf16.msra.mxu1 %v18029_v35 }
  0x31   : > { %5683 = vst.msk [vmem:[#allocation5] sm:$0xff] %vm3252_vm0, %v18601_v0  ;;  %5685 = vst.msk [vmem:[#allocation5 + $0x10] sm:$0xff] %vm3252_vm0, %v18601_v0  ;;  %14086 = vmatmul.mubr.msk.bf16.gmra.mrb[4].mxu0 %vm602_vm2, %v18011_v22  ;;  %1103 = vmatprep.subr.bf16.mxu1 %v18602_v1 }
  0x32   : > { %5684 = vst.msk [vmem:[#allocation5 + $0x8] sm:$0x3] %vm3254_vm1, %v18601_v0  ;;  %5686 = vst.msk [vmem:[#allocation5 + $0x18] sm:$0x3] %vm3254_vm1, %v18601_v0  ;;  %667 = vmatprep.mubr.bf16.mxu0 %v18602_v1  ;;  %1229 = vmatpush1.bf16.msra.mxu0 %v18018_v23 }
  0x33   : > { %5687 = vst.msk [vmem:[#allocation5 + $0x20] sm:$0xff] %vm3252_vm0, %v18601_v0  ;;  %5689 = vst.msk [vmem:[#allocation5 + $0x30] sm:$0xff] %vm3252_vm0, %v18601_v0  ;;  %1230 = vmatprep.subr.bf16.mxu0 %v18602_v1 }
  0x34   : > { %5688 = vst.msk [vmem:[#allocation5 + $0x28] sm:$0x3] %vm3254_vm1, %v18601_v0  ;;  %5690 = vst.msk [vmem:[#allocation5 + $0x38] sm:$0x3] %vm3254_vm1, %v18601_v0  ;;  %1104 = vmatpush1.bf16.msra.mxu1 %v18031_v37  ;;  %v18037_v37 = vld [vmem:[%s22417_s4 + $0xa8] sm:$0xff]  }
  0x35   : > { %5691 = vst.msk [vmem:[#allocation5 + $0x40] sm:$0xff] %vm3252_vm0, %v18601_v0  ;;  %5693 = vst.msk [vmem:[#allocation5 + $0x50] sm:$0xff] %vm3252_vm0, %v18601_v0  ;;  %1105 = vmatprep.subr.bf16.mxu1 %v18602_v1 }
  0x36   : > { %5692 = vst.msk [vmem:[#allocation5 + $0x48] sm:$0x3] %vm3254_vm1, %v18601_v0  ;;  %5694 = vst.msk [vmem:[#allocation5 + $0x58] sm:$0x3] %vm3254_vm1, %v18601_v0  ;;  %1231 = vmatpush1.bf16.msra.mxu0 %v18020_v25 }
  0x37   : > { %5695 = vst.msk [vmem:[#allocation5 + $0x60] sm:$0xff] %vm3252_vm0, %v18601_v0  ;;  %5697 = vst.msk [vmem:[#allocation5 + $0x70] sm:$0xff] %vm3252_vm0, %v18601_v0  ;;  %1232 = vmatprep.subr.bf16.mxu0 %v18602_v1 }
  0x38   : > { %5696 = vst.msk [vmem:[#allocation5 + $0x68] sm:$0x3] %vm3254_vm1, %v18601_v0  ;;  %5698 = vst.msk [vmem:[#allocation5 + $0x78] sm:$0x3] %vm3254_vm1, %v18601_v0  ;;  %1106 = vmatpush1.bf16.msra.mxu1 %v18033_v39 }
  0x39   : > { %5699 = vst.msk [vmem:[#allocation5 + $0x80] sm:$0xff] %vm3252_vm0, %v18601_v0  ;;  %5701 = vst.msk [vmem:[#allocation5 + $0x90] sm:$0xff] %vm3252_vm0, %v18601_v0  ;;  %14087 = vmatmul.mubr.msk.bf16.gmra.mrb[8].mxu0 %vm602_vm2, %v18012_v27  ;;  %1519 = vmatprep.subr.bf16.mxu1 %v18602_v1  ;;  %v18036_v27 = vld [vmem:[%s22417_s4 + $0xf8] sm:$0xff]  }
  0x3a   : > { %5700 = vst.msk [vmem:[#allocation5 + $0x88] sm:$0x3] %vm3254_vm1, %v18601_v0  ;;  %5702 = vst.msk [vmem:[#allocation5 + $0x98] sm:$0x3] %vm3254_vm1, %v18601_v0  ;;  %677 = vmatprep.mubr.bf16.mxu0 %v18602_v1  ;;  %1233 = vmatpush1.bf16.msra.mxu0 %v18022_v28 }
  0x3b   : > { %7270 = vst.msk [vmem:[#allocation6] sm:$0xff] %vm3252_vm0, %v18601_v0  ;;  %7271 = vst.msk [vmem:[#allocation6 + $0x8] sm:$0xff] %vm3252_vm0, %v18601_v0  ;;  %1234 = vmatprep.subr.bf16.mxu0 %v18602_v1 }
  0x3c   : > { %7272 = vst.msk [vmem:[#allocation6 + $0x10] sm:$0x3] %vm3254_vm1, %v18601_v0  ;;  %7275 = vst.msk [vmem:[#allocation6 + $0x28] sm:$0x3] %vm3254_vm1, %v18601_v0 }
  0x3d   : > { %7273 = vst.msk [vmem:[#allocation6 + $0x18] sm:$0xff] %vm3252_vm0, %v18601_v0  ;;  %7274 = vst.msk [vmem:[#allocation6 + $0x20] sm:$0xff] %vm3252_vm0, %v18601_v0 }
  0x3e   : > { %7276 = vst.msk [vmem:[#allocation6 + $0x30] sm:$0xff] %vm3252_vm0, %v18601_v0  ;;  %7277 = vst.msk [vmem:[#allocation6 + $0x38] sm:$0xff] %vm3252_vm0, %v18601_v0  ;;  %1235 = vmatpush1.bf16.msra.mxu0 %v18024_v30 }
  0x3f   : > { %7278 = vst.msk [vmem:[#allocation6 + $0x40] sm:$0x3] %vm3254_vm1, %v18601_v0  ;;  %7281 = vst.msk [vmem:[#allocation6 + $0x58] sm:$0x3] %vm3254_vm1, %v18601_v0  ;;  %1236 = vmatprep.subr.bf16.mxu0 %v18602_v1 }
  0x40   : > { %7279 = vst.msk [vmem:[#allocation6 + $0x48] sm:$0xff] %vm3252_vm0, %v18601_v0  ;;  %7280 = vst.msk [vmem:[#allocation6 + $0x50] sm:$0xff] %vm3252_vm0, %v18601_v0 }
  0x41   : > { %7282 = vst.msk [vmem:[#allocation6 + $0x60] sm:$0xff] %vm3252_vm0, %v18601_v0  ;;  %7283 = vst.msk [vmem:[#allocation6 + $0x68] sm:$0xff] %vm3252_vm0, %v18601_v0  ;;  %14088 = vmatmul.mubr.msk.bf16.gmra.mrb[12].mxu0 %vm602_vm2, %v18013_v31 }
  0x42   : > { %7284 = vst.msk [vmem:[#allocation6 + $0x70] sm:$0x3] %vm3254_vm1, %v18601_v0  ;;  %7287 = vst.msk [vmem:[#allocation6 + $0x88] sm:$0x3] %vm3254_vm1, %v18601_v0  ;;  %1237 = vmatpush1.bf16.msra.mxu0 %v18026_v32 }
  0x43   : > { %7285 = vst.msk [vmem:[#allocation6 + $0x78] sm:$0xff] %vm3252_vm0, %v18601_v0  ;;  %7286 = vst.msk [vmem:[#allocation6 + $0x80] sm:$0xff] %vm3252_vm0, %v18601_v0  ;;  %1238 = vmatprep.subr.bf16.mxu0 %v18602_v1 }
  0x44   : > { %7288 = vst.msk [vmem:[#allocation6 + $0x90] sm:$0xff] %vm3252_vm0, %v18601_v0  ;;  %7289 = vst.msk [vmem:[#allocation6 + $0x98] sm:$0xff] %vm3252_vm0, %v18601_v0 }
  0x45   : > { %7290 = vst.msk [vmem:[#allocation6 + $0xa0] sm:$0x3] %vm3254_vm1, %v18601_v0  ;;  %7293 = vst.msk [vmem:[#allocation6 + $0xb8] sm:$0x3] %vm3254_vm1, %v18601_v0 }
  0x46   : > { %7291 = vst.msk [vmem:[#allocation6 + $0xa8] sm:$0xff] %vm3252_vm0, %v18601_v0  ;;  %7292 = vst.msk [vmem:[#allocation6 + $0xb0] sm:$0xff] %vm3252_vm0, %v18601_v0  ;;  %1239 = vmatpush1.bf16.msra.mxu0 %v18028_v34 }
  0x47   : > { %7294 = vst.msk [vmem:[#allocation6 + $0xc0] sm:$0xff] %vm3252_vm0, %v18601_v0  ;;  %7295 = vst.msk [vmem:[#allocation6 + $0xc8] sm:$0xff] %vm3252_vm0, %v18601_v0  ;;  %1240 = vmatprep.subr.bf16.mxu0 %v18602_v1 }
  0x48   : > { %7296 = vst.msk [vmem:[#allocation6 + $0xd0] sm:$0x3] %vm3254_vm1, %v18601_v0  ;;  %7299 = vst.msk [vmem:[#allocation6 + $0xe8] sm:$0x3] %vm3254_vm1, %v18601_v0 }
  0x49   : > { %7297 = vst.msk [vmem:[#allocation6 + $0xd8] sm:$0xff] %vm3252_vm0, %v18601_v0  ;;  %7298 = vst.msk [vmem:[#allocation6 + $0xe0] sm:$0xff] %vm3252_vm0, %v18601_v0 }
  0x4a   : > { %7300 = vst.msk [vmem:[#allocation6 + $0xf0] sm:$0xff] %vm3252_vm0, %v18601_v0  ;;  %7301 = vst.msk [vmem:[#allocation6 + $0xf8] sm:$0xff] %vm3252_vm0, %v18601_v0  ;;  %1241 = vmatpush1.bf16.msra.mxu0 %v18030_v36 }
  0x4b   : > { %7302 = vst.msk [vmem:[#allocation6 + $0x100] sm:$0x3] %vm3254_vm1, %v18601_v0  ;;  %7305 = vst.msk [vmem:[#allocation6 + $0x118] sm:$0x3] %vm3254_vm1, %v18601_v0  ;;  %1242 = vmatprep.subr.bf16.mxu0 %v18602_v1 }
  0x4c   : > { %7303 = vst.msk [vmem:[#allocation6 + $0x108] sm:$0xff] %vm3252_vm0, %v18601_v0  ;;  %7304 = vst.msk [vmem:[#allocation6 + $0x110] sm:$0xff] %vm3252_vm0, %v18601_v0 }
  0x4d   : > { %7306 = vst.msk [vmem:[#allocation6 + $0x120] sm:$0xff] %vm3252_vm0, %v18601_v0  ;;  %7307 = vst.msk [vmem:[#allocation6 + $0x128] sm:$0xff] %vm3252_vm0, %v18601_v0 }
  0x4e   : > { %7308 = vst.msk [vmem:[#allocation6 + $0x130] sm:$0x3] %vm3254_vm1, %v18601_v0  ;;  %7311 = vst.msk [vmem:[#allocation6 + $0x148] sm:$0x3] %vm3254_vm1, %v18601_v0  ;;  %1243 = vmatpush1.bf16.msra.mxu0 %v18032_v38 }
  0x4f   : > { %7309 = vst.msk [vmem:[#allocation6 + $0x138] sm:$0xff] %vm3252_vm0, %v18601_v0  ;;  %7310 = vst.msk [vmem:[#allocation6 + $0x140] sm:$0xff] %vm3252_vm0, %v18601_v0  ;;  %1709 = vmatprep.subr.bf16.mxu0 %v18602_v1 }
  0x50   : > { %7312 = vst.msk [vmem:[#allocation6 + $0x150] sm:$0xff] %vm3252_vm0, %v18601_v0  ;;  %7313 = vst.msk [vmem:[#allocation6 + $0x158] sm:$0xff] %vm3252_vm0, %v18601_v0 }
  0x51   : > { %7314 = vst.msk [vmem:[#allocation6 + $0x160] sm:$0x3] %vm3254_vm1, %v18601_v0  ;;  %7317 = vst.msk [vmem:[#allocation6 + $0x178] sm:$0x3] %vm3254_vm1, %v18601_v0 }
  0x52   : > { %7315 = vst.msk [vmem:[#allocation6 + $0x168] sm:$0xff] %vm3252_vm0, %v18601_v0  ;;  %7316 = vst.msk [vmem:[#allocation6 + $0x170] sm:$0xff] %vm3252_vm0, %v18601_v0 }
  0x53   : > { %7318 = vst.msk [vmem:[#allocation6 + $0x180] sm:$0xff] %vm3252_vm0, %v18601_v0  ;;  %7319 = vst.msk [vmem:[#allocation6 + $0x188] sm:$0xff] %vm3252_vm0, %v18601_v0 }
  0x54   : > { %7320 = vst.msk [vmem:[#allocation6 + $0x190] sm:$0x3] %vm3254_vm1, %v18601_v0  ;;  %7323 = vst.msk [vmem:[#allocation6 + $0x1a8] sm:$0x3] %vm3254_vm1, %v18601_v0 }
  0x55   : > { %7321 = vst.msk [vmem:[#allocation6 + $0x198] sm:$0xff] %vm3252_vm0, %v18601_v0  ;;  %7322 = vst.msk [vmem:[#allocation6 + $0x1a0] sm:$0xff] %vm3252_vm0, %v18601_v0 }
  0x56   : > { %3275 = vst.msk [vmem:[#allocation3 + $0x11] sm:$0xff] %vm3252_vm0, %v3244_v4  ;;  %3276 = vst.msk [vmem:[#allocation3 + $0x21] sm:$0xff] %vm3252_vm0, %v3245_v6 }
  0x57   : > { %3277 = vst.msk [vmem:[#allocation3 + $0x31] sm:$0xff] %vm3252_vm0, %v3246_v7  ;;  %3278 = vst.msk [vmem:[#allocation3 + $0x41] sm:$0xff] %vm3252_vm0, %v3247_v8 }
  0x58   : > { %3279 = vst.msk [vmem:[#allocation3 + $0x51] sm:$0xff] %vm3252_vm0, %v3248_v9  ;;  %3280 = vst.msk [vmem:[#allocation3 + $0x61] sm:$0xff] %vm3252_vm0, %v3249_v10 }
  0x59   : > { %3281 = vst.msk [vmem:[#allocation3 + $0x71] sm:$0xff] %vm3252_vm0, %v3250_v11  ;;  %3282 = vst.msk [vmem:[#allocation3 + $0x81] sm:$0xff] %vm3252_vm0, %v3251_v12  ;;  %v18534_v12 = vld [vmem:[#allocation2] sm:$0xff] }
  0x5a   : > { %695 = vst.msk [vmem:[#allocation2 + $0x28] sm:$0xff] %vm689_vm3, %v18601_v0  ;;  %690 = vst.msk [vmem:[#allocation2 + $0x8] sm:$0xff] %vm689_vm3, %v18601_v0 }
  0x5b   : > { %697 = vst.msk [vmem:[#allocation2 + $0x38] sm:$0x3] %vm692_vm4, %v18601_v0  ;;  %693 = vst.msk [vmem:[#allocation2 + $0x18] sm:$0x3] %vm692_vm4, %v18601_v0 }
  0x5c   : > { %699 = vst.msk [vmem:[#allocation2 + $0x48] sm:$0xff] %vm689_vm3, %v18601_v0  ;;  %703 = vst.msk [vmem:[#allocation2 + $0x68] sm:$0xff] %vm689_vm3, %v18601_v0 }
  0x5d   : > { %701 = vst.msk [vmem:[#allocation2 + $0x58] sm:$0x3] %vm692_vm4, %v18601_v0  ;;  %705 = vst.msk [vmem:[#allocation2 + $0x78] sm:$0x3] %vm692_vm4, %v18601_v0 }
  0x5e   : > { %707 = vst.msk [vmem:[#allocation2 + $0x88] sm:$0xff] %vm689_vm3, %v18601_v0  ;;  %711 = vst.msk [vmem:[#allocation2 + $0xa8] sm:$0xff] %vm689_vm3, %v18601_v0 }
  0x5f   : > { %709 = vst.msk [vmem:[#allocation2 + $0x98] sm:$0x3] %vm692_vm4, %v18601_v0  ;;  %713 = vst.msk [vmem:[#allocation2 + $0xb8] sm:$0x3] %vm692_vm4, %v18601_v0 }
  0x60   : > { %715 = vst.msk [vmem:[#allocation2 + $0xc8] sm:$0xff] %vm689_vm3, %v18601_v0  ;;  %719 = vst.msk [vmem:[#allocation2 + $0xe8] sm:$0xff] %vm689_vm3, %v18601_v0 }
  0x61   : > { %717 = vst.msk [vmem:[#allocation2 + $0xd8] sm:$0x3] %vm692_vm4, %v18601_v0  ;;  %721 = vst.msk [vmem:[#allocation2 + $0xf8] sm:$0x3] %vm692_vm4, %v18601_v0  ;;  %v858_v49 = vld [vmem:[#allocation2 + $0x8] sm:$0xfe] }
  0x62   : > { %723 = vst.msk [vmem:[#allocation2 + $0x108] sm:$0xff] %vm689_vm3, %v18601_v0  ;;  %727 = vst.msk [vmem:[#allocation2 + $0x128] sm:$0xff] %vm689_vm3, %v18601_v0  ;;  %v860_v50 = vld [vmem:[#allocation2 + $0x18] sm:$0x1]  ;;  %v814_v55 = vld [vmem:[#allocation2 + $0x8] sm:$0xff]  ;;  %v925_v56 = vrot.slane %v858_v49, 1 }
  0x63   : > { %725 = vst.msk [vmem:[#allocation2 + $0x118] sm:$0x3] %vm692_vm4, %v18601_v0  ;;  %729 = vst.msk [vmem:[#allocation2 + $0x138] sm:$0x3] %vm692_vm4, %v18601_v0  ;;  %v926_v57 = vrot.slane %v860_v50, 1  ;;  %v923_v0 = vrot.slane %v859_v51, 1 }
  0x65   : > { %v927_v14 = vsel %vm921_vm7, %v925_v56, %v926_v57  ;;  %v924_v18 = vsel %vm921_vm7, %v922_v58, %v923_v0 }
  0xfc   : > { %v649_v40 = vpop.f32.mrb[0].mxu0 }
  0xfd   : > { %v746_v41 = vrot.slane %v649_v40, 7  ;;  %v651_v42 = vpop.f32.mrb[1].mxu0  ;;  %v18038_v40 = vld [vmem:[%s22417_s4 + $0x100] sm:$0xff]  }
  0xfe   : > { %v747_v43 = vrot.slane %v651_v42, 7  ;;  %v653_v44 = vpop.f32.mrb[2].mxu0 }
  0xff   : > { %779 = vst [vmem:[#allocation2 + $0x20] sm:$0xfe] %v746_v41  ;;  %782 = vst [vmem:[#allocation2 + $0x30] sm:$0x1] %v746_v41  ;;  %v748_v45 = vrot.slane %v653_v44, 7  ;;  %v655_v46 = vpop.f32.mrb[3].mxu0 }
 0x100   : > { %781 = vst.msk [vmem:[#allocation2 + $0x28] sm:$0xfe] %vm780_vm5, %v747_v43  ;;  %v749_v47 = vrot.slane %v655_v46, 7 }
 0x101   : > { %784 = vst.msk [vmem:[#allocation2 + $0x38] sm:$0x1] %vm783_vm6, %v747_v43  ;;  %785 = vst [vmem:[#allocation2 + $0x40] sm:$0xfe] %v748_v45 }
 0x102   : > { %787 = vst [vmem:[#allocation2 + $0x50] sm:$0x1] %v748_v45  ;;  %786 = vst.msk [vmem:[#allocation2 + $0x48] sm:$0xfe] %vm780_vm5, %v749_v47 }
 0x103   : > { %788 = vst.msk [vmem:[#allocation2 + $0x58] sm:$0x1] %vm783_vm6, %v749_v47 }
 0x104   : > { %v659_v52 = vpop.f32.mrb[4].mxu0 }
 0x105   : > { %v750_v53 = vrot.slane %v659_v52, 7  ;;  %v661_v54 = vpop.f32.mrb[5].mxu0 }
 0x106   : > { %v751_v59 = vrot.slane %v661_v54, 7  ;;  %v663_v60 = vpop.f32.mrb[6].mxu0  ;;  %v19156_v61 = vld [vmem:[#allocation2 + $0x20] sm:$0xff]  ;;  %v863_v11 = vld [vmem:[#allocation2 + $0x30] sm:$0x1] }
 0x107   : > { %v861_v63 = vld [vmem:[#allocation2 + $0x20] sm:$0xfe]  ;;  %789 = vst [vmem:[#allocation2 + $0x60] sm:$0xfe] %v750_v53  ;;  %791 = vst [vmem:[#allocation2 + $0x70] sm:$0x1] %v750_v53  ;;  %v829_v13 = vpack.c.bf16 %v19156_v61, %v18534_v12 }
 0x108   : > { %v752_v2 = vrot.slane %v663_v60, 7  ;;  %v19161_v3 = vld [vmem:[#allocation2 + $0x28] sm:$0xff]  ;;  %v665_v4 = vpop.f32.mrb[7].mxu0  ;;  %v928_v6 = vrot.slane %v861_v63, 1  ;;  %790 = vst.msk [vmem:[#allocation2 + $0x68] sm:$0xfe] %vm780_vm5, %v751_v59 }
 0x109   : > { %v862_v5 = vld [vmem:[#allocation2 + $0x28] sm:$0xfe]  ;;  %792 = vst.msk [vmem:[#allocation2 + $0x78] sm:$0x1] %vm783_vm6, %v751_v59  ;;  %v830_v7 = vpack.c.bf16 %v19161_v3, %v814_v55  ;;  %v753_v8 = vrot.slane %v665_v4, 7  ;;  %v929_v16 = vrot.slane %v863_v11, 1 }
 0x10a   : > { %v864_v9 = vld [vmem:[#allocation2 + $0x38] sm:$0x1]  ;;  %v931_v10 = vrot.slane %v862_v5, 1  ;;  %793 = vst [vmem:[#allocation2 + $0x80] sm:$0xfe] %v752_v2  ;;  %v19188_v32 = vld [vmem:[#allocation2 + $0x48] sm:$0xff] }
 0x10b   : > { %795 = vst [vmem:[#allocation2 + $0x90] sm:$0x1] %v752_v2  ;;  %v932_v15 = vrot.slane %v864_v9, 1  ;;  %v19168_v17 = vld [vmem:[#allocation2 + $0x48] sm:$0xfe]  ;;  %14133 = vmatprep.mubr.msk.bf16.mxu0 %vm689_vm3, %v830_v7  ;;  %v930_v22 = vsel %vm921_vm7, %v928_v6, %v929_v16  ;;  %v19195_v38 = vld [vmem:[#allocation2 + $0x40] sm:$0xff] }
 0x10c   : > { %794 = vst.msk [vmem:[#allocation2 + $0x88] sm:$0xfe] %vm780_vm5, %v753_v8  ;;  %v868_v19 = vld [vmem:[#allocation2 + $0x58] sm:$0x1]  ;;  %v19174_v20 = vld [vmem:[#allocation2 + $0x40] sm:$0xfe]  ;;  %1257 = vmatmul.mubr.bf16.vlgmr.msra.gmra.mrb[16].mxu0 %v829_v13  ;;  %v986_v31 = vpack.c.bf16 %v930_v22, %v924_v18 }
 0x10d   : > { %796 = vst.msk [vmem:[#allocation2 + $0x98] sm:$0x1] %vm783_vm6, %v753_v8  ;;  %v933_v21 = vsel %vm921_vm7, %v931_v10, %v932_v15  ;;  %v19178_v23 = vld [vmem:[#allocation2 + $0x50] sm:$0x1]  ;;  %1710 = vmatpush1.bf16.msra.mxu0 %v18034_v62  ;;  %v669_v24 = vpop.f32.mrb[8].mxu0  ;;  %v937_v28 = vrot.slane %v19168_v17, 1 }
 0x10e   : > { %v987_v25 = vpack.c.bf16 %v933_v21, %v927_v14  ;;  %v754_v29 = vrot.slane %v669_v24, 7  ;;  %v671_v30 = vpop.f32.mrb[9].mxu0  ;;  %1711 = vmatprep.subr.bf16.mxu0 %v18602_v1  ;;  %v938_v33 = vrot.slane %v868_v19, 1  ;;  %v934_v34 = vrot.slane %v19174_v20, 1  ;;  %v19197_v39 = vld [vmem:[#allocation2 + $0x60] sm:$0xff]  ;;  %v18039_v5 = vld [vmem:[%s22417_s4 + $0xb0] sm:$0xff]  }
 0x10f   : > { %v755_v35 = vrot.slane %v671_v30, 7  ;;  %v673_v36 = vpop.f32.mrb[10].mxu0  ;;  %v869_v41 = vld [vmem:[#allocation2 + $0x60] sm:$0xfe]  ;;  %v935_v42 = vrot.slane %v19178_v23, 1  ;;  %v19203_v44 = vld [vmem:[#allocation2 + $0x68] sm:$0xff]  ;;  %v831_v53 = vpack.c.bf16 %v19197_v39, %v19195_v38 }
 0x110   : > { %14119 = vmatprep.mubr.msk.bf16.mxu1 %vm689_vm3, %v987_v25  ;;  %797 = vst [vmem:[#allocation2 + $0xa0] sm:$0xfe] %v754_v29  ;;  %799 = vst [vmem:[#allocation2 + $0xb0] sm:$0x1] %v754_v29  ;;  %v756_v43 = vrot.slane %v673_v36, 7  ;;  %v675_v45 = vpop.f32.mrb[11].mxu0  ;;  %v832_v48 = vpack.c.bf16 %v19203_v44, %v19188_v32  ;;  %v939_v59 = vsel %vm921_vm7, %v937_v28, %v938_v33 }
 0x111   : > { %1120 = vmatmul.mubr.bf16.vlgmr.msra.gmra.mrb[0].mxu1 %v986_v31  ;;  %v870_v46 = vld [vmem:[#allocation2 + $0x68] sm:$0xfe]  ;;  %v940_v47 = vrot.slane %v869_v41, 1  ;;  %798 = vst.msk [vmem:[#allocation2 + $0xa8] sm:$0xfe] %vm780_vm5, %v755_v35  ;;  %1712 = vmatpush1.bf16.msra.mxu0 %v18036_v27  ;;  %v757_v49 = vrot.slane %v675_v45, 7  ;;  %v936_v4 = vsel %vm921_vm7, %v934_v34, %v935_v42 }
 0x112   : > { %800 = vst.msk [vmem:[#allocation2 + $0xb8] sm:$0x1] %vm783_vm6, %v755_v35  ;;  %1520 = vmatpush1.bf16.msra.mxu1 %v18035_v26  ;;  %v872_v50 = vld [vmem:[#allocation2 + $0x78] sm:$0x1]  ;;  %v943_v51 = vrot.slane %v870_v46, 1  ;;  %1713 = vmatprep.subr.bf16.mxu0 %v18602_v1  ;;  %v18040_v6 = vld [vmem:[%s22417_s4 + $0x108] sm:$0xff]  }
 0x113   : > { %v871_v52 = vld [vmem:[#allocation2 + $0x70] sm:$0x1]  ;;  %1521 = vmatprep.subr.bf16.mxu1 %v18602_v1  ;;  %801 = vst [vmem:[#allocation2 + $0xc0] sm:$0xfe] %v756_v43  ;;  %803 = vst [vmem:[#allocation2 + $0xd0] sm:$0x1] %v756_v43  ;;  %14134 = vmatprep.mubr.msk.bf16.mxu0 %vm689_vm3, %v832_v48 }
 0x114   : > { %v944_v54 = vrot.slane %v872_v50, 1  ;;  %v941_v55 = vrot.slane %v871_v52, 1  ;;  %v874_v56 = vld [vmem:[#allocation2 + $0x88] sm:$0xfe]  ;;  %802 = vst.msk [vmem:[#allocation2 + $0xc8] sm:$0xfe] %vm780_vm5, %v757_v49  ;;  %1265 = vmatmul.mubr.bf16.gmra.mrb[20].mxu0 %v831_v53 }
 0x115   : > { %804 = vst.msk [vmem:[#allocation2 + $0xd8] sm:$0x1] %vm783_vm6, %v757_v49  ;;  %v876_v57 = vld [vmem:[#allocation2 + $0x98] sm:$0x1]  ;;  %v19216_v58 = vld [vmem:[#allocation2 + $0x80] sm:$0xfe]  ;;  %1714 = vmatpush1.bf16.msra.mxu0 %v18038_v40 }
 0x116   : > { %v945_v60 = vsel %vm921_vm7, %v943_v51, %v944_v54  ;;  %v942_v62 = vsel %vm921_vm7, %v940_v47, %v941_v55  ;;  %v875_v63 = vld [vmem:[#allocation2 + $0x90] sm:$0x1]  ;;  %1522 = vmatpush1.bf16.msra.mxu1 %v18037_v37  ;;  %v679_v0 = vpop.f32.mrb[12].mxu0  ;;  %v949_v7 = vrot.slane %v874_v56, 1  ;;  %1715 = vmatprep.subr.bf16.mxu0 %v18602_v1  ;;  %v19230_v11 = vld [vmem:[#allocation2 + $0x88] sm:$0xff]  ;;  %v19232_v12 = vld [vmem:[#allocation2 + $0x80] sm:$0xff] }
 0x117   : > { %v989_v2 = vpack.c.bf16 %v945_v60, %v939_v59  ;;  %v758_v8 = vrot.slane %v679_v0, 7  ;;  %v681_v9 = vpop.f32.mrb[13].mxu0  ;;  %1523 = vmatprep.subr.bf16.mxu1 %v18602_v1  ;;  %v988_v10 = vpack.c.bf16 %v942_v62, %v936_v4  ;;  %v950_v13 = vrot.slane %v876_v57, 1  ;;  %v18041_v16 = vld [vmem:[%s22417_s4 + $0xb8] sm:$0xff]   ;;  %v19239_v18 = vld [vmem:[#allocation2 + $0xa0] sm:$0xff]  ;;  %v18042_v19 = vld [vmem:[%s22417_s4 + $0x110] sm:$0xff]  }
 0x118   : > { %v946_v14 = vrot.slane %v19216_v58, 1  ;;  %v759_v15 = vrot.slane %v681_v9, 7  ;;  %v683_v17 = vpop.f32.mrb[14].mxu0  ;;  %v877_v20 = vld [vmem:[#allocation2 + $0xa0] sm:$0xfe]  ;;  %v947_v21 = vrot.slane %v875_v63, 1  ;;  %v833_v35 = vpack.c.bf16 %v19239_v18, %v19232_v12 }
 0x119   : > { %14120 = vmatprep.mubr.msk.bf16.mxu1 %vm689_vm3, %v989_v2  ;;  %805 = vst [vmem:[#allocation2 + $0xe0] sm:$0xfe] %v758_v8  ;;  %807 = vst [vmem:[#allocation2 + $0xf0] sm:$0x1] %v758_v8  ;;  %v19244_v22 = vld [vmem:[#allocation2 + $0xa8] sm:$0xff]  ;;  %v760_v23 = vrot.slane %v683_v17, 7  ;;  %1716 = vmatpush1.bf16.msra.mxu0 %v18040_v6  ;;  %v951_v36 = vsel %vm921_vm7, %v949_v7, %v950_v13 }
 0x11a   : > { %1128 = vmatmul.mubr.bf16.gmra.mrb[4].mxu1 %v988_v10  ;;  %v685_v24 = vpop.f32.mrb[15].mxu0  ;;  %v878_v25 = vld [vmem:[#allocation2 + $0xa8] sm:$0xfe]  ;;  %v952_v26 = vrot.slane %v877_v20, 1  ;;  %v19248_v28 = vld [vmem:[#allocation2 + $0x18] sm:$0x3]  ;;  %v834_v29 = vpack.c.bf16 %v19244_v22, %v19230_v11  ;;  %1717 = vmatprep.subr.bf16.mxu0 %v18602_v1  ;;  %v948_v43 = vsel %vm921_vm7, %v946_v14, %v947_v21 }
 0x11b   : > { %v19246_v27 = vld [vmem:[#allocation2 + $0x8] sm:$0xfc]  ;;  %806 = vst.msk [vmem:[#allocation2 + $0xe8] sm:$0xfe] %vm780_vm5, %v759_v15  ;;  %1524 = vmatpush1.bf16.msra.mxu1 %v18039_v5  ;;  %v761_v30 = vrot.slane %v685_v24, 7  ;;  %v955_v33 = vrot.slane %v878_v25, 1 }
 0x11c   : > { %808 = vst.msk [vmem:[#allocation2 + $0xf8] sm:$0x1] %vm783_vm6, %v759_v15  ;;  %v880_v31 = vld [vmem:[#allocation2 + $0xb8] sm:$0x1]  ;;  %v879_v34 = vld [vmem:[#allocation2 + $0xb0] sm:$0x1]  ;;  %1525 = vmatprep.subr.bf16.mxu1 %v18602_v1  ;;  %14135 = vmatprep.mubr.msk.bf16.mxu0 %vm689_vm3, %v834_v29 }
 0x11d   : > { %809 = vst [vmem:[#allocation2 + $0x100] sm:$0xfe] %v760_v23  ;;  %811 = vst [vmem:[#allocation2 + $0x110] sm:$0x1] %v760_v23  ;;  %v956_v37 = vrot.slane %v880_v31, 1  ;;  %v953_v40 = vrot.slane %v879_v34, 1  ;;  %1273 = vmatmul.mubr.bf16.gmra.mrb[24].mxu0 %v833_v35 }
 0x11e   : > { %v882_v41 = vld [vmem:[#allocation2 + $0xc8] sm:$0xfe]  ;;  %810 = vst.msk [vmem:[#allocation2 + $0x108] sm:$0xfe] %vm780_vm5, %v761_v30  ;;  %v884_v45 = vld [vmem:[#allocation2 + $0xd8] sm:$0x1]  ;;  %1718 = vmatpush1.bf16.msra.mxu0 %v18042_v19 }
 0x11f   : > { %v1294_v42 = vld [vmem:[#allocation2 + $0x28] sm:$0xfc]  ;;  %812 = vst.msk [vmem:[#allocation2 + $0x118] sm:$0x1] %vm783_vm6, %v761_v30  ;;  %v881_v46 = vld [vmem:[#allocation2 + $0xc0] sm:$0xfe]  ;;  %v957_v48 = vsel %vm921_vm7, %v955_v33, %v956_v37  ;;  %v954_v49 = vsel %vm921_vm7, %v952_v26, %v953_v40  ;;  %1526 = vmatpush1.bf16.msra.mxu1 %v18041_v16  ;;  %1719 = vmatprep.subr.bf16.mxu0 %v18602_v1 }
 0x120   : > { %v1296_v47 = vld [vmem:[#allocation2 + $0x38] sm:$0x3]  ;;  %v961_v50 = vrot.slane %v882_v41, 1  ;;  %v962_v51 = vrot.slane %v884_v45, 1  ;;  %v883_v52 = vld [vmem:[#allocation2 + $0xd0] sm:$0x1]  ;;  %v991_v53 = vpack.c.bf16 %v957_v48, %v951_v36  ;;  %1527 = vmatprep.subr.bf16.mxu1 %v18602_v1  ;;  %v990_v58 = vpack.c.bf16 %v954_v49, %v948_v43 }
 0x121   : > { %v18043_v54 = vld [vmem:[%s22417_s4 + $0xc0] sm:$0xff]   ;;  %v18044_v55 = vld [vmem:[%s22417_s4 + $0x118] sm:$0xff]   ;;  %v1357_v56 = vrot.slane %v19246_v27, 2  ;;  %v1358_v57 = vrot.slane %v19248_v28, 2  ;;  %v19275_v59 = vld [vmem:[#allocation2 + $0xc8] sm:$0xff]  ;;  %v958_v62 = vrot.slane %v881_v46, 1  ;;  %v1609_v26 = vpack.c.bf16 %v19188_v32, %v19161_v3 }
 0x122   : > { %v19277_v60 = vld [vmem:[#allocation2 + $0xc0] sm:$0xff]  ;;  %v1363_v63 = vrot.slane %v1294_v42, 2  ;;  %v1364_v0 = vrot.slane %v1296_v47, 2  ;;  %14121 = vmatprep.mubr.msk.bf16.mxu1 %vm689_vm3, %v991_v53  ;;  %v887_v5 = vld [vmem:[#allocation2 + $0xf0] sm:$0x1]  ;;  %v959_v6 = vrot.slane %v883_v52, 1  ;;  %v963_v10 = vsel %vm921_vm7, %v961_v50, %v962_v51  ;;  %1720 = vmatpush1.bf16.msra.mxu0 %v18044_v55 }
 0x123   : > { %v19280_v2 = vld [vmem:[#allocation2 + $0xe0] sm:$0xff]  ;;  %1136 = vmatmul.mubr.bf16.gmra.mrb[8].mxu1 %v990_v58  ;;  %v19282_v7 = vld [vmem:[#allocation2 + $0xe8] sm:$0xff]  ;;  %v888_v9 = vld [vmem:[#allocation2 + $0xf8] sm:$0x1]  ;;  %v965_v20 = vrot.slane %v887_v5, 1  ;;  %1721 = vmatprep.subr.bf16.mxu0 %v18602_v1  ;;  %v1359_v28 = vsel %vm1353_vm8, %v1357_v56, %v1358_v57  ;;  %v1608_v58 = vpack.c.bf16 %v19195_v38, %v19156_v61 }
 0x124   : > { %v885_v4 = vld [vmem:[#allocation2 + $0xe0] sm:$0xfe]  ;;  %v886_v8 = vld [vmem:[#allocation2 + $0xe8] sm:$0xfe]  ;;  %1528 = vmatpush1.bf16.msra.mxu1 %v18043_v54  ;;  %v836_v14 = vpack.c.bf16 %v19282_v7, %v19275_v59  ;;  %v968_v19 = vrot.slane %v888_v9, 1  ;;  %v835_v21 = vpack.c.bf16 %v19280_v2, %v19277_v60  ;;  %v960_v24 = vsel %vm921_vm7, %v958_v62, %v959_v6  ;;  %v18047_v30 = vld [vmem:[%s22417_s4 + $0xd0] sm:$0xff]  }
 0x125   : > { %v964_v13 = vrot.slane %v885_v4, 1  ;;  %v18045_v15 = vld [vmem:[%s22417_s4 + $0xc8] sm:$0xff]   ;;  %v18046_v16 = vld [vmem:[%s22417_s4 + $0x120] sm:$0xff]   ;;  %v967_v17 = vrot.slane %v886_v8, 1  ;;  %1529 = vmatprep.subr.bf16.mxu1 %v18602_v1  ;;  %v1365_v29 = vsel %vm1353_vm8, %v1363_v63, %v1364_v0  ;;  %v18049_v33 = vld [vmem:[%s22417_s4 + $0xd8] sm:$0xff]   ;;  %v1611_v4 = vpack.c.bf16 %v19230_v11, %v19203_v44 }
 0x126   : > { %14136 = vmatprep.mubr.msk.bf16.mxu0 %vm689_vm3, %v836_v14  ;;  %1722 = vmatpush1.bf16.msra.mxu0 %v18046_v16  ;;  %v18048_v3 = vld [vmem:[%s22417_s4 + $0x128] sm:$0xff]   ;;  %v1419_v32 = vpack.c.bf16 %v1365_v29, %v1359_v28  ;;  %v18050_v34 = vld [vmem:[%s22417_s4 + $0x130] sm:$0xff]   ;;  %v1289_v35 = vld [vmem:[#allocation2] sm:$0xfc]  ;;  %v1610_v29 = vpack.c.bf16 %v19232_v12, %v19197_v39 }
 0x127   : > { %v969_v23 = vsel %vm921_vm7, %v967_v17, %v968_v19  ;;  %v966_v25 = vsel %vm921_vm7, %v964_v13, %v965_v20  ;;  %1281 = vmatmul.mubr.bf16.gmra.mrb[28].mxu0 %v835_v21  ;;  %1723 = vmatprep.subr.bf16.mxu0 %v18602_v1  ;;  %v1291_v36 = vld [vmem:[#allocation2 + $0x10] sm:$0x3]  ;;  %v1293_v37 = vld [vmem:[#allocation2 + $0x20] sm:$0xfc]  ;;  %v1302_v42 = vld [vmem:[#allocation2 + $0x68] sm:$0xfc] }
 0x128   : > { %v993_v27 = vpack.c.bf16 %v969_v23, %v963_v10  ;;  %1530 = vmatpush1.bf16.msra.mxu1 %v18045_v15  ;;  %14201 = vmatprep.mubr.msk.bf16.mxu0 %vm689_vm3, %v1609_v26  ;;  %v992_v31 = vpack.c.bf16 %v966_v25, %v960_v24  ;;  %v1295_v40 = vld [vmem:[#allocation2 + $0x30] sm:$0x3]  ;;  %v18051_v41 = vld [vmem:[%s22417_s4 + $0xe0] sm:$0xff]   ;;  %v1304_v43 = vld [vmem:[#allocation2 + $0x78] sm:$0x3]  ;;  %v1354_v46 = vrot.slane %v1289_v35, 2 }
 0x129   : > { %1531 = vmatprep.subr.bf16.mxu1 %v18602_v1  ;;  %v18052_v45 = vld [vmem:[%s22417_s4 + $0x138] sm:$0xff]   ;;  %v1355_v47 = vrot.slane %v1291_v36, 2  ;;  %v1360_v48 = vrot.slane %v1293_v37, 2  ;;  %v1361_v49 = vrot.slane %v1295_v40, 2  ;;  %v1298_v50 = vld [vmem:[#allocation2 + $0x48] sm:$0xfc] }
 0x12a   : > { %14122 = vmatprep.mubr.msk.bf16.mxu1 %vm689_vm3, %v993_v27  ;;  %1724 = vmatpush1.bf16.msra.mxu0 %v18048_v3  ;;  %v1300_v51 = vld [vmem:[#allocation2 + $0x58] sm:$0x3]  ;;  %v1375_v52 = vrot.slane %v1302_v42, 2  ;;  %v1376_v53 = vrot.slane %v1304_v43, 2  ;;  %v18053_v54 = vld [vmem:[%s22417_s4 + $0xe8] sm:$0xff]   ;;  %v18054_v55 = vld [vmem:[%s22417_s4 + $0x190] sm:$0xff]  }
 0x12b   : > { %1144 = vmatmul.mubr.bf16.gmra.mrb[12].mxu1 %v992_v31  ;;  %1725 = vmatprep.subr.bf16.mxu0 %v18602_v1  ;;  %v1369_v56 = vrot.slane %v1298_v50, 2  ;;  %v1370_v57 = vrot.slane %v1300_v51, 2  ;;  %v1356_v62 = vsel %vm1353_vm8, %v1354_v46, %v1355_v47  ;;  %v1362_v63 = vsel %vm1353_vm8, %v1360_v48, %v1361_v49  ;;  %v18055_v0 = vld [vmem:[%s22417_s4 + $0x140] sm:$0xff]   ;;  %v1303_v8 = vld [vmem:[#allocation2 + $0x70] sm:$0x3]  ;;  %v18056_v44 = vld [vmem:[%s22417_s4 + $0x198] sm:$0xff]  }
 0x12c   : > { %1532 = vmatpush1.bf16.msra.mxu1 %v18047_v30  ;;  %14167 = vmatprep.mubr.msk.bf16.mxu1 %vm689_vm3, %v1419_v32  ;;  %v1377_v5 = vsel %vm1353_vm8, %v1375_v52, %v1376_v53  ;;  %v1301_v6 = vld [vmem:[#allocation2 + $0x60] sm:$0xfc]  ;;  %v1306_v9 = vld [vmem:[#allocation2 + $0x88] sm:$0xfc]  ;;  %v1308_v61 = vld [vmem:[#allocation2 + $0x98] sm:$0x3]  ;;  %v1418_v13 = vpack.c.bf16 %v1362_v63, %v1356_v62  ;;  %v1612_v62 = vpack.c.bf16 %v19277_v60, %v19239_v18 }
 0x12d   : > { %1533 = vmatprep.subr.bf16.mxu1 %v18602_v1  ;;  %v1310_v38 = vld [vmem:[#allocation2 + $0xa8] sm:$0xfc]  ;;  %v1312_v10 = vld [vmem:[#allocation2 + $0xb8] sm:$0x3]  ;;  %v1371_v14 = vsel %vm1353_vm8, %v1369_v56, %v1370_v57  ;;  %v1297_v11 = vld [vmem:[#allocation2 + $0x40] sm:$0xfc] }
 0x12e   : > { %1726 = vmatpush1.bf16.msra.mxu0 %v18050_v34  ;;  %v1299_v15 = vld [vmem:[#allocation2 + $0x50] sm:$0x3]  ;;  %v1421_v16 = vpack.c.bf16 %v1377_v5, %v1371_v14  ;;  %v1372_v17 = vrot.slane %v1301_v6, 2  ;;  %v1373_v19 = vrot.slane %v1303_v8, 2  ;;  %v1381_v20 = vrot.slane %v1306_v9, 2  ;;  %v18057_v25 = vld [vmem:[%s22417_s4 + $0x148] sm:$0xff]  }
 0x12f   : > { %1727 = vmatprep.subr.bf16.mxu0 %v18602_v1  ;;  %v1382_v21 = vrot.slane %v1308_v61, 2  ;;  %v1387_v23 = vrot.slane %v1310_v38, 2  ;;  %v1388_v24 = vrot.slane %v1312_v10, 2  ;;  %v1366_v26 = vrot.slane %v1297_v11, 2  ;;  %v18058_v28 = vld [vmem:[%s22417_s4 + $0x1a0] sm:$0xff]   ;;  %v18059_v31 = vld [vmem:[%s22417_s4 + $0x150] sm:$0xff]  }
 0x130   : > { %1534 = vmatpush1.bf16.msra.mxu1 %v18049_v33  ;;  %v1367_v27 = vrot.slane %v1299_v15, 2  ;;  %v1374_v30 = vsel %vm1353_vm8, %v1372_v17, %v1373_v19  ;;  %v1305_v3 = vld [vmem:[#allocation2 + $0x80] sm:$0xfc]  ;;  %v1307_v32 = vld [vmem:[#allocation2 + $0x90] sm:$0x3]  ;;  %v1613_v33 = vpack.c.bf16 %v19275_v59, %v19244_v22  ;;  %v18060_v22 = vld [vmem:[%s22417_s4 + $0x1a8] sm:$0xff]  }
 0x131   : > { %1535 = vmatprep.subr.bf16.mxu1 %v18602_v1  ;;  %v1383_v34 = vsel %vm1353_vm8, %v1381_v20, %v1382_v21  ;;  %v1389_v35 = vsel %vm1353_vm8, %v1387_v23, %v1388_v24  ;;  %v1309_v36 = vld [vmem:[#allocation2 + $0xa0] sm:$0xfc]  ;;  %v1311_v37 = vld [vmem:[#allocation2 + $0xb0] sm:$0x3]  ;;  %v1314_v39 = vld [vmem:[#allocation2 + $0xc8] sm:$0xfc] }
 0x132   : > { %1728 = vmatpush1.bf16.msra.mxu0 %v18052_v45  ;;  %v1368_v12 = vsel %vm1353_vm8, %v1366_v26, %v1367_v27  ;;  %v1316_v40 = vld [vmem:[#allocation2 + $0xd8] sm:$0x3]  ;;  %v1378_v59 = vrot.slane %v1305_v3, 2  ;;  %v1423_v45 = vpack.c.bf16 %v1389_v35, %v1383_v34  ;;  %v1379_v46 = vrot.slane %v1307_v32, 2  ;;  %v18062_v56 = vld [vmem:[%s22417_s4 + $0x1b0] sm:$0xff]   ;;  %v18063_v38 = vld [vmem:[%s22417_s4 + $0x160] sm:$0xff]  }
 0x133   : > { %2313 = vmatprep.subr.bf16.mxu0 %v18602_v1  ;;  %v1320_v42 = vld [vmem:[#allocation2 + $0xf8] sm:$0x3]  ;;  %v1420_v43 = vpack.c.bf16 %v1374_v30, %v1368_v12  ;;  %v1384_v47 = vrot.slane %v1309_v36, 2  ;;  %v1385_v48 = vrot.slane %v1311_v37, 2  ;;  %v1393_v49 = vrot.slane %v1314_v39, 2  ;;  %v1606_v26 = vld [vmem:[#allocation2 + $0x100] sm:$0xff] }
 0x134   : > { %1536 = vmatpush1.bf16.msra.mxu1 %v18051_v41  ;;  %v1318_v41 = vld [vmem:[#allocation2 + $0xe8] sm:$0xfc]  ;;  %v1394_v50 = vrot.slane %v1316_v40, 2  ;;  %v1400_v52 = vrot.slane %v1320_v42, 2  ;;  %v18061_v53 = vld [vmem:[%s22417_s4 + $0x158] sm:$0xff]   ;;  %v1380_v63 = vsel %vm1353_vm8, %v1378_v59, %v1379_v46  ;;  %v1614_v34 = vpack.c.bf16 %v1606_v26, %v19280_v2  ;;  %v18067_v2 = vld [vmem:[%s22417_s4 + $0x170] sm:$0xff]  }
 0x135   : > { %1537 = vmatprep.subr.bf16.mxu1 %v18602_v1  ;;  %1742 = vmatmul.mubr.bf16.vlgmr.msra.gmra.mrb[32].mxu0 %v1608_v58  ;;  %v1399_v51 = vrot.slane %v1318_v41, 2  ;;  %v2089_v57 = vld [vmem:[#allocation2 + $0x48] sm:$0xfc]  ;;  %v2091_v58 = vld [vmem:[#allocation2 + $0x58] sm:$0x3] }
 0x136   : > { %14202 = vmatprep.mubr.msk.bf16.mxu0 %vm689_vm3, %v1611_v4  ;;  %2314 = vmatpush1.bf16.msra.mxu0 %v18054_v55  ;;  %v2085_v55 = vld [vmem:[#allocation2 + $0x28] sm:$0xfc]  ;;  %v2087_v4 = vld [vmem:[#allocation2 + $0x38] sm:$0x3]  ;;  %v1313_v5 = vld [vmem:[#allocation2 + $0xc0] sm:$0xfc]  ;;  %v1395_v9 = vsel %vm1353_vm8, %v1393_v49, %v1394_v50 }
 0x137   : > { %2315 = vmatprep.subr.bf16.mxu0 %v18602_v1  ;;  %v1315_v6 = vld [vmem:[#allocation2 + $0xd0] sm:$0x3]  ;;  %v1401_v61 = vsel %vm1353_vm8, %v1399_v51, %v1400_v52  ;;  %v2151_v18 = vrot.slane %v2085_v55, 2  ;;  %v1317_v60 = vld [vmem:[#allocation2 + $0xe0] sm:$0xfc]  ;;  %v2158_v14 = vrot.slane %v2091_v58, 2 }
 0x138   : > { %1538 = vmatpush1.bf16.msra.mxu1 %v18053_v54  ;;  %v1607_v54 = vld [vmem:[#allocation2 + $0x108] sm:$0xff]  ;;  %v1319_v10 = vld [vmem:[#allocation2 + $0xf0] sm:$0x3]  ;;  %v1789_v11 = vld [vmem:[#allocation2 + $0x58] sm:$0x1]  ;;  %v1390_v17 = vrot.slane %v1313_v5, 2  ;;  %v1425_v20 = vpack.c.bf16 %v1401_v61, %v1395_v9 }
 0x139   : > { %2011 = vmatprep.subr.bf16.mxu1 %v18602_v1  ;;  %v1615_v8 = vpack.c.bf16 %v1607_v54, %v19282_v7  ;;  %v18064_v15 = vld [vmem:[%s22417_s4 + $0x1b8] sm:$0xff]   ;;  %v1391_v19 = vrot.slane %v1315_v6, 2  ;;  %v1396_v21 = vrot.slane %v1317_v60, 2  ;;  %v1397_v23 = vrot.slane %v1319_v10, 2  ;;  %v1783_v24 = vld [vmem:[#allocation2 + $0x28] sm:$0xfe] }
 0x13a   : > { %2316 = vmatpush1.bf16.msra.mxu0 %v18056_v44  ;;  %v1787_v44 = vld [vmem:[#allocation2 + $0x48] sm:$0xfe]  ;;  %v1849_v3 = vrot.slane %v1783_v24, 1  ;;  %v19424_v39 = vld [vmem:[#allocation2 + $0x30] sm:$0x3] }
 0x13b   : > { %1552 = vmatmul.mubr.bf16.vlgmr.msra.gmra.mrb[16].mxu1 %v1418_v13  ;;  %2317 = vmatprep.subr.bf16.mxu0 %v18602_v1  ;;  %v2157_v13 = vrot.slane %v2089_v57, 2  ;;  %v1855_v27 = vrot.slane %v1787_v44, 1  ;;  %v1392_v36 = vsel %vm1353_vm8, %v1390_v17, %v1391_v19  ;;  %v1398_v37 = vsel %vm1353_vm8, %v1396_v21, %v1397_v23  ;;  %v2088_v12 = vld [vmem:[#allocation2 + $0x40] sm:$0xfc]  ;;  %v2090_v42 = vld [vmem:[#allocation2 + $0x50] sm:$0x3] }
 0x13c   : > { %14168 = vmatprep.mubr.msk.bf16.mxu1 %vm689_vm3, %v1421_v16  ;;  %2012 = vmatpush1.bf16.msra.mxu1 %v18055_v0  ;;  %v1386_v0 = vsel %vm1353_vm8, %v1384_v47, %v1385_v48  ;;  %v2152_v16 = vrot.slane %v2087_v4, 2  ;;  %v2099_v46 = vld [vmem:[#allocation2 + $0x98] sm:$0x3]  ;;  %v1424_v47 = vpack.c.bf16 %v1398_v37, %v1392_v36  ;;  %v18068_v49 = vld [vmem:[%s22417_s4 + $0x1c8] sm:$0xff]   ;;  %v2149_v50 = vrot.slane %v19424_v39, 2  ;;  %v18070_v57 = vld [vmem:[%s22417_s4 + $0x1d0] sm:$0xff]  }
 0x13d   : > { %2013 = vmatprep.subr.bf16.mxu1 %v18602_v1  ;;  %1750 = vmatmul.mubr.bf16.gmra.mrb[36].mxu0 %v1610_v29  ;;  %v1422_v7 = vpack.c.bf16 %v1386_v0, %v1380_v63  ;;  %v18065_v29 = vld [vmem:[%s22417_s4 + $0x168] sm:$0xff]   ;;  %v2159_v30 = vsel %vm1353_vm8, %v2157_v13, %v2158_v14  ;;  %v2154_v51 = vrot.slane %v2088_v12, 2  ;;  %v2155_v54 = vrot.slane %v2090_v42, 2  ;;  %v19445_v63 = vld [vmem:[#allocation2 + $0x20] sm:$0xfe] }
 0x13e   : > { %14203 = vmatprep.mubr.msk.bf16.mxu0 %vm689_vm3, %v1613_v33  ;;  %2318 = vmatpush1.bf16.msra.mxu0 %v18058_v28  ;;  %v1856_v28 = vrot.slane %v1789_v11, 1  ;;  %v19417_v33 = vld [vmem:[#allocation2 + $0x20] sm:$0xfc]  ;;  %v2153_v35 = vsel %vm1353_vm8, %v2151_v18, %v2152_v16  ;;  %v19447_v0 = vld [vmem:[#allocation2 + $0x30] sm:$0x1]  ;;  %v18072_v16 = vld [vmem:[%s22417_s4 + $0x1d8] sm:$0xff]  }
 0x13f   : > { %2319 = vmatprep.subr.bf16.mxu0 %v18602_v1  ;;  %v2213_v40 = vpack.c.bf16 %v2159_v30, %v2153_v35  ;;  %v2148_v59 = vrot.slane %v19417_v33, 2  ;;  %v1786_v4 = vld [vmem:[#allocation2 + $0x40] sm:$0xfe]  ;;  %v1788_v5 = vld [vmem:[#allocation2 + $0x50] sm:$0x1]  ;;  %v1847_v18 = vrot.slane %v19447_v0, 1  ;;  %v2156_v13 = vsel %vm1353_vm8, %v2154_v51, %v2155_v54 }
 0x140   : > { %2014 = vmatpush1.bf16.msra.mxu1 %v18057_v25  ;;  %v1785_v25 = vld [vmem:[#allocation2 + $0x38] sm:$0x1]  ;;  %v1857_v41 = vsel %vm921_vm7, %v1855_v27, %v1856_v28  ;;  %v1791_v6 = vld [vmem:[#allocation2 + $0x68] sm:$0xfe]  ;;  %v19454_v60 = vld [vmem:[#allocation2 + $0x60] sm:$0xfc] }
 0x141   : > { %2015 = vmatprep.subr.bf16.mxu1 %v18602_v1  ;;  %v1850_v32 = vrot.slane %v1785_v25, 1  ;;  %v1795_v9 = vld [vmem:[#allocation2 + $0x88] sm:$0xfe]  ;;  %v1797_v61 = vld [vmem:[#allocation2 + $0x98] sm:$0x1]  ;;  %v1852_v14 = vrot.slane %v1786_v4, 1 }
 0x142   : > { %2320 = vmatpush1.bf16.msra.mxu0 %v18060_v22  ;;  %v2095_v22 = vld [vmem:[#allocation2 + $0x78] sm:$0x3]  ;;  %v19456_v10 = vld [vmem:[#allocation2 + $0x70] sm:$0x3]  ;;  %v1853_v44 = vrot.slane %v1788_v5, 1  ;;  %v1861_v17 = vrot.slane %v1791_v6, 1 }
 0x143   : > { %1560 = vmatmul.mubr.bf16.gmra.mrb[20].mxu1 %v1420_v43  ;;  %2321 = vmatprep.subr.bf16.mxu0 %v18602_v1  ;;  %v2093_v43 = vld [vmem:[#allocation2 + $0x68] sm:$0xfc]  ;;  %v1851_v48 = vsel %vm921_vm7, %v1849_v3, %v1850_v32  ;;  %v19459_v11 = vld [vmem:[#allocation2 + $0x80] sm:$0xfc]  ;;  %v1868_v21 = vrot.slane %v1797_v61, 1  ;;  %v2160_v25 = vrot.slane %v19454_v60, 2 }
 0x144   : > { %14169 = vmatprep.mubr.msk.bf16.mxu1 %vm689_vm3, %v1423_v45  ;;  %2016 = vmatpush1.bf16.msra.mxu1 %v18059_v31  ;;  %v18066_v31 = vld [vmem:[%s22417_s4 + $0x1c0] sm:$0xff]   ;;  %v2097_v45 = vld [vmem:[#allocation2 + $0x88] sm:$0xfc]  ;;  %v1911_v52 = vpack.c.bf16 %v1857_v41, %v1851_v48  ;;  %v2163_v55 = vrot.slane %v2093_v43, 2  ;;  %v2161_v26 = vrot.slane %v19456_v10, 2  ;;  %v2166_v30 = vrot.slane %v19459_v11, 2 }
 0x145   : > { %2017 = vmatprep.subr.bf16.mxu1 %v18602_v1  ;;  %1758 = vmatmul.mubr.bf16.gmra.mrb[40].mxu0 %v1612_v62  ;;  %v2169_v58 = vrot.slane %v2097_v45, 2  ;;  %v2170_v62 = vrot.slane %v2099_v46, 2  ;;  %v2101_v27 = vld [vmem:[#allocation2 + $0xa8] sm:$0xfc]  ;;  %v2103_v28 = vld [vmem:[#allocation2 + $0xb8] sm:$0x3]  ;;  %v1854_v41 = vsel %vm921_vm7, %v1852_v14, %v1853_v44 }
 0x146   : > { %14204 = vmatprep.mubr.msk.bf16.mxu0 %vm689_vm3, %v1615_v8  ;;  %2322 = vmatpush1.bf16.msra.mxu0 %v18062_v56  ;;  %v2164_v56 = vrot.slane %v2095_v22, 2  ;;  %v1793_v8 = vld [vmem:[#allocation2 + $0x78] sm:$0x1]  ;;  %v2105_v3 = vld [vmem:[#allocation2 + $0xc8] sm:$0xfc]  ;;  %v18074_v35 = vld [vmem:[%s22417_s4 + $0x230] sm:$0xff]  }
 0x147   : > { %2323 = vmatprep.subr.bf16.mxu0 %v18602_v1  ;;  %v1862_v19 = vrot.slane %v1793_v8, 1  ;;  %v2171_v24 = vsel %vm1353_vm8, %v2169_v58, %v2170_v62  ;;  %v2107_v32 = vld [vmem:[#allocation2 + $0xd8] sm:$0x3]  ;;  %v1790_v36 = vld [vmem:[#allocation2 + $0x60] sm:$0xfe]  ;;  %v2176_v45 = vrot.slane %v2103_v28, 2 }
 0x148   : > { %2018 = vmatpush1.bf16.msra.mxu1 %v18061_v53  ;;  %v18069_v53 = vld [vmem:[%s22417_s4 + $0x178] sm:$0xff]   ;;  %v2165_v23 = vsel %vm1353_vm8, %v2163_v55, %v2164_v56  ;;  %v1792_v37 = vld [vmem:[#allocation2 + $0x70] sm:$0x1]  ;;  %v1794_v39 = vld [vmem:[#allocation2 + $0x80] sm:$0xfe]  ;;  %v2181_v48 = vrot.slane %v2105_v3, 2 }
 0x149   : > { %2019 = vmatprep.subr.bf16.mxu1 %v18602_v1  ;;  %v1796_v42 = vld [vmem:[#allocation2 + $0x90] sm:$0x1]  ;;  %v1799_v43 = vld [vmem:[#allocation2 + $0xa8] sm:$0xfe]  ;;  %v1801_v22 = vld [vmem:[#allocation2 + $0xb8] sm:$0x1]  ;;  %v1863_v33 = vsel %vm921_vm7, %v1861_v17, %v1862_v19 }
 0x14a   : > { %2324 = vmatpush1.bf16.msra.mxu0 %v18064_v15  ;;  %v18071_v15 = vld [vmem:[%s22417_s4 + $0x180] sm:$0xff]   ;;  %v1803_v46 = vld [vmem:[#allocation2 + $0xc8] sm:$0xfe]  ;;  %v1859_v51 = vrot.slane %v1792_v37, 1  ;;  %v1865_v54 = vrot.slane %v1796_v42, 1  ;;  %v1873_v55 = vrot.slane %v1799_v43, 1 }
 0x14b   : > { %1568 = vmatmul.mubr.bf16.gmra.mrb[24].mxu1 %v1422_v7  ;;  %2325 = vmatprep.subr.bf16.mxu0 %v18602_v1  ;;  %v19461_v7 = vld [vmem:[#allocation2 + $0x90] sm:$0x3]  ;;  %v1874_v56 = vrot.slane %v1801_v22, 1  ;;  %v1879_v58 = vrot.slane %v1803_v46, 1  ;;  %v2100_v0 = vld [vmem:[#allocation2 + $0xa0] sm:$0xfc] }
 0x14c   : > { %14170 = vmatprep.mubr.msk.bf16.mxu1 %vm689_vm3, %v1425_v20  ;;  %2020 = vmatpush1.bf16.msra.mxu1 %v18063_v38  ;;  %v1846_v38 = vrot.slane %v19445_v63, 1  ;;  %v1867_v20 = vrot.slane %v1795_v9, 1  ;;  %v2102_v4 = vld [vmem:[#allocation2 + $0xb0] sm:$0x3]  ;;  %v18076_v8 = vld [vmem:[%s22417_s4 + $0x238] sm:$0xff]   ;;  %v2162_v9 = vsel %vm1353_vm8, %v2160_v25, %v2161_v26  ;;  %v18077_v14 = vld [vmem:[%s22417_s4 + $0x1e8] sm:$0xff]  }
 0x14d   : > { %2021 = vmatprep.subr.bf16.mxu1 %v18602_v1  ;;  %1766 = vmatmul.mubr.bf16.gmra.mrb[44].mxu0 %v1614_v34  ;;  %v2150_v34 = vsel %vm1353_vm8, %v2148_v59, %v2149_v50  ;;  %v2175_v59 = vrot.slane %v2101_v27, 2  ;;  %v1858_v50 = vrot.slane %v1790_v36, 1  ;;  %v2104_v61 = vld [vmem:[#allocation2 + $0xc0] sm:$0xfc]  ;;  %v2106_v60 = vld [vmem:[#allocation2 + $0xd0] sm:$0x3]  ;;  %v1875_v17 = vsel %vm921_vm7, %v1873_v55, %v1874_v56 }
 0x14e   : > { %2326 = vmatpush1.bf16.msra.mxu0 %v18066_v31  ;;  %14269 = vmatprep.mubr.msk.bf16.mxu0 %vm689_vm3, %v2213_v40  ;;  %v2167_v31 = vrot.slane %v19461_v7, 2  ;;  %v2212_v12 = vpack.c.bf16 %v2156_v13, %v2150_v34  ;;  %v2215_v40 = vpack.c.bf16 %v2171_v24, %v2165_v23  ;;  %v19507_v10 = vld [vmem:[#allocation2 + $0xe8] sm:$0xfc]  ;;  %v19509_v13 = vld [vmem:[#allocation2 + $0xf8] sm:$0x3]  ;;  %v18078_v44 = vld [vmem:[%s22417_s4 + $0x240] sm:$0xff]  }
 0x14f   : > { %2327 = vmatprep.subr.bf16.mxu0 %v18602_v1  ;;  %v1860_v11 = vsel %vm921_vm7, %v1858_v50, %v1859_v51  ;;  %v2113_v23 = vld [vmem:[#allocation2 + $0x108] sm:$0xfc]  ;;  %v2115_v24 = vld [vmem:[#allocation2 + $0x118] sm:$0x3]  ;;  %v2187_v25 = vrot.slane %v19507_v10, 2  ;;  %v2188_v26 = vrot.slane %v19509_v13, 2 }
 0x150   : > { %2022 = vmatpush1.bf16.msra.mxu1 %v18065_v29  ;;  %v18073_v29 = vld [vmem:[%s22417_s4 + $0x188] sm:$0xff]   ;;  %v2168_v63 = vsel %vm1353_vm8, %v2166_v30, %v2167_v31  ;;  %v1798_v27 = vld [vmem:[#allocation2 + $0xa0] sm:$0xfe]  ;;  %v1800_v28 = vld [vmem:[#allocation2 + $0xb0] sm:$0x1]  ;;  %v2194_v42 = vrot.slane %v2115_v24, 2 }
 0x151   : > { %2023 = vmatprep.subr.bf16.mxu1 %v18602_v1  ;;  %v1802_v30 = vld [vmem:[#allocation2 + $0xc0] sm:$0xfe]  ;;  %v1804_v31 = vld [vmem:[#allocation2 + $0xd0] sm:$0x1]  ;;  %v1807_v3 = vld [vmem:[#allocation2 + $0xe8] sm:$0xfe]  ;;  %v2189_v55 = vsel %vm1353_vm8, %v2187_v25, %v2188_v26 }
 0x152   : > { %2328 = vmatpush1.bf16.msra.mxu0 %v18068_v49  ;;  %v2182_v49 = vrot.slane %v2107_v32, 2  ;;  %v1809_v36 = vld [vmem:[#allocation2 + $0xf8] sm:$0x1]  ;;  %v1811_v37 = vld [vmem:[#allocation2 + $0x108] sm:$0xfe]  ;;  %v1870_v43 = vrot.slane %v1798_v27, 1 }
 0x153   : > { %1576 = vmatmul.mubr.bf16.gmra.mrb[28].mxu1 %v1424_v47  ;;  %2329 = vmatprep.subr.bf16.mxu0 %v18602_v1  ;;  %v1805_v47 = vld [vmem:[#allocation2 + $0xd8] sm:$0x1]  ;;  %v1871_v22 = vrot.slane %v1800_v28, 1  ;;  %v2108_v46 = vld [vmem:[#allocation2 + $0xe0] sm:$0xfc]  ;;  %v1891_v50 = vrot.slane %v1811_v37, 1 }
 0x154   : > { %2024 = vmatpush1.bf16.msra.mxu1 %v18067_v2  ;;  %14235 = vmatprep.mubr.msk.bf16.mxu1 %vm689_vm3, %v1911_v52  ;;  %v1869_v2 = vsel %vm921_vm7, %v1867_v20, %v1868_v21  ;;  %v18075_v52 = vld [vmem:[%s22417_s4 + $0x1e0] sm:$0xff]   ;;  %v1880_v62 = vrot.slane %v1805_v47, 1  ;;  %v2178_v20 = vrot.slane %v2104_v61, 2  ;;  %v2179_v21 = vrot.slane %v2106_v60, 2  ;;  %v2110_v47 = vld [vmem:[#allocation2 + $0xf0] sm:$0x3] }
 0x155   : > { %2025 = vmatprep.subr.bf16.mxu1 %v18602_v1  ;;  %v1913_v6 = vpack.c.bf16 %v1869_v2, %v1863_v33  ;;  %v1806_v10 = vld [vmem:[#allocation2 + $0xe0] sm:$0xfe] }
 0x156   : > { %2330 = vmatpush1.bf16.msra.mxu0 %v18070_v57  ;;  %v1848_v57 = vsel %vm921_vm7, %v1846_v38, %v1847_v18  ;;  %v2177_v38 = vsel %vm1353_vm8, %v2175_v59, %v2176_v45  ;;  %v2183_v18 = vsel %vm1353_vm8, %v2181_v48, %v2182_v49  ;;  %v1881_v19 = vsel %vm921_vm7, %v1879_v58, %v1880_v62 }
 0x157   : > { %2331 = vmatprep.subr.bf16.mxu0 %v18602_v1  ;;  %v1910_v5 = vpack.c.bf16 %v1854_v41, %v1848_v57  ;;  %v2217_v32 = vpack.c.bf16 %v2183_v18, %v2177_v38  ;;  %v2193_v41 = vrot.slane %v2113_v23, 2  ;;  %v2180_v2 = vsel %vm1353_vm8, %v2178_v20, %v2179_v21  ;;  %v18082_v57 = vld [vmem:[%s22417_s4 + $0x250] sm:$0xff]   ;;  %v2580_v18 = vld [vmem:[#allocation2 + $0x58] sm:$0x1] }
 0x158   : > { %2026 = vmatpush1.bf16.msra.mxu1 %v18069_v53  ;;  %v1864_v53 = vrot.slane %v1794_v39, 1  ;;  %v1813_v39 = vld [vmem:[#allocation2 + $0x118] sm:$0x1]  ;;  %v1876_v59 = vrot.slane %v1802_v30, 1  ;;  %v1877_v45 = vrot.slane %v1804_v31, 1  ;;  %v1885_v48 = vrot.slane %v1807_v3, 1 }
 0x159   : > { %2027 = vmatprep.subr.bf16.mxu1 %v18602_v1  ;;  %v1886_v49 = vrot.slane %v1809_v36, 1  ;;  %v1892_v51 = vrot.slane %v1813_v39, 1  ;;  %v2195_v56 = vsel %vm1353_vm8, %v2193_v41, %v2194_v42  ;;  %v2184_v58 = vrot.slane %v2108_v46, 2  ;;  %v18084_v20 = vld [vmem:[%s22417_s4 + $0x258] sm:$0xff]   ;;  %v18085_v30 = vld [vmem:[%s22417_s4 + $0x208] sm:$0xff]   ;;  %v18086_v3 = vld [vmem:[%s22417_s4 + $0x260] sm:$0xff]  }
 0x15a   : > { %2332 = vmatpush1.bf16.msra.mxu0 %v18072_v16  ;;  %v1866_v7 = vsel %vm921_vm7, %v1864_v53, %v1865_v54  ;;  %v2173_v16 = vrot.slane %v2102_v4, 2  ;;  %v2114_v53 = vld [vmem:[#allocation2 + $0x110] sm:$0x3]  ;;  %v18081_v54 = vld [vmem:[%s22417_s4 + $0x1f8] sm:$0xff]   ;;  %v2185_v62 = vrot.slane %v2110_v47, 2  ;;  %v1872_v4 = vsel %vm921_vm7, %v1870_v43, %v1871_v22  ;;  %v2390_v39 = vld [vmem:[#allocation2 + $0x68] sm:$0xff] }
 0x15b   : > { %2806 = vmatprep.subr.bf16.mxu0 %v18602_v1  ;;  %v1912_v34 = vpack.c.bf16 %v1866_v7, %v1860_v11  ;;  %v1887_v61 = vsel %vm921_vm7, %v1885_v48, %v1886_v49  ;;  %v1893_v60 = vsel %vm921_vm7, %v1891_v50, %v1892_v51  ;;  %v2191_v38 = vrot.slane %v2114_v53, 2  ;;  %v1812_v11 = vld [vmem:[#allocation2 + $0x110] sm:$0x1]  ;;  %v18083_v7 = vld [vmem:[%s22417_s4 + $0x200] sm:$0xff]   ;;  %v2388_v41 = vld [vmem:[#allocation2 + $0x48] sm:$0xff] }
 0x15c   : > { %2028 = vmatpush1.bf16.msra.mxu1 %v18071_v15  ;;  %v2172_v15 = vrot.slane %v2100_v0, 2  ;;  %v2219_v13 = vpack.c.bf16 %v2195_v56, %v2189_v55  ;;  %v2645_v23 = vrot.slane %v2580_v18, 1  ;;  %v1882_v24 = vrot.slane %v1806_v10, 1  ;;  %v18088_v42 = vld [vmem:[%s22417_s4 + $0x268] sm:$0xff]   ;;  %v18089_v22 = vld [vmem:[%s22417_s4 + $0x218] sm:$0xff]   ;;  %v18091_v53 = vld [vmem:[%s22417_s4 + $0x220] sm:$0xff]  }
 0x15d   : > { %2029 = vmatprep.subr.bf16.mxu1 %v18602_v1  ;;  %2346 = vmatmul.mubr.bf16.vlgmr.msra.gmra.mrb[48].mxu0 %v2212_v12  ;;  %v18079_v12 = vld [vmem:[%s22417_s4 + $0x1f0] sm:$0xff]   ;;  %v1889_v27 = vrot.slane %v1812_v11, 1  ;;  %v2186_v28 = vsel %vm1353_vm8, %v2184_v58, %v2185_v62  ;;  %v2404_v43 = vpack.c.bf16 %v2390_v39, %v2388_v41  ;;  %v2588_v46 = vld [vmem:[#allocation2 + $0x98] sm:$0x1]  ;;  %v2590_v47 = vld [vmem:[#allocation2 + $0xa8] sm:$0xfe] }
 0x15e   : > { %14270 = vmatprep.mubr.msk.bf16.mxu0 %vm689_vm3, %v2215_v40  ;;  %2807 = vmatpush1.bf16.msra.mxu0 %v18074_v35  ;;  %v1915_v35 = vpack.c.bf16 %v1881_v19, %v1875_v17  ;;  %v18080_v40 = vld [vmem:[%s22417_s4 + $0x248] sm:$0xff]   ;;  %v2174_v33 = vsel %vm1353_vm8, %v2172_v15, %v2173_v16  ;;  %v1917_v19 = vpack.c.bf16 %v1893_v60, %v1887_v61  ;;  %v2592_v48 = vld [vmem:[#allocation2 + $0xb8] sm:$0x1]  ;;  %v2577_v49 = vld [vmem:[#allocation2 + $0x40] sm:$0xfe]  ;;  %v2657_v55 = vrot.slane %v2588_v46, 1 }
 0x15f   : > { %2808 = vmatprep.subr.bf16.mxu0 %v18602_v1  ;;  %v2216_v0 = vpack.c.bf16 %v2180_v2, %v2174_v33  ;;  %v18090_v33 = vld [vmem:[%s22417_s4 + $0x270] sm:$0xff]   ;;  %v2581_v2 = vld [vmem:[#allocation2 + $0x60] sm:$0xfe]  ;;  %v2662_v56 = vrot.slane %v2590_v47, 1  ;;  %v18092_v58 = vld [vmem:[%s22417_s4 + $0x278] sm:$0xff]   ;;  %v2641_v62 = vrot.slane %v2577_v49, 1 }
 0x160   : > { %2030 = vmatpush1.bf16.msra.mxu1 %v18073_v29  ;;  %v2214_v29 = vpack.c.bf16 %v2168_v63, %v2162_v9  ;;  %v2584_v9 = vld [vmem:[#allocation2 + $0x78] sm:$0x1]  ;;  %v2579_v50 = vld [vmem:[#allocation2 + $0x50] sm:$0x1]  ;;  %v2647_v51 = vrot.slane %v2581_v2, 1  ;;  %v2393_v46 = vld [vmem:[#allocation2 + $0xa0] sm:$0xff] }
 0x161   : > { %2504 = vmatprep.subr.bf16.mxu1 %v18602_v1  ;;  %v2651_v16 = vrot.slane %v2584_v9, 1  ;;  %v2587_v9 = vld [vmem:[#allocation2 + $0x90] sm:$0x1]  ;;  %v2594_v18 = vld [vmem:[#allocation2 + $0xc8] sm:$0xfe] }
 0x162   : > { %2809 = vmatpush1.bf16.msra.mxu0 %v18076_v8  ;;  %v2582_v8 = vld [vmem:[#allocation2 + $0x68] sm:$0xfe]  ;;  %v2595_v41 = vld [vmem:[#allocation2 + $0xd0] sm:$0x1]  ;;  %v2608_v2 = vld [vmem:[#allocation2 + $0x138] sm:$0x1] }
 0x163   : > { %2044 = vmatmul.mubr.bf16.vlgmr.msra.gmra.mrb[32].mxu1 %v1910_v5  ;;  %2810 = vmatprep.subr.bf16.mxu0 %v18602_v1  ;;  %v1878_v5 = vsel %vm921_vm7, %v1876_v59, %v1877_v45  ;;  %v2650_v15 = vrot.slane %v2582_v8, 1  ;;  %v2583_v59 = vld [vmem:[#allocation2 + $0x70] sm:$0x1]  ;;  %v2586_v45 = vld [vmem:[#allocation2 + $0x88] sm:$0xfe] }
 0x164   : > { %14236 = vmatprep.mubr.msk.bf16.mxu1 %vm689_vm3, %v1913_v6  ;;  %2505 = vmatpush1.bf16.msra.mxu1 %v18075_v52  ;;  %v2112_v52 = vld [vmem:[#allocation2 + $0x100] sm:$0xfc]  ;;  %v2578_v6 = vld [vmem:[#allocation2 + $0x48] sm:$0xfe]  ;;  %v1914_v17 = vpack.c.bf16 %v1878_v5, %v1872_v4 }
 0x165   : > { %2506 = vmatprep.subr.bf16.mxu1 %v18602_v1  ;;  %2354 = vmatmul.mubr.bf16.gmra.mrb[52].mxu0 %v2214_v29  ;;  %v2190_v63 = vrot.slane %v2112_v52, 2  ;;  %v2644_v21 = vrot.slane %v2578_v6, 1  ;;  %v2652_v31 = vsel %vm921_vm7, %v2650_v15, %v2651_v16  ;;  %v2648_v52 = vrot.slane %v2583_v59, 1  ;;  %v18094_v4 = vld [vmem:[%s22419_s6 + $0x20] sm:$0xff]   ;;  %v18093_v5 = vld [vmem:[%s22417_s4 + $0x228] sm:$0xff]  }
 0x166   : > { %14271 = vmatprep.mubr.msk.bf16.mxu0 %vm689_vm3, %v2217_v32  ;;  %2811 = vmatpush1.bf16.msra.mxu0 %v18078_v44  ;;  %v1810_v44 = vld [vmem:[#allocation2 + $0x100] sm:$0xfe]  ;;  %v18097_v16 = vld [vmem:[%s22419_s6 + $0x28] sm:$0xff]  }
 0x167   : > { %2812 = vmatprep.subr.bf16.mxu0 %v18602_v1  ;;  %v1888_v26 = vrot.slane %v1810_v44, 1  ;;  %v2192_v29 = vsel %vm1353_vm8, %v2190_v63, %v2191_v38  ;;  %v2649_v6 = vsel %vm921_vm7, %v2647_v51, %v2648_v52  ;;  %v2585_v8 = vld [vmem:[#allocation2 + $0x80] sm:$0xfe]  ;;  %v2591_v38 = vld [vmem:[#allocation2 + $0xb0] sm:$0x1]  ;;  %v2396_v49 = vld [vmem:[#allocation2 + $0xc8] sm:$0xff] }
 0x168   : > { %2507 = vmatpush1.bf16.msra.mxu1 %v18077_v14  ;;  %v1808_v14 = vld [vmem:[#allocation2 + $0xf0] sm:$0x1]  ;;  %v2218_v32 = vpack.c.bf16 %v2192_v29, %v2186_v28  ;;  %v2589_v63 = vld [vmem:[#allocation2 + $0xa0] sm:$0xfe]  ;;  %v2600_v44 = vld [vmem:[#allocation2 + $0xf8] sm:$0x1] }
 0x169   : > { %2508 = vmatprep.subr.bf16.mxu1 %v18602_v1  ;;  %v1883_v25 = vrot.slane %v1808_v14, 1  ;;  %v1890_v36 = vsel %vm921_vm7, %v1888_v26, %v1889_v27  ;;  %v2598_v14 = vld [vmem:[#allocation2 + $0xe8] sm:$0xfe]  ;;  %v2653_v15 = vrot.slane %v2585_v8, 1  ;;  %v18095_v26 = vld [vmem:[%s22417_s4 + $0x280] sm:$0xff]   ;;  %v2668_v27 = vrot.slane %v2594_v18, 1 }
 0x16a   : > { %2813 = vmatpush1.bf16.msra.mxu0 %v18080_v40  ;;  %v2674_v29 = vrot.slane %v2598_v14, 1  ;;  %v2606_v39 = vld [vmem:[#allocation2 + $0x128] sm:$0xfe]  ;;  %v2666_v51 = vrot.slane %v2595_v41, 1  ;;  %v2605_v8 = vld [vmem:[#allocation2 + $0x120] sm:$0xfe] }
 0x16b   : > { %2052 = vmatmul.mubr.bf16.gmra.mrb[36].mxu1 %v1912_v34  ;;  %2814 = vmatprep.subr.bf16.mxu0 %v18602_v1  ;;  %v2646_v34 = vsel %vm921_vm7, %v2644_v21, %v2645_v23  ;;  %v2654_v21 = vrot.slane %v2587_v9, 1  ;;  %v2659_v23 = vrot.slane %v2589_v63, 1  ;;  %v2607_v9 = vld [vmem:[#allocation2 + $0x130] sm:$0x1]  ;;  %v2601_v18 = vld [vmem:[#allocation2 + $0x100] sm:$0xfe] }
 0x16c   : > { %14237 = vmatprep.mubr.msk.bf16.mxu1 %vm689_vm3, %v1915_v35  ;;  %2509 = vmatpush1.bf16.msra.mxu1 %v18079_v12  ;;  %v1884_v35 = vsel %vm921_vm7, %v1882_v24, %v1883_v25  ;;  %v2706_v37 = vpack.c.bf16 %v2652_v31, %v2646_v34  ;;  %v18087_v12 = vld [vmem:[%s22417_s4 + $0x210] sm:$0xff]   ;;  %v2660_v24 = vrot.slane %v2591_v38, 1  ;;  %v2387_v25 = vld [vmem:[#allocation2 + $0x40] sm:$0xff] }
 0x16d   : > { %2510 = vmatprep.subr.bf16.mxu1 %v18602_v1  ;;  %2362 = vmatmul.mubr.bf16.gmra.mrb[56].mxu0 %v2216_v0  ;;  %v1916_v40 = vpack.c.bf16 %v1890_v36, %v1884_v35  ;;  %v2642_v0 = vrot.slane %v2579_v50, 1  ;;  %v2655_v34 = vsel %vm921_vm7, %v2653_v15, %v2654_v21  ;;  %v18096_v36 = vld [vmem:[%s22417_s4 + $0x288] sm:$0xff]   ;;  %v2395_v14 = vld [vmem:[#allocation2 + $0xc0] sm:$0xff] }
 0x16e   : > { %14272 = vmatprep.mubr.msk.bf16.mxu0 %vm689_vm3, %v2219_v13  ;;  %2815 = vmatpush1.bf16.msra.mxu0 %v18082_v57  ;;  %v2663_v57 = vrot.slane %v2592_v48, 1  ;;  %v2596_v13 = vld [vmem:[#allocation2 + $0xd8] sm:$0x1]  ;;  %v2661_v35 = vsel %vm921_vm7, %v2659_v23, %v2660_v24  ;;  %v2398_v50 = vld [vmem:[#allocation2 + $0xe8] sm:$0xff]  ;;  %v18101_v21 = vld [vmem:[%s22417_s4 + $0x2a0] sm:$0xff]  }
 0x16f   : > { %2816 = vmatprep.subr.bf16.mxu0 %v18602_v1  ;;  %v2643_v10 = vsel %vm921_vm7, %v2641_v62, %v2642_v0  ;;  %v2669_v28 = vrot.slane %v2596_v13, 1  ;;  %v2707_v59 = vpack.c.bf16 %v2661_v35, %v2655_v34  ;;  %v2687_v62 = vrot.slane %v2608_v2, 1  ;;  %v2400_v15 = vld [vmem:[#allocation2 + $0x108] sm:$0xff]  ;;  %v2886_v24 = vld [vmem:[#allocation2 + $0x78] sm:$0x3] }
 0x170   : > { %2511 = vmatpush1.bf16.msra.mxu1 %v18081_v54  ;;  %v2656_v54 = vrot.slane %v2586_v45, 1  ;;  %v2664_v60 = vsel %vm921_vm7, %v2662_v56, %v2663_v57  ;;  %v2705_v11 = vpack.c.bf16 %v2649_v6, %v2643_v10  ;;  %v2391_v45 = vld [vmem:[#allocation2 + $0x80] sm:$0xff]  ;;  %v2603_v10 = vld [vmem:[#allocation2 + $0x110] sm:$0x1]  ;;  %v2884_v23 = vld [vmem:[#allocation2 + $0x68] sm:$0xfc] }
 0x171   : > { %2512 = vmatprep.subr.bf16.mxu1 %v18602_v1  ;;  %v2405_v0 = vpack.c.bf16 %v2393_v46, %v2391_v45  ;;  %v2953_v34 = vrot.slane %v2886_v24, 2  ;;  %v18102_v35 = vld [vmem:[%s22417_s4 + $0x2a8] sm:$0xff]   ;;  %v2893_v24 = vld [vmem:[#allocation2 + $0xb0] sm:$0x3] }
 0x172   : > { %2817 = vmatpush1.bf16.msra.mxu0 %v18084_v20  ;;  %v2658_v61 = vsel %vm921_vm7, %v2656_v54, %v2657_v55  ;;  %v2394_v20 = vld [vmem:[#allocation2 + $0xa8] sm:$0xff]  ;;  %v18103_v54 = vld [vmem:[%s22419_s6 + $0x38] sm:$0xff]   ;;  %v18098_v55 = vld [vmem:[%s22417_s4 + $0x290] sm:$0xff]  }
 0x173   : > { %2060 = vmatmul.mubr.bf16.gmra.mrb[40].mxu1 %v1914_v17  ;;  %2818 = vmatprep.subr.bf16.mxu0 %v18602_v1  ;;  %v2708_v17 = vpack.c.bf16 %v2664_v60, %v2658_v61  ;;  %v19646_v61 = vld [vmem:[%s22419_s6] sm:$0xff]   ;;  %v18099_v60 = vld [vmem:[%s22417_s4 + $0x298] sm:$0xff]  }
 0x174   : > { %14238 = vmatprep.mubr.msk.bf16.mxu1 %vm689_vm3, %v1917_v19  ;;  %2513 = vmatpush1.bf16.msra.mxu1 %v18083_v7  ;;  %v2389_v7 = vld [vmem:[#allocation2 + $0x60] sm:$0xff]  ;;  %v2392_v19 = vld [vmem:[#allocation2 + $0x88] sm:$0xff] }
 0x175   : > { %2514 = vmatprep.subr.bf16.mxu1 %v18602_v1  ;;  %2370 = vmatmul.mubr.bf16.gmra.mrb[60].mxu0 %v2218_v32  ;;  %v2403_v31 = vpack.c.bf16 %v2389_v7, %v2387_v25  ;;  %v18100_v32 = vld [vmem:[%s22419_s6 + $0x30] sm:$0xff]   ;;  %v19678_v2 = vld [vmem:[#allocation3 + $0x21] sm:$0xff] }
 0x176   : > { %2819 = vmatpush1.bf16.msra.mxu0 %v18086_v3  ;;  %14337 = vmatprep.mubr.msk.bf16.mxu0 %vm689_vm3, %v2706_v37  ;;  %v2406_v3 = vpack.c.bf16 %v2394_v20, %v2392_v19  ;;  %v2593_v37 = vld [vmem:[#allocation2 + $0xc0] sm:$0xfe]  ;;  %v2678_v19 = vrot.slane %v2603_v10, 1  ;;  %v2684_v20 = vrot.slane %v2607_v9, 1 }
 0x177   : > { %2820 = vmatprep.subr.bf16.mxu0 %v18602_v1  ;;  %v2665_v47 = vrot.slane %v2593_v37, 1  ;;  %v19682_v46 = vld [vmem:[#allocation3 + $0x41] sm:$0xff] }
 0x178   : > { %2515 = vmatpush1.bf16.msra.mxu1 %v18085_v30  ;;  %v2675_v30 = vrot.slane %v2600_v44, 1  ;;  %v2397_v44 = vld [vmem:[#allocation2 + $0xe0] sm:$0xff] }
 0x179   : > { %2516 = vmatprep.subr.bf16.mxu1 %v18602_v1  ;;  %v2407_v25 = vpack.c.bf16 %v2397_v44, %v2395_v14 }
 0x17a   : > { %2821 = vmatpush1.bf16.msra.mxu0 %v18088_v42  ;;  %v2597_v42 = vld [vmem:[#allocation2 + $0xe0] sm:$0xfe] }
 0x17b   : > { %2068 = vmatmul.mubr.bf16.gmra.mrb[44].mxu1 %v1916_v40  ;;  %2822 = vmatprep.subr.bf16.mxu0 %v18602_v1  ;;  %v2676_v40 = vsel %vm921_vm7, %v2674_v29, %v2675_v30  ;;  %v2671_v52 = vrot.slane %v2597_v42, 1  ;;  %v3303_v29 = vld [vmem:[#allocation3 + $0x1] sm:$0xff]  ;;  %v19661_v30 = vld [vmem:[#allocation3 + $0x11] sm:$0xff] }
 0x17c   : > { %2517 = vmatpush1.bf16.msra.mxu1 %v18087_v12  ;;  %14303 = vmatprep.mubr.msk.bf16.mxu1 %vm689_vm3, %v2404_v43  ;;  %v2670_v12 = vsel %vm921_vm7, %v2668_v27, %v2669_v28  ;;  %v2599_v43 = vld [vmem:[#allocation2 + $0xf0] sm:$0x1]  ;;  %v2882_v28 = vld [vmem:[#allocation2 + $0x58] sm:$0x3] }
 0x17d   : > { %2518 = vmatprep.subr.bf16.mxu1 %v18602_v1  ;;  %v2710_v48 = vpack.c.bf16 %v2676_v40, %v2670_v12  ;;  %v2947_v37 = vrot.slane %v2882_v28, 2  ;;  %v2399_v40 = vld [vmem:[#allocation2 + $0x100] sm:$0xff]  ;;  %v18104_v42 = vld [vmem:[%s22417_s4 + $0x2b0] sm:$0xff]   ;;  %v2902_v28 = vld [vmem:[#allocation2 + $0xf8] sm:$0x3] }
 0x17e   : > { %2823 = vmatpush1.bf16.msra.mxu0 %v18090_v33  ;;  %v2604_v33 = vld [vmem:[#allocation2 + $0x118] sm:$0x1] }
 0x17f   : > { %2824 = vmatprep.subr.bf16.mxu0 %v18602_v1  ;;  %v2681_v57 = vrot.slane %v2604_v33, 1 }
 0x180   : > { %2519 = vmatpush1.bf16.msra.mxu1 %v18089_v22  ;;  %v2602_v22 = vld [vmem:[#allocation2 + $0x108] sm:$0xfe] }
 0x181   : > { %2520 = vmatprep.subr.bf16.mxu1 %v18602_v1  ;;  %v2680_v56 = vrot.slane %v2602_v22, 1 }
 0x182   : > { %2825 = vmatpush1.bf16.msra.mxu0 %v18092_v58  ;;  %v2686_v58 = vrot.slane %v2606_v39, 1  ;;  %v3311_v39 = vpack.c.bf16 %v19661_v30, %v3303_v29 }
 0x183   : > { %16037 = vmatprep.subr.bf16.mxu0 %v18094_v4  ;;  %v2682_v63 = vsel %vm921_vm7, %v2680_v56, %v2681_v57  ;;  %v2888_v56 = vld [vmem:[#allocation2 + $0x88] sm:$0xfc]  ;;  %v2890_v57 = vld [vmem:[#allocation2 + $0x98] sm:$0x3] }
 0x184   : > { %2521 = vmatpush1.bf16.msra.mxu1 %v18091_v53  ;;  %v2672_v53 = vrot.slane %v2599_v43, 1  ;;  %v2688_v38 = vsel %vm921_vm7, %v2686_v58, %v2687_v62  ;;  %v18535_v43 = vld [vmem:[#allocation2] sm:$0xff]  ;;  %v2892_v58 = vld [vmem:[#allocation2 + $0xa8] sm:$0xfc]  ;;  %v2894_v62 = vld [vmem:[#allocation2 + $0xb8] sm:$0x3] }
 0x185   : > { %2522 = vmatprep.subr.bf16.mxu1 %v18602_v1  ;;  %2839 = vmatmul.mubr.bf16.vlgmr.msra.gmra.mrb[64].mxu0 %v2705_v11  ;;  %v2683_v11 = vrot.slane %v2605_v8, 1  ;;  %v2712_v7 = vpack.c.bf16 %v2688_v38, %v2682_v63  ;;  %v2409_v22 = vpack.c.bf16 %v18535_v43, %v2399_v40  ;;  %v19718_v63 = vld [vmem:[#allocation3 + $0x10] sm:$0xff]  ;;  %v2959_v38 = vrot.slane %v2890_v57, 2 }
 0x186   : > { %14338 = vmatprep.mubr.msk.bf16.mxu0 %vm689_vm3, %v2708_v17  ;;  %16038 = vmatpush3.bf16.msra.mxu0 %v18094_v4  ;;  %v2408_v4 = vpack.c.bf16 %v2398_v50, %v2396_v49  ;;  %v2673_v6 = vsel %vm921_vm7, %v2671_v52, %v2672_v53  ;;  %v2677_v17 = vrot.slane %v2601_v18, 1  ;;  %v18107_v50 = vld [vmem:[%s22417_s4 + $0x2c0] sm:$0xff]   ;;  %v2964_v18 = vrot.slane %v2892_v58, 2  ;;  %v19748_v40 = vld [vmem:[#allocation3 + $0x50] sm:$0xff] }
 0x187   : > { %16039 = vmatprep.subr.bf16.mxu0 %v18097_v16  ;;  %v19705_v53 = vld [vmem:[#allocation3 + $0x61] sm:$0xff]  ;;  %v2965_v10 = vrot.slane %v2894_v62, 2  ;;  %v2897_v58 = vld [vmem:[#allocation2 + $0xd0] sm:$0x3] }
 0x188   : > { %2523 = vmatpush1.bf16.msra.mxu1 %v18093_v5  ;;  %v2667_v5 = vsel %vm921_vm7, %v2665_v47, %v2666_v51  ;;  %v19684_v47 = vld [vmem:[#allocation3 + $0x51] sm:$0xff]  ;;  %v18108_v51 = vld [vmem:[%s22419_s6 + $0x8] sm:$0xff]   ;;  %v2899_v62 = vld [vmem:[#allocation2 + $0xe0] sm:$0xfc] }
 0x189   : > { %3108 = vmatprep.subr.bf16.mxu1 %v18602_v1  ;;  %v2709_v13 = vpack.c.bf16 %v2673_v6, %v2667_v5  ;;  %v19703_v52 = vpack.c.bf16 %v19684_v47, %v19682_v46  ;;  %v2881_v5 = vld [vmem:[#allocation2 + $0x50] sm:$0x3] }
 0x18a   : > { %16040 = vmatpush3.bf16.msra.mxu0 %v18097_v16  ;;  %v2402_v16 = vld [vmem:[#allocation2 + $0x128] sm:$0xff]  ;;  %v18110_v6 = vld [vmem:[%s22419_s6 + $0x10] sm:$0xff]  }
 0x18b   : > { %2537 = vmatmul.mubr.bf16.vlgmr.msra.gmra.mrb[48].mxu1 %v2403_v31  ;;  %16041 = vmatprep.subr.bf16.mxu0 %v18100_v32  ;;  %v2410_v27 = vpack.c.bf16 %v2402_v16, %v2400_v15  ;;  %v2679_v31 = vsel %vm921_vm7, %v2677_v17, %v2678_v19  ;;  %v18111_v16 = vld [vmem:[%s22419_s6 + $0x18] sm:$0xff]   ;;  %v2887_v17 = vld [vmem:[#allocation2 + $0x80] sm:$0xfc]  ;;  %v2889_v19 = vld [vmem:[#allocation2 + $0x90] sm:$0x3] }
 0x18c   : > { %14304 = vmatprep.mubr.msk.bf16.mxu1 %vm689_vm3, %v2406_v3  ;;  %3109 = vmatpush1.bf16.msra.mxu1 %v18095_v26  ;;  %v2880_v26 = vld [vmem:[#allocation2 + $0x48] sm:$0xfc]  ;;  %v2685_v3 = vsel %vm921_vm7, %v2683_v11, %v2684_v20  ;;  %v2944_v11 = vrot.slane %v2881_v5, 2 }
 0x18d   : > { %3110 = vmatprep.subr.bf16.mxu1 %v18602_v1  ;;  %2847 = vmatmul.mubr.bf16.gmra.mrb[68].mxu0 %v2707_v59  ;;  %v2711_v12 = vpack.c.bf16 %v2685_v3, %v2679_v31  ;;  %v19680_v59 = vld [vmem:[#allocation3 + $0x31] sm:$0xff]  ;;  %v19739_v31 = vld [vmem:[#allocation3 + $0x20] sm:$0xff]  ;;  %v2904_v5 = vld [vmem:[#allocation2 + $0x108] sm:$0xfc] }
 0x18e   : > { %14339 = vmatprep.mubr.msk.bf16.mxu0 %vm689_vm3, %v2710_v48  ;;  %16042 = vmatpush3.bf16.msra.mxu0 %v18100_v32  ;;  %v2952_v32 = vrot.slane %v2884_v23, 2  ;;  %v18105_v48 = vld [vmem:[%s22417_s4 + $0x2b8] sm:$0xff]   ;;  %v19692_v49 = vpack.c.bf16 %v19680_v59, %v19678_v2  ;;  %v2891_v23 = vld [vmem:[#allocation2 + $0xa0] sm:$0xfc]  ;;  %v19741_v3 = vld [vmem:[#allocation3 + $0x30] sm:$0xff] }
 0x18f   : > { %16043 = vmatprep.subr.bf16.mxu0 %v18103_v54 }
 0x190   : > { %3111 = vmatpush1.bf16.msra.mxu1 %v18096_v36  ;;  %v2946_v36 = vrot.slane %v2880_v26, 2  ;;  %v2954_v41 = vsel %vm1353_vm8, %v2952_v32, %v2953_v34  ;;  %v2898_v26 = vld [vmem:[#allocation2 + $0xd8] sm:$0x3]  ;;  %v2955_v32 = vrot.slane %v2887_v17, 2 }
 0x191   : > { %3112 = vmatprep.subr.bf16.mxu1 %v18602_v1 }
 0x192   : > { %16044 = vmatpush3.bf16.msra.mxu0 %v18103_v54  ;;  %v2948_v33 = vsel %vm1353_vm8, %v2946_v36, %v2947_v37  ;;  %v2883_v54 = vld [vmem:[#allocation2 + $0x60] sm:$0xfc]  ;;  %v2956_v36 = vrot.slane %v2889_v19, 2  ;;  %v2961_v37 = vrot.slane %v2891_v23, 2 }
 0x193   : > { %2545 = vmatmul.mubr.bf16.gmra.mrb[52].mxu1 %v2405_v0  ;;  %16053 = vmatprep.subr.bf16.mxu0 %v19646_v61  ;;  %v3008_v45 = vpack.c.bf16 %v2954_v41, %v2948_v33  ;;  %v19711_v0 = vld [vmem:[#allocation3 + $0x71] sm:$0xff]  ;;  %v2949_v8 = vrot.slane %v2883_v54, 2  ;;  %v19753_v33 = vpack.c.bf16 %v19741_v3, %v19739_v31  ;;  %v2895_v54 = vld [vmem:[#allocation2 + $0xc0] sm:$0xfc] }
 0x194   : > { %14305 = vmatprep.mubr.msk.bf16.mxu1 %vm689_vm3, %v2408_v4  ;;  %3113 = vmatpush1.bf16.msra.mxu1 %v18098_v55  ;;  %v2885_v55 = vld [vmem:[#allocation2 + $0x70] sm:$0x3]  ;;  %v2879_v4 = vld [vmem:[#allocation2 + $0x40] sm:$0xfc]  ;;  %v19725_v14 = vpack.c.bf16 %v19711_v0, %v19705_v53 }
 0x195   : > { %3114 = vmatprep.subr.bf16.mxu1 %v18602_v1  ;;  %2855 = vmatmul.mubr.bf16.gmra.mrb[72].mxu0 %v2709_v13  ;;  %v2950_v9 = vrot.slane %v2885_v55, 2  ;;  %v18109_v13 = vld [vmem:[%s22417_s4 + $0x2c8] sm:$0xff]   ;;  %v2943_v44 = vrot.slane %v2879_v4, 2  ;;  %v2901_v4 = vld [vmem:[#allocation2 + $0xf0] sm:$0x3] }
 0x196   : > { %14340 = vmatprep.mubr.msk.bf16.mxu0 %vm689_vm3, %v2712_v7  ;;  %v2908_v55 = vld [vmem:[#allocation2 + $0x128] sm:$0xfc] }
 0x197   : > { %v2951_v15 = vsel %vm1353_vm8, %v2949_v8, %v2950_v9  ;;  %v2910_v8 = vld [vmem:[#allocation2 + $0x138] sm:$0x3]  ;;  %v2988_v19 = vrot.slane %v2908_v55, 2 }
 0x198   : > { %3115 = vmatpush1.bf16.msra.mxu1 %v18099_v60  ;;  %v3283_v60 = vld [vmem:[#allocation3] sm:$0xff] }
 0x199   : > { %3116 = vmatprep.subr.bf16.mxu1 %v18602_v1  ;;  %v3291_v7 = vpack.c.bf16 %v19718_v63, %v3283_v60  ;;  %v19770_v60 = vld [vmem:[#allocation3 + $0x60] sm:$0xff] }
 0x19b   : > { %2553 = vmatmul.mubr.bf16.gmra.mrb[56].mxu1 %v2407_v25  ;;  %v2896_v25 = vld [vmem:[#allocation2 + $0xc8] sm:$0xfc] }
 0x19c   : > { %14306 = vmatprep.mubr.msk.bf16.mxu1 %vm689_vm3, %v2410_v27  ;;  %3117 = vmatpush1.bf16.msra.mxu1 %v18101_v21  ;;  %v2966_v21 = vsel %vm1353_vm8, %v2964_v18, %v2965_v10  ;;  %v2900_v27 = vld [vmem:[#allocation2 + $0xe8] sm:$0xfc]  ;;  %v2970_v41 = vrot.slane %v2896_v25, 2  ;;  %v18114_v10 = vld [vmem:[%s22419_s6 + $0x50] sm:$0xff]  }
 0x19d   : > { %3118 = vmatprep.subr.bf16.mxu1 %v18602_v1  ;;  %2863 = vmatmul.mubr.bf16.gmra.mrb[76].mxu0 %v2711_v12  ;;  %v19746_v12 = vld [vmem:[#allocation3 + $0x40] sm:$0xff]  ;;  %v2976_v43 = vrot.slane %v2900_v27, 2 }
 0x19e   : > { %16045 = vmatprep.mubr.msk.bf16.mxu0 %vm3252_vm0, %v3311_v39  ;;  %v2962_v39 = vrot.slane %v2893_v24, 2 }
 0x1a0   : > { %3119 = vmatpush1.bf16.msra.mxu1 %v18102_v35  ;;  %v18112_v35 = vld [vmem:[%s22419_s6 + $0x40] sm:$0xff]  }
 0x1a1   : > { %3120 = vmatprep.subr.bf16.mxu1 %v18602_v1 }
 0x1a3   : > { %2561 = vmatmul.mubr.bf16.gmra.mrb[60].mxu1 %v2409_v22  ;;  %v2977_v22 = vrot.slane %v2902_v28, 2 }
 0x1a4   : > { %3121 = vmatpush1.bf16.msra.mxu1 %v18104_v42  ;;  %14371 = vmatprep.mubr.msk.bf16.mxu1 %vm689_vm3, %v3008_v45  ;;  %v2971_v42 = vrot.slane %v2898_v26, 2  ;;  %v19757_v45 = vpack.c.bf16 %v19748_v40, %v19746_v12  ;;  %v2907_v26 = vld [vmem:[#allocation2 + $0x120] sm:$0xfc] }
 0x1a5   : > { %3122 = vmatprep.subr.bf16.mxu1 %v18602_v1  ;;  %16046 = vmatmul.mubr.msk.bf16.vlgmr.msra.gmra.mrb[80].mxu0 %vm3252_vm0, %v19692_v49  ;;  %v2978_v57 = vsel %vm1353_vm8, %v2976_v43, %v2977_v22 }
 0x1a6   : > { %16054 = vmatpush3.bf16.msra.mxu0 %v19646_v61  ;;  %16049 = vmatprep.mubr.msk.bf16.mxu0 %vm3252_vm0, %v19703_v52  ;;  %v2958_v61 = vrot.slane %v2888_v56, 2  ;;  %v2972_v56 = vsel %vm1353_vm8, %v2970_v41, %v2971_v42  ;;  %v18116_v42 = vld [vmem:[%s22419_s6 + $0x60] sm:$0xff]  }
 0x1a7   : > { %16055 = vmatprep.subr.bf16.mxu0 %v18108_v51  ;;  %v3012_v18 = vpack.c.bf16 %v2978_v57, %v2972_v56 }
 0x1a8   : > { %3123 = vmatpush1.bf16.msra.mxu1 %v18105_v48  ;;  %v2960_v20 = vsel %vm1353_vm8, %v2958_v61, %v2959_v38  ;;  %v2957_v48 = vsel %vm1353_vm8, %v2955_v32, %v2956_v36  ;;  %v19772_v61 = vld [vmem:[#allocation3 + $0x70] sm:$0xff]  ;;  %v2967_v38 = vrot.slane %v2895_v54, 2  ;;  %v19795_v36 = vld [vmem:[#allocation3 + $0x22] sm:$0xff] }
 0x1a9   : > { %3124 = vmatprep.subr.bf16.mxu1 %v18602_v1  ;;  %v3010_v34 = vpack.c.bf16 %v2966_v21, %v2960_v20  ;;  %v2989_v20 = vrot.slane %v2910_v8, 2  ;;  %v19782_v21 = vpack.c.bf16 %v19772_v61, %v19770_v60  ;;  %v2905_v32 = vld [vmem:[#allocation2 + $0x110] sm:$0x3] }
 0x1aa   : > { %16056 = vmatpush3.bf16.msra.mxu0 %v18108_v51  ;;  %v18113_v51 = vld [vmem:[%s22419_s6 + $0x48] sm:$0xff]   ;;  %v2980_v22 = vrot.slane %v2905_v32, 2 }
 0x1ab   : > { %16057 = vmatprep.subr.bf16.mxu0 %v18110_v6  ;;  %v2990_v28 = vsel %vm1353_vm8, %v2988_v19, %v2989_v20  ;;  %v18125_v19 = vld [vmem:[%s22419_s6 + $0xa8] sm:$0xff]  }
 0x1ac   : > { %3125 = vmatpush1.bf16.msra.mxu1 %v18107_v50  ;;  %v2963_v50 = vsel %vm1353_vm8, %v2961_v37, %v2962_v39  ;;  %v19797_v37 = vld [vmem:[#allocation3 + $0x32] sm:$0xff]  ;;  %v2985_v39 = vrot.slane %v2907_v26, 2 }
 0x1ad   : > { %3126 = vmatprep.subr.bf16.mxu1 %v18602_v1  ;;  %16050 = vmatmul.mubr.msk.bf16.gmra.mrb[84].mxu0 %vm3252_vm0, %v19725_v14  ;;  %v2945_v1 = vsel %vm1353_vm8, %v2943_v44, %v2944_v11  ;;  %v3009_v9 = vpack.c.bf16 %v2963_v50, %v2957_v48  ;;  %v2973_v44 = vrot.slane %v2899_v62, 2  ;;  %v2974_v11 = vrot.slane %v2901_v4, 2  ;;  %v19802_v50 = vld [vmem:[#allocation3 + $0x42] sm:$0xff] }
 0x1ae   : > { %16058 = vmatpush3.bf16.msra.mxu0 %v18110_v6  ;;  %v3007_v29 = vpack.c.bf16 %v2951_v15, %v2945_v1  ;;  %16061 = vmatprep.mubr.msk.bf16.mxu0 %vm3252_vm0, %v3291_v7  ;;  %v2906_v6 = vld [vmem:[#allocation2 + $0x118] sm:$0x3]  ;;  %v3526_v7 = vld [vmem:[#allocation3 + $0x2] sm:$0xff]  ;;  %v19809_v54 = vpack.c.bf16 %v19797_v37, %v19795_v36 }
 0x1af   : > { %16059 = vmatprep.subr.bf16.mxu0 %v18111_v16  ;;  %v19777_v15 = vld [vmem:[#allocation3 + $0x12] sm:$0xff]  ;;  %v2983_v17 = vrot.slane %v2906_v6, 2  ;;  %v2975_v25 = vsel %vm1353_vm8, %v2973_v44, %v2974_v11  ;;  %v19824_v4 = vld [vmem:[#allocation3 + $0x62] sm:$0xff] }
 0x1b0   : > { %3127 = vmatpush1.bf16.msra.mxu1 %v18109_v13  ;;  %v2968_v13 = vrot.slane %v2897_v58, 2  ;;  %v3534_v23 = vpack.c.bf16 %v19777_v15, %v3526_v7  ;;  %v18115_v1 = vld [vmem:[%s22419_s6 + $0x58] sm:$0xff]   ;;  %v18117_v58 = vld [vmem:[%s22419_s6 + $0x68] sm:$0xff]   ;;  %v18118_v6 = vld [vmem:[%s22419_s6 + $0x70] sm:$0xff]  }
 0x1b2   : > { %16060 = vmatpush3.bf16.msra.mxu0 %v18111_v16  ;;  %v2982_v16 = vrot.slane %v2904_v5, 2  ;;  %v2969_v24 = vsel %vm1353_vm8, %v2967_v38, %v2968_v13  ;;  %v19826_v5 = vld [vmem:[#allocation3 + $0x72] sm:$0xff]  ;;  %v19855_v13 = vld [vmem:[#allocation3 + $0x80] sm:$0xff] }
 0x1b3   : > { %3141 = vmatmul.mubr.bf16.vlgmr.msra.gmra.mrb[64].mxu1 %v3007_v29  ;;  %16069 = vmatprep.subr.bf16.mxu0 %v18112_v35  ;;  %v2903_v29 = vld [vmem:[#allocation2 + $0x100] sm:$0xfc]  ;;  %v19833_v8 = vpack.c.bf16 %v19826_v5, %v19824_v4  ;;  %v18119_v38 = vld [vmem:[%s22419_s6 + $0x78] sm:$0xff]  }
 0x1b4   : > { %14372 = vmatprep.mubr.msk.bf16.mxu1 %vm689_vm3, %v3010_v34  ;;  %v2984_v27 = vsel %vm1353_vm8, %v2982_v16, %v2983_v17  ;;  %v2909_v34 = vld [vmem:[#allocation2 + $0x130] sm:$0x3]  ;;  %v2979_v43 = vrot.slane %v2903_v29, 2  ;;  %v3796_v16 = vpack.c.bf16 %v19705_v53, %v19684_v47  ;;  %v3924_v29 = vpack.c.bf16 %v19795_v36, %v19777_v15  ;;  %v18128_v15 = vld [vmem:[%s22419_s6 + $0xc0] sm:$0xff]  }
 0x1b5   : > { %16062 = vmatmul.mubr.msk.bf16.vlgmr.msra.gmra.mrb[80].mxu0 %vm3252_vm0, %v19753_v33  ;;  %v3014_v41 = vpack.c.bf16 %v2990_v28, %v2984_v27  ;;  %v2986_v48 = vrot.slane %v2909_v34, 2  ;;  %v18126_v53 = vld [vmem:[%s22419_s6 + $0xb0] sm:$0xff]   ;;  %v18127_v34 = vld [vmem:[%s22419_s6 + $0xb8] sm:$0xff]  }
 0x1b6   : > { %16070 = vmatpush3.bf16.msra.mxu0 %v18112_v35  ;;  %16065 = vmatprep.mubr.msk.bf16.mxu0 %vm3252_vm0, %v19757_v45  ;;  %v3011_v35 = vpack.c.bf16 %v2975_v25, %v2969_v24  ;;  %v2981_v56 = vsel %vm1353_vm8, %v2979_v43, %v2980_v22 }
 0x1b7   : > { %16071 = vmatprep.subr.bf16.mxu0 %v18113_v51  ;;  %v2987_v57 = vsel %vm1353_vm8, %v2985_v39, %v2986_v48  ;;  %v3925_v48 = vpack.c.bf16 %v19802_v50, %v19797_v37 }
 0x1b8   : > { %v3013_v62 = vpack.c.bf16 %v2987_v57, %v2981_v56 }
 0x1ba   : > { %16072 = vmatpush3.bf16.msra.mxu0 %v18113_v51  ;;  %v19804_v51 = vld [vmem:[#allocation3 + $0x52] sm:$0xff] }
 0x1bb   : > { %3149 = vmatmul.mubr.bf16.gmra.mrb[68].mxu1 %v3009_v9  ;;  %16073 = vmatprep.subr.bf16.mxu0 %v18114_v10  ;;  %v19813_v55 = vpack.c.bf16 %v19804_v51, %v19802_v50  ;;  %v3664_v9 = vpack.c.bf16 %v19739_v31, %v19718_v63  ;;  %v3666_v63 = vpack.c.bf16 %v19770_v60, %v19748_v40  ;;  %v18121_v31 = vld [vmem:[%s22419_s6 + $0x88] sm:$0xff]   ;;  %v18123_v60 = vld [vmem:[%s22419_s6 + $0x98] sm:$0xff]  }
 0x1bc   : > { %14373 = vmatprep.mubr.msk.bf16.mxu1 %vm689_vm3, %v3012_v18  ;;  %v18120_v18 = vld [vmem:[%s22419_s6 + $0x80] sm:$0xff]   ;;  %v3794_v40 = vpack.c.bf16 %v19678_v2, %v19661_v30  ;;  %v3795_v30 = vpack.c.bf16 %v19682_v46, %v19680_v59  ;;  %v3926_v57 = vpack.c.bf16 %v19824_v4, %v19804_v51  ;;  %v18130_v4 = vld [vmem:[%s22419_s6 + $0xd0] sm:$0xff]  }
 0x1bd   : > { %16066 = vmatmul.mubr.msk.bf16.gmra.mrb[84].mxu0 %vm3252_vm0, %v19782_v21  ;;  %v19885_v46 = vld [vmem:[#allocation3 + $0x81] sm:$0xff] }
 0x1be   : > { %16074 = vmatpush3.bf16.msra.mxu0 %v18114_v10  ;;  %16077 = vmatprep.mubr.msk.bf16.mxu0 %vm3252_vm0, %v3534_v23  ;;  %v3665_v10 = vpack.c.bf16 %v19746_v12, %v19741_v3  ;;  %v18122_v3 = vld [vmem:[%s22419_s6 + $0x90] sm:$0xff]   ;;  %v3667_v12 = vpack.c.bf16 %v19855_v13, %v19772_v61  ;;  %v18124_v61 = vld [vmem:[%s22419_s6 + $0xa0] sm:$0xff]   ;;  %v3797_v27 = vpack.c.bf16 %v19885_v46, %v19711_v0 }
 0x1bf   : > { %16075 = vmatprep.subr.bf16.mxu0 %v18115_v1  ;;  %v19919_v50 = vld [vmem:[#allocation3 + $0x82] sm:$0xff] }
 0x1c2   : > { %16076 = vmatpush3.bf16.msra.mxu0 %v18115_v1 }
 0x1c3   : > { %3157 = vmatmul.mubr.bf16.gmra.mrb[72].mxu1 %v3011_v35  ;;  %16085 = vmatprep.subr.bf16.mxu0 %v18116_v42 }
 0x1c4   : > { %14374 = vmatprep.mubr.msk.bf16.mxu1 %vm689_vm3, %v3014_v41 }
 0x1c5   : > { %16078 = vmatmul.mubr.msk.bf16.vlgmr.msra.gmra.mrb[80].mxu0 %vm3252_vm0, %v19809_v54 }
 0x1c6   : > { %16086 = vmatpush3.bf16.msra.mxu0 %v18116_v42  ;;  %16081 = vmatprep.mubr.msk.bf16.mxu0 %vm3252_vm0, %v19813_v55 }
 0x1c7   : > { %16087 = vmatprep.subr.bf16.mxu0 %v18117_v58 }
 0x1ca   : > { %16088 = vmatpush3.bf16.msra.mxu0 %v18117_v58 }
 0x1cb   : > { %3165 = vmatmul.mubr.bf16.gmra.mrb[76].mxu1 %v3013_v62  ;;  %16089 = vmatprep.subr.bf16.mxu0 %v18118_v6  ;;  %v18129_v62 = vld [vmem:[%s22419_s6 + $0xc8] sm:$0xff]  }
 0x1cd   : > { %16082 = vmatmul.mubr.msk.bf16.gmra.mrb[84].mxu0 %vm3252_vm0, %v19833_v8 }
 0x1ce   : > { %16090 = vmatpush3.bf16.msra.mxu0 %v18118_v6  ;;  %16093 = vmatprep.mubr.msk.bf16.mxu0 %vm3252_vm0, %v3664_v9 }
 0x1cf   : > { %16091 = vmatprep.subr.bf16.mxu0 %v18119_v38 }
 0x1d2   : > { %16092 = vmatpush3.bf16.msra.mxu0 %v18119_v38 }
 0x1d3   : > { %16101 = vmatprep.subr.bf16.mxu0 %v18120_v18 }
 0x1d5   : > { %16094 = vmatmul.mubr.msk.bf16.vlgmr.msra.gmra.mrb[80].mxu0 %vm3252_vm0, %v3665_v10 }
 0x1d6   : > { %16102 = vmatpush3.bf16.msra.mxu0 %v18120_v18  ;;  %16097 = vmatprep.mubr.msk.bf16.mxu0 %vm3252_vm0, %v3666_v63 }
 0x1d7   : > { %16103 = vmatprep.subr.bf16.mxu0 %v18121_v31 }
 0x1da   : > { %16104 = vmatpush3.bf16.msra.mxu0 %v18121_v31  ;;  %v3927_v31 = vpack.c.bf16 %v19919_v50, %v19826_v5  ;;  %v18132_v5 = vld [vmem:[%s22419_s6 + $0xe0] sm:$0xff]  }
 0x1db   : > { %16105 = vmatprep.subr.bf16.mxu0 %v18122_v3 }
 0x1dd   : > { %16098 = vmatmul.mubr.msk.bf16.gmra.mrb[84].mxu0 %vm3252_vm0, %v3667_v12 }
 0x1de   : > { %16106 = vmatpush3.bf16.msra.mxu0 %v18122_v3  ;;  %16109 = vmatprep.mubr.msk.bf16.mxu0 %vm3252_vm0, %v3794_v40  ;;  %v18131_v40 = vld [vmem:[%s22419_s6 + $0xd8] sm:$0xff]  }
 0x1df   : > { %v1258_v44 = vpop.f32.mrb[16].mxu0  ;;  %16107 = vmatprep.subr.bf16.mxu0 %v18123_v60 }
 0x1e0   : > { %v1260_v11 = vpop.f32.mrb[17].mxu0 }
 0x1e1   : > { %v1261_v7 = vpop.f32.mrb[18].mxu0 }
 0x1e2   : > { %16108 = vmatpush3.bf16.msra.mxu0 %v18123_v60  ;;  %v1263_v2 = vpop.f32.mrb[19].mxu0 }
 0x1e3   : > { %16117 = vmatprep.subr.bf16.mxu0 %v18124_v61  ;;  %v4054_v2 = vld [vmem:[#allocation3 + $0x90] sm:$0xff] }
 0x1e4   : > { %v1121_v17 = vpop.f32.mrb[0].mxu1 }
 0x1e5   : > { %v19879_v20 = vadd.f32 %v1258_v44, %v1121_v17  ;;  %v1123_v23 = vpop.f32.mrb[1].mxu1  ;;  %16110 = vmatmul.mubr.msk.bf16.vlgmr.msra.gmra.mrb[80].mxu0 %vm3252_vm0, %v3795_v30  ;;  %v18133_v30 = vld [vmem:[%s22419_s6 + $0xe8] sm:$0xff]  }
 0x1e6   : > { %v1124_v24 = vpop.f32.mrb[2].mxu1  ;;  %16118 = vmatpush3.bf16.msra.mxu0 %v18124_v61  ;;  %16113 = vmatprep.mubr.msk.bf16.mxu0 %vm3252_vm0, %v3796_v16 }
 0x1e7   : > { %v19882_v25 = vadd.f32 %v1261_v7, %v1124_v24  ;;  %v1126_v59 = vpop.f32.mrb[3].mxu1  ;;  %v1266_v47 = vpop.f32.mrb[20].mxu0  ;;  %16119 = vmatprep.subr.bf16.mxu0 %v18125_v19 }
 0x1e8   : > { %v1268_v1 = vpop.f32.mrb[21].mxu0 }
 0x1e9   : > { %v1269_v26 = vpop.f32.mrb[22].mxu0 }
 0x1ea   : > { %16120 = vmatpush3.bf16.msra.mxu0 %v18125_v19  ;;  %v1271_v28 = vpop.f32.mrb[23].mxu0  ;;  %v4058_v19 = vpack.c.bf16 %v4054_v2, %v19855_v13 }
 0x1eb   : > { %16121 = vmatprep.subr.bf16.mxu0 %v18126_v53 }
 0x1ed   : > { %v1129_v32 = vpop.f32.mrb[4].mxu1  ;;  %16114 = vmatmul.mubr.msk.bf16.gmra.mrb[84].mxu0 %vm3252_vm0, %v3797_v27  ;;  %v18136_v27 = vld [vmem:[%s22419_s6 + $0x100] sm:$0xff]  }
 0x1ee   : > { %v19897_v35 = vadd.f32 %v1266_v47, %v1129_v32  ;;  %v1131_v39 = vpop.f32.mrb[5].mxu1  ;;  %16122 = vmatpush3.bf16.msra.mxu0 %v18126_v53  ;;  %16125 = vmatprep.mubr.msk.bf16.mxu0 %vm3252_vm0, %v3924_v29 }
 0x1ef   : > { %v1132_v41 = vpop.f32.mrb[6].mxu1  ;;  %16123 = vmatprep.subr.bf16.mxu0 %v18127_v34 }
 0x1f0   : > { %v19900_v42 = vadd.f32 %v1269_v26, %v1132_v41  ;;  %v1134_v0 = vpop.f32.mrb[7].mxu1  ;;  %v1274_v43 = vpop.f32.mrb[24].mxu0 }
 0x1f1   : > { %v1276_v36 = vpop.f32.mrb[25].mxu0 }
 0x1f2   : > { %v1277_v22 = vpop.f32.mrb[26].mxu0  ;;  %16124 = vmatpush3.bf16.msra.mxu0 %v18127_v34  ;;  %v4184_v36 = vld [vmem:[#allocation3 + $0x91] sm:$0xff] }
 0x1f3   : > { %v1279_v56 = vpop.f32.mrb[27].mxu0  ;;  %16133 = vmatprep.subr.bf16.mxu0 %v18128_v15 }
 0x1f5   : > { %16126 = vmatmul.mubr.msk.bf16.vlgmr.msra.gmra.mrb[80].mxu0 %vm3252_vm0, %v3925_v48  ;;  %v18138_v48 = vld [vmem:[%s22419_s6 + $0x110] sm:$0xff]  }
 0x1f6   : > { %v1137_v58 = vpop.f32.mrb[8].mxu1  ;;  %16134 = vmatpush3.bf16.msra.mxu0 %v18128_v15  ;;  %16129 = vmatprep.mubr.msk.bf16.mxu0 %vm3252_vm0, %v3926_v57 }
 0x1f7   : > { %v19913_v6 = vadd.f32 %v1274_v43, %v1137_v58  ;;  %v1139_v9 = vpop.f32.mrb[9].mxu1  ;;  %16135 = vmatprep.subr.bf16.mxu0 %v18129_v62  ;;  %v4188_v58 = vpack.c.bf16 %v4184_v36, %v19885_v46 }
 0x1f8   : > { %v1140_v38 = vpop.f32.mrb[10].mxu1 }
 0x1f9   : > { %v19916_v18 = vadd.f32 %v1277_v22, %v1140_v38  ;;  %v1142_v37 = vpop.f32.mrb[11].mxu1 }
 0x1fa   : > { %v1282_v51 = vpop.f32.mrb[28].mxu0  ;;  %16136 = vmatpush3.bf16.msra.mxu0 %v18129_v62 }
 0x1fb   : > { %v1284_v10 = vpop.f32.mrb[29].mxu0  ;;  %16137 = vmatprep.subr.bf16.mxu0 %v18130_v4 }
 0x1fc   : > { %v1285_v63 = vpop.f32.mrb[30].mxu0 }
 0x1fd   : > { %v1287_v3 = vpop.f32.mrb[31].mxu0  ;;  %16130 = vmatmul.mubr.msk.bf16.gmra.mrb[84].mxu0 %vm3252_vm0, %v3927_v31 }
 0x1fe   : > { %v1145_v12 = vpop.f32.mrb[12].mxu1  ;;  %16138 = vmatpush3.bf16.msra.mxu0 %v18130_v4  ;;  %16141 = vmatprep.mubr.msk.bf16.mxu0 %vm3252_vm0, %v19753_v33  ;;  %v18134_v33 = vld [vmem:[%s22419_s6 + $0xf0] sm:$0xff]  }
 0x1ff   : > { %v19929_v60 = vadd.f32 %v1282_v51, %v1145_v12  ;;  %v1147_v44 = vpop.f32.mrb[13].mxu1  ;;  %16139 = vmatprep.subr.bf16.mxu0 %v18131_v40 }
 0x200   : > { %v1148_v61 = vpop.f32.mrb[14].mxu1 }
 0x201   : > { %v19932_v11 = vadd.f32 %v1285_v63, %v1148_v61  ;;  %v1150_v7 = vpop.f32.mrb[15].mxu1 }
 0x202   : > { %16140 = vmatpush3.bf16.msra.mxu0 %v18131_v40 }
 0x203   : > { %16149 = vmatprep.subr.bf16.mxu0 %v18132_v5 }
 0x205   : > { %16142 = vmatmul.mubr.msk.bf16.vlgmr.msra.gmra.mrb[80].mxu0 %vm3252_vm0, %v19757_v45  ;;  %v18135_v45 = vld [vmem:[%s22419_s6 + $0xf8] sm:$0xff]  }
 0x206   : > { %16150 = vmatpush3.bf16.msra.mxu0 %v18132_v5  ;;  %16145 = vmatprep.mubr.msk.bf16.mxu0 %vm3252_vm0, %v19782_v21 }
 0x207   : > { %16151 = vmatprep.subr.bf16.mxu0 %v18133_v30 }
 0x208   : > { %v1743_v16 = vpop.f32.mrb[32].mxu0 }
 0x209   : > { %v1745_v17 = vpop.f32.mrb[33].mxu0 }
 0x20a   : > { %v1746_v23 = vpop.f32.mrb[34].mxu0  ;;  %16152 = vmatpush3.bf16.msra.mxu0 %v18133_v30 }
 0x20b   : > { %v1748_v59 = vpop.f32.mrb[35].mxu0  ;;  %16153 = vmatprep.subr.bf16.mxu0 %v18134_v33 }
 0x20d   : > { %16146 = vmatmul.mubr.msk.bf16.gmra.mrb[84].mxu0 %vm3252_vm0, %v4058_v19 }
 0x20e   : > { %v1553_v24 = vpop.f32.mrb[16].mxu1  ;;  %16154 = vmatpush3.bf16.msra.mxu0 %v18134_v33  ;;  %16157 = vmatprep.mubr.msk.bf16.mxu0 %vm3252_vm0, %v19692_v49  ;;  %v18137_v49 = vld [vmem:[%s22419_s6 + $0x108] sm:$0xff]  }
 0x20f   : > { %v1584_v21 = vadd.f32 %v1553_v24, %v19879_v20  ;;  %v1555_v47 = vpop.f32.mrb[17].mxu1  ;;  %16155 = vmatprep.subr.bf16.mxu0 %v18135_v45 }
 0x210   : > { %v1556_v53 = vpop.f32.mrb[18].mxu1  ;;  %v1751_v28 = vpop.f32.mrb[36].mxu0 }
 0x211   : > { %v1585_v1 = vadd.f32 %v1556_v53, %v19882_v25  ;;  %v1558_v26 = vpop.f32.mrb[19].mxu1  ;;  %v19958_v13 = vadd.f32 %v1743_v16, %v1584_v21  ;;  %v1753_v29 = vpop.f32.mrb[37].mxu0 }
 0x212   : > { %v1754_v32 = vpop.f32.mrb[38].mxu0  ;;  %16156 = vmatpush3.bf16.msra.mxu0 %v18135_v45 }
 0x213   : > { %v19963_v20 = vadd.f32 %v1746_v23, %v1585_v1  ;;  %v1756_v25 = vpop.f32.mrb[39].mxu0  ;;  %16165 = vmatprep.subr.bf16.mxu0 %v18136_v27 }
 0x215   : > { %16158 = vmatmul.mubr.msk.bf16.vlgmr.msra.gmra.mrb[80].mxu0 %vm3252_vm0, %v19703_v52 }
 0x216   : > { %v1561_v34 = vpop.f32.mrb[20].mxu1  ;;  %16166 = vmatpush3.bf16.msra.mxu0 %v18136_v27  ;;  %16161 = vmatprep.mubr.msk.bf16.mxu0 %vm3252_vm0, %v19725_v14  ;;  %v18139_v14 = vld [vmem:[%s22419_s6 + $0x118] sm:$0xff]  }
 0x217   : > { %v1586_v39 = vadd.f32 %v1561_v34, %v19897_v35  ;;  %v1563_v41 = vpop.f32.mrb[21].mxu1  ;;  %16167 = vmatprep.subr.bf16.mxu0 %v18137_v49 }
 0x218   : > { %v1564_v0 = vpop.f32.mrb[22].mxu1  ;;  %v1759_v35 = vpop.f32.mrb[40].mxu0 }
 0x219   : > { %v1587_v43 = vadd.f32 %v1564_v0, %v19900_v42  ;;  %v1566_v15 = vpop.f32.mrb[23].mxu1  ;;  %v1776_v22 = vadd.f32 %v1751_v28, %v1586_v39  ;;  %v1761_v57 = vpop.f32.mrb[41].mxu0 }
 0x21a   : > { %v1762_v52 = vpop.f32.mrb[42].mxu0  ;;  %16168 = vmatpush3.bf16.msra.mxu0 %v18137_v49 }
 0x21b   : > { %v1777_v56 = vadd.f32 %v1754_v32, %v1587_v43  ;;  %v1764_v62 = vpop.f32.mrb[43].mxu0  ;;  %16169 = vmatprep.subr.bf16.mxu0 %v18138_v48 }
 0x21d   : > { %16162 = vmatmul.mubr.msk.bf16.gmra.mrb[84].mxu0 %vm3252_vm0, %v4188_v58 }
 0x21e   : > { %v1569_v42 = vpop.f32.mrb[24].mxu1  ;;  %16170 = vmatpush3.bf16.msra.mxu0 %v18138_v48  ;;  %16173 = vmatprep.mubr.msk.bf16.mxu0 %vm3252_vm0, %v19809_v54  ;;  %v4314_v54 = vld [vmem:[#allocation3 + $0x92] sm:$0xff] }
 0x21f   : > { %v1588_v9 = vadd.f32 %v1569_v42, %v19913_v6  ;;  %v1571_v38 = vpop.f32.mrb[25].mxu1  ;;  %16171 = vmatprep.subr.bf16.mxu0 %v18139_v14  ;;  %v4318_v2 = vpack.c.bf16 %v4314_v54, %v19919_v50 }
 0x220   : > { %v1572_v37 = vpop.f32.mrb[26].mxu1  ;;  %v1767_v10 = vpop.f32.mrb[44].mxu0 }
 0x221   : > { %v1589_v51 = vadd.f32 %v1572_v37, %v19916_v18  ;;  %v1574_v4 = vpop.f32.mrb[27].mxu1  ;;  %v1778_v46 = vadd.f32 %v1759_v35, %v1588_v9  ;;  %v1769_v31 = vpop.f32.mrb[45].mxu0 }
 0x222   : > { %v1770_v3 = vpop.f32.mrb[46].mxu0  ;;  %16172 = vmatpush3.bf16.msra.mxu0 %v18139_v14 }
 0x223   : > { %v1779_v63 = vadd.f32 %v1762_v52, %v1589_v51  ;;  %v1772_v6 = vpop.f32.mrb[47].mxu0 }
 0x225   : > { %16174 = vmatmul.mubr.msk.bf16.vlgmr.msra.gmra.mrb[80].mxu0 %vm3252_vm0, %v19813_v55 }
 0x226   : > { %v1577_v12 = vpop.f32.mrb[28].mxu1  ;;  %16177 = vmatprep.mubr.msk.bf16.mxu0 %vm3252_vm0, %v19833_v8 }
 0x227   : > { %v1590_v40 = vadd.f32 %v1577_v12, %v19929_v60  ;;  %v1579_v44 = vpop.f32.mrb[29].mxu1 }
 0x228   : > { %v1580_v61 = vpop.f32.mrb[30].mxu1 }
 0x229   : > { %v1591_v18 = vadd.f32 %v1580_v61, %v19932_v11  ;;  %v1582_v7 = vpop.f32.mrb[31].mxu1  ;;  %v1780_v5 = vadd.f32 %v1767_v10, %v1590_v40 }
 0x22b   : > { %v1781_v30 = vadd.f32 %v1770_v3, %v1591_v18 }
 0x22d   : > { %16178 = vmatmul.mubr.msk.bf16.gmra.mrb[84].mxu0 %vm3252_vm0, %v4318_v2 }
 0x230   : > { %v2347_v33 = vpop.f32.mrb[48].mxu0 }
 0x231   : > { %v2349_v60 = vpop.f32.mrb[49].mxu0 }
 0x232   : > { %v2350_v16 = vpop.f32.mrb[50].mxu0 }
 0x233   : > { %v2352_v19 = vpop.f32.mrb[51].mxu0 }
 0x236   : > { %v2045_v17 = vpop.f32.mrb[32].mxu1 }
 0x237   : > { %v2076_v55 = vadd.f32 %v2045_v17, %v19958_v13  ;;  %v2047_v23 = vpop.f32.mrb[33].mxu1 }
 0x238   : > { %v2048_v11 = vpop.f32.mrb[34].mxu1  ;;  %v2355_v45 = vpop.f32.mrb[52].mxu0 }
 0x239   : > { %v2077_v24 = vadd.f32 %v2048_v11, %v19963_v20  ;;  %v2050_v59 = vpop.f32.mrb[35].mxu1  ;;  %v2378_v8 = vadd.f32 %v2347_v33, %v2076_v55  ;;  %v2357_v47 = vpop.f32.mrb[53].mxu0 }
 0x23a   : > { %v2358_v53 = vpop.f32.mrb[54].mxu0 }
 0x23b   : > { %v2379_v21 = vadd.f32 %v2350_v16, %v2077_v24  ;;  %v2360_v1 = vpop.f32.mrb[55].mxu0 }
 0x23e   : > { %v2053_v50 = vpop.f32.mrb[36].mxu1 }
 0x23f   : > { %v2078_v26 = vadd.f32 %v2053_v50, %v1776_v22  ;;  %v2055_v27 = vpop.f32.mrb[37].mxu1 }
 0x240   : > { %v2056_v28 = vpop.f32.mrb[38].mxu1  ;;  %v2363_v25 = vpop.f32.mrb[56].mxu0 }
 0x241   : > { %v2079_v29 = vadd.f32 %v2056_v28, %v1777_v56  ;;  %v2058_v32 = vpop.f32.mrb[39].mxu1  ;;  %v2380_v34 = vadd.f32 %v2355_v45, %v2078_v26  ;;  %v2365_v49 = vpop.f32.mrb[57].mxu0 }
 0x242   : > { %v2366_v39 = vpop.f32.mrb[58].mxu0 }
 0x243   : > { %v2381_v13 = vadd.f32 %v2358_v53, %v2079_v29  ;;  %v2368_v20 = vpop.f32.mrb[59].mxu0 }
 0x246   : > { %v2061_v41 = vpop.f32.mrb[40].mxu1 }
 0x247   : > { %v2080_v0 = vadd.f32 %v2061_v41, %v1778_v46  ;;  %v2063_v43 = vpop.f32.mrb[41].mxu1 }
 0x248   : > { %v2064_v15 = vpop.f32.mrb[42].mxu1  ;;  %v2371_v57 = vpop.f32.mrb[60].mxu0 }
 0x249   : > { %v2081_v36 = vadd.f32 %v2064_v15, %v1779_v63  ;;  %v2066_v48 = vpop.f32.mrb[43].mxu1  ;;  %v2382_v35 = vadd.f32 %v2363_v25, %v2080_v0  ;;  %v2373_v22 = vpop.f32.mrb[61].mxu0 }
 0x24a   : > { %v2374_v52 = vpop.f32.mrb[62].mxu0  ;;  %v20003_v48 = vld [vmem:[%s22418_s5] ss:$0 sm:$0xff] }
 0x24b   : > { %v2383_v58 = vadd.f32 %v2366_v39, %v2081_v36  ;;  %v2376_v56 = vpop.f32.mrb[63].mxu0 }
 0x24e   : > { %v2069_v42 = vpop.f32.mrb[44].mxu1 }
 0x24f   : > { %v2082_v62 = vadd.f32 %v2069_v42, %v1780_v5  ;;  %v2071_v14 = vpop.f32.mrb[45].mxu1 }
 0x250   : > { %v2072_v9 = vpop.f32.mrb[46].mxu1 }
 0x251   : > { %v2083_v38 = vadd.f32 %v2072_v9, %v1781_v30  ;;  %v2074_v37 = vpop.f32.mrb[47].mxu1  ;;  %v2384_v51 = vadd.f32 %v2371_v57, %v2082_v62 }
 0x253   : > { %v2385_v4 = vadd.f32 %v2374_v52, %v2083_v38 }
 0x258   : > { %v2840_v10 = vpop.f32.mrb[64].mxu0 }
 0x259   : > { %v2842_v46 = vpop.f32.mrb[65].mxu0 }
 0x25a   : > { %v2843_v31 = vpop.f32.mrb[66].mxu0 }
 0x25b   : > { %v2845_v63 = vpop.f32.mrb[67].mxu0 }
 0x25c   : > { %v18140_v63 = vld [vmem:[%s22421_s8 + $0x20] sm:$0xff]  }
 0x25d   : > { %16181 = vmatprep.subr.bf16.mxu1 %v18140_v63 }
 0x25e   : > { %v2538_v3 = vpop.f32.mrb[48].mxu1  ;;  %16182 = vmatpush3.bf16.msra.mxu1 %v18140_v63 }
 0x25f   : > { %v2569_v12 = vadd.f32 %v2538_v3, %v2378_v8  ;;  %v2540_v6 = vpop.f32.mrb[49].mxu1 }
 0x260   : > { %v2541_v40 = vpop.f32.mrb[50].mxu1  ;;  %v2848_v7 = vpop.f32.mrb[68].mxu0 }
 0x261   : > { %v2570_v44 = vadd.f32 %v2541_v40, %v2379_v21  ;;  %v2543_v61 = vpop.f32.mrb[51].mxu1  ;;  %v2871_v18 = vadd.f32 %v2840_v10, %v2569_v12  ;;  %v2850_v5 = vpop.f32.mrb[69].mxu0 }
 0x262   : > { %v2851_v2 = vpop.f32.mrb[70].mxu0 }
 0x263   : > { %v2872_v54 = vadd.f32 %v2843_v31, %v2570_v44  ;;  %v2853_v30 = vpop.f32.mrb[71].mxu0 }
 0x266   : > { %v2546_v33 = vpop.f32.mrb[52].mxu1 }
 0x267   : > { %v2571_v60 = vadd.f32 %v2546_v33, %v2380_v34  ;;  %v2548_v16 = vpop.f32.mrb[53].mxu1 }
 0x268   : > { %v2549_v17 = vpop.f32.mrb[54].mxu1  ;;  %v2856_v11 = vpop.f32.mrb[72].mxu0 }
 0x269   : > { %v2572_v19 = vadd.f32 %v2549_v17, %v2381_v13  ;;  %v2551_v55 = vpop.f32.mrb[55].mxu1  ;;  %v2873_v23 = vadd.f32 %v2848_v7, %v2571_v60  ;;  %v2858_v59 = vpop.f32.mrb[73].mxu0  ;;  %v18141_v17 = vld [vmem:[%s22421_s8 + $0x28] sm:$0xff]  }
 0x26a   : > { %v2859_v8 = vpop.f32.mrb[74].mxu0  ;;  %16183 = vmatprep.subr.bf16.mxu1 %v18141_v17 }
 0x26b   : > { %v2874_v24 = vadd.f32 %v2851_v2, %v2572_v19  ;;  %v2861_v21 = vpop.f32.mrb[75].mxu0  ;;  %16184 = vmatpush3.bf16.msra.mxu1 %v18141_v17 }
 0x26e   : > { %v2554_v45 = vpop.f32.mrb[56].mxu1 }
 0x26f   : > { %v2573_v47 = vadd.f32 %v2554_v45, %v2382_v35  ;;  %v2556_v53 = vpop.f32.mrb[57].mxu1 }
 0x270   : > { %v2557_v50 = vpop.f32.mrb[58].mxu1  ;;  %v2864_v28 = vpop.f32.mrb[76].mxu0  ;;  %v18143_v53 = vld [vmem:[%s22421_s8 + $0x38] sm:$0xff]  }
 0x271   : > { %v2574_v1 = vadd.f32 %v2557_v50, %v2383_v58  ;;  %v2559_v26 = vpop.f32.mrb[59].mxu1  ;;  %v2875_v27 = vadd.f32 %v2856_v11, %v2573_v47  ;;  %v2866_v32 = vpop.f32.mrb[77].mxu0  ;;  %v18142_v11 = vld [vmem:[%s22421_s8 + $0x30] sm:$0xff]  }
 0x272   : > { %v2867_v34 = vpop.f32.mrb[78].mxu0  ;;  %16185 = vmatprep.subr.bf16.mxu1 %v18142_v11 }
 0x273   : > { %v2876_v29 = vadd.f32 %v2859_v8, %v2574_v1  ;;  %v2869_v13 = vpop.f32.mrb[79].mxu0  ;;  %16186 = vmatpush3.bf16.msra.mxu1 %v18142_v11 }
 0x274   : > { %16187 = vmatprep.subr.bf16.mxu1 %v18143_v53  ;;  %v20031_v13 = vld [vmem:[%s22421_s8] sm:$0xff]  }
 0x276   : > { %v2562_v25 = vpop.f32.mrb[60].mxu1 }
 0x277   : > { %v2575_v49 = vadd.f32 %v2562_v25, %v2384_v51  ;;  %v2564_v39 = vpop.f32.mrb[61].mxu1  ;;  %16188 = vmatpush3.bf16.msra.mxu1 %v18143_v53 }
 0x278   : > { %v2565_v41 = vpop.f32.mrb[62].mxu1  ;;  %16197 = vmatprep.subr.bf16.mxu1 %v20031_v13 }
 0x279   : > { %v2576_v20 = vadd.f32 %v2565_v41, %v2385_v4  ;;  %v2567_v0 = vpop.f32.mrb[63].mxu1  ;;  %v19996_v43 = vadd.f32 %v2864_v28, %v2575_v49 }
 0x27b   : > { %v19998_v15 = vadd.f32 %v2867_v34, %v2576_v20 }
 0x286   : > { %v3142_v36 = vpop.f32.mrb[64].mxu1 }
 0x287   : > { %v3173_v35 = vadd.f32 %v3142_v36, %v2871_v18  ;;  %v3144_v57 = vpop.f32.mrb[65].mxu1 }
 0x288   : > { %v3145_v58 = vpop.f32.mrb[66].mxu1 }
 0x289   : > { %v3188_v22 = vadd.f32 %v20003_v48, %v3173_v35  ;;  %v3174_v52 = vadd.f32 %v3145_v58, %v2872_v54  ;;  %v3147_v42 = vpop.f32.mrb[67].mxu1 }
 0x28b   : > { %v3204_v56 = vmin.f32 %v3188_v22, 0.0  ;;  %v3189_v62 = vadd.f32 %v20003_v48, %v3174_v52  ;;  %vm3196_vm9 = vcmp.gt.f32.partialorder %v3188_v22, 0.0 }
 0x28d   : > { %v3212_v14 = vmul.f32 1.442695, %v3204_v56  ;;  %v3205_v9 = vmin.f32 %v3189_v62, 0.0  ;;  %vm3197_vm10 = vcmp.gt.f32.partialorder %v3189_v62, 0.0 }
 0x28e   : > { %v3150_v38 = vpop.f32.mrb[68].mxu1 }
 0x28f   : > { %18294 = vpow2.f32 %v3212_v14  ;;  %v3214_v37 = vmul.f32 1.442695, %v3205_v9  ;;  %v3175_v51 = vadd.f32 %v3150_v38, %v2873_v23  ;;  %v3152_v4 = vpop.f32.mrb[69].mxu1 }
 0x290   : > { %v3153_v10 = vpop.f32.mrb[70].mxu1 }
 0x291   : > { %18296 = vpow2.f32 %v3214_v37  ;;  %v3190_v46 = vadd.f32 %v20003_v48, %v3175_v51  ;;  %v3176_v31 = vadd.f32 %v3153_v10, %v2874_v24  ;;  %v3155_v3 = vpop.f32.mrb[71].mxu1  ;;  %v14520_v51 = vld [vmem:[%s22420_s7] ss:$0 sm:$0xff] }
 0x293   : > { %v3206_v12 = vmin.f32 %v3190_v46, 0.0  ;;  %v3191_v6 = vadd.f32 %v20003_v48, %v3176_v31  ;;  %vm3198_vm11 = vcmp.gt.f32.partialorder %v3190_v46, 0.0 }
 0x295   : > { %v3216_v40 = vmul.f32 1.442695, %v3206_v12  ;;  %v3207_v44 = vmin.f32 %v3191_v6, 0.0  ;;  %vm3199_vm12 = vcmp.gt.f32.partialorder %v3191_v6, 0.0 }
 0x296   : > { %v3158_v61 = vpop.f32.mrb[72].mxu1 }
 0x297   : > { %18298 = vpow2.f32 %v3216_v40  ;;  %v3218_v18 = vmul.f32 1.442695, %v3207_v44  ;;  %v3177_v7 = vadd.f32 %v3158_v61, %v2875_v27  ;;  %v3160_v54 = vpop.f32.mrb[73].mxu1 }
 0x298   : > { %v3161_v5 = vpop.f32.mrb[74].mxu1 }
 0x299   : > { %v18295_v2 = vpop.eup %18294  ;;  %18300 = vpow2.f32 %v3218_v18  ;;  %v3192_v33 = vadd.f32 %v20003_v48, %v3177_v7  ;;  %v3178_v30 = vadd.f32 %v3161_v5, %v2876_v29  ;;  %v3163_v60 = vpop.f32.mrb[75].mxu1 }
 0x29a   : > { %v14376_v16 = vadd.f32 -1.0, %v18295_v2 }
 0x29b   : > { %v18297_v19 = vpop.eup %18296  ;;  %v3208_v55 = vmin.f32 %v3192_v33, 0.0  ;;  %v3193_v23 = vadd.f32 %v20003_v48, %v3178_v30  ;;  %vm3200_vm13 = vcmp.gt.f32.partialorder %v3192_v33, 0.0 }
 0x29c   : > { %v3236_v24 = vsel %vm3196_vm9, %v3188_v22, %v14376_v16  ;;  %v14377_v59 = vadd.f32 -1.0, %v18297_v19 }
 0x29d   : > { %5704 = vst.msk [vmem:[#allocation5 + $0x11] sm:$0xff] %vm3252_vm0, %v3236_v24  ;;  %v3220_v8 = vmul.f32 1.442695, %v3208_v55  ;;  %v3209_v45 = vmin.f32 %v3193_v23, 0.0  ;;  %vm3201_vm14 = vcmp.gt.f32.partialorder %v3193_v23, 0.0 }
 0x29e   : > { %v3237_v21 = vsel %vm3197_vm10, %v3189_v62, %v14377_v59  ;;  %v3166_v47 = vpop.f32.mrb[76].mxu1 }
 0x29f   : > { %5705 = vst.msk [vmem:[#allocation5 + $0x21] sm:$0xff] %vm3252_vm0, %v3237_v21  ;;  %18302 = vpow2.f32 %v3220_v8  ;;  %v3222_v50 = vmul.f32 1.442695, %v3209_v45  ;;  %v3179_v1 = vadd.f32 %v3166_v47, %v19996_v43  ;;  %v3168_v26 = vpop.f32.mrb[77].mxu1 }
 0x2a0   : > { %v3169_v27 = vpop.f32.mrb[78].mxu1 }
 0x2a1   : > { %v18299_v28 = vpop.eup %18298  ;;  %18304 = vpow2.f32 %v3222_v50  ;;  %v3194_v29 = vadd.f32 %v20003_v48, %v3179_v1  ;;  %v3180_v32 = vadd.f32 %v3169_v27, %v19998_v15  ;;  %v3171_v34 = vpop.f32.mrb[79].mxu1 }
 0x2a2   : > { %v14378_v25 = vadd.f32 -1.0, %v18299_v28 }
 0x2a3   : > { %v18301_v49 = vpop.eup %18300  ;;  %v3210_v39 = vmin.f32 %v3194_v29, 0.0  ;;  %v3195_v41 = vadd.f32 %v20003_v48, %v3180_v32  ;;  %vm3202_vm15 = vcmp.gt.f32.partialorder %v3194_v29, 0.0 }
 0x2a4   : > { %v3238_v20 = vsel %vm3198_vm11, %v3190_v46, %v14378_v25  ;;  %v14379_v0 = vadd.f32 -1.0, %v18301_v49 }
 0x2a5   : > { %5706 = vst.msk [vmem:[#allocation5 + $0x31] sm:$0xff] %vm3252_vm0, %v3238_v20  ;;  %v3224_v43 = vmul.f32 1.442695, %v3210_v39  ;;  %v3211_v15 = vmin.f32 %v3195_v41, 0.0  ;;  %vm3203_vm1 = vcmp.gt.f32.partialorder %v3195_v41, 0.0 }
 0x2a6   : > { %v3239_v36 = vsel %vm3199_vm12, %v3191_v6, %v14379_v0 }
 0x2a7   : > { %5707 = vst.msk [vmem:[#allocation5 + $0x41] sm:$0xff] %vm3252_vm0, %v3239_v36  ;;  %18306 = vpow2.f32 %v3224_v43  ;;  %v3226_v35 = vmul.f32 1.442695, %v3211_v15 }
 0x2a9   : > { %v18303_v57 = vpop.eup %18302  ;;  %18308 = vpow2.f32 %v3226_v35  ;;  %v4549_v35 = vld [vmem:[#allocation4 + $0x1] sm:$0xff] }
 0x2aa   : > { %v14380_v58 = vadd.f32 -1.0, %v18303_v57 }
 0x2ab   : > { %v18305_v22 = vpop.eup %18304 }
 0x2ac   : > { %v3240_v48 = vsel %vm3200_vm13, %v3192_v33, %v14380_v58  ;;  %v14381_v52 = vadd.f32 -1.0, %v18305_v22 }
 0x2ad   : > { %5708 = vst.msk [vmem:[#allocation5 + $0x51] sm:$0xff] %vm3252_vm0, %v3240_v48 }
 0x2ae   : > { %v3241_v42 = vsel %vm3201_vm14, %v3193_v23, %v14381_v52 }
 0x2af   : > { %5709 = vst.msk [vmem:[#allocation5 + $0x61] sm:$0xff] %vm3252_vm0, %v3241_v42 }
 0x2b1   : > { %v18307_v56 = vpop.eup %18306 }
 0x2b2   : > { %v14382_v62 = vadd.f32 -1.0, %v18307_v56 }
 0x2b3   : > { %v18309_v14 = vpop.eup %18308 }
 0x2b4   : > { %v3242_v9 = vsel %vm3202_vm15, %v3194_v29, %v14382_v62  ;;  %v14383_v38 = vadd.f32 -1.0, %v18309_v14 }
 0x2b5   : > { %5710 = vst.msk [vmem:[#allocation5 + $0x71] sm:$0xff] %vm3252_vm0, %v3242_v9 }
 0x2b6   : > { %v3243_v37 = vsel %vm3203_vm1, %v3195_v41, %v14383_v38 }
 0x2b7   : > { %5711 = vst.msk [vmem:[#allocation5 + $0x81] sm:$0xff] %vm3252_vm0, %v3243_v37 }
 0x2f8   : > { %v16175_v4 = vpop.f32.mrb[80].mxu0 }
 0x2f9   : > { %v4446_v10 = vadd.f32 %v16175_v4, %v14520_v51  ;;  %v4398_v46 = vpop.f32.mrb[81].mxu0  ;;  %v18146_v4 = vld [vmem:[%s22421_s8 + $0x10] sm:$0xff]  }
 0x2fa   : > { %v4444_v31 = vadd.f32 %v14520_v51, %v4398_v46  ;;  %v16176_v3 = vpop.f32.mrb[82].mxu0 }
 0x2fb   : > { %v4462_v63 = vmin.f32 %v4446_v10, 0.0  ;;  %v4447_v12 = vadd.f32 %v16176_v3, %v14520_v51  ;;  %v4401_v6 = vpop.f32.mrb[83].mxu0  ;;  %vm4454_vm2 = vcmp.gt.f32.partialorder %v4446_v10, 0.0  ;;  %v4529_v3 = vld [vmem:[#allocation4] sm:$0xff] }
 0x2fc   : > { %v4460_v40 = vmin.f32 %v4444_v31, 0.0  ;;  %v4445_v44 = vadd.f32 %v14520_v51, %v4401_v6  ;;  %vm4452_vm3 = vcmp.gt.f32.partialorder %v4444_v31, 0.0 }
 0x2fd   : > { %v4472_v61 = vmul.f32 1.442695, %v4462_v63  ;;  %v4463_v18 = vmin.f32 %v4447_v12, 0.0  ;;  %vm4455_vm4 = vcmp.gt.f32.partialorder %v4447_v12, 0.0 }
 0x2fe   : > { %v4468_v7 = vmul.f32 1.442695, %v4460_v40  ;;  %v4461_v54 = vmin.f32 %v4445_v44, 0.0  ;;  %vm4453_vm5 = vcmp.gt.f32.partialorder %v4445_v44, 0.0  ;;  %v18147_v40 = vld [vmem:[%s22421_s8 + $0x18] sm:$0xff]  }
 0x2ff   : > { %18310 = vpow2.f32 %v4472_v61  ;;  %v4474_v5 = vmul.f32 1.442695, %v4463_v18  ;;  %v18148_v61 = vld [vmem:[%s22421_s8 + $0x40] sm:$0xff]  }
 0x300   : > { %18312 = vpow2.f32 %v4468_v7  ;;  %v4470_v2 = vmul.f32 1.442695, %v4461_v54  ;;  %v16179_v33 = vpop.f32.mrb[84].mxu0 }
 0x301   : > { %18314 = vpow2.f32 %v4474_v5  ;;  %v4450_v30 = vadd.f32 %v16179_v33, %v14520_v51  ;;  %v4414_v60 = vpop.f32.mrb[85].mxu0  ;;  %v18149_v33 = vld [vmem:[%s22421_s8 + $0x48] sm:$0xff]  }
 0x302   : > { %18316 = vpow2.f32 %v4470_v2  ;;  %v4448_v16 = vadd.f32 %v14520_v51, %v4414_v60  ;;  %v16180_v17 = vpop.f32.mrb[86].mxu0  ;;  %v18150_v60 = vld [vmem:[%s22421_s8 + $0x50] sm:$0xff]  }
 0x303   : > { %v4466_v19 = vmin.f32 %v4450_v30, 0.0  ;;  %v4451_v55 = vadd.f32 %v16180_v17, %v14520_v51  ;;  %v4417_v23 = vpop.f32.mrb[87].mxu0  ;;  %vm4458_vm6 = vcmp.gt.f32.partialorder %v4450_v30, 0.0  ;;  %v4772_v17 = vld [vmem:[#allocation4 + $0x2] sm:$0xff] }
 0x304   : > { %v4464_v11 = vmin.f32 %v4448_v16, 0.0  ;;  %v4449_v24 = vadd.f32 %v14520_v51, %v4417_v23  ;;  %vm4456_vm7 = vcmp.gt.f32.partialorder %v4448_v16, 0.0  ;;  %v18145_v51 = vld [vmem:[%s22421_s8 + $0x8] sm:$0xff]  }
 0x305   : > { %v4480_v59 = vmul.f32 1.442695, %v4466_v19  ;;  %v4467_v8 = vmin.f32 %v4451_v55, 0.0  ;;  %vm4459_vm8 = vcmp.gt.f32.partialorder %v4451_v55, 0.0 }
 0x306   : > { %v4476_v45 = vmul.f32 1.442695, %v4464_v11  ;;  %v4465_v21 = vmin.f32 %v4449_v24, 0.0  ;;  %vm4457_vm9 = vcmp.gt.f32.partialorder %v4449_v24, 0.0  ;;  %v18151_v11 = vld [vmem:[%s22421_s8 + $0x58] sm:$0xff]  }
 0x307   : > { %18318 = vpow2.f32 %v4480_v59  ;;  %v4482_v47 = vmul.f32 1.442695, %v4467_v8  ;;  %v18152_v59 = vld [vmem:[%s22421_s8 + $0x60] sm:$0xff]  }
 0x308   : > { %18320 = vpow2.f32 %v4476_v45  ;;  %v4478_v53 = vmul.f32 1.442695, %v4465_v21 }
 0x309   : > { %v18311_v50 = vpop.eup %18310  ;;  %18322 = vpow2.f32 %v4482_v47 }
 0x30a   : > { %v18313_v1 = vpop.eup %18312  ;;  %v14523_v26 = vadd.f32 -1.0, %v18311_v50  ;;  %18324 = vpow2.f32 %v4478_v53  ;;  %v18153_v50 = vld [vmem:[%s22421_s8 + $0x68] sm:$0xff]  }
 0x30b   : > { %v18315_v27 = vpop.eup %18314  ;;  %v14521_v28 = vadd.f32 -1.0, %v18313_v1 }
 0x30c   : > { %v18317_v29 = vpop.eup %18316  ;;  %v4494_v32 = vsel %vm4454_vm2, %v4446_v10, %v14523_v26  ;;  %v14524_v34 = vadd.f32 -1.0, %v18315_v27  ;;  %v18154_v26 = vld [vmem:[%s22421_s8 + $0x70] sm:$0xff]  }
 0x30d   : > { %4523 = vst.msk [vmem:[#allocation4 + $0x31] sm:$0xff] %vm3252_vm0, %v4494_v32  ;;  %v4492_v25 = vsel %vm4452_vm3, %v4444_v31, %v14521_v28  ;;  %v14522_v49 = vadd.f32 -1.0, %v18317_v29  ;;  %v18155_v32 = vld [vmem:[%s22421_s8 + $0x78] sm:$0xff]   ;;  %vm10422_vm3 = vcmask 392192  }
 0x30e   : > { %4521 = vst.msk [vmem:[#allocation4 + $0x11] sm:$0xff] %vm3252_vm0, %v4492_v25  ;;  %v4495_v39 = vsel %vm4455_vm4, %v4447_v12, %v14524_v34  ;;  %v18156_v25 = vld [vmem:[%s22421_s8 + $0x80] sm:$0xff]  }
 0x30f   : > { %4524 = vst.msk [vmem:[#allocation4 + $0x41] sm:$0xff] %vm3252_vm0, %v4495_v39  ;;  %v4493_v41 = vsel %vm4453_vm5, %v4445_v44, %v14522_v49  ;;  %v18157_v39 = vld [vmem:[%s22421_s8 + $0x88] sm:$0xff]  }
 0x310   : > { %4522 = vst.msk [vmem:[#allocation4 + $0x21] sm:$0xff] %vm3252_vm0, %v4493_v41 }
 0x311   : > { %v18319_v20 = vpop.eup %18318 }
 0x312   : > { %v18321_v0 = vpop.eup %18320  ;;  %v14527_v43 = vadd.f32 -1.0, %v18319_v20  ;;  %v18158_v20 = vld [vmem:[%s22421_s8 + $0x90] sm:$0xff]  }
 0x313   : > { %v18323_v15 = vpop.eup %18322  ;;  %v14525_v36 = vadd.f32 -1.0, %v18321_v0 }
 0x314   : > { %v18325_v57 = vpop.eup %18324  ;;  %v4498_v58 = vsel %vm4458_vm6, %v4450_v30, %v14527_v43  ;;  %v14528_v22 = vadd.f32 -1.0, %v18323_v15  ;;  %v20056_v38 = vld [vmem:[#allocation4 + $0x31] sm:$0xff] }
 0x315   : > { %4527 = vst.msk [vmem:[#allocation4 + $0x71] sm:$0xff] %vm3252_vm0, %v4498_v58  ;;  %v4496_v48 = vsel %vm4456_vm7, %v4448_v16, %v14525_v36  ;;  %v14526_v52 = vadd.f32 -1.0, %v18325_v57  ;;  %v20049_v42 = vld [vmem:[#allocation4 + $0x11] sm:$0xff]  ;;  %v18161_v58 = vld [vmem:[%s22421_s8 + $0xa8] sm:$0xff]  }
 0x316   : > { %4525 = vst.msk [vmem:[#allocation4 + $0x51] sm:$0xff] %vm3252_vm0, %v4496_v48  ;;  %v4499_v56 = vsel %vm4459_vm8, %v4451_v55, %v14528_v22  ;;  %v4557_v62 = vpack.c.bf16 %v20049_v42, %v4549_v35  ;;  %v20073_v10 = vld [vmem:[#allocation4 + $0x41] sm:$0xff]  ;;  %v20081_v63 = vld [vmem:[#allocation4 + $0x10] sm:$0xff]  ;;  %v18159_v15 = vld [vmem:[%s22421_s8 + $0x98] sm:$0xff]  }
 0x317   : > { %4528 = vst.msk [vmem:[#allocation4 + $0x81] sm:$0xff] %vm3252_vm0, %v4499_v56  ;;  %v4497_v14 = vsel %vm4457_vm9, %v4449_v24, %v14526_v52  ;;  %v20054_v9 = vld [vmem:[#allocation4 + $0x21] sm:$0xff]  ;;  %v4537_v44 = vpack.c.bf16 %v20081_v63, %v4529_v3  ;;  %v4532_v54 = vld [vmem:[#allocation4 + $0x30] sm:$0xff]  ;;  %v5041_v57 = vpack.c.bf16 %v20073_v10, %v20056_v38  ;;  %v18163_v56 = vld [vmem:[%s22421_s8 + $0xb8] sm:$0xff]  }
 0x318   : > { %4526 = vst.msk [vmem:[#allocation4 + $0x61] sm:$0xff] %vm3252_vm0, %v4497_v14  ;;  %16189 = vmatprep.mubr.msk.bf16.mxu1 %vm3252_vm0, %v4557_v62  ;;  %v20062_v37 = vpack.c.bf16 %v20056_v38, %v20054_v9  ;;  %v4531_v18 = vld [vmem:[#allocation4 + $0x20] sm:$0xff]  ;;  %v20117_v19 = vld [vmem:[#allocation4 + $0x12] sm:$0xff]  ;;  %v5040_v36 = vpack.c.bf16 %v20054_v9, %v20049_v42  ;;  %v18165_v38 = vld [vmem:[%s22421_s8 + $0xc8] sm:$0xff]  }
 0x319   : > { %v20103_v5 = vpack.c.bf16 %v4532_v54, %v4531_v18  ;;  %v4533_v2 = vld [vmem:[#allocation4 + $0x40] sm:$0xff]  ;;  %v4780_v24 = vpack.c.bf16 %v20117_v19, %v4772_v17  ;;  %v20135_v21 = vld [vmem:[#allocation4 + $0x32] sm:$0xff]  ;;  %v4910_v34 = vpack.c.bf16 %v4531_v18, %v20081_v63 }
 0x31a   : > { %16190 = vmatmul.mubr.msk.bf16.vlgmr.msra.gmra.mrb[80].mxu1 %vm3252_vm0, %v20062_v37  ;;  %v20131_v8 = vld [vmem:[#allocation4 + $0x22] sm:$0xff]  ;;  %v4911_v49 = vpack.c.bf16 %v4533_v2, %v4532_v54  ;;  %v18162_v48 = vld [vmem:[%s22421_s8 + $0xb0] sm:$0xff]   ;;  %v18167_v3 = vld [vmem:[%s22421_s8 + $0xd8] sm:$0xff]  }
 0x31b   : > { %16198 = vmatpush3.bf16.msra.mxu1 %v20031_v13  ;;  %v20139_v47 = vpack.c.bf16 %v20135_v21, %v20131_v8  ;;  %v20141_v53 = vld [vmem:[#allocation4 + $0x42] sm:$0xff]  ;;  %v5170_v62 = vpack.c.bf16 %v20131_v8, %v20117_v19  ;;  %v5430_v54 = vld [vmem:[#allocation4 + $0x91] sm:$0xff] }
 0x31c   : > { %16199 = vmatprep.subr.bf16.mxu1 %v18145_v51  ;;  %v20085_v13 = vld [vmem:[#allocation4 + $0x71] sm:$0xff]  ;;  %v18160_v35 = vld [vmem:[%s22421_s8 + $0xa0] sm:$0xff]   ;;  %v5171_v9 = vpack.c.bf16 %v20141_v53, %v20135_v21  ;;  %v18181_v21 = vld [vmem:[%s22422_s9 + $0x28] sm:$0xff]  }
 0x31d   : > { %v20075_v46 = vld [vmem:[#allocation4 + $0x51] sm:$0xff]  ;;  %v18164_v14 = vld [vmem:[%s22421_s8 + $0xc0] sm:$0xff]  }
 0x31e   : > { %v20079_v31 = vpack.c.bf16 %v20075_v46, %v20073_v10  ;;  %v4534_v7 = vld [vmem:[#allocation4 + $0x50] sm:$0xff]  ;;  %v20180_v0 = vld [vmem:[#allocation4 + $0x80] sm:$0xff]  ;;  %v18179_v19 = vld [vmem:[%s22422_s9 + $0x18] sm:$0xff]  }
 0x31f   : > { %16200 = vmatpush3.bf16.msra.mxu1 %v18145_v51  ;;  %v20083_v12 = vld [vmem:[#allocation4 + $0x61] sm:$0xff]  ;;  %v20108_v30 = vpack.c.bf16 %v4534_v7, %v4533_v2  ;;  %v4536_v55 = vld [vmem:[#allocation4 + $0x70] sm:$0xff]  ;;  %v18175_v2 = vld [vmem:[%s22421_s8 + $0x118] sm:$0xff]  }
 0x320   : > { %16193 = vmatprep.mubr.msk.bf16.mxu1 %vm3252_vm0, %v20079_v31  ;;  %v20091_v6 = vpack.c.bf16 %v20085_v13, %v20083_v12  ;;  %16201 = vmatprep.subr.bf16.mxu1 %v18146_v4  ;;  %v4535_v16 = vld [vmem:[#allocation4 + $0x60] sm:$0xff]  ;;  %v20133_v45 = vld [vmem:[#allocation4 + $0x52] sm:$0xff]  ;;  %v4913_v43 = vpack.c.bf16 %v20180_v0, %v4536_v55  ;;  %v5042_v22 = vpack.c.bf16 %v20083_v12, %v20075_v46  ;;  %v18169_v12 = vld [vmem:[%s22421_s8 + $0xe8] sm:$0xff]  }
 0x321   : > { %v20119_v23 = vpack.c.bf16 %v4536_v55, %v4535_v16  ;;  %v20148_v1 = vpack.c.bf16 %v20133_v45, %v20141_v53  ;;  %v4778_v27 = vld [vmem:[#allocation4 + $0x62] sm:$0xff]  ;;  %v20157_v28 = vld [vmem:[#allocation4 + $0x72] sm:$0xff]  ;;  %v4912_v41 = vpack.c.bf16 %v4535_v16, %v4534_v7 }
 0x322   : > { %16194 = vmatmul.mubr.msk.bf16.gmra.mrb[84].mxu1 %vm3252_vm0, %v20091_v6  ;;  %v20160_v29 = vpack.c.bf16 %v20157_v28, %v4778_v27  ;;  %v20205_v52 = vld [vmem:[#allocation4 + $0x81] sm:$0xff]  ;;  %v5172_v51 = vpack.c.bf16 %v4778_v27, %v20133_v45  ;;  %v20293_v16 = vld [vmem:[#allocation5 + $0x10] sm:$0xff] }
 0x323   : > { %16202 = vmatpush3.bf16.msra.mxu1 %v18146_v4  ;;  %16205 = vmatprep.mubr.msk.bf16.mxu1 %vm3252_vm0, %v4537_v44  ;;  %v5043_v42 = vpack.c.bf16 %v20205_v52, %v20085_v13  ;;  %v18166_v4 = vld [vmem:[%s22421_s8 + $0xd0] sm:$0xff]   ;;  %v20230_v10 = vld [vmem:[#allocation4 + $0x82] sm:$0xff] }
 0x324   : > { %16203 = vmatprep.subr.bf16.mxu1 %v18147_v40  ;;  %v5173_v46 = vpack.c.bf16 %v20230_v10, %v20157_v28  ;;  %v18168_v63 = vld [vmem:[%s22421_s8 + $0xe0] sm:$0xff]   ;;  %v18170_v13 = vld [vmem:[%s22421_s8 + $0xf0] sm:$0xff]   ;;  %v18173_v7 = vld [vmem:[%s22421_s8 + $0x108] sm:$0xff]  }
 0x325   : > { %v18172_v18 = vld [vmem:[%s22421_s8 + $0x100] sm:$0xff]   ;;  %v18182_v53 = vld [vmem:[%s22422_s9 + $0x30] sm:$0xff]  }
 0x326   : > { %v20315_v45 = vld [vmem:[#allocation5 + $0x40] sm:$0xff] }
 0x327   : > { %16204 = vmatpush3.bf16.msra.mxu1 %v18147_v40  ;;  %v5300_v40 = vld [vmem:[#allocation4 + $0x90] sm:$0xff]  ;;  %v20335_v27 = vld [vmem:[#allocation5 + $0x60] sm:$0xff] }
 0x328   : > { %16213 = vmatprep.subr.bf16.mxu1 %v18148_v61  ;;  %v5304_v44 = vpack.c.bf16 %v5300_v40, %v20180_v0  ;;  %v18185_v0 = vld [vmem:[%s22422_s9 + $0x48] sm:$0xff]   ;;  %v18192_v40 = vld [vmem:[%s22422_s9 + $0x80] sm:$0xff]  }
 0x32a   : > { %16206 = vmatmul.mubr.msk.bf16.vlgmr.msra.gmra.mrb[80].mxu1 %vm3252_vm0, %v20103_v5 }
 0x32b   : > { %16209 = vmatprep.mubr.msk.bf16.mxu1 %vm3252_vm0, %v20108_v30  ;;  %16214 = vmatpush3.bf16.msra.mxu1 %v18148_v61  ;;  %v18171_v61 = vld [vmem:[%s22421_s8 + $0xf8] sm:$0xff]  }
 0x32c   : > { %16215 = vmatprep.subr.bf16.mxu1 %v18149_v33 }
 0x32f   : > { %16216 = vmatpush3.bf16.msra.mxu1 %v18149_v33  ;;  %v18178_v33 = vld [vmem:[%s22422_s9 + $0x10] sm:$0xff]  }
 0x330   : > { %16217 = vmatprep.subr.bf16.mxu1 %v18150_v60 }
 0x332   : > { %16210 = vmatmul.mubr.msk.bf16.gmra.mrb[84].mxu1 %vm3252_vm0, %v20119_v23 }
 0x333   : > { %16218 = vmatpush3.bf16.msra.mxu1 %v18150_v60  ;;  %16221 = vmatprep.mubr.msk.bf16.mxu1 %vm3252_vm0, %v4780_v24  ;;  %v5712_v60 = vld [vmem:[#allocation5] sm:$0xff]  ;;  %v20307_v24 = vld [vmem:[#allocation5 + $0x50] sm:$0xff] }
 0x334   : > { %16219 = vmatprep.subr.bf16.mxu1 %v18151_v11  ;;  %v5720_v55 = vpack.c.bf16 %v20293_v16, %v5712_v60  ;;  %v18198_v60 = vld [vmem:[%s22422_s9 + $0xb0] sm:$0xff]  }
 0x337   : > { %16220 = vmatpush3.bf16.msra.mxu1 %v18151_v11  ;;  %v20305_v11 = vld [vmem:[#allocation5 + $0x30] sm:$0xff] }
 0x338   : > { %16229 = vmatprep.subr.bf16.mxu1 %v18152_v59 }
 0x33a   : > { %16222 = vmatmul.mubr.msk.bf16.vlgmr.msra.gmra.mrb[80].mxu1 %vm3252_vm0, %v20139_v47 }
 0x33b   : > { %16225 = vmatprep.mubr.msk.bf16.mxu1 %vm3252_vm0, %v20148_v1  ;;  %16230 = vmatpush3.bf16.msra.mxu1 %v18152_v59  ;;  %v20309_v59 = vld [vmem:[#allocation5 + $0x20] sm:$0xff] }
 0x33c   : > { %16231 = vmatprep.subr.bf16.mxu1 %v18153_v50  ;;  %v20313_v8 = vpack.c.bf16 %v20305_v11, %v20309_v59 }
 0x33f   : > { %16232 = vmatpush3.bf16.msra.mxu1 %v18153_v50  ;;  %v20331_v50 = vld [vmem:[#allocation5 + $0x70] sm:$0xff] }
 0x340   : > { %16233 = vmatprep.subr.bf16.mxu1 %v18154_v26  ;;  %v20339_v28 = vpack.c.bf16 %v20331_v50, %v20335_v27 }
 0x342   : > { %16226 = vmatmul.mubr.msk.bf16.gmra.mrb[84].mxu1 %vm3252_vm0, %v20160_v29 }
 0x343   : > { %16234 = vmatpush3.bf16.msra.mxu1 %v18154_v26  ;;  %16237 = vmatprep.mubr.msk.bf16.mxu1 %vm3252_vm0, %v4910_v34  ;;  %v20333_v26 = vld [vmem:[#allocation5 + $0x11] sm:$0xff]  ;;  %v18184_v34 = vld [vmem:[%s22422_s9 + $0x40] sm:$0xff]  }
 0x344   : > { %16235 = vmatprep.subr.bf16.mxu1 %v18155_v32 }
 0x347   : > { %16236 = vmatpush3.bf16.msra.mxu1 %v18155_v32 }
 0x348   : > { %16245 = vmatprep.subr.bf16.mxu1 %v18156_v25 }
 0x34a   : > { %16238 = vmatmul.mubr.msk.bf16.vlgmr.msra.gmra.mrb[80].mxu1 %vm3252_vm0, %v4911_v49  ;;  %v20353_v49 = vld [vmem:[#allocation5 + $0x51] sm:$0xff] }
 0x34b   : > { %16241 = vmatprep.mubr.msk.bf16.mxu1 %vm3252_vm0, %v4912_v41  ;;  %16246 = vmatpush3.bf16.msra.mxu1 %v18156_v25  ;;  %v20351_v25 = vld [vmem:[#allocation5 + $0x31] sm:$0xff] }
 0x34c   : > { %16247 = vmatprep.subr.bf16.mxu1 %v18157_v39 }
 0x34f   : > { %16248 = vmatpush3.bf16.msra.mxu1 %v18157_v39  ;;  %v20355_v39 = vld [vmem:[#allocation5 + $0x21] sm:$0xff] }
 0x350   : > { %16249 = vmatprep.subr.bf16.mxu1 %v18158_v20  ;;  %v20359_v41 = vpack.c.bf16 %v20351_v25, %v20355_v39 }
 0x352   : > { %16242 = vmatmul.mubr.msk.bf16.gmra.mrb[84].mxu1 %vm3252_vm0, %v4913_v43 }
 0x353   : > { %16250 = vmatpush3.bf16.msra.mxu1 %v18158_v20  ;;  %16253 = vmatprep.mubr.msk.bf16.mxu1 %vm3252_vm0, %v5040_v36  ;;  %v20361_v20 = vld [vmem:[#allocation5 + $0x41] sm:$0xff]  ;;  %v20377_v36 = vld [vmem:[#allocation5 + $0x71] sm:$0xff] }
 0x354   : > { %16251 = vmatprep.subr.bf16.mxu1 %v18159_v15  ;;  %v20368_v43 = vpack.c.bf16 %v20353_v49, %v20361_v20 }
 0x357   : > { %16252 = vmatpush3.bf16.msra.mxu1 %v18159_v15  ;;  %v18186_v15 = vld [vmem:[%s22422_s9 + $0x50] sm:$0xff]  }
 0x358   : > { %16261 = vmatprep.subr.bf16.mxu1 %v18160_v35 }
 0x35a   : > { %16254 = vmatmul.mubr.msk.bf16.vlgmr.msra.gmra.mrb[80].mxu1 %vm3252_vm0, %v5041_v57  ;;  %v20379_v57 = vld [vmem:[#allocation5 + $0x12] sm:$0xff] }
 0x35b   : > { %16257 = vmatprep.mubr.msk.bf16.mxu1 %vm3252_vm0, %v5042_v22  ;;  %16262 = vmatpush3.bf16.msra.mxu1 %v18160_v35  ;;  %v5971_v35 = vld [vmem:[#allocation5 + $0x2] sm:$0xff] }
 0x35c   : > { %16263 = vmatprep.subr.bf16.mxu1 %v18161_v58 }
 0x35f   : > { %16264 = vmatpush3.bf16.msra.mxu1 %v18161_v58  ;;  %v20381_v58 = vld [vmem:[#allocation5 + $0x61] sm:$0xff] }
 0x360   : > { %16265 = vmatprep.subr.bf16.mxu1 %v18162_v48  ;;  %v20385_v22 = vpack.c.bf16 %v20377_v36, %v20381_v58 }
 0x362   : > { %16258 = vmatmul.mubr.msk.bf16.gmra.mrb[84].mxu1 %vm3252_vm0, %v5043_v42  ;;  %v18188_v42 = vld [vmem:[%s22422_s9 + $0x60] sm:$0xff]  }
 0x363   : > { %16266 = vmatpush3.bf16.msra.mxu1 %v18162_v48  ;;  %16269 = vmatprep.mubr.msk.bf16.mxu1 %vm3252_vm0, %v5170_v62  ;;  %v18187_v48 = vld [vmem:[%s22422_s9 + $0x58] sm:$0xff]  }
 0x364   : > { %16267 = vmatprep.subr.bf16.mxu1 %v18163_v56  ;;  %v20399_v62 = vld [vmem:[#allocation5 + $0x52] sm:$0xff] }
 0x367   : > { %16268 = vmatpush3.bf16.msra.mxu1 %v18163_v56  ;;  %v20397_v56 = vld [vmem:[#allocation5 + $0x32] sm:$0xff] }
 0x368   : > { %16277 = vmatprep.subr.bf16.mxu1 %v18164_v14 }
 0x36a   : > { %16270 = vmatmul.mubr.msk.bf16.vlgmr.msra.gmra.mrb[80].mxu1 %vm3252_vm0, %v5171_v9 }
 0x36b   : > { %16273 = vmatprep.mubr.msk.bf16.mxu1 %vm3252_vm0, %v5172_v51  ;;  %16278 = vmatpush3.bf16.msra.mxu1 %v18164_v14  ;;  %v20401_v14 = vld [vmem:[#allocation5 + $0x22] sm:$0xff] }
 0x36c   : > { %16279 = vmatprep.subr.bf16.mxu1 %v18165_v38  ;;  %v20405_v9 = vpack.c.bf16 %v20397_v56, %v20401_v14  ;;  %v18189_v51 = vld [vmem:[%s22422_s9 + $0x68] sm:$0xff]  }
 0x36f   : > { %16280 = vmatpush3.bf16.msra.mxu1 %v18165_v38  ;;  %v20407_v38 = vld [vmem:[#allocation5 + $0x42] sm:$0xff] }
 0x370   : > { %16281 = vmatprep.subr.bf16.mxu1 %v18166_v4 }
 0x372   : > { %16274 = vmatmul.mubr.msk.bf16.gmra.mrb[84].mxu1 %vm3252_vm0, %v5173_v46  ;;  %v20423_v46 = vld [vmem:[#allocation5 + $0x72] sm:$0xff] }
 0x373   : > { %16282 = vmatpush3.bf16.msra.mxu1 %v18166_v4  ;;  %16285 = vmatprep.mubr.msk.bf16.mxu1 %vm3252_vm0, %v20103_v5  ;;  %v5434_v5 = vpack.c.bf16 %v5430_v54, %v20205_v52  ;;  %v5979_v52 = vpack.c.bf16 %v20379_v57, %v5971_v35  ;;  %v20414_v4 = vpack.c.bf16 %v20399_v62, %v20407_v38 }
 0x374   : > { %16283 = vmatprep.subr.bf16.mxu1 %v18167_v3 }
 0x377   : > { %16284 = vmatpush3.bf16.msra.mxu1 %v18167_v3  ;;  %v5977_v3 = vld [vmem:[#allocation5 + $0x62] sm:$0xff] }
 0x378   : > { %16293 = vmatprep.subr.bf16.mxu1 %v18168_v63 }
 0x37a   : > { %16286 = vmatmul.mubr.msk.bf16.vlgmr.msra.gmra.mrb[80].mxu1 %vm3252_vm0, %v20108_v30  ;;  %v5560_v30 = vld [vmem:[#allocation4 + $0x92] sm:$0xff] }
 0x37b   : > { %16289 = vmatprep.mubr.msk.bf16.mxu1 %vm3252_vm0, %v20119_v23  ;;  %16294 = vmatpush3.bf16.msra.mxu1 %v18168_v63  ;;  %v5564_v17 = vpack.c.bf16 %v5560_v30, %v20230_v10  ;;  %v18180_v23 = vld [vmem:[%s22422_s9 + $0x20] sm:$0xff]   ;;  %v18190_v10 = vld [vmem:[%s22422_s9 + $0x70] sm:$0xff]   ;;  %v20426_v63 = vpack.c.bf16 %v20423_v46, %v5977_v3  ;;  %v6241_v30 = vpack.c.bf16 %v20381_v58, %v20353_v49 }
 0x37c   : > { %16295 = vmatprep.subr.bf16.mxu1 %v18169_v12 }
 0x37f   : > { %16296 = vmatpush3.bf16.msra.mxu1 %v18169_v12  ;;  %v18191_v12 = vld [vmem:[%s22422_s9 + $0x78] sm:$0xff]  }
 0x380   : > { %16297 = vmatprep.subr.bf16.mxu1 %v18170_v13 }
 0x382   : > { %16290 = vmatmul.mubr.msk.bf16.gmra.mrb[84].mxu1 %vm3252_vm0, %v5304_v44  ;;  %v6110_v44 = vpack.c.bf16 %v20315_v45, %v20305_v11  ;;  %v6370_v11 = vpack.c.bf16 %v20407_v38, %v20397_v56 }
 0x383   : > { %16298 = vmatpush3.bf16.msra.mxu1 %v18170_v13  ;;  %16301 = vmatprep.mubr.msk.bf16.mxu1 %vm3252_vm0, %v20062_v37  ;;  %v18174_v37 = vld [vmem:[%s22421_s8 + $0x110] sm:$0xff]   ;;  %v6109_v13 = vpack.c.bf16 %v20309_v59, %v20293_v16  ;;  %v20477_v16 = vld [vmem:[#allocation5 + $0x81] sm:$0xff]  ;;  %v6371_v59 = vpack.c.bf16 %v5977_v3, %v20399_v62 }
 0x384   : > { %16299 = vmatprep.subr.bf16.mxu1 %v18171_v61 }
 0x387   : > { %16300 = vmatpush3.bf16.msra.mxu1 %v18171_v61  ;;  %v18193_v61 = vld [vmem:[%s22422_s9 + $0x88] sm:$0xff]  }
 0x388   : > { %16309 = vmatprep.subr.bf16.mxu1 %v18172_v18 }
 0x38a   : > { %16302 = vmatmul.mubr.msk.bf16.vlgmr.msra.gmra.mrb[80].mxu1 %vm3252_vm0, %v20079_v31  ;;  %v18176_v31 = vld [vmem:[%s22422_s9] sm:$0xff]  }
 0x38b   : > { %16305 = vmatprep.mubr.msk.bf16.mxu1 %vm3252_vm0, %v20091_v6  ;;  %16310 = vmatpush3.bf16.msra.mxu1 %v18172_v18  ;;  %v18177_v6 = vld [vmem:[%s22422_s9 + $0x8] sm:$0xff]   ;;  %v6111_v18 = vpack.c.bf16 %v20335_v27, %v20307_v24  ;;  %v6499_v27 = vld [vmem:[#allocation5 + $0x90] sm:$0xff] }
 0x38c   : > { %16311 = vmatprep.subr.bf16.mxu1 %v18173_v7 }
 0x38f   : > { %16312 = vmatpush3.bf16.msra.mxu1 %v18173_v7  ;;  %v18194_v7 = vld [vmem:[%s22422_s9 + $0x90] sm:$0xff]  }
 0x390   : > { %16313 = vmatprep.subr.bf16.mxu1 %v18174_v37 }
 0x392   : > { %16306 = vmatmul.mubr.msk.bf16.gmra.mrb[84].mxu1 %vm3252_vm0, %v5434_v5  ;;  %v18195_v5 = vld [vmem:[%s22422_s9 + $0x98] sm:$0xff]  }
 0x393   : > { %16314 = vmatpush3.bf16.msra.mxu1 %v18174_v37  ;;  %16317 = vmatprep.mubr.msk.bf16.mxu1 %vm3252_vm0, %v20139_v47  ;;  %v20322_v47 = vpack.c.bf16 %v20307_v24, %v20315_v45  ;;  %v20451_v37 = vld [vmem:[#allocation5 + $0x80] sm:$0xff]  ;;  %v18201_v24 = vld [vmem:[%s22422_s9 + $0xc8] sm:$0xff]   ;;  %v18202_v45 = vld [vmem:[%s22422_s9 + $0xd0] sm:$0xff]  }
 0x394   : > { %16315 = vmatprep.subr.bf16.mxu1 %v18175_v2  ;;  %v6112_v54 = vpack.c.bf16 %v20451_v37, %v20331_v50  ;;  %v18203_v50 = vld [vmem:[%s22422_s9 + $0xd8] sm:$0xff]  }
 0x397   : > { %16316 = vmatpush3.bf16.msra.mxu1 %v18175_v2  ;;  %v6239_v2 = vpack.c.bf16 %v20355_v39, %v20333_v26  ;;  %v18211_v39 = vld [vmem:[%s22422_s9 + $0x118] sm:$0xff]  }
 0x398   : > { %16325 = vmatprep.subr.bf16.mxu1 %v18176_v31 }
 0x39a   : > { %16318 = vmatmul.mubr.msk.bf16.vlgmr.msra.gmra.mrb[80].mxu1 %vm3252_vm0, %v20148_v1  ;;  %v5841_v1 = vld [vmem:[#allocation5 + $0x1] sm:$0xff] }
 0x39b   : > { %16321 = vmatprep.mubr.msk.bf16.mxu1 %vm3252_vm0, %v20160_v29  ;;  %16326 = vmatpush3.bf16.msra.mxu1 %v18176_v31  ;;  %v18183_v29 = vld [vmem:[%s22422_s9 + $0x38] sm:$0xff]   ;;  %v5849_v32 = vpack.c.bf16 %v20333_v26, %v5841_v1  ;;  %v18196_v31 = vld [vmem:[%s22422_s9 + $0xa0] sm:$0xff]   ;;  %v18205_v26 = vld [vmem:[%s22422_s9 + $0xe8] sm:$0xff]  }
 0x39c   : > { %16327 = vmatprep.subr.bf16.mxu1 %v18177_v6  ;;  %v18204_v1 = vld [vmem:[%s22422_s9 + $0xe0] sm:$0xff]  }
 0x39f   : > { %16328 = vmatpush3.bf16.msra.mxu1 %v18177_v6  ;;  %v6240_v6 = vpack.c.bf16 %v20361_v20, %v20351_v25  ;;  %v6629_v25 = vld [vmem:[#allocation5 + $0x91] sm:$0xff] }
 0x3a0   : > { %16329 = vmatprep.subr.bf16.mxu1 %v18178_v33  ;;  %v6633_v49 = vpack.c.bf16 %v6629_v25, %v20477_v16 }
 0x3a2   : > { %16322 = vmatmul.mubr.msk.bf16.gmra.mrb[84].mxu1 %vm3252_vm0, %v5564_v17  ;;  %v6242_v17 = vpack.c.bf16 %v20477_v16, %v20377_v36 }
 0x3a3   : > { %16330 = vmatpush3.bf16.msra.mxu1 %v18178_v33  ;;  %16333 = vmatprep.mubr.msk.bf16.mxu1 %vm3252_vm0, %v5720_v55  ;;  %v18197_v33 = vld [vmem:[%s22422_s9 + $0xa8] sm:$0xff]   ;;  %v6369_v55 = vpack.c.bf16 %v20401_v14, %v20379_v57 }
 0x3a4   : > { %16331 = vmatprep.subr.bf16.mxu1 %v18179_v19 }
 0x3a7   : > { %16332 = vmatpush3.bf16.msra.mxu1 %v18179_v19  ;;  %v18199_v19 = vld [vmem:[%s22422_s9 + $0xb8] sm:$0xff]  }
 0x3a8   : > { %16341 = vmatprep.subr.bf16.mxu1 %v18180_v23 }
 0x3aa   : > { %16334 = vmatmul.mubr.msk.bf16.vlgmr.msra.gmra.mrb[80].mxu1 %vm3252_vm0, %v20313_v8 }
 0x3ab   : > { %16337 = vmatprep.mubr.msk.bf16.mxu1 %vm3252_vm0, %v20322_v47  ;;  %16342 = vmatpush3.bf16.msra.mxu1 %v18180_v23  ;;  %v18200_v23 = vld [vmem:[%s22422_s9 + $0xc0] sm:$0xff]  }
 0x3ac   : > { %16343 = vmatprep.subr.bf16.mxu1 %v18181_v21 }
 0x3af   : > { %16344 = vmatpush3.bf16.msra.mxu1 %v18181_v21  ;;  %v6368_v21 = vld [vmem:[#allocation5 + $0x82] sm:$0xff] }
 0x3b0   : > { %16345 = vmatprep.subr.bf16.mxu1 %v18182_v53 }
 0x3b2   : > { %16338 = vmatmul.mubr.msk.bf16.gmra.mrb[84].mxu1 %vm3252_vm0, %v20339_v28 }
 0x3b3   : > { %16346 = vmatpush3.bf16.msra.mxu1 %v18182_v53  ;;  %16349 = vmatprep.mubr.msk.bf16.mxu1 %vm3252_vm0, %v5849_v32  ;;  %v6372_v53 = vpack.c.bf16 %v6368_v21, %v20423_v46  ;;  %v18207_v32 = vld [vmem:[%s22422_s9 + $0xf8] sm:$0xff]  }
 0x3b4   : > { %16347 = vmatprep.subr.bf16.mxu1 %v18183_v29 }
 0x3b7   : > { %16348 = vmatpush3.bf16.msra.mxu1 %v18183_v29  ;;  %v6503_v29 = vpack.c.bf16 %v6499_v27, %v20451_v37 }
 0x3b8   : > { %16357 = vmatprep.subr.bf16.mxu1 %v18184_v34 }
 0x3ba   : > { %16350 = vmatmul.mubr.msk.bf16.vlgmr.msra.gmra.mrb[80].mxu1 %vm3252_vm0, %v20359_v41 }
 0x3bb   : > { %16353 = vmatprep.mubr.msk.bf16.mxu1 %vm3252_vm0, %v20368_v43  ;;  %16358 = vmatpush3.bf16.msra.mxu1 %v18184_v34  ;;  %v18210_v34 = vld [vmem:[%s22422_s9 + $0x110] sm:$0xff]  }
 0x3bc   : > { %16359 = vmatprep.subr.bf16.mxu1 %v18185_v0 }
 0x3bf   : > { %16360 = vmatpush3.bf16.msra.mxu1 %v18185_v0  ;;  %v18212_v0 = vld [vmem:[%s22416_s3] sm:$0xff]  }
 0x3c0   : > { %16361 = vmatprep.subr.bf16.mxu1 %v18186_v15  ;;  %16477 = vmatprep.mubr.msk.bf16.mxu0 %vm3252_vm0, %v18212_v0  ;;  %v18214_v0 = vld [vmem:[%s22416_s3 + $0x10] sm:$0xff]  }
 0x3c2   : > { %16354 = vmatmul.mubr.msk.bf16.gmra.mrb[84].mxu1 %vm3252_vm0, %v20385_v22 }
 0x3c3   : > { %16362 = vmatpush3.bf16.msra.mxu1 %v18186_v15  ;;  %16365 = vmatprep.mubr.msk.bf16.mxu1 %vm3252_vm0, %v5979_v52 }
 0x3c4   : > { %16363 = vmatprep.subr.bf16.mxu1 %v18187_v48 }
 0x3c7   : > { %16364 = vmatpush3.bf16.msra.mxu1 %v18187_v48 }
 0x3c8   : > { %16373 = vmatprep.subr.bf16.mxu1 %v18188_v42 }
 0x3ca   : > { %16366 = vmatmul.mubr.msk.bf16.vlgmr.msra.gmra.mrb[80].mxu1 %vm3252_vm0, %v20405_v9 }
 0x3cb   : > { %16369 = vmatprep.mubr.msk.bf16.mxu1 %vm3252_vm0, %v20414_v4  ;;  %16374 = vmatpush3.bf16.msra.mxu1 %v18188_v42 }
 0x3cc   : > { %16375 = vmatprep.subr.bf16.mxu1 %v18189_v51 }
 0x3cf   : > { %16376 = vmatpush3.bf16.msra.mxu1 %v18189_v51 }
 0x3d0   : > { %16377 = vmatprep.subr.bf16.mxu1 %v18190_v10 }
 0x3d2   : > { %16370 = vmatmul.mubr.msk.bf16.gmra.mrb[84].mxu1 %vm3252_vm0, %v20426_v63 }
 0x3d3   : > { %16378 = vmatpush3.bf16.msra.mxu1 %v18190_v10  ;;  %16381 = vmatprep.mubr.msk.bf16.mxu1 %vm3252_vm0, %v6109_v13 }
 0x3d4   : > { %16379 = vmatprep.subr.bf16.mxu1 %v18191_v12 }
 0x3d7   : > { %16380 = vmatpush3.bf16.msra.mxu1 %v18191_v12 }
 0x3d8   : > { %16389 = vmatprep.subr.bf16.mxu1 %v18192_v40 }
 0x3da   : > { %16382 = vmatmul.mubr.msk.bf16.vlgmr.msra.gmra.mrb[80].mxu1 %vm3252_vm0, %v6110_v44 }
 0x3db   : > { %16385 = vmatprep.mubr.msk.bf16.mxu1 %vm3252_vm0, %v6111_v18  ;;  %16390 = vmatpush3.bf16.msra.mxu1 %v18192_v40 }
 0x3dc   : > { %16391 = vmatprep.subr.bf16.mxu1 %v18193_v61 }
 0x3df   : > { %16392 = vmatpush3.bf16.msra.mxu1 %v18193_v61 }
 0x3e0   : > { %16393 = vmatprep.subr.bf16.mxu1 %v18194_v7 }
 0x3e2   : > { %16386 = vmatmul.mubr.msk.bf16.gmra.mrb[84].mxu1 %vm3252_vm0, %v6112_v54 }
 0x3e3   : > { %16394 = vmatpush3.bf16.msra.mxu1 %v18194_v7  ;;  %16397 = vmatprep.mubr.msk.bf16.mxu1 %vm3252_vm0, %v6239_v2 }
 0x3e4   : > { %16395 = vmatprep.subr.bf16.mxu1 %v18195_v5 }
 0x3e7   : > { %16396 = vmatpush3.bf16.msra.mxu1 %v18195_v5 }
 0x3e8   : > { %16405 = vmatprep.subr.bf16.mxu1 %v18196_v31 }
 0x3ea   : > { %16398 = vmatmul.mubr.msk.bf16.vlgmr.msra.gmra.mrb[80].mxu1 %vm3252_vm0, %v6240_v6 }
 0x3eb   : > { %16401 = vmatprep.mubr.msk.bf16.mxu1 %vm3252_vm0, %v6241_v30  ;;  %16406 = vmatpush3.bf16.msra.mxu1 %v18196_v31 }
 0x3ec   : > { %16407 = vmatprep.subr.bf16.mxu1 %v18197_v33 }
 0x3ef   : > { %16408 = vmatpush3.bf16.msra.mxu1 %v18197_v33 }
 0x3f0   : > { %16409 = vmatprep.subr.bf16.mxu1 %v18198_v60 }
 0x3f2   : > { %16402 = vmatmul.mubr.msk.bf16.gmra.mrb[84].mxu1 %vm3252_vm0, %v6242_v17 }
 0x3f3   : > { %16410 = vmatpush3.bf16.msra.mxu1 %v18198_v60  ;;  %16413 = vmatprep.mubr.msk.bf16.mxu1 %vm3252_vm0, %v6369_v55 }
 0x3f4   : > { %16411 = vmatprep.subr.bf16.mxu1 %v18199_v19 }
 0x3f7   : > { %16412 = vmatpush3.bf16.msra.mxu1 %v18199_v19 }
 0x3f8   : > { %16421 = vmatprep.subr.bf16.mxu1 %v18200_v23 }
 0x3fa   : > { %16414 = vmatmul.mubr.msk.bf16.vlgmr.msra.gmra.mrb[80].mxu1 %vm3252_vm0, %v6370_v11 }
 0x3fb   : > { %16417 = vmatprep.mubr.msk.bf16.mxu1 %vm3252_vm0, %v6371_v59  ;;  %16422 = vmatpush3.bf16.msra.mxu1 %v18200_v23 }
 0x3fc   : > { %16423 = vmatprep.subr.bf16.mxu1 %v18201_v24 }
 0x3ff   : > { %16424 = vmatpush3.bf16.msra.mxu1 %v18201_v24 }
 0x400   : > { %16425 = vmatprep.subr.bf16.mxu1 %v18202_v45 }
 0x402   : > { %16418 = vmatmul.mubr.msk.bf16.gmra.mrb[84].mxu1 %vm3252_vm0, %v6372_v53 }
 0x403   : > { %16426 = vmatpush3.bf16.msra.mxu1 %v18202_v45  ;;  %16429 = vmatprep.mubr.msk.bf16.mxu1 %vm3252_vm0, %v20313_v8  ;;  %v18206_v8 = vld [vmem:[%s22422_s9 + $0xf0] sm:$0xff]  }
 0x404   : > { %16427 = vmatprep.subr.bf16.mxu1 %v18203_v50 }
 0x407   : > { %16428 = vmatpush3.bf16.msra.mxu1 %v18203_v50 }
 0x408   : > { %16437 = vmatprep.subr.bf16.mxu1 %v18204_v1 }
 0x40a   : > { %16430 = vmatmul.mubr.msk.bf16.vlgmr.msra.gmra.mrb[80].mxu1 %vm3252_vm0, %v20322_v47  ;;  %v18208_v47 = vld [vmem:[%s22422_s9 + $0x100] sm:$0xff]  }
 0x40b   : > { %16433 = vmatprep.mubr.msk.bf16.mxu1 %vm3252_vm0, %v20339_v28  ;;  %16438 = vmatpush3.bf16.msra.mxu1 %v18204_v1  ;;  %v18209_v28 = vld [vmem:[%s22422_s9 + $0x108] sm:$0xff]  }
 0x40c   : > { %16439 = vmatprep.subr.bf16.mxu1 %v18205_v26 }
 0x40f   : > { %16440 = vmatpush3.bf16.msra.mxu1 %v18205_v26 }
 0x410   : > { %16441 = vmatprep.subr.bf16.mxu1 %v18206_v8 }
 0x412   : > { %16434 = vmatmul.mubr.msk.bf16.gmra.mrb[84].mxu1 %vm3252_vm0, %v6503_v29 }
 0x413   : > { %16442 = vmatpush3.bf16.msra.mxu1 %v18206_v8  ;;  %16445 = vmatprep.mubr.msk.bf16.mxu1 %vm3252_vm0, %v20359_v41  ;;  %v6759_v41 = vld [vmem:[#allocation5 + $0x92] sm:$0xff] }
 0x414   : > { %16443 = vmatprep.subr.bf16.mxu1 %v18207_v32  ;;  %v6763_v20 = vpack.c.bf16 %v6759_v41, %v6368_v21  ;;  %v18228_v41 = vld [vmem:[%s22424_s11 + $0x20] sm:$0xff]  }
 0x417   : > { %16444 = vmatpush3.bf16.msra.mxu1 %v18207_v32 }
 0x418   : > { %16453 = vmatprep.subr.bf16.mxu1 %v18208_v47 }
 0x41a   : > { %16446 = vmatmul.mubr.msk.bf16.vlgmr.msra.gmra.mrb[80].mxu1 %vm3252_vm0, %v20368_v43  ;;  %v14801_v43 = vld [vmem:[%s22423_s10] ss:$0 sm:$0xff] }
 0x41b   : > { %16449 = vmatprep.mubr.msk.bf16.mxu1 %vm3252_vm0, %v20385_v22  ;;  %16454 = vmatpush3.bf16.msra.mxu1 %v18208_v47 }
 0x41c   : > { %16455 = vmatprep.subr.bf16.mxu1 %v18209_v28 }
 0x41f   : > { %16456 = vmatpush3.bf16.msra.mxu1 %v18209_v28 }
 0x420   : > { %16457 = vmatprep.subr.bf16.mxu1 %v18210_v34 }
 0x422   : > { %16450 = vmatmul.mubr.msk.bf16.gmra.mrb[84].mxu1 %vm3252_vm0, %v6633_v49 }
 0x423   : > { %16458 = vmatpush3.bf16.msra.mxu1 %v18210_v34  ;;  %16461 = vmatprep.mubr.msk.bf16.mxu1 %vm3252_vm0, %v20405_v9 }
 0x424   : > { %16459 = vmatprep.subr.bf16.mxu1 %v18211_v39 }
 0x427   : > { %16460 = vmatpush3.bf16.msra.mxu1 %v18211_v39 }
 0x42a   : > { %16462 = vmatmul.mubr.msk.bf16.vlgmr.msra.gmra.mrb[80].mxu1 %vm3252_vm0, %v20414_v4 }
 0x42b   : > { %16465 = vmatprep.mubr.msk.bf16.mxu1 %vm3252_vm0, %v20426_v63 }
 0x432   : > { %16466 = vmatmul.mubr.msk.bf16.gmra.mrb[84].mxu1 %vm3252_vm0, %v6763_v20  ;;  %v18213_v20 = vld [vmem:[%s22416_s3 + $0x8] sm:$0xff]  }
 0x4fd   : > { %v16463_v15 = vpop.f32.mrb[80].mxu1 }
 0x4fe   : > { %v6891_v36 = vadd.f32 %v16463_v15, %v14801_v43  ;;  %v6843_v35 = vpop.f32.mrb[81].mxu1  ;;  %v18230_v15 = vld [vmem:[%s22424_s11 + $0x30] sm:$0xff]  }
 0x4ff   : > { %v6889_v57 = vadd.f32 %v14801_v43, %v6843_v35  ;;  %v16464_v58 = vpop.f32.mrb[82].mxu1  ;;  %v18216_v35 = vld [vmem:[%s22416_s3 + $0x20] sm:$0xff]  }
 0x500   : > { %v6907_v22 = vmin.f32 %v6891_v36, 0.0  ;;  %v6892_v48 = vadd.f32 %v16464_v58, %v14801_v43  ;;  %v6846_v52 = vpop.f32.mrb[83].mxu1  ;;  %vm6899_vm10 = vcmp.gt.f32.partialorder %v6891_v36, 0.0  ;;  %v18217_v58 = vld [vmem:[%s22416_s3 + $0x28] sm:$0xff]  }
 0x501   : > { %v6905_v42 = vmin.f32 %v6889_v57, 0.0  ;;  %v6890_v56 = vadd.f32 %v14801_v43, %v6846_v52  ;;  %vm6897_vm12 = vcmp.gt.f32.partialorder %v6889_v57, 0.0  ;;  %v18220_v52 = vld [vmem:[%s22416_s3 + $0x40] sm:$0xff]  }
 0x502   : > { %v6917_v62 = vmul.f32 1.442695, %v6907_v22  ;;  %v6908_v14 = vmin.f32 %v6892_v48, 0.0  ;;  %vm6900_vm11 = vcmp.gt.f32.partialorder %v6892_v48, 0.0  ;;  %v18218_v22 = vld [vmem:[%s22416_s3 + $0x30] sm:$0xff]  }
 0x503   : > { %v6913_v9 = vmul.f32 1.442695, %v6905_v42  ;;  %v6906_v38 = vmin.f32 %v6890_v56, 0.0  ;;  %vm6898_vm13 = vcmp.gt.f32.partialorder %v6890_v56, 0.0  ;;  %v18221_v42 = vld [vmem:[%s22416_s3 + $0x48] sm:$0xff]  }
 0x504   : > { %18326 = vpow2.f32 %v6917_v62  ;;  %v6919_v51 = vmul.f32 1.442695, %v6908_v14  ;;  %v18223_v62 = vld [vmem:[%s22416_s3 + $0x58] sm:$0xff]   ;;  %v18224_v14 = vld [vmem:[%s22416_s3 + $0x60] sm:$0xff]  }
 0x505   : > { %18328 = vpow2.f32 %v6913_v9  ;;  %v6915_v4 = vmul.f32 1.442695, %v6906_v38  ;;  %v16467_v10 = vpop.f32.mrb[84].mxu1  ;;  %v18225_v9 = vld [vmem:[%s22416_s3 + $0x68] sm:$0xff]   ;;  %v18226_v38 = vld [vmem:[%s22416_s3 + $0x70] sm:$0xff]  }
 0x506   : > { %18330 = vpow2.f32 %v6919_v51  ;;  %v6895_v46 = vadd.f32 %v16467_v10, %v14801_v43  ;;  %v6859_v3 = vpop.f32.mrb[85].mxu1  ;;  %v18227_v51 = vld [vmem:[%s22416_s3 + $0x78] sm:$0xff]   ;;  %v7414_v10 = vld [vmem:[#allocation6 + $0x9] sm:$0xff] }
 0x507   : > { %18332 = vpow2.f32 %v6915_v4  ;;  %v6893_v63 = vadd.f32 %v14801_v43, %v6859_v3  ;;  %v16468_v12 = vpop.f32.mrb[86].mxu1  ;;  %v7413_v4 = vld [vmem:[#allocation6 + $0x1] sm:$0xff] }
 0x508   : > { %v6911_v13 = vmin.f32 %v6895_v46, 0.0  ;;  %v6896_v40 = vadd.f32 %v16468_v12, %v14801_v43  ;;  %v6862_v44 = vpop.f32.mrb[87].mxu1  ;;  %vm6903_vm14 = vcmp.gt.f32.partialorder %v6895_v46, 0.0  ;;  %v18232_v3 = vld [vmem:[%s22424_s11] sm:$0xff]  }
 0x509   : > { %v6909_v61 = vmin.f32 %v6893_v63, 0.0  ;;  %v6894_v18 = vadd.f32 %v14801_v43, %v6862_v44  ;;  %vm6901_vm1 = vcmp.gt.f32.partialorder %v6893_v63, 0.0  ;;  %v18229_v43 = vld [vmem:[%s22424_s11 + $0x28] sm:$0xff]  }
 0x50a   : > { %v6925_v7 = vmul.f32 1.442695, %v6911_v13  ;;  %v6912_v37 = vmin.f32 %v6896_v40, 0.0  ;;  %vm6904_vm15 = vcmp.gt.f32.partialorder %v6896_v40, 0.0 }
 0x50b   : > { %v6921_v54 = vmul.f32 1.442695, %v6909_v61  ;;  %v6910_v5 = vmin.f32 %v6894_v18, 0.0  ;;  %vm6902_vm2 = vcmp.gt.f32.partialorder %v6894_v18, 0.0 }
 0x50c   : > { %18334 = vpow2.f32 %v6925_v7  ;;  %v6927_v2 = vmul.f32 1.442695, %v6912_v37 }
 0x50d   : > { %18336 = vpow2.f32 %v6921_v54  ;;  %v6923_v31 = vmul.f32 1.442695, %v6910_v5 }
 0x50e   : > { %v18327_v6 = vpop.eup %18326  ;;  %18338 = vpow2.f32 %v6927_v2 }
 0x50f   : > { %v18329_v33 = vpop.eup %18328  ;;  %v14804_v30 = vadd.f32 -1.0, %v18327_v6  ;;  %18340 = vpow2.f32 %v6923_v31  ;;  %v18233_v6 = vld [vmem:[%s22424_s11 + $0x8] sm:$0xff]  }
 0x510   : > { %v18331_v60 = vpop.eup %18330  ;;  %v14802_v16 = vadd.f32 -1.0, %v18329_v33 }
 0x511   : > { %v18333_v17 = vpop.eup %18332  ;;  %v14805_v19 = vadd.f32 -1.0, %v18331_v60  ;;  %v6939_v23 = vsel %vm6899_vm10, %v6891_v36, %v14804_v30  ;;  %v18215_v36 = vld [vmem:[%s22416_s3 + $0x18] sm:$0xff]   ;;  %v18234_v60 = vld [vmem:[%s22424_s11 + $0x10] sm:$0xff]  }
 0x512   : > { %v14803_v55 = vadd.f32 -1.0, %v18333_v17  ;;  %v6937_v24 = vsel %vm6897_vm12, %v6889_v57, %v14802_v16  ;;  %v18231_v57 = vld [vmem:[%s22424_s11 + $0x38] sm:$0xff]  }
 0x513   : > { %v6940_v11 = vsel %vm6900_vm11, %v6892_v48, %v14805_v19  ;;  %v18219_v48 = vld [vmem:[%s22416_s3 + $0x38] sm:$0xff]  }
 0x514   : > { %v6938_v59 = vsel %vm6898_vm13, %v6890_v56, %v14803_v55  ;;  %v6978_v45 = vpack.c.bf16 %v6940_v11, %v6939_v23  ;;  %v18222_v56 = vld [vmem:[%s22416_s3 + $0x50] sm:$0xff]  }
 0x515   : > { %v6977_v21 = vpack.c.bf16 %v6938_v59, %v6937_v24 }
 0x516   : > { %v18335_v53 = vpop.eup %18334 }
 0x517   : > { %v18337_v50 = vpop.eup %18336  ;;  %v14808_v1 = vadd.f32 -1.0, %v18335_v53  ;;  %16469 = vmatprep.subr.bf16.mxu0 %v6977_v21 }
 0x518   : > { %v18339_v26 = vpop.eup %18338  ;;  %v14806_v8 = vadd.f32 -1.0, %v18337_v50  ;;  %16470 = vmatpush3.bf16.msra.mxu0 %v6977_v21  ;;  %v20677_v50 = vld [vmem:[%s22424_s11 + $0x40] sm:$0xff]  }
 0x519   : > { %v18341_v27 = vpop.eup %18340  ;;  %v14809_v29 = vadd.f32 -1.0, %v18339_v26  ;;  %16471 = vmatprep.subr.bf16.mxu0 %v6978_v45  ;;  %v6943_v47 = vsel %vm6903_vm14, %v6895_v46, %v14808_v1  ;;  %v7445_v46 = vpack.c.bf16 %v7414_v10, %v7413_v4 }
 0x51a   : > { %v14807_v32 = vadd.f32 -1.0, %v18341_v27  ;;  %v6941_v34 = vsel %vm6901_vm1, %v6893_v63, %v14806_v8 }
 0x51b   : > { %v6944_v28 = vsel %vm6904_vm15, %v6896_v40, %v14809_v29 }
 0x51c   : > { %16472 = vmatpush3.bf16.msra.mxu0 %v6978_v45  ;;  %v6942_v25 = vsel %vm6902_vm2, %v6894_v18, %v14807_v32  ;;  %v6980_v49 = vpack.c.bf16 %v6944_v28, %v6943_v47  ;;  %v18235_v45 = vld [vmem:[%s22424_s11 + $0x18] sm:$0xff]  }
 0x51d   : > { %v6979_v39 = vpack.c.bf16 %v6942_v25, %v6941_v34 }
 0x51f   : > { %16473 = vmatprep.subr.bf16.mxu0 %v6979_v39 }
 0x520   : > { %16474 = vmatpush3.bf16.msra.mxu0 %v6979_v39 }
 0x521   : > { %16475 = vmatprep.subr.bf16.mxu0 %v6980_v49 }
 0x524   : > { %16476 = vmatpush3.bf16.msra.mxu0 %v6980_v49 }
 0x525   : > { %16509 = vmatprep.subr.bf16.mxu0 %v18228_v41 }
 0x527   : > { %16478 = vmatmul.mubr.msk.bf16.vlgmr.msra.gmra.mrb[88].mxu0 %vm3252_vm0, %v18213_v20 }
 0x528   : > { %16481 = vmatprep.mubr.msk.bf16.mxu0 %vm3252_vm0, %v18214_v0  ;;  %16510 = vmatpush3.bf16.msra.mxu0 %v18228_v41 }
 0x529   : > { %16511 = vmatprep.subr.bf16.mxu0 %v18229_v43 }
 0x52c   : > { %16512 = vmatpush3.bf16.msra.mxu0 %v18229_v43 }
 0x52d   : > { %16513 = vmatprep.subr.bf16.mxu0 %v18230_v15 }
 0x52f   : > { %16482 = vmatmul.mubr.msk.bf16.gmra.mrb[92].mxu0 %vm3252_vm0, %v18215_v36 }
 0x530   : > { %16485 = vmatprep.mubr.msk.bf16.mxu0 %vm3252_vm0, %v18216_v35  ;;  %16514 = vmatpush3.bf16.msra.mxu0 %v18230_v15 }
 0x531   : > { %16515 = vmatprep.subr.bf16.mxu0 %v18231_v57 }
 0x534   : > { %16516 = vmatpush3.bf16.msra.mxu0 %v18231_v57 }
 0x535   : > { %16549 = vmatprep.subr.bf16.mxu0 %v18232_v3 }
 0x537   : > { %16486 = vmatmul.mubr.msk.bf16.gmra.mrb[96].mxu0 %vm3252_vm0, %v18217_v58 }
 0x538   : > { %16489 = vmatprep.mubr.msk.bf16.mxu0 %vm3252_vm0, %v18218_v22 }
 0x53f   : > { %16490 = vmatmul.mubr.msk.bf16.gmra.mrb[100].mxu0 %vm3252_vm0, %v18219_v48 }
 0x540   : > { %16493 = vmatprep.mubr.msk.bf16.mxu0 %vm3252_vm0, %v18220_v52 }
 0x547   : > { %16494 = vmatmul.mubr.msk.bf16.gmra.mrb[104].mxu0 %vm3252_vm0, %v18221_v42 }
 0x548   : > { %16497 = vmatprep.mubr.msk.bf16.mxu0 %vm3252_vm0, %v18222_v56 }
 0x54f   : > { %16498 = vmatmul.mubr.msk.bf16.gmra.mrb[108].mxu0 %vm3252_vm0, %v18223_v62 }
 0x550   : > { %16501 = vmatprep.mubr.msk.bf16.mxu0 %vm3252_vm0, %v18224_v14 }
 0x557   : > { %16502 = vmatmul.mubr.msk.bf16.gmra.mrb[112].mxu0 %vm3252_vm0, %v18225_v9 }
 0x558   : > { %16505 = vmatprep.mubr.msk.bf16.mxu0 %vm3252_vm0, %v18226_v38 }
 0x55f   : > { %16506 = vmatmul.mubr.msk.bf16.gmra.mrb[116].mxu0 %vm3252_vm0, %v18227_v51 }
 0x560   : > { %16517 = vmatprep.mubr.msk.bf16.mxu0 %vm3252_vm0, %v7445_v46 }
 0x5fa   : > { %v16479_v63 = vpop.f32.mrb[88].mxu0 }
 0x5fb   : > { %7327 = vst.msk [vmem:[#allocation6 + $0x31] sm:$0xff] %vm3252_vm0, %v16479_v63  ;;  %v7143_v12 = vpop.f32.mrb[89].mxu0 }
 0x5fc   : > { %7325 = vst.msk [vmem:[#allocation6 + $0x19] sm:$0xff] %vm3252_vm0, %v7143_v12  ;;  %v16480_v13 = vpop.f32.mrb[90].mxu0 }
 0x5fd   : > { %7328 = vst.msk [vmem:[#allocation6 + $0x39] sm:$0xff] %vm3252_vm0, %v16480_v13  ;;  %v7146_v40 = vpop.f32.mrb[91].mxu0 }
 0x5fe   : > { %7326 = vst.msk [vmem:[#allocation6 + $0x21] sm:$0xff] %vm3252_vm0, %v7146_v40 }
 0x602   : > { %v16483_v44 = vpop.f32.mrb[92].mxu0  ;;  %v7417_v31 = vld [vmem:[#allocation6 + $0x31] sm:$0xff] }
 0x603   : > { %7331 = vst.msk [vmem:[#allocation6 + $0x61] sm:$0xff] %vm3252_vm0, %v16483_v44  ;;  %v7159_v61 = vpop.f32.mrb[93].mxu0  ;;  %v7415_v54 = vld [vmem:[#allocation6 + $0x19] sm:$0xff] }
 0x604   : > { %7329 = vst.msk [vmem:[#allocation6 + $0x49] sm:$0xff] %vm3252_vm0, %v7159_v61  ;;  %v16484_v18 = vpop.f32.mrb[94].mxu0  ;;  %v7418_v7 = vld [vmem:[#allocation6 + $0x39] sm:$0xff] }
 0x605   : > { %7332 = vst.msk [vmem:[#allocation6 + $0x69] sm:$0xff] %vm3252_vm0, %v16484_v18  ;;  %v7162_v37 = vpop.f32.mrb[95].mxu0  ;;  %v7416_v5 = vld [vmem:[#allocation6 + $0x21] sm:$0xff]  ;;  %v20650_v33 = vpack.c.bf16 %v7418_v7, %v7417_v31 }
 0x606   : > { %7330 = vst.msk [vmem:[#allocation6 + $0x51] sm:$0xff] %vm3252_vm0, %v7162_v37  ;;  %v20645_v2 = vpack.c.bf16 %v7416_v5, %v7415_v54 }
 0x608   : > { %16518 = vmatmul.mubr.msk.bf16.vlgmr.msra.gmra.mrb[120].mxu0 %vm3252_vm0, %v20645_v2 }
 0x609   : > { %16521 = vmatprep.mubr.msk.bf16.mxu0 %vm3252_vm0, %v20650_v33  ;;  %16550 = vmatpush3.bf16.msra.mxu0 %v18232_v3 }
 0x60a   : > { %v16487_v30 = vpop.f32.mrb[96].mxu0  ;;  %16551 = vmatprep.subr.bf16.mxu0 %v18233_v6  ;;  %v7421_v59 = vld [vmem:[#allocation6 + $0x61] sm:$0xff] }
 0x60b   : > { %7335 = vst.msk [vmem:[#allocation6 + $0x91] sm:$0xff] %vm3252_vm0, %v16487_v30  ;;  %v7175_v16 = vpop.f32.mrb[97].mxu0  ;;  %v7419_v23 = vld [vmem:[#allocation6 + $0x49] sm:$0xff] }
 0x60c   : > { %7333 = vst.msk [vmem:[#allocation6 + $0x79] sm:$0xff] %vm3252_vm0, %v7175_v16  ;;  %v16488_v17 = vpop.f32.mrb[98].mxu0  ;;  %v7422_v19 = vld [vmem:[#allocation6 + $0x69] sm:$0xff] }
 0x60d   : > { %7336 = vst.msk [vmem:[#allocation6 + $0x99] sm:$0xff] %vm3252_vm0, %v16488_v17  ;;  %v7178_v55 = vpop.f32.mrb[99].mxu0  ;;  %v7420_v11 = vld [vmem:[#allocation6 + $0x51] sm:$0xff]  ;;  %16552 = vmatpush3.bf16.msra.mxu0 %v18233_v6  ;;  %v20668_v21 = vpack.c.bf16 %v7422_v19, %v7421_v59  ;;  %v7358_v16 = vld [vmem:[#allocation6 + $0x8] sm:$0xff] }
 0x60e   : > { %7334 = vst.msk [vmem:[#allocation6 + $0x81] sm:$0xff] %vm3252_vm0, %v7178_v55  ;;  %v20663_v24 = vpack.c.bf16 %v7420_v11, %v7419_v23  ;;  %16553 = vmatprep.subr.bf16.mxu0 %v18234_v60  ;;  %v7360_v11 = vld [vmem:[#allocation6 + $0x20] sm:$0xff]  ;;  %v7362_v59 = vld [vmem:[#allocation6 + $0x38] sm:$0xff] }
 0x610   : > { %16522 = vmatmul.mubr.msk.bf16.gmra.mrb[124].mxu0 %vm3252_vm0, %v20663_v24 }
 0x611   : > { %16525 = vmatprep.mubr.msk.bf16.mxu0 %vm3252_vm0, %v20668_v21  ;;  %16554 = vmatpush3.bf16.msra.mxu0 %v18234_v60  ;;  %v7357_v60 = vld [vmem:[#allocation6] sm:$0xff] }
 0x612   : > { %v16491_v53 = vpop.f32.mrb[100].mxu0  ;;  %16555 = vmatprep.subr.bf16.mxu0 %v18235_v45  ;;  %v7425_v28 = vld [vmem:[#allocation6 + $0x91] sm:$0xff]  ;;  %v7389_v55 = vpack.c.bf16 %v7358_v16, %v7357_v60 }
 0x613   : > { %7339 = vst.msk [vmem:[#allocation6 + $0xc1] sm:$0xff] %vm3252_vm0, %v16491_v53  ;;  %v7191_v1 = vpop.f32.mrb[101].mxu0  ;;  %v7423_v29 = vld [vmem:[#allocation6 + $0x79] sm:$0xff] }
 0x614   : > { %7337 = vst.msk [vmem:[#allocation6 + $0xa9] sm:$0xff] %vm3252_vm0, %v7191_v1  ;;  %v16492_v26 = vpop.f32.mrb[102].mxu0  ;;  %v7426_v8 = vld [vmem:[#allocation6 + $0x99] sm:$0xff]  ;;  %v7361_v1 = vld [vmem:[#allocation6 + $0x30] sm:$0xff] }
 0x615   : > { %7340 = vst.msk [vmem:[#allocation6 + $0xc9] sm:$0xff] %vm3252_vm0, %v16492_v26  ;;  %v7194_v27 = vpop.f32.mrb[103].mxu0  ;;  %v7424_v32 = vld [vmem:[#allocation6 + $0x81] sm:$0xff]  ;;  %16556 = vmatpush3.bf16.msra.mxu0 %v18235_v45  ;;  %v20686_v34 = vpack.c.bf16 %v7426_v8, %v7425_v28  ;;  %v7359_v45 = vld [vmem:[#allocation6 + $0x18] sm:$0xff]  ;;  %v20750_v8 = vpack.c.bf16 %v7362_v59, %v7361_v1 }
 0x616   : > { %7338 = vst.msk [vmem:[#allocation6 + $0xb1] sm:$0xff] %vm3252_vm0, %v7194_v27  ;;  %v20683_v47 = vpack.c.bf16 %v7424_v32, %v7423_v29  ;;  %16589 = vmatprep.subr.bf16.mxu0 %v20677_v50  ;;  %v20745_v53 = vpack.c.bf16 %v7360_v11, %v7359_v45  ;;  %v18237_v26 = vld [vmem:[%s22424_s11 + $0x48] sm:$0xff]   ;;  %v18238_v27 = vld [vmem:[%s22424_s11 + $0x50] sm:$0xff]   ;;  %v7938_v1 = vld [vmem:[#allocation6 + $0x1a] sm:$0xff] }
 0x617   : > { %v7364_v29 = vld [vmem:[#allocation6 + $0x50] sm:$0xff]  ;;  %v7366_v32 = vld [vmem:[#allocation6 + $0x68] sm:$0xff] }
 0x618   : > { %16526 = vmatmul.mubr.msk.bf16.gmra.mrb[128].mxu0 %vm3252_vm0, %v20683_v47  ;;  %v7363_v28 = vld [vmem:[#allocation6 + $0x48] sm:$0xff] }
 0x619   : > { %16529 = vmatprep.mubr.msk.bf16.mxu0 %vm3252_vm0, %v20686_v34 }
 0x61a   : > { %v16495_v25 = vpop.f32.mrb[104].mxu0  ;;  %v7429_v36 = vld [vmem:[#allocation6 + $0xc1] sm:$0xff] }
 0x61b   : > { %7343 = vst.msk [vmem:[#allocation6 + $0xf1] sm:$0xff] %vm3252_vm0, %v16495_v25  ;;  %v7207_v49 = vpop.f32.mrb[105].mxu0  ;;  %v7427_v0 = vld [vmem:[#allocation6 + $0xa9] sm:$0xff]  ;;  %v20760_v25 = vpack.c.bf16 %v7364_v29, %v7363_v28  ;;  %v7941_v29 = vld [vmem:[#allocation6 + $0x3a] sm:$0xff] }
 0x61c   : > { %7341 = vst.msk [vmem:[#allocation6 + $0xd9] sm:$0xff] %vm3252_vm0, %v7207_v49  ;;  %v16496_v39 = vpop.f32.mrb[106].mxu0  ;;  %v7430_v41 = vld [vmem:[#allocation6 + $0xc9] sm:$0xff]  ;;  %v7365_v49 = vld [vmem:[#allocation6 + $0x60] sm:$0xff] }
 0x61d   : > { %7344 = vst.msk [vmem:[#allocation6 + $0xf9] sm:$0xff] %vm3252_vm0, %v16496_v39  ;;  %v7210_v20 = vpop.f32.mrb[107].mxu0  ;;  %v7428_v43 = vld [vmem:[#allocation6 + $0xb1] sm:$0xff]  ;;  %v20698_v35 = vpack.c.bf16 %v7430_v41, %v7429_v36  ;;  %v20765_v41 = vpack.c.bf16 %v7366_v32, %v7365_v49  ;;  %v18241_v28 = vld [vmem:[%s22424_s11 + $0x68] sm:$0xff]  }
 0x61e   : > { %7342 = vst.msk [vmem:[#allocation6 + $0xe1] sm:$0xff] %vm3252_vm0, %v7210_v20  ;;  %v20696_v15 = vpack.c.bf16 %v7428_v43, %v7427_v0  ;;  %v18239_v39 = vld [vmem:[%s22424_s11 + $0x58] sm:$0xff]   ;;  %v7368_v20 = vld [vmem:[#allocation6 + $0x80] sm:$0xff] }
 0x61f   : > { %v7370_v0 = vld [vmem:[#allocation6 + $0x98] sm:$0xff] }
 0x620   : > { %16530 = vmatmul.mubr.msk.bf16.gmra.mrb[132].mxu0 %vm3252_vm0, %v20696_v15  ;;  %v7367_v43 = vld [vmem:[#allocation6 + $0x78] sm:$0xff] }
 0x621   : > { %16533 = vmatprep.mubr.msk.bf16.mxu0 %vm3252_vm0, %v20698_v35  ;;  %v20774_v36 = vpack.c.bf16 %v7368_v20, %v7367_v43  ;;  %v7942_v20 = vld [vmem:[#allocation6 + $0x4a] sm:$0xff]  ;;  %v7944_v43 = vld [vmem:[#allocation6 + $0x62] sm:$0xff] }
 0x622   : > { %v16499_v57 = vpop.f32.mrb[108].mxu0  ;;  %v7433_v14 = vld [vmem:[#allocation6 + $0xf1] sm:$0xff] }
 0x623   : > { %7347 = vst.msk [vmem:[#allocation6 + $0x121] sm:$0xff] %vm3252_vm0, %v16499_v57  ;;  %v7223_v58 = vpop.f32.mrb[109].mxu0  ;;  %v7431_v42 = vld [vmem:[#allocation6 + $0xd9] sm:$0xff]  ;;  %v7369_v57 = vld [vmem:[#allocation6 + $0x90] sm:$0xff] }
 0x624   : > { %7345 = vst.msk [vmem:[#allocation6 + $0x109] sm:$0xff] %vm3252_vm0, %v7223_v58  ;;  %v16500_v22 = vpop.f32.mrb[110].mxu0  ;;  %v7434_v48 = vld [vmem:[#allocation6 + $0xf9] sm:$0xff]  ;;  %v20776_v58 = vpack.c.bf16 %v7370_v0, %v7369_v57  ;;  %v7945_v57 = vld [vmem:[#allocation6 + $0x6a] sm:$0xff] }
 0x625   : > { %7348 = vst.msk [vmem:[#allocation6 + $0x129] sm:$0xff] %vm3252_vm0, %v16500_v22  ;;  %v7226_v52 = vpop.f32.mrb[111].mxu0  ;;  %v7432_v56 = vld [vmem:[#allocation6 + $0xe1] sm:$0xff]  ;;  %v20710_v9 = vpack.c.bf16 %v7434_v48, %v7433_v14  ;;  %v7372_v22 = vld [vmem:[#allocation6 + $0xb0] sm:$0xff] }
 0x626   : > { %7346 = vst.msk [vmem:[#allocation6 + $0x111] sm:$0xff] %vm3252_vm0, %v7226_v52  ;;  %v20708_v62 = vpack.c.bf16 %v7432_v56, %v7431_v42  ;;  %v7374_v48 = vld [vmem:[#allocation6 + $0xc8] sm:$0xff]  ;;  %v7373_v56 = vld [vmem:[#allocation6 + $0xc0] sm:$0xff]  ;;  %v7943_v0 = vld [vmem:[#allocation6 + $0x52] sm:$0xff] }
 0x627   : > { %v7371_v52 = vld [vmem:[#allocation6 + $0xa8] sm:$0xff]  ;;  %v20784_v14 = vpack.c.bf16 %v7374_v48, %v7373_v56  ;;  %v18243_v48 = vld [vmem:[%s22424_s11 + $0x78] sm:$0xff]  }
 0x628   : > { %16534 = vmatmul.mubr.msk.bf16.gmra.mrb[136].mxu0 %vm3252_vm0, %v20708_v62  ;;  %v20782_v42 = vpack.c.bf16 %v7372_v22, %v7371_v52  ;;  %v20833_v22 = vpack.c.bf16 %v7943_v0, %v7942_v20  ;;  %v20838_v52 = vpack.c.bf16 %v7945_v57, %v7944_v43  ;;  %v7946_v56 = vld [vmem:[#allocation6 + $0x7a] sm:$0xff] }
 0x629   : > { %16537 = vmatprep.mubr.msk.bf16.mxu0 %vm3252_vm0, %v20710_v9 }
 0x62a   : > { %v16503_v38 = vpop.f32.mrb[112].mxu0  ;;  %v7437_v13 = vld [vmem:[#allocation6 + $0x121] sm:$0xff] }
 0x62b   : > { %7351 = vst.msk [vmem:[#allocation6 + $0x151] sm:$0xff] %vm3252_vm0, %v16503_v38  ;;  %v7239_v51 = vpop.f32.mrb[113].mxu0  ;;  %v7435_v3 = vld [vmem:[#allocation6 + $0x109] sm:$0xff]  ;;  %v7376_v38 = vld [vmem:[#allocation6 + $0xe0] sm:$0xff] }
 0x62c   : > { %7349 = vst.msk [vmem:[#allocation6 + $0x139] sm:$0xff] %vm3252_vm0, %v7239_v51  ;;  %v16504_v4 = vpop.f32.mrb[114].mxu0  ;;  %v7438_v10 = vld [vmem:[#allocation6 + $0x129] sm:$0xff]  ;;  %v7378_v51 = vld [vmem:[#allocation6 + $0xf8] sm:$0xff] }
 0x62d   : > { %7352 = vst.msk [vmem:[#allocation6 + $0x159] sm:$0xff] %vm3252_vm0, %v16504_v4  ;;  %v7242_v46 = vpop.f32.mrb[115].mxu0  ;;  %v7436_v63 = vld [vmem:[#allocation6 + $0x111] sm:$0xff]  ;;  %v20722_v40 = vpack.c.bf16 %v7438_v10, %v7437_v13  ;;  %v7382_v13 = vld [vmem:[#allocation6 + $0x128] sm:$0xff] }
 0x62e   : > { %7350 = vst.msk [vmem:[#allocation6 + $0x141] sm:$0xff] %vm3252_vm0, %v7242_v46  ;;  %v20720_v12 = vpack.c.bf16 %v7436_v63, %v7435_v3  ;;  %v7375_v4 = vld [vmem:[#allocation6 + $0xd8] sm:$0xff]  ;;  %v7377_v46 = vld [vmem:[#allocation6 + $0xf0] sm:$0xff] }
 0x62f   : > { %v20790_v10 = vpack.c.bf16 %v7376_v38, %v7375_v4  ;;  %v20792_v3 = vpack.c.bf16 %v7378_v51, %v7377_v46  ;;  %v7380_v63 = vld [vmem:[#allocation6 + $0x110] sm:$0xff]  ;;  %v7947_v38 = vld [vmem:[#allocation6 + $0x82] sm:$0xff]  ;;  %v7949_v4 = vld [vmem:[#allocation6 + $0x9a] sm:$0xff] }
 0x630   : > { %16538 = vmatmul.mubr.msk.bf16.gmra.mrb[140].mxu0 %vm3252_vm0, %v20720_v12  ;;  %v7948_v51 = vld [vmem:[#allocation6 + $0x92] sm:$0xff]  ;;  %v20847_v46 = vpack.c.bf16 %v7947_v38, %v7946_v56 }
 0x631   : > { %16541 = vmatprep.mubr.msk.bf16.mxu0 %vm3252_vm0, %v20722_v40 }
 0x632   : > { %v16507_v44 = vpop.f32.mrb[116].mxu0  ;;  %v7441_v6 = vld [vmem:[#allocation6 + $0x151] sm:$0xff] }
 0x633   : > { %7355 = vst.msk [vmem:[#allocation6 + $0x181] sm:$0xff] %vm3252_vm0, %v16507_v44  ;;  %v7255_v61 = vpop.f32.mrb[117].mxu0  ;;  %v7439_v54 = vld [vmem:[#allocation6 + $0x139] sm:$0xff]  ;;  %v7379_v44 = vld [vmem:[#allocation6 + $0x108] sm:$0xff]  ;;  %v7385_v60 = vld [vmem:[#allocation6 + $0x150] sm:$0xff] }
 0x634   : > { %7353 = vst.msk [vmem:[#allocation6 + $0x169] sm:$0xff] %vm3252_vm0, %v7255_v61  ;;  %v16508_v18 = vpop.f32.mrb[118].mxu0  ;;  %v7442_v7 = vld [vmem:[#allocation6 + $0x159] sm:$0xff]  ;;  %v20798_v61 = vpack.c.bf16 %v7380_v63, %v7379_v44  ;;  %v20849_v63 = vpack.c.bf16 %v7949_v4, %v7948_v51 }
 0x635   : > { %7356 = vst.msk [vmem:[#allocation6 + $0x189] sm:$0xff] %vm3252_vm0, %v16508_v18  ;;  %v7258_v37 = vpop.f32.mrb[119].mxu0  ;;  %v7440_v5 = vld [vmem:[#allocation6 + $0x141] sm:$0xff]  ;;  %v20734_v30 = vpack.c.bf16 %v7442_v7, %v7441_v6  ;;  %v7951_v44 = vld [vmem:[#allocation6 + $0xb2] sm:$0xff] }
 0x636   : > { %7354 = vst.msk [vmem:[#allocation6 + $0x171] sm:$0xff] %vm3252_vm0, %v7258_v37  ;;  %v20732_v31 = vpack.c.bf16 %v7440_v5, %v7439_v54  ;;  %v7381_v18 = vld [vmem:[#allocation6 + $0x120] sm:$0xff]  ;;  %v7386_v54 = vld [vmem:[#allocation6 + $0x158] sm:$0xff] }
 0x637   : > { %v20800_v7 = vpack.c.bf16 %v7382_v13, %v7381_v18  ;;  %v7384_v37 = vld [vmem:[#allocation6 + $0x140] sm:$0xff]  ;;  %v7383_v5 = vld [vmem:[#allocation6 + $0x138] sm:$0xff]  ;;  %v20808_v16 = vpack.c.bf16 %v7386_v54, %v7385_v60  ;;  %v7950_v13 = vld [vmem:[#allocation6 + $0xaa] sm:$0xff] }
 0x638   : > { %16542 = vmatmul.mubr.msk.bf16.gmra.mrb[144].mxu0 %vm3252_vm0, %v20732_v31  ;;  %v20806_v6 = vpack.c.bf16 %v7384_v37, %v7383_v5  ;;  %v7952_v18 = vld [vmem:[#allocation6 + $0xc2] sm:$0xff]  ;;  %v7953_v37 = vld [vmem:[#allocation6 + $0xca] sm:$0xff]  ;;  %v20855_v54 = vpack.c.bf16 %v7951_v44, %v7950_v13  ;;  %v7954_v60 = vld [vmem:[#allocation6 + $0xda] sm:$0xff] }
 0x639   : > { %16545 = vmatprep.mubr.msk.bf16.mxu0 %vm3252_vm0, %v20734_v30  ;;  %v20857_v5 = vpack.c.bf16 %v7953_v37, %v7952_v18  ;;  %v7962_v20 = vld [vmem:[#allocation6 + $0x13a] sm:$0xff]  ;;  %v7963_v0 = vld [vmem:[#allocation6 + $0x142] sm:$0xff]  ;;  %v7964_v43 = vld [vmem:[#allocation6 + $0x152] sm:$0xff] }
 0x63a   : > { %v7965_v57 = vld [vmem:[#allocation6 + $0x15a] sm:$0xff]  ;;  %v18245_v13 = vld [vmem:[%s22424_s11 + $0x88] sm:$0xff]   ;;  %v18246_v44 = vld [vmem:[%s22424_s11 + $0x90] sm:$0xff]  }
 0x63b   : > { %v7443_v17 = vld [vmem:[#allocation6 + $0x169] sm:$0xff]  ;;  %v20881_v56 = vpack.c.bf16 %v7965_v57, %v7964_v43  ;;  %v8288_v37 = vld [vmem:[#allocation6 + $0x180] sm:$0xff]  ;;  %v9558_v43 = vld [vmem:[#allocation6 + $0xb1] sm:$0xff] }
 0x63c   : > { %v7387_v11 = vld [vmem:[#allocation6 + $0x168] sm:$0xff] }
 0x63d   : > { %v7444_v19 = vld [vmem:[#allocation6 + $0x171] sm:$0xff]  ;;  %v8289_v18 = vld [vmem:[#allocation6 + $0x188] sm:$0xff] }
 0x63e   : > { %v20740_v23 = vpack.c.bf16 %v7444_v19, %v7443_v17  ;;  %v7936_v17 = vld [vmem:[#allocation6 + $0x2] sm:$0xff]  ;;  %v7937_v19 = vld [vmem:[#allocation6 + $0xa] sm:$0xff]  ;;  %v7967_v51 = vld [vmem:[#allocation6 + $0x172] sm:$0xff] }
 0x63f   : > { %v7968_v59 = vpack.c.bf16 %v7937_v19, %v7936_v17  ;;  %v7955_v17 = vld [vmem:[#allocation6 + $0xe2] sm:$0xff]  ;;  %v7956_v19 = vld [vmem:[#allocation6 + $0xf2] sm:$0xff]  ;;  %v7966_v38 = vld [vmem:[#allocation6 + $0x16a] sm:$0xff] }
 0x640   : > { %16546 = vmatmul.mubr.msk.bf16.gmra.mrb[148].mxu0 %vm3252_vm0, %v20740_v23  ;;  %v20887_v4 = vpack.c.bf16 %v7967_v51, %v7966_v38  ;;  %v9560_v57 = vld [vmem:[#allocation6 + $0xc9] sm:$0xff] }
 0x641   : > { %16557 = vmatprep.mubr.msk.bf16.mxu0 %vm3252_vm0, %v7389_v55  ;;  %v7388_v55 = vld [vmem:[#allocation6 + $0x170] sm:$0xff] }
 0x642   : > { %v20814_v45 = vpack.c.bf16 %v7388_v55, %v7387_v11  ;;  %v7957_v55 = vld [vmem:[#allocation6 + $0xfa] sm:$0xff]  ;;  %v20863_v11 = vpack.c.bf16 %v7955_v17, %v7954_v60  ;;  %v20933_v60 = vpack.c.bf16 %v8289_v18, %v8288_v37  ;;  %v18249_v17 = vld [vmem:[%s22424_s11 + $0xa8] sm:$0xff]  }
 0x643   : > { %v9557_v38 = vld [vmem:[#allocation6 + $0xa9] sm:$0xff]  ;;  %v9561_v18 = vld [vmem:[#allocation6 + $0xd9] sm:$0xff] }
 0x644   : > { %v9584_v51 = vpack.c.bf16 %v9558_v43, %v9557_v38 }
 0x648   : > { %16558 = vmatmul.mubr.msk.bf16.vlgmr.msra.gmra.mrb[120].mxu0 %vm3252_vm0, %v20745_v53 }
 0x649   : > { %16561 = vmatprep.mubr.msk.bf16.mxu0 %vm3252_vm0, %v20750_v8  ;;  %16590 = vmatpush3.bf16.msra.mxu0 %v20677_v50  ;;  %v18240_v50 = vld [vmem:[%s22424_s11 + $0x60] sm:$0xff]  }
 0x64a   : > { %16591 = vmatprep.subr.bf16.mxu0 %v18237_v26 }
 0x64d   : > { %16592 = vmatpush3.bf16.msra.mxu0 %v18237_v26  ;;  %v7939_v26 = vld [vmem:[#allocation6 + $0x22] sm:$0xff] }
 0x64e   : > { %16593 = vmatprep.subr.bf16.mxu0 %v18238_v27  ;;  %v20819_v32 = vpack.c.bf16 %v7939_v26, %v7938_v1  ;;  %v7958_v1 = vld [vmem:[#allocation6 + $0x10a] sm:$0xff]  ;;  %v7959_v26 = vld [vmem:[#allocation6 + $0x112] sm:$0xff] }
 0x650   : > { %16562 = vmatmul.mubr.msk.bf16.gmra.mrb[124].mxu0 %vm3252_vm0, %v20760_v25 }
 0x651   : > { %16565 = vmatprep.mubr.msk.bf16.mxu0 %vm3252_vm0, %v20765_v41  ;;  %16594 = vmatpush3.bf16.msra.mxu0 %v18238_v27  ;;  %v7940_v27 = vld [vmem:[#allocation6 + $0x32] sm:$0xff] }
 0x652   : > { %16595 = vmatprep.subr.bf16.mxu0 %v18239_v39  ;;  %v20824_v49 = vpack.c.bf16 %v7941_v29, %v7940_v27  ;;  %v7960_v27 = vld [vmem:[#allocation6 + $0x122] sm:$0xff]  ;;  %v7961_v29 = vld [vmem:[#allocation6 + $0x12a] sm:$0xff] }
 0x655   : > { %16596 = vmatpush3.bf16.msra.mxu0 %v18239_v39  ;;  %v18242_v39 = vld [vmem:[%s22424_s11 + $0x70] sm:$0xff]  }
 0x656   : > { %16629 = vmatprep.subr.bf16.mxu0 %v18240_v50 }
 0x658   : > { %16566 = vmatmul.mubr.msk.bf16.gmra.mrb[128].mxu0 %vm3252_vm0, %v20774_v36 }
 0x659   : > { %16569 = vmatprep.mubr.msk.bf16.mxu0 %vm3252_vm0, %v20776_v58 }
 0x660   : > { %16570 = vmatmul.mubr.msk.bf16.gmra.mrb[132].mxu0 %vm3252_vm0, %v20782_v42 }
 0x661   : > { %16573 = vmatprep.mubr.msk.bf16.mxu0 %vm3252_vm0, %v20784_v14 }
 0x668   : > { %16574 = vmatmul.mubr.msk.bf16.gmra.mrb[136].mxu0 %vm3252_vm0, %v20790_v10 }
 0x669   : > { %16577 = vmatprep.mubr.msk.bf16.mxu0 %vm3252_vm0, %v20792_v3 }
 0x670   : > { %16578 = vmatmul.mubr.msk.bf16.gmra.mrb[140].mxu0 %vm3252_vm0, %v20798_v61 }
 0x671   : > { %16581 = vmatprep.mubr.msk.bf16.mxu0 %vm3252_vm0, %v20800_v7 }
 0x678   : > { %16582 = vmatmul.mubr.msk.bf16.gmra.mrb[144].mxu0 %vm3252_vm0, %v20806_v6 }
 0x679   : > { %16585 = vmatprep.mubr.msk.bf16.mxu0 %vm3252_vm0, %v20808_v16 }
 0x680   : > { %16586 = vmatmul.mubr.msk.bf16.gmra.mrb[148].mxu0 %vm3252_vm0, %v20814_v45 }
 0x681   : > { %16597 = vmatprep.mubr.msk.bf16.mxu0 %vm3252_vm0, %v7968_v59  ;;  %v20865_v59 = vpack.c.bf16 %v7957_v55, %v7956_v19  ;;  %v18250_v19 = vld [vmem:[%s22424_s11 + $0xb0] sm:$0xff]   ;;  %v9554_v55 = vld [vmem:[#allocation6 + $0x81] sm:$0xff] }
 0x688   : > { %16598 = vmatmul.mubr.msk.bf16.vlgmr.msra.gmra.mrb[120].mxu0 %vm3252_vm0, %v20819_v32 }
 0x689   : > { %16601 = vmatprep.mubr.msk.bf16.mxu0 %vm3252_vm0, %v20824_v49  ;;  %16630 = vmatpush3.bf16.msra.mxu0 %v18240_v50  ;;  %v18244_v50 = vld [vmem:[%s22424_s11 + $0x80] sm:$0xff]  }
 0x68a   : > { %16631 = vmatprep.subr.bf16.mxu0 %v18241_v28 }
 0x68d   : > { %16632 = vmatpush3.bf16.msra.mxu0 %v18241_v28  ;;  %v20871_v28 = vpack.c.bf16 %v7959_v26, %v7958_v1  ;;  %v9556_v1 = vld [vmem:[#allocation6 + $0x99] sm:$0xff] }
 0x68e   : > { %16633 = vmatprep.subr.bf16.mxu0 %v18242_v39  ;;  %v9553_v26 = vld [vmem:[#allocation6 + $0x79] sm:$0xff] }
 0x690   : > { %16602 = vmatmul.mubr.msk.bf16.gmra.mrb[124].mxu0 %vm3252_vm0, %v20833_v22 }
 0x691   : > { %16605 = vmatprep.mubr.msk.bf16.mxu0 %vm3252_vm0, %v20838_v52  ;;  %16634 = vmatpush3.bf16.msra.mxu0 %v18242_v39  ;;  %v20873_v39 = vpack.c.bf16 %v7961_v29, %v7960_v27  ;;  %v9582_v27 = vpack.c.bf16 %v9554_v55, %v9553_v26  ;;  %v9555_v29 = vld [vmem:[#allocation6 + $0x91] sm:$0xff] }
 0x692   : > { %16635 = vmatprep.subr.bf16.mxu0 %v18243_v48 }
 0x695   : > { %16636 = vmatpush3.bf16.msra.mxu0 %v18243_v48  ;;  %v20879_v48 = vpack.c.bf16 %v7963_v0, %v7962_v20  ;;  %v18263_v20 = vld [vmem:[%s22424_s11 + $0x118] sm:$0xff]   ;;  %v9583_v0 = vpack.c.bf16 %v9556_v1, %v9555_v29 }
 0x696   : > { %16669 = vmatprep.subr.bf16.mxu0 %v18244_v50 }
 0x698   : > { %16606 = vmatmul.mubr.msk.bf16.gmra.mrb[128].mxu0 %vm3252_vm0, %v20847_v46 }
 0x699   : > { %16609 = vmatprep.mubr.msk.bf16.mxu0 %vm3252_vm0, %v20849_v63 }
 0x6a0   : > { %16610 = vmatmul.mubr.msk.bf16.gmra.mrb[132].mxu0 %vm3252_vm0, %v20855_v54 }
 0x6a1   : > { %16613 = vmatprep.mubr.msk.bf16.mxu0 %vm3252_vm0, %v20857_v5 }
 0x6a8   : > { %16614 = vmatmul.mubr.msk.bf16.gmra.mrb[136].mxu0 %vm3252_vm0, %v20863_v11 }
 0x6a9   : > { %16617 = vmatprep.mubr.msk.bf16.mxu0 %vm3252_vm0, %v20865_v59 }
 0x6b0   : > { %16618 = vmatmul.mubr.msk.bf16.gmra.mrb[140].mxu0 %vm3252_vm0, %v20871_v28 }
 0x6b1   : > { %16621 = vmatprep.mubr.msk.bf16.mxu0 %vm3252_vm0, %v20873_v39 }
 0x6b8   : > { %16622 = vmatmul.mubr.msk.bf16.gmra.mrb[144].mxu0 %vm3252_vm0, %v20879_v48 }
 0x6b9   : > { %16625 = vmatprep.mubr.msk.bf16.mxu0 %vm3252_vm0, %v20881_v56 }
 0x6c0   : > { %16626 = vmatmul.mubr.msk.bf16.gmra.mrb[148].mxu0 %vm3252_vm0, %v20887_v4 }
 0x6c1   : > { %16637 = vmatprep.mubr.msk.bf16.mxu0 %vm3252_vm0, %v20745_v53  ;;  %v18247_v53 = vld [vmem:[%s22424_s11 + $0x98] sm:$0xff]  }
 0x6c8   : > { %16638 = vmatmul.mubr.msk.bf16.vlgmr.msra.gmra.mrb[120].mxu0 %vm3252_vm0, %v20750_v8 }
 0x6c9   : > { %16641 = vmatprep.mubr.msk.bf16.mxu0 %vm3252_vm0, %v20760_v25  ;;  %16670 = vmatpush3.bf16.msra.mxu0 %v18244_v50  ;;  %v18248_v50 = vld [vmem:[%s22424_s11 + $0xa0] sm:$0xff]  }
 0x6ca   : > { %16671 = vmatprep.subr.bf16.mxu0 %v18245_v13 }
 0x6cd   : > { %16672 = vmatpush3.bf16.msra.mxu0 %v18245_v13  ;;  %v9559_v13 = vld [vmem:[#allocation6 + $0xc1] sm:$0xff] }
 0x6ce   : > { %16673 = vmatprep.subr.bf16.mxu0 %v18246_v44 }
 0x6d0   : > { %16642 = vmatmul.mubr.msk.bf16.gmra.mrb[124].mxu0 %vm3252_vm0, %v20765_v41 }
 0x6d1   : > { %16645 = vmatprep.mubr.msk.bf16.mxu0 %vm3252_vm0, %v20774_v36  ;;  %16674 = vmatpush3.bf16.msra.mxu0 %v18246_v44  ;;  %v9585_v44 = vpack.c.bf16 %v9560_v57, %v9559_v13 }
 0x6d2   : > { %16675 = vmatprep.subr.bf16.mxu0 %v18247_v53 }
 0x6d5   : > { %16676 = vmatpush3.bf16.msra.mxu0 %v18247_v53  ;;  %v9562_v53 = vld [vmem:[#allocation6 + $0xe1] sm:$0xff] }
 0x6d6   : > { %16709 = vmatprep.subr.bf16.mxu0 %v18248_v50  ;;  %v9586_v37 = vpack.c.bf16 %v9562_v53, %v9561_v18 }
 0x6d8   : > { %16646 = vmatmul.mubr.msk.bf16.gmra.mrb[128].mxu0 %vm3252_vm0, %v20776_v58 }
 0x6d9   : > { %16649 = vmatprep.mubr.msk.bf16.mxu0 %vm3252_vm0, %v20782_v42 }
 0x6e0   : > { %16650 = vmatmul.mubr.msk.bf16.gmra.mrb[132].mxu0 %vm3252_vm0, %v20784_v14 }
 0x6e1   : > { %16653 = vmatprep.mubr.msk.bf16.mxu0 %vm3252_vm0, %v20790_v10 }
 0x6e8   : > { %16654 = vmatmul.mubr.msk.bf16.gmra.mrb[136].mxu0 %vm3252_vm0, %v20792_v3 }
 0x6e9   : > { %16657 = vmatprep.mubr.msk.bf16.mxu0 %vm3252_vm0, %v20798_v61 }
 0x6f0   : > { %16658 = vmatmul.mubr.msk.bf16.gmra.mrb[140].mxu0 %vm3252_vm0, %v20800_v7 }
 0x6f1   : > { %16661 = vmatprep.mubr.msk.bf16.mxu0 %vm3252_vm0, %v20806_v6 }
 0x6f8   : > { %16662 = vmatmul.mubr.msk.bf16.gmra.mrb[144].mxu0 %vm3252_vm0, %v20808_v16 }
 0x6f9   : > { %16665 = vmatprep.mubr.msk.bf16.mxu0 %vm3252_vm0, %v20814_v45 }
 0x700   : > { %16666 = vmatmul.mubr.msk.bf16.gmra.mrb[148].mxu0 %vm3252_vm0, %v20933_v60 }
 0x701   : > { %16677 = vmatprep.mubr.msk.bf16.mxu0 %vm3252_vm0, %v20645_v2  ;;  %v18251_v2 = vld [vmem:[%s22424_s11 + $0xb8] sm:$0xff]  }
 0x708   : > { %16678 = vmatmul.mubr.msk.bf16.vlgmr.msra.gmra.mrb[120].mxu0 %vm3252_vm0, %v20650_v33  ;;  %v18252_v33 = vld [vmem:[%s22424_s11 + $0xc0] sm:$0xff]  }
 0x709   : > { %16681 = vmatprep.mubr.msk.bf16.mxu0 %vm3252_vm0, %v20663_v24  ;;  %16710 = vmatpush3.bf16.msra.mxu0 %v18248_v50  ;;  %v8611_v24 = vld [vmem:[#allocation6 + $0x189] sm:$0xff]  ;;  %v9564_v50 = vld [vmem:[#allocation6 + $0xf9] sm:$0xff] }
 0x70a   : > { %16711 = vmatprep.subr.bf16.mxu0 %v18249_v17 }
 0x70d   : > { %16712 = vmatpush3.bf16.msra.mxu0 %v18249_v17 }
 0x70e   : > { %16713 = vmatprep.subr.bf16.mxu0 %v18250_v19 }
 0x710   : > { %16682 = vmatmul.mubr.msk.bf16.gmra.mrb[124].mxu0 %vm3252_vm0, %v20668_v21  ;;  %v8610_v21 = vld [vmem:[#allocation6 + $0x181] sm:$0xff] }
 0x711   : > { %16685 = vmatprep.mubr.msk.bf16.mxu0 %vm3252_vm0, %v20683_v47  ;;  %16714 = vmatpush3.bf16.msra.mxu0 %v18250_v19  ;;  %v20979_v47 = vpack.c.bf16 %v8611_v24, %v8610_v21  ;;  %v9566_v19 = vld [vmem:[#allocation6 + $0x111] sm:$0xff]  ;;  %v9567_v21 = vld [vmem:[#allocation6 + $0x121] sm:$0xff] }
 0x712   : > { %16715 = vmatprep.subr.bf16.mxu0 %v18251_v2 }
 0x715   : > { %16716 = vmatpush3.bf16.msra.mxu0 %v18251_v2  ;;  %v9568_v2 = vld [vmem:[#allocation6 + $0x129] sm:$0xff] }
 0x716   : > { %16749 = vmatprep.subr.bf16.mxu0 %v18252_v33 }
 0x718   : > { %16686 = vmatmul.mubr.msk.bf16.gmra.mrb[128].mxu0 %vm3252_vm0, %v20686_v34  ;;  %v18253_v34 = vld [vmem:[%s22424_s11 + $0xc8] sm:$0xff]  }
 0x719   : > { %16689 = vmatprep.mubr.msk.bf16.mxu0 %vm3252_vm0, %v20696_v15  ;;  %v18254_v15 = vld [vmem:[%s22424_s11 + $0xd0] sm:$0xff]  }
 0x720   : > { %16690 = vmatmul.mubr.msk.bf16.gmra.mrb[132].mxu0 %vm3252_vm0, %v20698_v35  ;;  %v18255_v35 = vld [vmem:[%s22424_s11 + $0xd8] sm:$0xff]  }
 0x721   : > { %16693 = vmatprep.mubr.msk.bf16.mxu0 %vm3252_vm0, %v20708_v62  ;;  %v18256_v62 = vld [vmem:[%s22424_s11 + $0xe0] sm:$0xff]  }
 0x728   : > { %16694 = vmatmul.mubr.msk.bf16.gmra.mrb[136].mxu0 %vm3252_vm0, %v20710_v9  ;;  %v8932_v9 = vld [vmem:[#allocation6 + $0x182] sm:$0xff] }
 0x729   : > { %16697 = vmatprep.mubr.msk.bf16.mxu0 %vm3252_vm0, %v20720_v12  ;;  %v8933_v12 = vld [vmem:[#allocation6 + $0x18a] sm:$0xff] }
 0x730   : > { %16698 = vmatmul.mubr.msk.bf16.gmra.mrb[140].mxu0 %vm3252_vm0, %v20722_v40  ;;  %v21025_v40 = vpack.c.bf16 %v8933_v12, %v8932_v9  ;;  %v9571_v12 = vld [vmem:[#allocation6 + $0x151] sm:$0xff] }
 0x731   : > { %16701 = vmatprep.mubr.msk.bf16.mxu0 %vm3252_vm0, %v20732_v31  ;;  %v18257_v31 = vld [vmem:[%s22424_s11 + $0xe8] sm:$0xff]  }
 0x738   : > { %16702 = vmatmul.mubr.msk.bf16.gmra.mrb[144].mxu0 %vm3252_vm0, %v20734_v30  ;;  %v18258_v30 = vld [vmem:[%s22424_s11 + $0xf0] sm:$0xff]  }
 0x739   : > { %16705 = vmatprep.mubr.msk.bf16.mxu0 %vm3252_vm0, %v20740_v23  ;;  %v18259_v23 = vld [vmem:[%s22424_s11 + $0xf8] sm:$0xff]  }
 0x740   : > { %16706 = vmatmul.mubr.msk.bf16.gmra.mrb[148].mxu0 %vm3252_vm0, %v20979_v47 }
 0x741   : > { %16717 = vmatprep.mubr.msk.bf16.mxu0 %vm3252_vm0, %v20819_v32  ;;  %v18262_v32 = vld [vmem:[%s22424_s11 + $0x110] sm:$0xff]  }
 0x748   : > { %16718 = vmatmul.mubr.msk.bf16.vlgmr.msra.gmra.mrb[120].mxu0 %vm3252_vm0, %v20824_v49 }
 0x749   : > { %16721 = vmatprep.mubr.msk.bf16.mxu0 %vm3252_vm0, %v20833_v22  ;;  %16750 = vmatpush3.bf16.msra.mxu0 %v18252_v33  ;;  %v9565_v33 = vld [vmem:[#allocation6 + $0x109] sm:$0xff] }
 0x74a   : > { %16751 = vmatprep.subr.bf16.mxu0 %v18253_v34  ;;  %v9588_v24 = vpack.c.bf16 %v9566_v19, %v9565_v33 }
 0x74d   : > { %16752 = vmatpush3.bf16.msra.mxu0 %v18253_v34  ;;  %v9589_v34 = vpack.c.bf16 %v9568_v2, %v9567_v21 }
 0x74e   : > { %16753 = vmatprep.subr.bf16.mxu0 %v18254_v15 }
 0x750   : > { %16722 = vmatmul.mubr.msk.bf16.gmra.mrb[124].mxu0 %vm3252_vm0, %v20838_v52 }
 0x751   : > { %16725 = vmatprep.mubr.msk.bf16.mxu0 %vm3252_vm0, %v20847_v46  ;;  %16754 = vmatpush3.bf16.msra.mxu0 %v18254_v15  ;;  %v9570_v15 = vld [vmem:[#allocation6 + $0x141] sm:$0xff] }
 0x752   : > { %16755 = vmatprep.subr.bf16.mxu0 %v18255_v35 }
 0x755   : > { %16756 = vmatpush3.bf16.msra.mxu0 %v18255_v35  ;;  %v9572_v35 = vld [vmem:[#allocation6 + $0x159] sm:$0xff] }
 0x756   : > { %16789 = vmatprep.subr.bf16.mxu0 %v18256_v62 }
 0x758   : > { %16726 = vmatmul.mubr.msk.bf16.gmra.mrb[128].mxu0 %vm3252_vm0, %v20849_v63 }
 0x759   : > { %16729 = vmatprep.mubr.msk.bf16.mxu0 %vm3252_vm0, %v20855_v54 }
 0x760   : > { %16730 = vmatmul.mubr.msk.bf16.gmra.mrb[132].mxu0 %vm3252_vm0, %v20857_v5 }
 0x761   : > { %16733 = vmatprep.mubr.msk.bf16.mxu0 %vm3252_vm0, %v20863_v11 }
 0x768   : > { %16734 = vmatmul.mubr.msk.bf16.gmra.mrb[136].mxu0 %vm3252_vm0, %v20865_v59 }
 0x769   : > { %16737 = vmatprep.mubr.msk.bf16.mxu0 %vm3252_vm0, %v20871_v28 }
 0x770   : > { %16738 = vmatmul.mubr.msk.bf16.gmra.mrb[140].mxu0 %vm3252_vm0, %v20873_v39 }
 0x771   : > { %16741 = vmatprep.mubr.msk.bf16.mxu0 %vm3252_vm0, %v20879_v48 }
 0x778   : > { %16742 = vmatmul.mubr.msk.bf16.gmra.mrb[144].mxu0 %vm3252_vm0, %v20881_v56 }
 0x779   : > { %16745 = vmatprep.mubr.msk.bf16.mxu0 %vm3252_vm0, %v20887_v4 }
 0x780   : > { %16746 = vmatmul.mubr.msk.bf16.gmra.mrb[148].mxu0 %vm3252_vm0, %v21025_v40 }
 0x781   : > { %16757 = vmatprep.mubr.msk.bf16.mxu0 %vm3252_vm0, %v20750_v8  ;;  %v18260_v8 = vld [vmem:[%s22424_s11 + $0x100] sm:$0xff]  }
 0x788   : > { %16758 = vmatmul.mubr.msk.bf16.vlgmr.msra.gmra.mrb[120].mxu0 %vm3252_vm0, %v20760_v25  ;;  %v9255_v25 = vld [vmem:[#allocation6 + $0x198] sm:$0xff] }
 0x789   : > { %16761 = vmatprep.mubr.msk.bf16.mxu0 %vm3252_vm0, %v20765_v41  ;;  %16790 = vmatpush3.bf16.msra.mxu0 %v18256_v62  ;;  %v9256_v41 = vld [vmem:[#allocation6 + $0x1a0] sm:$0xff] }
 0x78a   : > { %16791 = vmatprep.subr.bf16.mxu0 %v18257_v31  ;;  %v9569_v62 = vld [vmem:[#allocation6 + $0x139] sm:$0xff] }
 0x78b   : > { %v9590_v9 = vpack.c.bf16 %v9570_v15, %v9569_v62 }
 0x78d   : > { %16792 = vmatpush3.bf16.msra.mxu0 %v18257_v31  ;;  %v9591_v31 = vpack.c.bf16 %v9572_v35, %v9571_v12 }
 0x78e   : > { %16793 = vmatprep.subr.bf16.mxu0 %v18258_v30 }
 0x790   : > { %16762 = vmatmul.mubr.msk.bf16.gmra.mrb[124].mxu0 %vm3252_vm0, %v20774_v36  ;;  %v9272_v36 = vpack.c.bf16 %v9256_v41, %v9255_v25  ;;  %v9577_v25 = vld [vmem:[#allocation6 + $0x199] sm:$0xff]  ;;  %v9578_v41 = vld [vmem:[#allocation6 + $0x1a1] sm:$0xff] }
 0x791   : > { %16765 = vmatprep.mubr.msk.bf16.mxu0 %vm3252_vm0, %v20776_v58  ;;  %16794 = vmatpush3.bf16.msra.mxu0 %v18258_v30  ;;  %v9548_v58 = vld [vmem:[#allocation6 + $0x39] sm:$0xff]  ;;  %v9574_v30 = vld [vmem:[#allocation6 + $0x171] sm:$0xff] }
 0x792   : > { %16795 = vmatprep.subr.bf16.mxu0 %v18259_v23 }
 0x795   : > { %16796 = vmatpush3.bf16.msra.mxu0 %v18259_v23  ;;  %v9573_v23 = vld [vmem:[#allocation6 + $0x169] sm:$0xff] }
 0x796   : > { %16829 = vmatprep.subr.bf16.mxu0 %v18260_v8 }
 0x798   : > { %16766 = vmatmul.mubr.msk.bf16.gmra.mrb[128].mxu0 %vm3252_vm0, %v20782_v42  ;;  %v9547_v42 = vld [vmem:[#allocation6 + $0x31] sm:$0xff] }
 0x799   : > { %16769 = vmatprep.mubr.msk.bf16.mxu0 %vm3252_vm0, %v20784_v14  ;;  %v9579_v14 = vpack.c.bf16 %v9548_v58, %v9547_v42 }
 0x7a0   : > { %16770 = vmatmul.mubr.msk.bf16.gmra.mrb[132].mxu0 %vm3252_vm0, %v20790_v10  ;;  %v9550_v10 = vld [vmem:[#allocation6 + $0x51] sm:$0xff] }
 0x7a1   : > { %16773 = vmatprep.mubr.msk.bf16.mxu0 %vm3252_vm0, %v20792_v3  ;;  %v9552_v3 = vld [vmem:[#allocation6 + $0x69] sm:$0xff] }
 0x7a8   : > { %16774 = vmatmul.mubr.msk.bf16.gmra.mrb[136].mxu0 %vm3252_vm0, %v20798_v61  ;;  %v9549_v61 = vld [vmem:[#allocation6 + $0x49] sm:$0xff] }
 0x7a9   : > { %16777 = vmatprep.mubr.msk.bf16.mxu0 %vm3252_vm0, %v20800_v7  ;;  %v9580_v7 = vpack.c.bf16 %v9550_v10, %v9549_v61 }
 0x7b0   : > { %16778 = vmatmul.mubr.msk.bf16.gmra.mrb[140].mxu0 %vm3252_vm0, %v20806_v6  ;;  %v9551_v6 = vld [vmem:[#allocation6 + $0x61] sm:$0xff] }
 0x7b1   : > { %16781 = vmatprep.mubr.msk.bf16.mxu0 %vm3252_vm0, %v20808_v16  ;;  %v18261_v16 = vld [vmem:[%s22424_s11 + $0x108] sm:$0xff]  }
 0x7b8   : > { %16782 = vmatmul.mubr.msk.bf16.gmra.mrb[144].mxu0 %vm3252_vm0, %v20814_v45  ;;  %v9581_v45 = vpack.c.bf16 %v9552_v3, %v9551_v6 }
 0x7b9   : > { %16785 = vmatprep.mubr.msk.bf16.mxu0 %vm3252_vm0, %v20933_v60  ;;  %v9563_v60 = vld [vmem:[#allocation6 + $0xf1] sm:$0xff] }
 0x7ba   : > { %v9587_v17 = vpack.c.bf16 %v9564_v50, %v9563_v60 }
 0x7c0   : > { %16786 = vmatmul.mubr.msk.bf16.gmra.mrb[148].mxu0 %vm3252_vm0, %v9272_v36  ;;  %v9594_v36 = vpack.c.bf16 %v9578_v41, %v9577_v25 }
 0x7c1   : > { %16797 = vmatprep.mubr.msk.bf16.mxu0 %vm3252_vm0, %v9579_v14 }
 0x7c8   : > { %16798 = vmatmul.mubr.msk.bf16.vlgmr.msra.gmra.mrb[120].mxu0 %vm3252_vm0, %v9580_v7 }
 0x7c9   : > { %16801 = vmatprep.mubr.msk.bf16.mxu0 %vm3252_vm0, %v9581_v45  ;;  %16830 = vmatpush3.bf16.msra.mxu0 %v18260_v8  ;;  %v9592_v8 = vpack.c.bf16 %v9574_v30, %v9573_v23 }
 0x7ca   : > { %16831 = vmatprep.subr.bf16.mxu0 %v18261_v16 }
 0x7cd   : > { %16832 = vmatpush3.bf16.msra.mxu0 %v18261_v16 }
 0x7ce   : > { %16833 = vmatprep.subr.bf16.mxu0 %v18262_v32 }
 0x7d0   : > { %16802 = vmatmul.mubr.msk.bf16.gmra.mrb[124].mxu0 %vm3252_vm0, %v9582_v27 }
 0x7d1   : > { %16805 = vmatprep.mubr.msk.bf16.mxu0 %vm3252_vm0, %v9583_v0  ;;  %16834 = vmatpush3.bf16.msra.mxu0 %v18262_v32 }
 0x7d2   : > { %16835 = vmatprep.subr.bf16.mxu0 %v18263_v20 }
 0x7d5   : > { %16836 = vmatpush3.bf16.msra.mxu0 %v18263_v20 }
 0x7d8   : > { %16806 = vmatmul.mubr.msk.bf16.gmra.mrb[128].mxu0 %vm3252_vm0, %v9584_v51 }
 0x7d9   : > { %16809 = vmatprep.mubr.msk.bf16.mxu0 %vm3252_vm0, %v9585_v44 }
 0x7e0   : > { %16810 = vmatmul.mubr.msk.bf16.gmra.mrb[132].mxu0 %vm3252_vm0, %v9586_v37 }
 0x7e1   : > { %16813 = vmatprep.mubr.msk.bf16.mxu0 %vm3252_vm0, %v9587_v17 }
 0x7e8   : > { %16814 = vmatmul.mubr.msk.bf16.gmra.mrb[136].mxu0 %vm3252_vm0, %v9588_v24 }
 0x7e9   : > { %16817 = vmatprep.mubr.msk.bf16.mxu0 %vm3252_vm0, %v9589_v34 }
 0x7f0   : > { %16818 = vmatmul.mubr.msk.bf16.gmra.mrb[140].mxu0 %vm3252_vm0, %v9590_v9 }
 0x7f1   : > { %16821 = vmatprep.mubr.msk.bf16.mxu0 %vm3252_vm0, %v9591_v31 }
 0x7f8   : > { %16822 = vmatmul.mubr.msk.bf16.gmra.mrb[144].mxu0 %vm3252_vm0, %v9592_v8 }
 0x7f9   : > { %16825 = vmatprep.mubr.msk.bf16.mxu0 %vm3252_vm0, %v20979_v47 }
 0x800   : > { %16826 = vmatmul.mubr.msk.bf16.gmra.mrb[148].mxu0 %vm3252_vm0, %v9594_v36 }
 0x801   : > { %16837 = vmatprep.mubr.msk.bf16.mxu0 %vm3252_vm0, %v20824_v49  ;;  %v9899_v49 = vld [vmem:[#allocation6 + $0x19a] sm:$0xff] }
 0x808   : > { %16838 = vmatmul.mubr.msk.bf16.vlgmr.msra.gmra.mrb[120].mxu0 %vm3252_vm0, %v20833_v22  ;;  %v9900_v22 = vld [vmem:[#allocation6 + $0x1a2] sm:$0xff] }
 0x809   : > { %16841 = vmatprep.mubr.msk.bf16.mxu0 %vm3252_vm0, %v20838_v52  ;;  %v9916_v52 = vpack.c.bf16 %v9900_v22, %v9899_v49 }
 0x810   : > { %16842 = vmatmul.mubr.msk.bf16.gmra.mrb[124].mxu0 %vm3252_vm0, %v20847_v46  ;;  %v18536_v46 = vld [vmem:[#allocation2] sm:$0xff] }
 0x811   : > { %16845 = vmatprep.mubr.msk.bf16.mxu0 %vm3252_vm0, %v20849_v63  ;;  %10430 = vst.msk [vmem:[#allocation7 + $0x30] sm:$0xff] %vm10422_vm3, %v18536_v46  ;;  %10431 = vst.msk [vmem:[#allocation7 + $0x38] sm:$0xff] %vm10422_vm3, %v18536_v46  ;;  %v18264_v63 = vld [vmem:[%s22426_s13 + $0x18] sm:$0xff]  }
 0x812   : > { %10423 = vst.msk [vmem:[#allocation7] sm:$0xff] %vm10422_vm3, %v18536_v46  ;;  %10424 = vst.msk [vmem:[#allocation7 + $0x8] sm:$0xff] %vm10422_vm3, %v18536_v46  ;;  %16869 = vmatprep.subr.bf16.mxu0 %v18264_v63  ;;  %17249 = vmatprep.subr.bf16.mxu1 %v18264_v63 }
 0x813   : > { %10427 = vst.msk [vmem:[#allocation7 + $0x18] sm:$0xff] %vm10422_vm3, %v18536_v46  ;;  %10428 = vst.msk [vmem:[#allocation7 + $0x20] sm:$0xff] %vm10422_vm3, %v18536_v46  ;;  %16870 = vmatpush3.bf16.msra.mxu0 %v18264_v63  ;;  %17252 = vmatpush3.bf16.msra.mxu1 %v18264_v63 }
 0x814   : > { %10433 = vst.msk [vmem:[#allocation7 + $0x48] sm:$0xff] %vm10422_vm3, %v18536_v46  ;;  %10434 = vst.msk [vmem:[#allocation7 + $0x50] sm:$0xff] %vm10422_vm3, %v18536_v46 }
 0x815   : > { %10436 = vst.msk [vmem:[#allocation7 + $0x60] sm:$0xff] %vm10422_vm3, %v18536_v46  ;;  %10437 = vst.msk [vmem:[#allocation7 + $0x68] sm:$0xff] %vm10422_vm3, %v18536_v46 }
 0x816   : > { %10439 = vst.msk [vmem:[#allocation7 + $0x78] sm:$0xff] %vm10422_vm3, %v18536_v46  ;;  %10440 = vst.msk [vmem:[#allocation7 + $0x80] sm:$0xff] %vm10422_vm3, %v18536_v46 }
 0x817   : > { %10442 = vst.msk [vmem:[#allocation7 + $0x90] sm:$0xff] %vm10422_vm3, %v18536_v46  ;;  %10443 = vst.msk [vmem:[#allocation7 + $0x98] sm:$0xff] %vm10422_vm3, %v18536_v46 }
 0x818   : > { %16846 = vmatmul.mubr.msk.bf16.gmra.mrb[128].mxu0 %vm3252_vm0, %v20855_v54  ;;  %10445 = vst.msk [vmem:[#allocation7 + $0xa8] sm:$0xff] %vm10422_vm3, %v18536_v46  ;;  %10446 = vst.msk [vmem:[#allocation7 + $0xb0] sm:$0xff] %vm10422_vm3, %v18536_v46  ;;  %v18265_v54 = vld [vmem:[%s22426_s13 + $0x20] sm:$0xff]  }
 0x819   : > { %16849 = vmatprep.mubr.msk.bf16.mxu0 %vm3252_vm0, %v20857_v5  ;;  %10448 = vst.msk [vmem:[#allocation7 + $0xc0] sm:$0xff] %vm10422_vm3, %v18536_v46  ;;  %10449 = vst.msk [vmem:[#allocation7 + $0xc8] sm:$0xff] %vm10422_vm3, %v18536_v46  ;;  %16871 = vmatprep.subr.bf16.mxu0 %v18265_v54  ;;  %v18266_v5 = vld [vmem:[%s22426_s13 + $0x28] sm:$0xff]  }
 0x81a   : > { %10451 = vst.msk [vmem:[#allocation7 + $0xd8] sm:$0xff] %vm10422_vm3, %v18536_v46  ;;  %10452 = vst.msk [vmem:[#allocation7 + $0xe0] sm:$0xff] %vm10422_vm3, %v18536_v46  ;;  %17250 = vmatprep.subr.bf16.mxu1 %v18265_v54  ;;  %16872 = vmatpush3.bf16.msra.mxu0 %v18265_v54 }
 0x81b   : > { %10454 = vst.msk [vmem:[#allocation7 + $0xf0] sm:$0xff] %vm10422_vm3, %v18536_v46  ;;  %10455 = vst.msk [vmem:[#allocation7 + $0xf8] sm:$0xff] %vm10422_vm3, %v18536_v46  ;;  %17253 = vmatpush3.bf16.msra.mxu1 %v18265_v54  ;;  %16873 = vmatprep.subr.bf16.mxu0 %v18266_v5 }
 0x81c   : > { %10457 = vst.msk [vmem:[#allocation7 + $0x108] sm:$0xff] %vm10422_vm3, %v18536_v46  ;;  %10458 = vst.msk [vmem:[#allocation7 + $0x110] sm:$0xff] %vm10422_vm3, %v18536_v46  ;;  %17251 = vmatprep.subr.bf16.mxu1 %v18266_v5 }
 0x81d   : > { %10460 = vst.msk [vmem:[#allocation7 + $0x120] sm:$0xff] %vm10422_vm3, %v18536_v46  ;;  %10461 = vst.msk [vmem:[#allocation7 + $0x128] sm:$0xff] %vm10422_vm3, %v18536_v46 }
 0x81e   : > { %10463 = vst.msk [vmem:[#allocation7 + $0x138] sm:$0xff] %vm10422_vm3, %v18536_v46  ;;  %10464 = vst.msk [vmem:[#allocation7 + $0x140] sm:$0xff] %vm10422_vm3, %v18536_v46  ;;  %16874 = vmatpush3.bf16.msra.mxu0 %v18266_v5 }
 0x81f   : > { %10466 = vst.msk [vmem:[#allocation7 + $0x150] sm:$0xff] %vm10422_vm3, %v18536_v46  ;;  %10467 = vst.msk [vmem:[#allocation7 + $0x158] sm:$0xff] %vm10422_vm3, %v18536_v46  ;;  %17254 = vmatpush3.bf16.msra.mxu1 %v18266_v5 }
 0x820   : > { %16850 = vmatmul.mubr.msk.bf16.gmra.mrb[132].mxu0 %vm3252_vm0, %v20863_v11  ;;  %10469 = vst.msk [vmem:[#allocation7 + $0x168] sm:$0xff] %vm10422_vm3, %v18536_v46  ;;  %10470 = vst.msk [vmem:[#allocation7 + $0x170] sm:$0xff] %vm10422_vm3, %v18536_v46  ;;  %v10565_v11 = vld [vmem:[#allocation7 + $0x1] sm:$0xff] }
 0x821   : > { %16853 = vmatprep.mubr.msk.bf16.mxu0 %vm3252_vm0, %v20865_v59  ;;  %10472 = vst.msk [vmem:[#allocation7 + $0x180] sm:$0xff] %vm10422_vm3, %v18536_v46  ;;  %10473 = vst.msk [vmem:[#allocation7 + $0x188] sm:$0xff] %vm10422_vm3, %v18536_v46 }
 0x822   : > { %10475 = vst.msk [vmem:[#allocation7 + $0x198] sm:$0xff] %vm10422_vm3, %v18536_v46  ;;  %10476 = vst.msk [vmem:[#allocation7 + $0x1a0] sm:$0xff] %vm10422_vm3, %v18536_v46 }
 0x828   : > { %16854 = vmatmul.mubr.msk.bf16.gmra.mrb[136].mxu0 %vm3252_vm0, %v20871_v28 }
 0x829   : > { %16857 = vmatprep.mubr.msk.bf16.mxu0 %vm3252_vm0, %v20873_v39  ;;  %v21196_v39 = vld [vmem:[%s22426_s13] sm:$0xff]  }
 0x82a   : > { %16907 = vmatprep.subr.bf16.mxu1 %v21196_v39 }
 0x830   : > { %16858 = vmatmul.mubr.msk.bf16.gmra.mrb[140].mxu0 %vm3252_vm0, %v20879_v48  ;;  %v21202_v48 = vld [vmem:[%s22425_s12] ss:$0 sm:$0xff] }
 0x831   : > { %16861 = vmatprep.mubr.msk.bf16.mxu0 %vm3252_vm0, %v20881_v56 }
 0x838   : > { %16862 = vmatmul.mubr.msk.bf16.gmra.mrb[144].mxu0 %vm3252_vm0, %v20887_v4 }
 0x839   : > { %16865 = vmatprep.mubr.msk.bf16.mxu0 %vm3252_vm0, %v21025_v40 }
 0x840   : > { %16866 = vmatmul.mubr.msk.bf16.gmra.mrb[148].mxu0 %vm3252_vm0, %v9916_v52  ;;  %vm10425_vm0 = vcmask 386048  }
 0x841   : > { %10432 = vst.msk [vmem:[#allocation7 + $0x40] sm:$0x3] %vm10425_vm0, %v18536_v46  ;;  %10426 = vst.msk [vmem:[#allocation7 + $0x10] sm:$0x3] %vm10425_vm0, %v18536_v46 }
 0x842   : > { %10429 = vst.msk [vmem:[#allocation7 + $0x28] sm:$0x3] %vm10425_vm0, %v18536_v46  ;;  %10435 = vst.msk [vmem:[#allocation7 + $0x58] sm:$0x3] %vm10425_vm0, %v18536_v46 }
 0x843   : > { %10438 = vst.msk [vmem:[#allocation7 + $0x70] sm:$0x3] %vm10425_vm0, %v18536_v46  ;;  %10441 = vst.msk [vmem:[#allocation7 + $0x88] sm:$0x3] %vm10425_vm0, %v18536_v46 }
 0x844   : > { %10444 = vst.msk [vmem:[#allocation7 + $0xa0] sm:$0x3] %vm10425_vm0, %v18536_v46  ;;  %10447 = vst.msk [vmem:[#allocation7 + $0xb8] sm:$0x3] %vm10425_vm0, %v18536_v46 }
 0x845   : > { %10450 = vst.msk [vmem:[#allocation7 + $0xd0] sm:$0x3] %vm10425_vm0, %v18536_v46  ;;  %10453 = vst.msk [vmem:[#allocation7 + $0xe8] sm:$0x3] %vm10425_vm0, %v18536_v46 }
 0x846   : > { %10456 = vst.msk [vmem:[#allocation7 + $0x100] sm:$0x3] %vm10425_vm0, %v18536_v46  ;;  %10459 = vst.msk [vmem:[#allocation7 + $0x118] sm:$0x3] %vm10425_vm0, %v18536_v46 }
 0x847   : > { %10462 = vst.msk [vmem:[#allocation7 + $0x130] sm:$0x3] %vm10425_vm0, %v18536_v46  ;;  %10465 = vst.msk [vmem:[#allocation7 + $0x148] sm:$0x3] %vm10425_vm0, %v18536_v46 }
 0x848   : > { %10468 = vst.msk [vmem:[#allocation7 + $0x160] sm:$0x3] %vm10425_vm0, %v18536_v46  ;;  %10471 = vst.msk [vmem:[#allocation7 + $0x178] sm:$0x3] %vm10425_vm0, %v18536_v46  ;;  %v10566_v59 = vld [vmem:[#allocation7 + $0x9] sm:$0xff] }
 0x849   : > { %10474 = vst.msk [vmem:[#allocation7 + $0x190] sm:$0x3] %vm10425_vm0, %v18536_v46  ;;  %10477 = vst.msk [vmem:[#allocation7 + $0x1a8] sm:$0x3] %vm10425_vm0, %v18536_v46  ;;  %v10597_v28 = vpack.c.bf16 %v10566_v59, %v10565_v11 }
 0x84b   : > { %16875 = vmatprep.mubr.msk.bf16.mxu0 %vm10422_vm3, %v10597_v28 }
 0x8db   : > { %v16839_v56 = vpop.f32.mrb[120].mxu0 }
 0x8dc   : > { %v10200_v4 = vadd.f32 %v16839_v56, %v21202_v48  ;;  %v10032_v47 = vpop.f32.mrb[121].mxu0 }
 0x8dd   : > { %v10198_v40 = vadd.f32 %v21202_v48, %v10032_v47  ;;  %v16840_v58 = vpop.f32.mrb[122].mxu0 }
 0x8de   : > { %v10264_v42 = vmin.f32 %v10200_v4, 0.0  ;;  %v10201_v14 = vadd.f32 %v16840_v58, %v21202_v48  ;;  %v10035_v10 = vpop.f32.mrb[123].mxu0  ;;  %vm10232_vm4 = vcmp.gt.f32.partialorder %v10200_v4, 0.0 }
 0x8df   : > { %v10262_v3 = vmin.f32 %v10198_v40, 0.0  ;;  %v21208_v61 = vadd.f32 %v21202_v48, %v10035_v10  ;;  %vm10230_vm5 = vcmp.gt.f32.partialorder %v10198_v40, 0.0 }
 0x8e0   : > { %v10298_v7 = vmul.f32 1.442695, %v10264_v42  ;;  %v10265_v6 = vmin.f32 %v10201_v14, 0.0  ;;  %vm10233_vm6 = vcmp.gt.f32.partialorder %v10201_v14, 0.0 }
 0x8e1   : > { %v10294_v16 = vmul.f32 1.442695, %v10262_v3  ;;  %v10263_v45 = vmin.f32 %v21208_v61, 0.0  ;;  %vm10231_vm7 = vcmp.gt.f32.partialorder %v21208_v61, 0.0 }
 0x8e2   : > { %18342 = vpow2.f32 %v10298_v7  ;;  %v10300_v32 = vmul.f32 1.442695, %v10265_v6 }
 0x8e3   : > { %18344 = vpow2.f32 %v10294_v16  ;;  %v10296_v55 = vmul.f32 1.442695, %v10263_v45  ;;  %v16843_v1 = vpop.f32.mrb[124].mxu0 }
 0x8e4   : > { %18346 = vpow2.f32 %v10300_v32  ;;  %v21212_v26 = vadd.f32 %v16843_v1, %v21202_v48  ;;  %v10048_v27 = vpop.f32.mrb[125].mxu0 }
 0x8e5   : > { %18348 = vpow2.f32 %v10296_v55  ;;  %v21215_v29 = vadd.f32 %v21202_v48, %v10048_v27  ;;  %v16844_v20 = vpop.f32.mrb[126].mxu0 }
 0x8e6   : > { %v10268_v0 = vmin.f32 %v21212_v26, 0.0  ;;  %v21219_v43 = vadd.f32 %v16844_v20, %v21202_v48  ;;  %v10051_v57 = vpop.f32.mrb[127].mxu0  ;;  %vm10236_vm8 = vcmp.gt.f32.partialorder %v21212_v26, 0.0 }
 0x8e7   : > { %v10266_v38 = vmin.f32 %v21215_v29, 0.0  ;;  %v21223_v51 = vadd.f32 %v21202_v48, %v10051_v57  ;;  %vm10234_vm9 = vcmp.gt.f32.partialorder %v21215_v29, 0.0 }
 0x8e8   : > { %v10306_v13 = vmul.f32 1.442695, %v10268_v0  ;;  %v10269_v44 = vmin.f32 %v21219_v43, 0.0  ;;  %vm10237_vm10 = vcmp.gt.f32.partialorder %v21219_v43, 0.0 }
 0x8e9   : > { %v10302_v53 = vmul.f32 1.442695, %v10266_v38  ;;  %v10267_v50 = vmin.f32 %v21223_v51, 0.0  ;;  %vm10235_vm11 = vcmp.gt.f32.partialorder %v21223_v51, 0.0 }
 0x8ea   : > { %18350 = vpow2.f32 %v10306_v13  ;;  %v10308_v18 = vmul.f32 1.442695, %v10269_v44 }
 0x8eb   : > { %18352 = vpow2.f32 %v10302_v53  ;;  %v10304_v37 = vmul.f32 1.442695, %v10267_v50  ;;  %v16847_v60 = vpop.f32.mrb[128].mxu0 }
 0x8ec   : > { %v18343_v17 = vpop.eup %18342  ;;  %18354 = vpow2.f32 %v10308_v18  ;;  %v21228_v19 = vadd.f32 %v16847_v60, %v21202_v48  ;;  %v10064_v2 = vpop.f32.mrb[129].mxu0 }
 0x8ed   : > { %v18345_v33 = vpop.eup %18344  ;;  %v15089_v24 = vadd.f32 -1.0, %v18343_v17  ;;  %18356 = vpow2.f32 %v10304_v37  ;;  %v21231_v21 = vadd.f32 %v21202_v48, %v10064_v2  ;;  %v16848_v34 = vpop.f32.mrb[130].mxu0 }
 0x8ee   : > { %v18347_v15 = vpop.eup %18346  ;;  %v15087_v35 = vadd.f32 -1.0, %v18345_v33  ;;  %v10272_v62 = vmin.f32 %v21228_v19, 0.0  ;;  %v21235_v9 = vadd.f32 %v16848_v34, %v21202_v48  ;;  %v10067_v12 = vpop.f32.mrb[131].mxu0  ;;  %vm10240_vm12 = vcmp.gt.f32.partialorder %v21228_v19, 0.0 }
 0x8ef   : > { %v18349_v31 = vpop.eup %18348  ;;  %v10392_v30 = vsel %vm10232_vm4, %v10200_v4, %v15089_v24  ;;  %v15090_v23 = vadd.f32 -1.0, %v18347_v15  ;;  %v10270_v8 = vmin.f32 %v21231_v21, 0.0  ;;  %v21243_v46 = vadd.f32 %v21202_v48, %v10067_v12 }
 0x8f0   : > { %10481 = vst.msk [vmem:[#allocation7 + $0x31] sm:$0xff] %vm10422_vm3, %v10392_v30  ;;  %v10390_v25 = vsel %vm10230_vm5, %v10198_v40, %v15087_v35  ;;  %v15088_v41 = vadd.f32 -1.0, %v18349_v31  ;;  %v10314_v36 = vmul.f32 1.442695, %v10272_v62  ;;  %v10273_v52 = vmin.f32 %v21235_v9, 0.0 }
 0x8f1   : > { %10479 = vst.msk [vmem:[#allocation7 + $0x19] sm:$0xff] %vm10422_vm3, %v10390_v25  ;;  %v10393_v49 = vsel %vm10233_vm6, %v10201_v14, %v15090_v23  ;;  %v10310_v22 = vmul.f32 1.442695, %v10270_v8  ;;  %v10271_v5 = vmin.f32 %v21243_v46, 0.0  ;;  %vm10238_vm13 = vcmp.gt.f32.partialorder %v21231_v21, 0.0 }
 0x8f2   : > { %10482 = vst.msk [vmem:[#allocation7 + $0x39] sm:$0xff] %vm10422_vm3, %v10393_v49  ;;  %v10391_v63 = vsel %vm10231_vm7, %v21208_v61, %v15088_v41  ;;  %18358 = vpow2.f32 %v10314_v36  ;;  %v10316_v54 = vmul.f32 1.442695, %v10273_v52  ;;  %vm10241_vm14 = vcmp.gt.f32.partialorder %v21235_v9, 0.0 }
 0x8f3   : > { %10480 = vst.msk [vmem:[#allocation7 + $0x21] sm:$0xff] %vm10422_vm3, %v10391_v63  ;;  %18360 = vpow2.f32 %v10310_v22  ;;  %v16851_v11 = vpop.f32.mrb[132].mxu0  ;;  %v10312_v40 = vmul.f32 1.442695, %v10271_v5  ;;  %vm10239_vm15 = vcmp.gt.f32.partialorder %v21243_v46, 0.0 }
 0x8f4   : > { %v18351_v59 = vpop.eup %18350  ;;  %v21251_v28 = vadd.f32 %v16851_v11, %v21202_v48  ;;  %v10080_v56 = vpop.f32.mrb[133].mxu0  ;;  %18362 = vpow2.f32 %v10316_v54 }
 0x8f5   : > { %v18353_v4 = vpop.eup %18352  ;;  %v15093_v47 = vadd.f32 -1.0, %v18351_v59  ;;  %v21254_v58 = vadd.f32 %v21202_v48, %v10080_v56  ;;  %v16852_v42 = vpop.f32.mrb[134].mxu0  ;;  %18364 = vpow2.f32 %v10312_v40 }
 0x8f6   : > { %v18355_v14 = vpop.eup %18354  ;;  %v15091_v10 = vadd.f32 -1.0, %v18353_v4  ;;  %v10276_v3 = vmin.f32 %v21251_v28, 0.0  ;;  %v21259_v61 = vadd.f32 %v16852_v42, %v21202_v48  ;;  %v10083_v7 = vpop.f32.mrb[135].mxu0  ;;  %vm10244_vm1 = vcmp.gt.f32.partialorder %v21251_v28, 0.0 }
 0x8f7   : > { %v18357_v6 = vpop.eup %18356  ;;  %v10396_v16 = vsel %vm10236_vm8, %v21212_v26, %v15093_v47  ;;  %v15094_v45 = vadd.f32 -1.0, %v18355_v14  ;;  %v10274_v27 = vmin.f32 %v21254_v58, 0.0  ;;  %v21273_v0 = vadd.f32 %v21202_v48, %v10083_v7  ;;  %v10569_v37 = vld [vmem:[#allocation7 + $0x31] sm:$0xff] }
 0x8f8   : > { %10485 = vst.msk [vmem:[#allocation7 + $0x61] sm:$0xff] %vm10422_vm3, %v10396_v16  ;;  %v10394_v32 = vsel %vm10234_vm9, %v21215_v29, %v15091_v10  ;;  %v15092_v55 = vadd.f32 -1.0, %v18357_v6  ;;  %v10322_v1 = vmul.f32 1.442695, %v10276_v3  ;;  %v10277_v26 = vmin.f32 %v21259_v61, 0.0  ;;  %v10567_v13 = vld [vmem:[#allocation7 + $0x19] sm:$0xff] }
 0x8f9   : > { %10483 = vst.msk [vmem:[#allocation7 + $0x49] sm:$0xff] %vm10422_vm3, %v10394_v32  ;;  %v10397_v20 = vsel %vm10237_vm10, %v21219_v43, %v15094_v45  ;;  %v10570_v57 = vld [vmem:[#allocation7 + $0x39] sm:$0xff]  ;;  %v10318_v38 = vmul.f32 1.442695, %v10274_v27  ;;  %v10275_v43 = vmin.f32 %v21273_v0, 0.0  ;;  %vm10242_vm2 = vcmp.gt.f32.partialorder %v21254_v58, 0.0 }
 0x8fa   : > { %10486 = vst.msk [vmem:[#allocation7 + $0x69] sm:$0xff] %vm10422_vm3, %v10397_v20  ;;  %v10395_v29 = vsel %vm10235_vm11, %v21223_v51, %v15092_v55  ;;  %18366 = vpow2.f32 %v10322_v1  ;;  %v10568_v44 = vld [vmem:[#allocation7 + $0x21] sm:$0xff]  ;;  %v10324_v53 = vmul.f32 1.442695, %v10277_v26  ;;  %v21284_v51 = vpack.c.bf16 %v10570_v57, %v10569_v37 }
 0x8fb   : > { %10484 = vst.msk [vmem:[#allocation7 + $0x51] sm:$0xff] %vm10422_vm3, %v10395_v29  ;;  %v16855_v50 = vpop.f32.mrb[136].mxu0  ;;  %v21279_v18 = vpack.c.bf16 %v10568_v44, %v10567_v13  ;;  %18368 = vpow2.f32 %v10318_v38  ;;  %v10320_v34 = vmul.f32 1.442695, %v10275_v43  ;;  %vm10245_vm0 = vcmp.gt.f32.partialorder %v21259_v61, 0.0 }
 0x8fc   : > { %v18359_v60 = vpop.eup %18358  ;;  %v21282_v17 = vadd.f32 %v16855_v50, %v21202_v48  ;;  %v10096_v2 = vpop.f32.mrb[137].mxu0  ;;  %18370 = vpow2.f32 %v10324_v53  ;;  %vm10243_vm4 = vcmp.gt.f32.partialorder %v21273_v0, 0.0 }
 0x8fd   : > { %v18361_v33 = vpop.eup %18360  ;;  %v15097_v24 = vadd.f32 -1.0, %v18359_v60  ;;  %v21287_v15 = vadd.f32 %v21202_v48, %v10096_v2  ;;  %v16856_v35 = vpop.f32.mrb[138].mxu0  ;;  %16876 = vmatmul.mubr.msk.bf16.vlgmr.msra.gmra.mrb[152].mxu0 %vm10422_vm3, %v21279_v18  ;;  %18372 = vpow2.f32 %v10320_v34 }
 0x8fe   : > { %v15095_v62 = vadd.f32 -1.0, %v18361_v33  ;;  %v10280_v12 = vmin.f32 %v21282_v17, 0.0  ;;  %v21294_v31 = vadd.f32 %v16856_v35, %v21202_v48  ;;  %v10099_v30 = vpop.f32.mrb[139].mxu0  ;;  %16879 = vmatprep.mubr.msk.bf16.mxu0 %vm10422_vm3, %v21284_v51  ;;  %v18363_v23 = vpop.eup %18362  ;;  %vm10248_vm5 = vcmp.gt.f32.partialorder %v21282_v17, 0.0 }
 0x8ff   : > { %v10400_v8 = vsel %vm10240_vm12, %v21228_v19, %v15097_v24  ;;  %v10278_v25 = vmin.f32 %v21287_v15, 0.0  ;;  %v15098_v36 = vadd.f32 -1.0, %v18363_v23  ;;  %v18365_v22 = vpop.eup %18364  ;;  %v21307_v19 = vadd.f32 %v21202_v48, %v10099_v30  ;;  %v10573_v40 = vld [vmem:[#allocation7 + $0x61] sm:$0xff] }
 0x900   : > { %10489 = vst.msk [vmem:[#allocation7 + $0x91] sm:$0xff] %vm10422_vm3, %v10400_v8  ;;  %v10398_v41 = vsel %vm10238_vm13, %v21231_v21, %v15095_v62  ;;  %v10330_v49 = vmul.f32 1.442695, %v10280_v12  ;;  %v10281_v63 = vmin.f32 %v21294_v31, 0.0  ;;  %v15096_v11 = vadd.f32 -1.0, %v18365_v22  ;;  %v10571_v47 = vld [vmem:[#allocation7 + $0x49] sm:$0xff] }
 0x901   : > { %10487 = vst.msk [vmem:[#allocation7 + $0x79] sm:$0xff] %vm10422_vm3, %v10398_v41  ;;  %v10326_v52 = vmul.f32 1.442695, %v10278_v25  ;;  %v10574_v54 = vld [vmem:[#allocation7 + $0x69] sm:$0xff]  ;;  %v10401_v5 = vsel %vm10241_vm14, %v21235_v9, %v15098_v36  ;;  %v10279_v56 = vmin.f32 %v21307_v19, 0.0  ;;  %vm10246_vm6 = vcmp.gt.f32.partialorder %v21287_v15, 0.0 }
 0x902   : > { %18374 = vpow2.f32 %v10330_v49  ;;  %v10572_v21 = vld [vmem:[#allocation7 + $0x51] sm:$0xff]  ;;  %10490 = vst.msk [vmem:[#allocation7 + $0x99] sm:$0xff] %vm10422_vm3, %v10401_v5  ;;  %v10332_v59 = vmul.f32 1.442695, %v10281_v63  ;;  %v10399_v14 = vsel %vm10239_vm15, %v21243_v46, %v15096_v11  ;;  %v21319_v7 = vpack.c.bf16 %v10574_v54, %v10573_v40 }
 0x903   : > { %18376 = vpow2.f32 %v10326_v52  ;;  %v16859_v4 = vpop.f32.mrb[140].mxu0  ;;  %v21317_v3 = vpack.c.bf16 %v10572_v21, %v10571_v47  ;;  %10488 = vst.msk [vmem:[#allocation7 + $0x81] sm:$0xff] %vm10422_vm3, %v10399_v14  ;;  %v10328_v16 = vmul.f32 1.442695, %v10279_v56  ;;  %vm10249_vm7 = vcmp.gt.f32.partialorder %v21294_v31, 0.0 }
 0x904   : > { %v18367_v42 = vpop.eup %18366  ;;  %v21315_v10 = vadd.f32 %v16859_v4, %v21202_v48  ;;  %v10112_v9 = vpop.f32.mrb[141].mxu0  ;;  %18378 = vpow2.f32 %v10332_v59  ;;  %vm10247_vm8 = vcmp.gt.f32.partialorder %v21307_v19, 0.0 }
 0x905   : > { %v15101_v6 = vadd.f32 -1.0, %v18367_v42  ;;  %v21323_v45 = vadd.f32 %v21202_v48, %v10112_v9  ;;  %v16860_v32 = vpop.f32.mrb[142].mxu0  ;;  %v18369_v55 = vpop.eup %18368  ;;  %16880 = vmatmul.mubr.msk.bf16.gmra.mrb[156].mxu0 %vm10422_vm3, %v21317_v3  ;;  %18380 = vpow2.f32 %v10328_v16 }
 0x906   : > { %v10284_v46 = vmin.f32 %v21315_v10, 0.0  ;;  %v21328_v1 = vadd.f32 %v16860_v32, %v21202_v48  ;;  %v10115_v27 = vpop.f32.mrb[143].mxu0  ;;  %v18371_v20 = vpop.eup %18370  ;;  %v15099_v57 = vadd.f32 -1.0, %v18369_v55  ;;  %16883 = vmatprep.mubr.msk.bf16.mxu0 %vm10422_vm3, %v21319_v7  ;;  %vm10252_vm9 = vcmp.gt.f32.partialorder %v21315_v10, 0.0 }
 0x907   : > { %v10404_v26 = vsel %vm10244_vm1, %v21251_v28, %v15101_v6  ;;  %v15102_v29 = vadd.f32 -1.0, %v18371_v20  ;;  %v10282_v13 = vmin.f32 %v21323_v45, 0.0  ;;  %v18373_v44 = vpop.eup %18372  ;;  %v21342_v43 = vadd.f32 %v21202_v48, %v10115_v27  ;;  %v10577_v2 = vld [vmem:[#allocation7 + $0x91] sm:$0xff] }
 0x908   : > { %10493 = vst.msk [vmem:[#allocation7 + $0xc1] sm:$0xff] %vm10422_vm3, %v10404_v26  ;;  %v10338_v38 = vmul.f32 1.442695, %v10284_v46  ;;  %v10402_v53 = vsel %vm10242_vm2, %v21254_v58, %v15099_v57  ;;  %v10285_v28 = vmin.f32 %v21328_v1, 0.0  ;;  %v15100_v37 = vadd.f32 -1.0, %v18373_v44  ;;  %v10575_v4 = vld [vmem:[#allocation7 + $0x79] sm:$0xff] }
 0x909   : > { %10491 = vst.msk [vmem:[#allocation7 + $0xa9] sm:$0xff] %vm10422_vm3, %v10402_v53  ;;  %v10405_v50 = vsel %vm10245_vm0, %v21259_v61, %v15102_v29  ;;  %v10334_v60 = vmul.f32 1.442695, %v10282_v13  ;;  %v10578_v33 = vld [vmem:[#allocation7 + $0x99] sm:$0xff]  ;;  %v10283_v24 = vmin.f32 %v21342_v43, 0.0  ;;  %vm10250_vm10 = vcmp.gt.f32.partialorder %v21323_v45, 0.0 }
 0x90a   : > { %18382 = vpow2.f32 %v10338_v38  ;;  %10494 = vst.msk [vmem:[#allocation7 + $0xc9] sm:$0xff] %vm10422_vm3, %v10405_v50  ;;  %v10340_v58 = vmul.f32 1.442695, %v10285_v28  ;;  %v21349_v35 = vpack.c.bf16 %v10578_v33, %v10577_v2  ;;  %v10403_v12 = vsel %vm10243_vm4, %v21273_v0, %v15100_v37  ;;  %v10576_v52 = vld [vmem:[#allocation7 + $0x81] sm:$0xff]  ;;  %v18268_v2 = vld [vmem:[%s22426_s13 + $0x8] sm:$0xff]  }
 0x90b   : > { %v16863_v34 = vpop.f32.mrb[144].mxu0  ;;  %18384 = vpow2.f32 %v10334_v60  ;;  %10492 = vst.msk [vmem:[#allocation7 + $0xb1] sm:$0xff] %vm10422_vm3, %v10403_v12  ;;  %v10336_v25 = vmul.f32 1.442695, %v10283_v24  ;;  %v21374_v42 = vpack.c.bf16 %v10576_v52, %v10575_v4  ;;  %vm10253_vm11 = vcmp.gt.f32.partialorder %v21328_v1, 0.0 }
 0x90c   : > { %v18375_v62 = vpop.eup %18374  ;;  %v21353_v61 = vadd.f32 %v16863_v34, %v21202_v48  ;;  %v10128_v30 = vpop.f32.mrb[145].mxu0  ;;  %18386 = vpow2.f32 %v10340_v58  ;;  %16887 = vmatprep.mubr.msk.bf16.mxu1 %vm10422_vm3, %v21349_v35  ;;  %vm10251_vm12 = vcmp.gt.f32.partialorder %v21342_v43, 0.0 }
 0x90d   : > { %v18377_v23 = vpop.eup %18376  ;;  %v15105_v8 = vadd.f32 -1.0, %v18375_v62  ;;  %v21357_v41 = vadd.f32 %v21202_v48, %v10128_v30  ;;  %v16864_v36 = vpop.f32.mrb[146].mxu0  ;;  %18388 = vpow2.f32 %v10336_v25  ;;  %16884 = vmatmul.mubr.msk.bf16.gmra.mrb[160].mxu0 %vm10422_vm3, %v21374_v42 }
 0x90e   : > { %v15103_v0 = vadd.f32 -1.0, %v18377_v23  ;;  %v10288_v49 = vmin.f32 %v21353_v61, 0.0  ;;  %v21364_v22 = vadd.f32 %v16864_v36, %v21202_v48  ;;  %v10131_v63 = vpop.f32.mrb[147].mxu0  ;;  %v18379_v54 = vpop.eup %18378  ;;  %vm10256_vm13 = vcmp.gt.f32.partialorder %v21353_v61, 0.0 }
 0x90f   : > { %v10408_v5 = vsel %vm10248_vm5, %v21282_v17, %v15105_v8  ;;  %v10286_v11 = vmin.f32 %v21357_v41, 0.0  ;;  %v15106_v59 = vadd.f32 -1.0, %v18379_v54  ;;  %v18381_v47 = vpop.eup %18380  ;;  %v21377_v14 = vadd.f32 %v21202_v48, %v10131_v63  ;;  %v10581_v60 = vld [vmem:[#allocation7 + $0xc1] sm:$0xff] }
 0x910   : > { %10497 = vst.msk [vmem:[#allocation7 + $0xf1] sm:$0xff] %vm10422_vm3, %v10408_v5  ;;  %v10406_v21 = vsel %vm10246_vm6, %v21287_v15, %v15103_v0  ;;  %v10346_v56 = vmul.f32 1.442695, %v10288_v49  ;;  %v10289_v17 = vmin.f32 %v21364_v22, 0.0  ;;  %v15104_v6 = vadd.f32 -1.0, %v18381_v47  ;;  %v10579_v44 = vld [vmem:[#allocation7 + $0xa9] sm:$0xff] }
 0x911   : > { %10495 = vst.msk [vmem:[#allocation7 + $0xd9] sm:$0xff] %vm10422_vm3, %v10406_v21  ;;  %v10342_v40 = vmul.f32 1.442695, %v10286_v11  ;;  %v10409_v9 = vsel %vm10249_vm7, %v21294_v31, %v15106_v59  ;;  %v10287_v16 = vmin.f32 %v21377_v14, 0.0  ;;  %v10582_v26 = vld [vmem:[#allocation7 + $0xc9] sm:$0xff]  ;;  %vm10254_vm14 = vcmp.gt.f32.partialorder %v21357_v41, 0.0 }
 0x912   : > { %18390 = vpow2.f32 %v10346_v56  ;;  %10498 = vst.msk [vmem:[#allocation7 + $0xf9] sm:$0xff] %vm10422_vm3, %v10409_v9  ;;  %v10348_v15 = vmul.f32 1.442695, %v10289_v17  ;;  %v10407_v46 = vsel %vm10247_vm8, %v21307_v19, %v15104_v6  ;;  %v10580_v20 = vld [vmem:[#allocation7 + $0xb1] sm:$0xff]  ;;  %v21404_v34 = vpack.c.bf16 %v10582_v26, %v10581_v60 }
 0x913   : > { %18392 = vpow2.f32 %v10342_v40  ;;  %v16867_v32 = vpop.f32.mrb[148].mxu0  ;;  %10496 = vst.msk [vmem:[#allocation7 + $0xe1] sm:$0xff] %vm10422_vm3, %v10407_v46  ;;  %v10344_v29 = vmul.f32 1.442695, %v10287_v16  ;;  %v21398_v50 = vpack.c.bf16 %v10580_v20, %v10579_v44  ;;  %vm10257_vm15 = vcmp.gt.f32.partialorder %v21364_v22, 0.0 }
 0x914   : > { %v18383_v55 = vpop.eup %18382  ;;  %v21387_v27 = vadd.f32 %v16867_v32, %v21202_v48  ;;  %v10144_v31 = vpop.f32.mrb[149].mxu0  ;;  %18394 = vpow2.f32 %v10348_v15  ;;  %vm10255_vm1 = vcmp.gt.f32.partialorder %v21377_v14, 0.0 }
 0x915   : > { %v15109_v57 = vadd.f32 -1.0, %v18383_v55  ;;  %v21391_v38 = vadd.f32 %v21202_v48, %v10144_v31  ;;  %v16868_v13 = vpop.f32.mrb[150].mxu0  ;;  %v18385_v53 = vpop.eup %18384  ;;  %18396 = vpow2.f32 %v10344_v29  ;;  %16888 = vmatmul.mubr.msk.bf16.vlgmr.msra.gmra.mrb[88].mxu1 %vm10422_vm3, %v21398_v50 }
 0x916   : > { %v10292_v19 = vmin.f32 %v21387_v27, 0.0  ;;  %v21396_v28 = vadd.f32 %v16868_v13, %v21202_v48  ;;  %v10147_v37 = vpop.f32.mrb[151].mxu0  ;;  %v18387_v33 = vpop.eup %18386  ;;  %v15107_v24 = vadd.f32 -1.0, %v18385_v53  ;;  %16891 = vmatprep.mubr.msk.bf16.mxu1 %vm10422_vm3, %v21404_v34  ;;  %16908 = vmatpush3.bf16.msra.mxu1 %v21196_v39  ;;  %vm10260_vm2 = vcmp.gt.f32.partialorder %v21387_v27, 0.0 }
 0x917   : > { %v10412_v58 = vsel %vm10252_vm9, %v21315_v10, %v15109_v57  ;;  %v15110_v62 = vadd.f32 -1.0, %v18387_v33  ;;  %v10290_v30 = vmin.f32 %v21391_v38, 0.0  ;;  %v18389_v23 = vpop.eup %18388  ;;  %v21415_v25 = vadd.f32 %v21202_v48, %v10147_v37  ;;  %16909 = vmatprep.subr.bf16.mxu1 %v18268_v2  ;;  %v10585_v47 = vld [vmem:[#allocation7 + $0xf1] sm:$0xff] }
 0x918   : > { %10501 = vst.msk [vmem:[#allocation7 + $0x121] sm:$0xff] %vm10422_vm3, %v10412_v58  ;;  %v10354_v12 = vmul.f32 1.442695, %v10292_v19  ;;  %v10410_v8 = vsel %vm10250_vm10, %v21323_v45, %v15107_v24  ;;  %v10293_v10 = vmin.f32 %v21396_v28, 0.0  ;;  %v15108_v0 = vadd.f32 -1.0, %v18389_v23  ;;  %v18269_v45 = vld [vmem:[%s22426_s13 + $0x10] sm:$0xff]  }
 0x919   : > { %10499 = vst.msk [vmem:[#allocation7 + $0x109] sm:$0xff] %vm10422_vm3, %v10410_v8  ;;  %v10413_v36 = vsel %vm10253_vm11, %v21328_v1, %v15110_v62  ;;  %v10350_v49 = vmul.f32 1.442695, %v10290_v30  ;;  %v10291_v52 = vmin.f32 %v21415_v25, 0.0  ;;  %v10583_v1 = vld [vmem:[#allocation7 + $0xd9] sm:$0xff]  ;;  %vm10258_vm0 = vcmp.gt.f32.partialorder %v21391_v38, 0.0 }
 0x91a   : > { %18398 = vpow2.f32 %v10354_v12  ;;  %10502 = vst.msk [vmem:[#allocation7 + $0x129] sm:$0xff] %vm10422_vm3, %v10413_v36  ;;  %v10356_v48 = vmul.f32 1.442695, %v10293_v10  ;;  %v10411_v63 = vsel %vm10251_vm12, %v21342_v43, %v15108_v0  ;;  %v10584_v54 = vld [vmem:[#allocation7 + $0xe1] sm:$0xff]  ;;  %v10586_v5 = vld [vmem:[#allocation7 + $0xf9] sm:$0xff]  ;;  %16910 = vmatpush3.bf16.msra.mxu1 %v18268_v2  ;;  %vm10261_vm4 = vcmp.gt.f32.partialorder %v21396_v28, 0.0 }
 0x91b   : > { %18400 = vpow2.f32 %v10350_v49  ;;  %10500 = vst.msk [vmem:[#allocation7 + $0x111] sm:$0xff] %vm10422_vm3, %v10411_v63  ;;  %v10352_v59 = vmul.f32 1.442695, %v10291_v52  ;;  %v21430_v56 = vpack.c.bf16 %v10584_v54, %v10583_v1  ;;  %16911 = vmatprep.subr.bf16.mxu1 %v18269_v45  ;;  %v21436_v43 = vld [vmem:[%s22426_s13 + $0x30] sm:$0xff]   ;;  %v21440_v9 = vpack.c.bf16 %v10586_v5, %v10585_v47  ;;  %v10512_v23 = vld [vmem:[#allocation7 + $0x8] sm:$0xff]  ;;  %v10516_v49 = vld [vmem:[#allocation7 + $0x38] sm:$0xff] }
 0x91c   : > { %v18391_v39 = vpop.eup %18390  ;;  %18402 = vpow2.f32 %v10356_v48  ;;  %vm10259_vm5 = vcmp.gt.f32.partialorder %v21415_v25, 0.0  ;;  %v10514_v0 = vld [vmem:[#allocation7 + $0x20] sm:$0xff]  ;;  %v10515_v52 = vld [vmem:[#allocation7 + $0x30] sm:$0xff]  ;;  %v10520_v5 = vld [vmem:[#allocation7 + $0x68] sm:$0xff] }
 0x91d   : > { %v18393_v11 = vpop.eup %18392  ;;  %v15113_v21 = vadd.f32 -1.0, %v18391_v39  ;;  %18404 = vpow2.f32 %v10352_v59  ;;  %16892 = vmatmul.mubr.msk.bf16.gmra.mrb[92].mxu1 %vm10422_vm3, %v21430_v56  ;;  %v18271_v39 = vld [vmem:[%s22426_s13 + $0x38] sm:$0xff]   ;;  %v21494_v63 = vpack.c.bf16 %v10516_v49, %v10515_v52  ;;  %v18272_v1 = vld [vmem:[%s22426_s13 + $0x40] sm:$0xff]   ;;  %v10519_v59 = vld [vmem:[#allocation7 + $0x60] sm:$0xff] }
 0x91e   : > { %v15111_v4 = vadd.f32 -1.0, %v18393_v11  ;;  %v18395_v40 = vpop.eup %18394  ;;  %16895 = vmatprep.mubr.msk.bf16.mxu1 %vm10422_vm3, %v21440_v9  ;;  %16912 = vmatpush3.bf16.msra.mxu1 %v18269_v45  ;;  %v10513_v45 = vld [vmem:[#allocation7 + $0x18] sm:$0xff]  ;;  %v10518_v54 = vld [vmem:[#allocation7 + $0x50] sm:$0xff]  ;;  %v10517_v11 = vld [vmem:[#allocation7 + $0x48] sm:$0xff]  ;;  %v21511_v47 = vpack.c.bf16 %v10520_v5, %v10519_v59 }
 0x91f   : > { %v10416_v17 = vsel %vm10256_vm13, %v21353_v61, %v15113_v21  ;;  %v15114_v15 = vadd.f32 -1.0, %v18395_v40  ;;  %v18397_v16 = vpop.eup %18396  ;;  %16945 = vmatprep.subr.bf16.mxu1 %v21436_v43  ;;  %v21489_v48 = vpack.c.bf16 %v10514_v0, %v10513_v45  ;;  %v21504_v21 = vpack.c.bf16 %v10518_v54, %v10517_v11  ;;  %v10524_v40 = vld [vmem:[#allocation7 + $0x98] sm:$0xff]  ;;  %v11077_v52 = vld [vmem:[#allocation7 + $0x22] sm:$0xff] }
 0x920   : > { %10505 = vst.msk [vmem:[#allocation7 + $0x151] sm:$0xff] %vm10422_vm3, %v10416_v17  ;;  %v10414_v6 = vsel %vm10254_vm14, %v21357_v41, %v15111_v4  ;;  %v15112_v32 = vadd.f32 -1.0, %v18397_v16  ;;  %v10587_v46 = vld [vmem:[#allocation7 + $0x109] sm:$0xff]  ;;  %v21509_v4 = vld [vmem:[%s22426_s13 + $0x48] sm:$0xff]   ;;  %v18274_v5 = vld [vmem:[%s22426_s13 + $0x50] sm:$0xff]  }
 0x921   : > { %10503 = vst.msk [vmem:[#allocation7 + $0x139] sm:$0xff] %vm10422_vm3, %v10414_v6  ;;  %v10417_v61 = vsel %vm10257_vm15, %v21364_v22, %v15114_v15  ;;  %v10590_v20 = vld [vmem:[#allocation7 + $0x129] sm:$0xff]  ;;  %v10589_v22 = vld [vmem:[#allocation7 + $0x121] sm:$0xff]  ;;  %v10521_v17 = vld [vmem:[#allocation7 + $0x78] sm:$0xff] }
 0x922   : > { %10506 = vst.msk [vmem:[#allocation7 + $0x159] sm:$0xff] %vm10422_vm3, %v10417_v61  ;;  %v10415_v55 = vsel %vm10255_vm1, %v21377_v14, %v15112_v32  ;;  %v10588_v31 = vld [vmem:[#allocation7 + $0x111] sm:$0xff]  ;;  %v21460_v19 = vpack.c.bf16 %v10590_v20, %v10589_v22  ;;  %v10528_v32 = vld [vmem:[#allocation7 + $0xc8] sm:$0xff]  ;;  %v10530_v20 = vld [vmem:[#allocation7 + $0xe0] sm:$0xff] }
 0x923   : > { %10504 = vst.msk [vmem:[#allocation7 + $0x141] sm:$0xff] %vm10422_vm3, %v10415_v55  ;;  %v21456_v57 = vpack.c.bf16 %v10588_v31, %v10587_v46  ;;  %v10523_v15 = vld [vmem:[#allocation7 + $0x90] sm:$0xff]  ;;  %v10527_v46 = vld [vmem:[#allocation7 + $0xc0] sm:$0xff]  ;;  %v18275_v59 = vld [vmem:[%s22426_s13 + $0x58] sm:$0xff]  }
 0x924   : > { %v18399_v41 = vpop.eup %18398  ;;  %v21520_v16 = vpack.c.bf16 %v10524_v40, %v10523_v15  ;;  %v10526_v61 = vld [vmem:[#allocation7 + $0xb0] sm:$0xff]  ;;  %v21528_v31 = vpack.c.bf16 %v10528_v32, %v10527_v46  ;;  %v11076_v45 = vld [vmem:[#allocation7 + $0x1a] sm:$0xff]  ;;  %v11085_v46 = vld [vmem:[#allocation7 + $0x82] sm:$0xff] }
 0x925   : > { %v15117_v26 = vadd.f32 -1.0, %v18399_v41  ;;  %v18401_v29 = vpop.eup %18400  ;;  %16896 = vmatmul.mubr.msk.bf16.gmra.mrb[96].mxu1 %vm10422_vm3, %v21456_v57  ;;  %v10525_v41 = vld [vmem:[#allocation7 + $0xa8] sm:$0xff]  ;;  %v21563_v54 = vpack.c.bf16 %v11077_v52, %v11076_v45  ;;  %v11081_v40 = vld [vmem:[#allocation7 + $0x52] sm:$0xff] }
 0x926   : > { %v18403_v13 = vpop.eup %18402  ;;  %v15115_v53 = vadd.f32 -1.0, %v18401_v29  ;;  %16899 = vmatprep.mubr.msk.bf16.mxu1 %vm10422_vm3, %v21460_v19  ;;  %v21526_v55 = vpack.c.bf16 %v10526_v61, %v10525_v41  ;;  %v10529_v29 = vld [vmem:[#allocation7 + $0xd8] sm:$0xff]  ;;  %v11083_v15 = vld [vmem:[#allocation7 + $0x6a] sm:$0xff]  ;;  %v11098_v52 = vld [vmem:[#allocation7 + $0x122] sm:$0xff] }
 0x927   : > { %v10420_v44 = vsel %vm10260_vm2, %v21387_v27, %v15117_v26  ;;  %v15118_v14 = vadd.f32 -1.0, %v18403_v13  ;;  %v18405_v37 = vpop.eup %18404  ;;  %v10593_v12 = vld [vmem:[#allocation7 + $0x151] sm:$0xff]  ;;  %v21534_v22 = vpack.c.bf16 %v10530_v20, %v10529_v29 }
 0x928   : > { %10509 = vst.msk [vmem:[#allocation7 + $0x181] sm:$0xff] %vm10422_vm3, %v10420_v44  ;;  %v10418_v60 = vsel %vm10258_vm0, %v21391_v38, %v15115_v53  ;;  %v15116_v2 = vadd.f32 -1.0, %v18405_v37  ;;  %v10591_v58 = vld [vmem:[#allocation7 + $0x139] sm:$0xff]  ;;  %v10531_v13 = vld [vmem:[#allocation7 + $0xf0] sm:$0xff]  ;;  %v10533_v37 = vld [vmem:[#allocation7 + $0x108] sm:$0xff] }
 0x929   : > { %10507 = vst.msk [vmem:[#allocation7 + $0x169] sm:$0xff] %vm10422_vm3, %v10418_v60  ;;  %v10421_v27 = vsel %vm10261_vm4, %v21396_v28, %v15118_v14  ;;  %v10594_v62 = vld [vmem:[#allocation7 + $0x159] sm:$0xff]  ;;  %v10534_v53 = vld [vmem:[#allocation7 + $0x110] sm:$0xff]  ;;  %v10536_v14 = vld [vmem:[#allocation7 + $0x128] sm:$0xff] }
 0x92a   : > { %10510 = vst.msk [vmem:[#allocation7 + $0x189] sm:$0xff] %vm10422_vm3, %v10421_v27  ;;  %v10419_v33 = vsel %vm10259_vm5, %v21415_v25, %v15116_v2  ;;  %v10592_v24 = vld [vmem:[#allocation7 + $0x141] sm:$0xff]  ;;  %v21478_v30 = vpack.c.bf16 %v10594_v62, %v10593_v12  ;;  %v10532_v26 = vld [vmem:[#allocation7 + $0xf8] sm:$0xff]  ;;  %v21542_v60 = vpack.c.bf16 %v10534_v53, %v10533_v37  ;;  %v10539_v12 = vld [vmem:[#allocation7 + $0x150] sm:$0xff] }
 0x92b   : > { %10508 = vst.msk [vmem:[#allocation7 + $0x171] sm:$0xff] %vm10422_vm3, %v10419_v33  ;;  %v21476_v38 = vpack.c.bf16 %v10592_v24, %v10591_v58  ;;  %v10511_v28 = vld [vmem:[#allocation7] sm:$0xff]  ;;  %v21536_v44 = vpack.c.bf16 %v10532_v26, %v10531_v13  ;;  %v10540_v58 = vld [vmem:[#allocation7 + $0x158] sm:$0xff]  ;;  %v18276_v32 = vld [vmem:[%s22426_s13 + $0x60] sm:$0xff]  }
 0x92c   : > { %v10543_v36 = vpack.c.bf16 %v10512_v23, %v10511_v28  ;;  %v10535_v27 = vld [vmem:[#allocation7 + $0x120] sm:$0xff]  ;;  %v10537_v24 = vld [vmem:[#allocation7 + $0x138] sm:$0xff]  ;;  %v21552_v28 = vpack.c.bf16 %v10540_v58, %v10539_v12  ;;  %v11088_v53 = vld [vmem:[#allocation7 + $0xaa] sm:$0xff] }
 0x92d   : > { %16900 = vmatmul.mubr.msk.bf16.gmra.mrb[100].mxu1 %vm10422_vm3, %v21476_v38  ;;  %v21544_v2 = vpack.c.bf16 %v10536_v14, %v10535_v27  ;;  %v10538_v33 = vld [vmem:[#allocation7 + $0x140] sm:$0xff]  ;;  %v11086_v20 = vld [vmem:[#allocation7 + $0x92] sm:$0xff]  ;;  %v11091_v27 = vld [vmem:[#allocation7 + $0xca] sm:$0xff] }
 0x92e   : > { %16903 = vmatprep.mubr.msk.bf16.mxu1 %vm10422_vm3, %v21478_v30  ;;  %v21550_v62 = vpack.c.bf16 %v10538_v33, %v10537_v24  ;;  %v11074_v23 = vld [vmem:[#allocation7 + $0x2] sm:$0xff]  ;;  %v11087_v26 = vld [vmem:[#allocation7 + $0x9a] sm:$0xff]  ;;  %v11089_v14 = vld [vmem:[#allocation7 + $0xb2] sm:$0xff] }
 0x92f   : > { %v21591_v13 = vpack.c.bf16 %v11087_v26, %v11086_v20  ;;  %v11090_v37 = vld [vmem:[#allocation7 + $0xc2] sm:$0xff]  ;;  %v21597_v33 = vpack.c.bf16 %v11089_v14, %v11088_v53  ;;  %v11092_v24 = vld [vmem:[#allocation7 + $0xda] sm:$0xff]  ;;  %v11097_v45 = vld [vmem:[#allocation7 + $0x112] sm:$0xff] }
 0x930   : > { %v10595_v8 = vld [vmem:[#allocation7 + $0x169] sm:$0xff]  ;;  %v21599_v58 = vpack.c.bf16 %v11091_v27, %v11090_v37  ;;  %v18277_v53 = vld [vmem:[%s22426_s13 + $0x68] sm:$0xff]   ;;  %v18278_v14 = vld [vmem:[%s22426_s13 + $0x70] sm:$0xff]  }
 0x931   : > { %v11093_v12 = vld [vmem:[#allocation7 + $0xe2] sm:$0xff] }
 0x932   : > { %v10596_v10 = vld [vmem:[#allocation7 + $0x171] sm:$0xff] }
 0x933   : > { %v21484_v25 = vpack.c.bf16 %v10596_v10, %v10595_v8  ;;  %v11075_v8 = vld [vmem:[#allocation7 + $0xa] sm:$0xff]  ;;  %v11105_v20 = vld [vmem:[#allocation7 + $0x172] sm:$0xff] }
 0x934   : > { %v10542_v10 = vld [vmem:[#allocation7 + $0x170] sm:$0xff]  ;;  %v11106_v0 = vpack.c.bf16 %v11075_v8, %v11074_v23  ;;  %v11095_v8 = vld [vmem:[#allocation7 + $0xfa] sm:$0xff] }
 0x935   : > { %16904 = vmatmul.mubr.msk.bf16.gmra.mrb[104].mxu1 %vm10422_vm3, %v21484_v25  ;;  %v11094_v23 = vld [vmem:[#allocation7 + $0xf2] sm:$0xff] }
 0x936   : > { %16913 = vmatprep.mubr.msk.bf16.mxu1 %vm10422_vm3, %v10543_v36  ;;  %v10541_v36 = vld [vmem:[#allocation7 + $0x168] sm:$0xff] }
 0x937   : > { %v21558_v49 = vpack.c.bf16 %v10542_v10, %v10541_v36  ;;  %v21605_v10 = vpack.c.bf16 %v11093_v12, %v11092_v24  ;;  %v21607_v36 = vpack.c.bf16 %v11095_v8, %v11094_v23 }
 0x93d   : > { %16914 = vmatmul.mubr.msk.bf16.vlgmr.msra.gmra.mrb[108].mxu1 %vm10422_vm3, %v21489_v48 }
 0x93e   : > { %16917 = vmatprep.mubr.msk.bf16.mxu1 %vm10422_vm3, %v21494_v63  ;;  %16946 = vmatpush3.bf16.msra.mxu1 %v21436_v43  ;;  %v10522_v43 = vld [vmem:[#allocation7 + $0x80] sm:$0xff] }
 0x93f   : > { %16947 = vmatprep.subr.bf16.mxu1 %v18271_v39  ;;  %v21518_v6 = vpack.c.bf16 %v10522_v43, %v10521_v17  ;;  %v11080_v43 = vld [vmem:[#allocation7 + $0x4a] sm:$0xff]  ;;  %v11082_v17 = vld [vmem:[#allocation7 + $0x62] sm:$0xff] }
 0x940   : > { %v21578_v61 = vpack.c.bf16 %v11081_v40, %v11080_v43  ;;  %v21583_v41 = vpack.c.bf16 %v11083_v15, %v11082_v17  ;;  %v11101_v43 = vld [vmem:[#allocation7 + $0x142] sm:$0xff]  ;;  %v11102_v40 = vld [vmem:[#allocation7 + $0x152] sm:$0xff]  ;;  %v11103_v17 = vld [vmem:[#allocation7 + $0x15a] sm:$0xff] }
 0x942   : > { %16948 = vmatpush3.bf16.msra.mxu1 %v18271_v39  ;;  %v11078_v39 = vld [vmem:[#allocation7 + $0x32] sm:$0xff] }
 0x943   : > { %16949 = vmatprep.subr.bf16.mxu1 %v18272_v1 }
 0x945   : > { %16918 = vmatmul.mubr.msk.bf16.gmra.mrb[112].mxu1 %vm10422_vm3, %v21504_v21 }
 0x946   : > { %16921 = vmatprep.mubr.msk.bf16.mxu1 %vm10422_vm3, %v21511_v47  ;;  %16950 = vmatpush3.bf16.msra.mxu1 %v18272_v1  ;;  %v11079_v1 = vld [vmem:[#allocation7 + $0x3a] sm:$0xff] }
 0x947   : > { %16983 = vmatprep.subr.bf16.mxu1 %v21509_v4  ;;  %v21568_v11 = vpack.c.bf16 %v11079_v1, %v11078_v39  ;;  %v11099_v39 = vld [vmem:[#allocation7 + $0x12a] sm:$0xff] }
 0x94d   : > { %16922 = vmatmul.mubr.msk.bf16.gmra.mrb[116].mxu1 %vm10422_vm3, %v21518_v6 }
 0x94e   : > { %16925 = vmatprep.mubr.msk.bf16.mxu1 %vm10422_vm3, %v21520_v16 }
 0x955   : > { %16926 = vmatmul.mubr.msk.bf16.gmra.mrb[88].mxu1 %vm10422_vm3, %v21526_v55 }
 0x956   : > { %16929 = vmatprep.mubr.msk.bf16.mxu1 %vm10422_vm3, %v21528_v31 }
 0x95d   : > { %16930 = vmatmul.mubr.msk.bf16.gmra.mrb[92].mxu1 %vm10422_vm3, %v21534_v22 }
 0x95e   : > { %16933 = vmatprep.mubr.msk.bf16.mxu1 %vm10422_vm3, %v21536_v44 }
 0x965   : > { %16934 = vmatmul.mubr.msk.bf16.gmra.mrb[96].mxu1 %vm10422_vm3, %v21542_v60 }
 0x966   : > { %16937 = vmatprep.mubr.msk.bf16.mxu1 %vm10422_vm3, %v21544_v2 }
 0x96d   : > { %16938 = vmatmul.mubr.msk.bf16.gmra.mrb[100].mxu1 %vm10422_vm3, %v21550_v62 }
 0x96e   : > { %16941 = vmatprep.mubr.msk.bf16.mxu1 %vm10422_vm3, %v21552_v28 }
 0x975   : > { %16942 = vmatmul.mubr.msk.bf16.gmra.mrb[104].mxu1 %vm10422_vm3, %v21558_v49 }
 0x976   : > { %16951 = vmatprep.mubr.msk.bf16.mxu1 %vm10422_vm3, %v11106_v0  ;;  %v11096_v0 = vld [vmem:[#allocation7 + $0x10a] sm:$0xff] }
 0x977   : > { %v21613_v1 = vpack.c.bf16 %v11097_v45, %v11096_v0 }
 0x97d   : > { %16952 = vmatmul.mubr.msk.bf16.vlgmr.msra.gmra.mrb[108].mxu1 %vm10422_vm3, %v21563_v54 }
 0x97e   : > { %16955 = vmatprep.mubr.msk.bf16.mxu1 %vm10422_vm3, %v21568_v11  ;;  %16984 = vmatpush3.bf16.msra.mxu1 %v21509_v4  ;;  %v11084_v4 = vld [vmem:[#allocation7 + $0x7a] sm:$0xff] }
 0x97f   : > { %16985 = vmatprep.subr.bf16.mxu1 %v18274_v5  ;;  %v21589_v29 = vpack.c.bf16 %v11085_v46, %v11084_v4  ;;  %v21623_v4 = vpack.c.bf16 %v11103_v17, %v11102_v40  ;;  %v11104_v46 = vld [vmem:[#allocation7 + $0x16a] sm:$0xff]  ;;  %v11418_v40 = vld [vmem:[#allocation7 + $0x180] sm:$0xff] }
 0x980   : > { %v21629_v26 = vpack.c.bf16 %v11105_v20, %v11104_v46  ;;  %v18280_v46 = vld [vmem:[%s22426_s13 + $0x80] sm:$0xff]   ;;  %v18281_v20 = vld [vmem:[%s22426_s13 + $0x88] sm:$0xff]  }
 0x982   : > { %16986 = vmatpush3.bf16.msra.mxu1 %v18274_v5  ;;  %v21615_v5 = vpack.c.bf16 %v11099_v39, %v11098_v52 }
 0x983   : > { %16987 = vmatprep.subr.bf16.mxu1 %v18275_v59 }
 0x985   : > { %16956 = vmatmul.mubr.msk.bf16.gmra.mrb[112].mxu1 %vm10422_vm3, %v21578_v61 }
 0x986   : > { %16959 = vmatprep.mubr.msk.bf16.mxu1 %vm10422_vm3, %v21583_v41  ;;  %16988 = vmatpush3.bf16.msra.mxu1 %v18275_v59  ;;  %v11100_v59 = vld [vmem:[#allocation7 + $0x13a] sm:$0xff] }
 0x987   : > { %17021 = vmatprep.subr.bf16.mxu1 %v18276_v32  ;;  %v21621_v15 = vpack.c.bf16 %v11101_v43, %v11100_v59  ;;  %v11419_v43 = vld [vmem:[#allocation7 + $0x188] sm:$0xff] }
 0x988   : > { %v21696_v17 = vpack.c.bf16 %v11419_v43, %v11418_v40  ;;  %v12656_v43 = vld [vmem:[#allocation7 + $0xb1] sm:$0xff]  ;;  %v12658_v40 = vld [vmem:[#allocation7 + $0xc9] sm:$0xff] }
 0x98d   : > { %16960 = vmatmul.mubr.msk.bf16.gmra.mrb[116].mxu1 %vm10422_vm3, %v21589_v29 }
 0x98e   : > { %16963 = vmatprep.mubr.msk.bf16.mxu1 %vm10422_vm3, %v21591_v13 }
 0x995   : > { %16964 = vmatmul.mubr.msk.bf16.gmra.mrb[88].mxu1 %vm10422_vm3, %v21597_v33 }
 0x996   : > { %16967 = vmatprep.mubr.msk.bf16.mxu1 %vm10422_vm3, %v21599_v58 }
 0x99d   : > { %16968 = vmatmul.mubr.msk.bf16.gmra.mrb[92].mxu1 %vm10422_vm3, %v21605_v10 }
 0x99e   : > { %16971 = vmatprep.mubr.msk.bf16.mxu1 %vm10422_vm3, %v21607_v36 }
 0x9a5   : > { %16972 = vmatmul.mubr.msk.bf16.gmra.mrb[96].mxu1 %vm10422_vm3, %v21613_v1 }
 0x9a6   : > { %16975 = vmatprep.mubr.msk.bf16.mxu1 %vm10422_vm3, %v21615_v5 }
 0x9ad   : > { %16976 = vmatmul.mubr.msk.bf16.gmra.mrb[100].mxu1 %vm10422_vm3, %v21621_v15 }
 0x9ae   : > { %16979 = vmatprep.mubr.msk.bf16.mxu1 %vm10422_vm3, %v21623_v4 }
 0x9b5   : > { %16980 = vmatmul.mubr.msk.bf16.gmra.mrb[104].mxu1 %vm10422_vm3, %v21629_v26 }
 0x9b6   : > { %16989 = vmatprep.mubr.msk.bf16.mxu1 %vm10422_vm3, %v21489_v48  ;;  %v18279_v48 = vld [vmem:[%s22426_s13 + $0x78] sm:$0xff]  }
 0x9bd   : > { %16990 = vmatmul.mubr.msk.bf16.vlgmr.msra.gmra.mrb[108].mxu1 %vm10422_vm3, %v21494_v63 }
 0x9be   : > { %16993 = vmatprep.mubr.msk.bf16.mxu1 %vm10422_vm3, %v21504_v21  ;;  %17022 = vmatpush3.bf16.msra.mxu1 %v18276_v32 }
 0x9bf   : > { %17023 = vmatprep.subr.bf16.mxu1 %v18277_v53 }
 0x9c2   : > { %17024 = vmatpush3.bf16.msra.mxu1 %v18277_v53 }
 0x9c3   : > { %17025 = vmatprep.subr.bf16.mxu1 %v18278_v14 }
 0x9c5   : > { %16994 = vmatmul.mubr.msk.bf16.gmra.mrb[112].mxu1 %vm10422_vm3, %v21511_v47 }
 0x9c6   : > { %16997 = vmatprep.mubr.msk.bf16.mxu1 %vm10422_vm3, %v21518_v6  ;;  %17026 = vmatpush3.bf16.msra.mxu1 %v18278_v14  ;;  %v12653_v14 = vld [vmem:[#allocation7 + $0x91] sm:$0xff] }
 0x9c7   : > { %17059 = vmatprep.subr.bf16.mxu1 %v18279_v48 }
 0x9cd   : > { %16998 = vmatmul.mubr.msk.bf16.gmra.mrb[116].mxu1 %vm10422_vm3, %v21520_v16 }
 0x9ce   : > { %17001 = vmatprep.mubr.msk.bf16.mxu1 %vm10422_vm3, %v21526_v55 }
 0x9d0   : > { %v21654_v32 = vpop.f32.mrb[152].mxu0 }
 0x9d1   : > { %v21658_v37 = vpop.f32.mrb[153].mxu0 }
 0x9d2   : > { %v21660_v27 = vpop.f32.mrb[154].mxu0 }
 0x9d3   : > { %v21662_v24 = vpop.f32.mrb[155].mxu0 }
 0x9d5   : > { %17002 = vmatmul.mubr.msk.bf16.gmra.mrb[88].mxu1 %vm10422_vm3, %v21528_v31 }
 0x9d6   : > { %17005 = vmatprep.mubr.msk.bf16.mxu1 %vm10422_vm3, %v21534_v22 }
 0x9d8   : > { %v21668_v12 = vpop.f32.mrb[156].mxu0 }
 0x9d9   : > { %v21670_v23 = vpop.f32.mrb[157].mxu0 }
 0x9da   : > { %v21672_v8 = vpop.f32.mrb[158].mxu0 }
 0x9db   : > { %v21674_v0 = vpop.f32.mrb[159].mxu0 }
 0x9dd   : > { %17006 = vmatmul.mubr.msk.bf16.gmra.mrb[92].mxu1 %vm10422_vm3, %v21536_v44 }
 0x9de   : > { %17009 = vmatprep.mubr.msk.bf16.mxu1 %vm10422_vm3, %v21542_v60 }
 0x9e0   : > { %v21680_v45 = vpop.f32.mrb[160].mxu0 }
 0x9e1   : > { %v21682_v52 = vpop.f32.mrb[161].mxu0 }
 0x9e2   : > { %v21684_v39 = vpop.f32.mrb[162].mxu0 }
 0x9e3   : > { %v21688_v59 = vpop.f32.mrb[163].mxu0 }
 0x9e5   : > { %17010 = vmatmul.mubr.msk.bf16.gmra.mrb[96].mxu1 %vm10422_vm3, %v21544_v2 }
 0x9e6   : > { %17013 = vmatprep.mubr.msk.bf16.mxu1 %vm10422_vm3, %v21550_v62 }
 0x9ed   : > { %17014 = vmatmul.mubr.msk.bf16.gmra.mrb[100].mxu1 %vm10422_vm3, %v21552_v28 }
 0x9ee   : > { %17017 = vmatprep.mubr.msk.bf16.mxu1 %vm10422_vm3, %v21558_v49 }
 0x9f5   : > { %17018 = vmatmul.mubr.msk.bf16.gmra.mrb[104].mxu1 %vm10422_vm3, %v21696_v17 }
 0x9f6   : > { %17027 = vmatprep.mubr.msk.bf16.mxu1 %vm10422_vm3, %v21279_v18  ;;  %v18282_v18 = vld [vmem:[%s22426_s13 + $0x90] sm:$0xff]  }
 0x9fd   : > { %17028 = vmatmul.mubr.msk.bf16.vlgmr.msra.gmra.mrb[108].mxu1 %vm10422_vm3, %v21284_v51  ;;  %v11733_v51 = vld [vmem:[#allocation7 + $0x189] sm:$0xff] }
 0x9fe   : > { %17031 = vmatprep.mubr.msk.bf16.mxu1 %vm10422_vm3, %v21317_v3  ;;  %17060 = vmatpush3.bf16.msra.mxu1 %v18279_v48  ;;  %v11732_v3 = vld [vmem:[#allocation7 + $0x181] sm:$0xff] }
 0x9ff   : > { %17061 = vmatprep.subr.bf16.mxu1 %v18280_v46 }
 0xa02   : > { %17062 = vmatpush3.bf16.msra.mxu1 %v18280_v46 }
 0xa03   : > { %17063 = vmatprep.subr.bf16.mxu1 %v18281_v20 }
 0xa05   : > { %17032 = vmatmul.mubr.msk.bf16.gmra.mrb[112].mxu1 %vm10422_vm3, %v21319_v7  ;;  %v21739_v7 = vpack.c.bf16 %v11733_v51, %v11732_v3  ;;  %v12660_v51 = vld [vmem:[#allocation7 + $0xe1] sm:$0xff]  ;;  %v12662_v3 = vld [vmem:[#allocation7 + $0xf9] sm:$0xff] }
 0xa06   : > { %17035 = vmatprep.mubr.msk.bf16.mxu1 %vm10422_vm3, %v21374_v42  ;;  %17064 = vmatpush3.bf16.msra.mxu1 %v18281_v20  ;;  %v18284_v42 = vld [vmem:[%s22426_s13 + $0xa0] sm:$0xff]   ;;  %v12657_v20 = vld [vmem:[#allocation7 + $0xc1] sm:$0xff] }
 0xa07   : > { %17097 = vmatprep.subr.bf16.mxu1 %v18282_v18 }
 0xa0d   : > { %17036 = vmatmul.mubr.msk.bf16.gmra.mrb[116].mxu1 %vm10422_vm3, %v21349_v35  ;;  %v18283_v35 = vld [vmem:[%s22426_s13 + $0x98] sm:$0xff]  }
 0xa0e   : > { %17039 = vmatprep.mubr.msk.bf16.mxu1 %vm10422_vm3, %v21398_v50  ;;  %v18285_v50 = vld [vmem:[%s22426_s13 + $0xa8] sm:$0xff]  }
 0xa15   : > { %17040 = vmatmul.mubr.msk.bf16.gmra.mrb[88].mxu1 %vm10422_vm3, %v21404_v34  ;;  %v12046_v34 = vld [vmem:[#allocation7 + $0x182] sm:$0xff] }
 0xa16   : > { %17043 = vmatprep.mubr.msk.bf16.mxu1 %vm10422_vm3, %v21430_v56  ;;  %v12047_v56 = vld [vmem:[#allocation7 + $0x18a] sm:$0xff] }
 0xa1d   : > { %17044 = vmatmul.mubr.msk.bf16.gmra.mrb[92].mxu1 %vm10422_vm3, %v21440_v9  ;;  %v21782_v9 = vpack.c.bf16 %v12047_v56, %v12046_v34  ;;  %v12664_v56 = vld [vmem:[#allocation7 + $0x111] sm:$0xff] }
 0xa1e   : > { %17047 = vmatprep.mubr.msk.bf16.mxu1 %vm10422_vm3, %v21456_v57  ;;  %v18286_v57 = vld [vmem:[%s22426_s13 + $0xb0] sm:$0xff]  }
 0xa25   : > { %17048 = vmatmul.mubr.msk.bf16.gmra.mrb[96].mxu1 %vm10422_vm3, %v21460_v19  ;;  %v18287_v19 = vld [vmem:[%s22426_s13 + $0xb8] sm:$0xff]  }
 0xa26   : > { %17051 = vmatprep.mubr.msk.bf16.mxu1 %vm10422_vm3, %v21476_v38  ;;  %v18288_v38 = vld [vmem:[%s22426_s13 + $0xc0] sm:$0xff]  }
 0xa2d   : > { %17052 = vmatmul.mubr.msk.bf16.gmra.mrb[100].mxu1 %vm10422_vm3, %v21478_v30  ;;  %v12361_v30 = vld [vmem:[#allocation7 + $0x198] sm:$0xff] }
 0xa2e   : > { %17055 = vmatprep.mubr.msk.bf16.mxu1 %vm10422_vm3, %v21484_v25  ;;  %v12362_v25 = vld [vmem:[#allocation7 + $0x1a0] sm:$0xff] }
 0xa35   : > { %17056 = vmatmul.mubr.msk.bf16.gmra.mrb[104].mxu1 %vm10422_vm3, %v21739_v7 }
 0xa36   : > { %17065 = vmatprep.mubr.msk.bf16.mxu1 %vm10422_vm3, %v21563_v54  ;;  %v12651_v54 = vld [vmem:[#allocation7 + $0x79] sm:$0xff] }
 0xa3d   : > { %17066 = vmatmul.mubr.msk.bf16.vlgmr.msra.gmra.mrb[108].mxu1 %vm10422_vm3, %v21568_v11 }
 0xa3e   : > { %17069 = vmatprep.mubr.msk.bf16.mxu1 %vm10422_vm3, %v21578_v61  ;;  %17098 = vmatpush3.bf16.msra.mxu1 %v18282_v18  ;;  %v12683_v18 = vpack.c.bf16 %v12658_v40, %v12657_v20 }
 0xa3f   : > { %17099 = vmatprep.subr.bf16.mxu1 %v18283_v35 }
 0xa42   : > { %17100 = vmatpush3.bf16.msra.mxu1 %v18283_v35  ;;  %v12659_v35 = vld [vmem:[#allocation7 + $0xd9] sm:$0xff] }
 0xa43   : > { %17101 = vmatprep.subr.bf16.mxu1 %v18284_v42 }
 0xa45   : > { %17070 = vmatmul.mubr.msk.bf16.gmra.mrb[112].mxu1 %vm10422_vm3, %v21583_v41 }
 0xa46   : > { %17073 = vmatprep.mubr.msk.bf16.mxu1 %vm10422_vm3, %v21589_v29  ;;  %17102 = vmatpush3.bf16.msra.mxu1 %v18284_v42  ;;  %v12684_v42 = vpack.c.bf16 %v12660_v51, %v12659_v35 }
 0xa47   : > { %17135 = vmatprep.subr.bf16.mxu1 %v18285_v50 }
 0xa4d   : > { %17074 = vmatmul.mubr.msk.bf16.gmra.mrb[116].mxu1 %vm10422_vm3, %v21591_v13 }
 0xa4e   : > { %17077 = vmatprep.mubr.msk.bf16.mxu1 %vm10422_vm3, %v21597_v33 }
 0xa55   : > { %17078 = vmatmul.mubr.msk.bf16.gmra.mrb[88].mxu1 %vm10422_vm3, %v21599_v58 }
 0xa56   : > { %17081 = vmatprep.mubr.msk.bf16.mxu1 %vm10422_vm3, %v21605_v10 }
 0xa5d   : > { %17082 = vmatmul.mubr.msk.bf16.gmra.mrb[92].mxu1 %vm10422_vm3, %v21607_v36 }
 0xa5e   : > { %17085 = vmatprep.mubr.msk.bf16.mxu1 %vm10422_vm3, %v21613_v1 }
 0xa65   : > { %17086 = vmatmul.mubr.msk.bf16.gmra.mrb[96].mxu1 %vm10422_vm3, %v21615_v5 }
 0xa66   : > { %17089 = vmatprep.mubr.msk.bf16.mxu1 %vm10422_vm3, %v21621_v15 }
 0xa6d   : > { %17090 = vmatmul.mubr.msk.bf16.gmra.mrb[100].mxu1 %vm10422_vm3, %v21623_v4 }
 0xa6e   : > { %17093 = vmatprep.mubr.msk.bf16.mxu1 %vm10422_vm3, %v21629_v26 }
 0xa75   : > { %17094 = vmatmul.mubr.msk.bf16.gmra.mrb[104].mxu1 %vm10422_vm3, %v21782_v9 }
 0xa76   : > { %17103 = vmatprep.mubr.msk.bf16.mxu1 %vm10422_vm3, %v21494_v63  ;;  %v12378_v63 = vpack.c.bf16 %v12362_v25, %v12361_v30  ;;  %v12665_v30 = vld [vmem:[#allocation7 + $0x121] sm:$0xff] }
 0xa7d   : > { %17104 = vmatmul.mubr.msk.bf16.vlgmr.msra.gmra.mrb[108].mxu1 %vm10422_vm3, %v21504_v21  ;;  %v12646_v21 = vld [vmem:[#allocation7 + $0x39] sm:$0xff] }
 0xa7e   : > { %17107 = vmatprep.mubr.msk.bf16.mxu1 %vm10422_vm3, %v21511_v47  ;;  %17136 = vmatpush3.bf16.msra.mxu1 %v18285_v50  ;;  %v12645_v47 = vld [vmem:[#allocation7 + $0x31] sm:$0xff] }
 0xa7f   : > { %17137 = vmatprep.subr.bf16.mxu1 %v18286_v57  ;;  %v12661_v50 = vld [vmem:[#allocation7 + $0xf1] sm:$0xff] }
 0xa80   : > { %v12685_v34 = vpack.c.bf16 %v12662_v3, %v12661_v50 }
 0xa82   : > { %17138 = vmatpush3.bf16.msra.mxu1 %v18286_v57  ;;  %v12666_v57 = vld [vmem:[#allocation7 + $0x129] sm:$0xff] }
 0xa83   : > { %17139 = vmatprep.subr.bf16.mxu1 %v18287_v19  ;;  %v12687_v25 = vpack.c.bf16 %v12666_v57, %v12665_v30 }
 0xa85   : > { %17108 = vmatmul.mubr.msk.bf16.gmra.mrb[112].mxu1 %vm10422_vm3, %v21518_v6  ;;  %v12677_v6 = vpack.c.bf16 %v12646_v21, %v12645_v47  ;;  %v12670_v21 = vld [vmem:[#allocation7 + $0x159] sm:$0xff] }
 0xa86   : > { %17111 = vmatprep.mubr.msk.bf16.mxu1 %vm10422_vm3, %v21520_v16  ;;  %17140 = vmatpush3.bf16.msra.mxu1 %v18287_v19  ;;  %v12648_v16 = vld [vmem:[#allocation7 + $0x51] sm:$0xff]  ;;  %v12663_v19 = vld [vmem:[#allocation7 + $0x109] sm:$0xff]  ;;  %v12667_v47 = vld [vmem:[#allocation7 + $0x139] sm:$0xff] }
 0xa87   : > { %17173 = vmatprep.subr.bf16.mxu1 %v18288_v38 }
 0xa8d   : > { %17112 = vmatmul.mubr.msk.bf16.gmra.mrb[116].mxu1 %vm10422_vm3, %v21526_v55  ;;  %v12650_v55 = vld [vmem:[#allocation7 + $0x69] sm:$0xff] }
 0xa8e   : > { %17115 = vmatprep.mubr.msk.bf16.mxu1 %vm10422_vm3, %v21528_v31  ;;  %v12647_v31 = vld [vmem:[#allocation7 + $0x49] sm:$0xff] }
 0xa95   : > { %17116 = vmatmul.mubr.msk.bf16.gmra.mrb[88].mxu1 %vm10422_vm3, %v21534_v22  ;;  %v12678_v22 = vpack.c.bf16 %v12648_v16, %v12647_v31  ;;  %v12669_v16 = vld [vmem:[#allocation7 + $0x151] sm:$0xff] }
 0xa96   : > { %17119 = vmatprep.mubr.msk.bf16.mxu1 %vm10422_vm3, %v21536_v44  ;;  %v12649_v44 = vld [vmem:[#allocation7 + $0x61] sm:$0xff]  ;;  %v12672_v31 = vld [vmem:[#allocation7 + $0x171] sm:$0xff] }
 0xa9d   : > { %17120 = vmatmul.mubr.msk.bf16.gmra.mrb[92].mxu1 %vm10422_vm3, %v21542_v60  ;;  %v18289_v60 = vld [vmem:[%s22426_s13 + $0xc8] sm:$0xff]  }
 0xa9e   : > { %17123 = vmatprep.mubr.msk.bf16.mxu1 %vm10422_vm3, %v21544_v2  ;;  %v12679_v2 = vpack.c.bf16 %v12650_v55, %v12649_v44  ;;  %v12689_v55 = vpack.c.bf16 %v12670_v21, %v12669_v16 }
 0xaa5   : > { %17124 = vmatmul.mubr.msk.bf16.gmra.mrb[96].mxu1 %vm10422_vm3, %v21550_v62  ;;  %v18290_v62 = vld [vmem:[%s22426_s13 + $0xd0] sm:$0xff]  }
 0xaa6   : > { %17127 = vmatprep.mubr.msk.bf16.mxu1 %vm10422_vm3, %v21552_v28  ;;  %v12652_v28 = vld [vmem:[#allocation7 + $0x81] sm:$0xff] }
 0xaa7   : > { %v12680_v53 = vpack.c.bf16 %v12652_v28, %v12651_v54 }
 0xaad   : > { %17128 = vmatmul.mubr.msk.bf16.gmra.mrb[100].mxu1 %vm10422_vm3, %v21558_v49  ;;  %v12654_v49 = vld [vmem:[#allocation7 + $0x99] sm:$0xff] }
 0xaae   : > { %17131 = vmatprep.mubr.msk.bf16.mxu1 %vm10422_vm3, %v21696_v17  ;;  %v12681_v48 = vpack.c.bf16 %v12654_v49, %v12653_v14  ;;  %v12655_v17 = vld [vmem:[#allocation7 + $0xa9] sm:$0xff] }
 0xaaf   : > { %v12682_v46 = vpack.c.bf16 %v12656_v43, %v12655_v17 }
 0xab5   : > { %17132 = vmatmul.mubr.msk.bf16.gmra.mrb[104].mxu1 %vm10422_vm3, %v12378_v63  ;;  %v12668_v63 = vld [vmem:[#allocation7 + $0x141] sm:$0xff] }
 0xab6   : > { %17141 = vmatprep.mubr.msk.bf16.mxu1 %vm10422_vm3, %v12677_v6  ;;  %v12688_v6 = vpack.c.bf16 %v12668_v63, %v12667_v47 }
 0xabd   : > { %17142 = vmatmul.mubr.msk.bf16.vlgmr.msra.gmra.mrb[108].mxu1 %vm10422_vm3, %v12678_v22  ;;  %v12671_v22 = vld [vmem:[#allocation7 + $0x169] sm:$0xff] }
 0xabe   : > { %17145 = vmatprep.mubr.msk.bf16.mxu1 %vm10422_vm3, %v12679_v2  ;;  %17174 = vmatpush3.bf16.msra.mxu1 %v18288_v38  ;;  %v12686_v38 = vpack.c.bf16 %v12664_v56, %v12663_v19  ;;  %v12690_v44 = vpack.c.bf16 %v12672_v31, %v12671_v22  ;;  %v12676_v2 = vld [vmem:[#allocation7 + $0x1a1] sm:$0xff] }
 0xabf   : > { %17175 = vmatprep.subr.bf16.mxu1 %v18289_v60 }
 0xac2   : > { %17176 = vmatpush3.bf16.msra.mxu1 %v18289_v60  ;;  %v12675_v60 = vld [vmem:[#allocation7 + $0x199] sm:$0xff] }
 0xac3   : > { %17177 = vmatprep.subr.bf16.mxu1 %v18290_v62 }
 0xac5   : > { %17146 = vmatmul.mubr.msk.bf16.gmra.mrb[112].mxu1 %vm10422_vm3, %v12680_v53 }
 0xac6   : > { %17149 = vmatprep.mubr.msk.bf16.mxu1 %vm10422_vm3, %v12681_v48  ;;  %17178 = vmatpush3.bf16.msra.mxu1 %v18290_v62  ;;  %v12692_v62 = vpack.c.bf16 %v12676_v2, %v12675_v60 }
 0xacd   : > { %17150 = vmatmul.mubr.msk.bf16.gmra.mrb[116].mxu1 %vm10422_vm3, %v12682_v46 }
 0xace   : > { %17153 = vmatprep.mubr.msk.bf16.mxu1 %vm10422_vm3, %v12683_v18 }
 0xad5   : > { %17154 = vmatmul.mubr.msk.bf16.gmra.mrb[88].mxu1 %vm10422_vm3, %v12684_v42 }
 0xad6   : > { %17157 = vmatprep.mubr.msk.bf16.mxu1 %vm10422_vm3, %v12685_v34 }
 0xadd   : > { %17158 = vmatmul.mubr.msk.bf16.gmra.mrb[92].mxu1 %vm10422_vm3, %v12686_v38 }
 0xade   : > { %17161 = vmatprep.mubr.msk.bf16.mxu1 %vm10422_vm3, %v12687_v25 }
 0xae5   : > { %17162 = vmatmul.mubr.msk.bf16.gmra.mrb[96].mxu1 %vm10422_vm3, %v12688_v6 }
 0xae6   : > { %17165 = vmatprep.mubr.msk.bf16.mxu1 %vm10422_vm3, %v12689_v55 }
 0xaed   : > { %17166 = vmatmul.mubr.msk.bf16.gmra.mrb[100].mxu1 %vm10422_vm3, %v12690_v44 }
 0xaee   : > { %17169 = vmatprep.mubr.msk.bf16.mxu1 %vm10422_vm3, %v21739_v7 }
 0xaf5   : > { %17170 = vmatmul.mubr.msk.bf16.gmra.mrb[104].mxu1 %vm10422_vm3, %v12692_v62 }
 0xaf6   : > { %17179 = vmatprep.mubr.msk.bf16.mxu1 %vm10422_vm3, %v21568_v11  ;;  %v12989_v11 = vld [vmem:[#allocation7 + $0x19a] sm:$0xff] }
 0xafd   : > { %17180 = vmatmul.mubr.msk.bf16.vlgmr.msra.gmra.mrb[108].mxu1 %vm10422_vm3, %v21578_v61  ;;  %v12990_v61 = vld [vmem:[#allocation7 + $0x1a2] sm:$0xff] }
 0xafe   : > { %17183 = vmatprep.mubr.msk.bf16.mxu1 %vm10422_vm3, %v21583_v41  ;;  %v13006_v41 = vpack.c.bf16 %v12990_v61, %v12989_v11 }
 0xb05   : > { %17184 = vmatmul.mubr.msk.bf16.gmra.mrb[112].mxu1 %vm10422_vm3, %v21589_v29  ;;  %v18291_v29 = vld [vmem:[%s22428_s15] sm:$0xff]  }
 0xb06   : > { %17187 = vmatprep.mubr.msk.bf16.mxu1 %vm10422_vm3, %v21591_v13  ;;  %17211 = vmatprep.subr.bf16.mxu0 %v18291_v29  ;;  %v18292_v13 = vld [vmem:[%s22428_s15 + $0x8] sm:$0xff]  }
 0xb07   : > { %17212 = vmatpush3.bf16.msra.mxu0 %v18291_v29 }
 0xb08   : > { %17213 = vmatprep.subr.bf16.mxu0 %v18292_v13 }
 0xb0b   : > { %17214 = vmatpush3.bf16.msra.mxu0 %v18292_v13 }
 0xb0d   : > { %17188 = vmatmul.mubr.msk.bf16.gmra.mrb[116].mxu1 %vm10422_vm3, %v21597_v33  ;;  %v18293_v33 = vld [vmem:[%s22428_s15 + $0x10] sm:$0xff]  }
 0xb0e   : > { %17191 = vmatprep.mubr.msk.bf16.mxu1 %vm10422_vm3, %v21599_v58  ;;  %17215 = vmatprep.subr.bf16.mxu0 %v18293_v33 }
 0xb0f   : > { %17216 = vmatpush3.bf16.msra.mxu0 %v18293_v33 }
 0xb15   : > { %17192 = vmatmul.mubr.msk.bf16.gmra.mrb[88].mxu1 %vm10422_vm3, %v21605_v10  ;;  %v21892_v10 = vld [vmem:[%s22427_s14] ss:$0 sm:$0xff] }
 0xb16   : > { %17195 = vmatprep.mubr.msk.bf16.mxu1 %vm10422_vm3, %v21607_v36 }
 0xb1d   : > { %17196 = vmatmul.mubr.msk.bf16.gmra.mrb[92].mxu1 %vm10422_vm3, %v21613_v1 }
 0xb1e   : > { %17199 = vmatprep.mubr.msk.bf16.mxu1 %vm10422_vm3, %v21615_v5 }
 0xb25   : > { %17200 = vmatmul.mubr.msk.bf16.gmra.mrb[96].mxu1 %vm10422_vm3, %v21621_v15 }
 0xb26   : > { %17203 = vmatprep.mubr.msk.bf16.mxu1 %vm10422_vm3, %v21623_v4 }
 0xb2d   : > { %17204 = vmatmul.mubr.msk.bf16.gmra.mrb[100].mxu1 %vm10422_vm3, %v21629_v26 }
 0xb2e   : > { %17207 = vmatprep.mubr.msk.bf16.mxu1 %vm10422_vm3, %v21782_v9 }
 0xb35   : > { %17208 = vmatmul.mubr.msk.bf16.gmra.mrb[104].mxu1 %vm10422_vm3, %v13006_v41 }
 0xbd0   : > { %v17181_v58 = vpop.f32.mrb[108].mxu1 }
 0xbd1   : > { %v17255_v36 = vadd.f32 %v17181_v58, %v21654_v32  ;;  %v13114_v1 = vpop.f32.mrb[109].mxu1 }
 0xbd2   : > { %v17256_v5 = vadd.f32 %v13114_v1, %v21658_v37  ;;  %v17182_v15 = vpop.f32.mrb[110].mxu1 }
 0xbd3   : > { %v21897_v4 = vadd.f32 %v17255_v36, %v21892_v10  ;;  %v17257_v26 = vadd.f32 %v17182_v15, %v21660_v27  ;;  %v13117_v7 = vpop.f32.mrb[111].mxu1 }
 0xbd4   : > { %v21901_v9 = vadd.f32 %v17256_v5, %v21892_v10  ;;  %v17258_v28 = vadd.f32 %v13117_v7, %v21662_v24 }
 0xbd5   : > { %v13346_v49 = vmin.f32 %v21897_v4, 0.0  ;;  %v21906_v54 = vadd.f32 %v17257_v26, %v21892_v10  ;;  %vm13314_vm6 = vcmp.gt.f32.partialorder %v21897_v4, 0.0 }
 0xbd6   : > { %v13344_v32 = vmin.f32 %v21901_v9, 0.0  ;;  %v21910_v37 = vadd.f32 %v17258_v28, %v21892_v10  ;;  %vm13312_vm7 = vcmp.gt.f32.partialorder %v21901_v9, 0.0 }
 0xbd7   : > { %v13380_v53 = vmul.f32 1.442695, %v13346_v49  ;;  %v13347_v14 = vmin.f32 %v21906_v54, 0.0  ;;  %vm13315_vm8 = vcmp.gt.f32.partialorder %v21906_v54, 0.0 }
 0xbd8   : > { %v13376_v27 = vmul.f32 1.442695, %v13344_v32  ;;  %v13345_v48 = vmin.f32 %v21910_v37, 0.0  ;;  %v17185_v43 = vpop.f32.mrb[112].mxu1  ;;  %vm13313_vm9 = vcmp.gt.f32.partialorder %v21910_v37, 0.0 }
 0xbd9   : > { %18406 = vpow2.f32 %v13380_v53  ;;  %v13382_v40 = vmul.f32 1.442695, %v13347_v14  ;;  %v17259_v24 = vadd.f32 %v17185_v43, %v21668_v12  ;;  %v13130_v17 = vpop.f32.mrb[113].mxu1 }
 0xbda   : > { %v13378_v46 = vmul.f32 1.442695, %v13345_v48  ;;  %v17260_v20 = vadd.f32 %v13130_v17, %v21670_v23  ;;  %v17186_v18 = vpop.f32.mrb[114].mxu1 }
 0xbdb   : > { %18408 = vpow2.f32 %v13382_v40  ;;  %v21917_v51 = vadd.f32 %v17259_v24, %v21892_v10  ;;  %v17261_v3 = vadd.f32 %v17186_v18, %v21672_v8  ;;  %v13133_v35 = vpop.f32.mrb[115].mxu1 }
 0xbdc   : > { %18410 = vpow2.f32 %v13376_v27  ;;  %v21921_v42 = vadd.f32 %v17260_v20, %v21892_v10  ;;  %v17262_v50 = vadd.f32 %v13133_v35, %v21674_v0 }
 0xbdd   : > { %18412 = vpow2.f32 %v13378_v46  ;;  %v13350_v12 = vmin.f32 %v21917_v51, 0.0  ;;  %v21926_v34 = vadd.f32 %v17261_v3, %v21892_v10  ;;  %vm13318_vm10 = vcmp.gt.f32.partialorder %v21917_v51, 0.0 }
 0xbde   : > { %v13348_v23 = vmin.f32 %v21921_v42, 0.0  ;;  %v21930_v56 = vadd.f32 %v17262_v50, %v21892_v10  ;;  %vm13316_vm11 = vcmp.gt.f32.partialorder %v21921_v42, 0.0 }
 0xbdf   : > { %v13388_v57 = vmul.f32 1.442695, %v13350_v12  ;;  %v13351_v8 = vmin.f32 %v21926_v34, 0.0  ;;  %vm13319_vm12 = vcmp.gt.f32.partialorder %v21926_v34, 0.0 }
 0xbe0   : > { %v13384_v19 = vmul.f32 1.442695, %v13348_v23  ;;  %v13349_v38 = vmin.f32 %v21930_v56, 0.0  ;;  %v17189_v30 = vpop.f32.mrb[116].mxu1  ;;  %vm13317_vm13 = vcmp.gt.f32.partialorder %v21930_v56, 0.0 }
 0xbe1   : > { %18414 = vpow2.f32 %v13388_v57  ;;  %v13390_v0 = vmul.f32 1.442695, %v13351_v8  ;;  %v17263_v25 = vadd.f32 %v17189_v30, %v21680_v45  ;;  %v13146_v63 = vpop.f32.mrb[117].mxu1 }
 0xbe2   : > { %18416 = vpow2.f32 %v13384_v19  ;;  %v13386_v21 = vmul.f32 1.442695, %v13349_v38  ;;  %v17264_v47 = vadd.f32 %v13146_v63, %v21682_v52  ;;  %v17190_v6 = vpop.f32.mrb[118].mxu1 }
 0xbe3   : > { %v18407_v16 = vpop.eup %18406  ;;  %18418 = vpow2.f32 %v13390_v0  ;;  %v21937_v55 = vadd.f32 %v17263_v25, %v21892_v10  ;;  %v17265_v31 = vadd.f32 %v17190_v6, %v21684_v39  ;;  %v13149_v22 = vpop.f32.mrb[119].mxu1 }
 0xbe4   : > { %v15341_v44 = vadd.f32 -1.0, %v18407_v16  ;;  %18420 = vpow2.f32 %v13386_v21  ;;  %v21941_v60 = vadd.f32 %v17264_v47, %v21892_v10  ;;  %v17266_v45 = vadd.f32 %v13149_v22, %v21688_v59 }
 0xbe5   : > { %v18409_v2 = vpop.eup %18408  ;;  %v13354_v52 = vmin.f32 %v21937_v55, 0.0  ;;  %v21948_v62 = vadd.f32 %v17265_v31, %v21892_v10  ;;  %vm13322_vm14 = vcmp.gt.f32.partialorder %v21937_v55, 0.0 }
 0xbe6   : > { %v18411_v11 = vpop.eup %18410  ;;  %v15342_v39 = vadd.f32 -1.0, %v18409_v2  ;;  %v13352_v61 = vmin.f32 %v21941_v60, 0.0  ;;  %v21954_v59 = vsel %vm13314_vm6, %v21897_v4, %v15341_v44  ;;  %v21963_v36 = vadd.f32 %v17266_v45, %v21892_v10 }
 0xbe7   : > { %v18413_v41 = vpop.eup %18412  ;;  %v13396_v29 = vmul.f32 1.442695, %v13354_v52  ;;  %v13355_v58 = vmin.f32 %v21948_v62, 0.0  ;;  %v15339_v5 = vadd.f32 -1.0, %v18411_v11  ;;  %vm13320_vm15 = vcmp.gt.f32.partialorder %v21941_v60, 0.0 }
 0xbe8   : > { %v21959_v13 = vsel %vm13315_vm8, %v21906_v54, %v15342_v39  ;;  %v13392_v33 = vmul.f32 1.442695, %v13352_v61  ;;  %v17193_v1 = vpop.f32.mrb[88].mxu1  ;;  %v15340_v7 = vadd.f32 -1.0, %v18413_v41  ;;  %v13353_v49 = vmin.f32 %v21963_v36, 0.0 }
 0xbe9   : > { %v13505_v15 = vpack.c.bf16 %v21959_v13, %v21954_v59  ;;  %v21969_v4 = vadd.f32 %v17193_v1, %v21892_v10  ;;  %v13162_v26 = vpop.f32.mrb[89].mxu1  ;;  %18422 = vpow2.f32 %v13396_v29  ;;  %v13398_v28 = vmul.f32 1.442695, %v13355_v58 }
 0xbea   : > { %v17194_v54 = vpop.f32.mrb[90].mxu1  ;;  %18424 = vpow2.f32 %v13392_v33  ;;  %v21974_v14 = vadd.f32 %v21892_v10, %v13162_v26  ;;  %v13394_v24 = vmul.f32 1.442695, %v13353_v49  ;;  %v13472_v50 = vsel %vm13312_vm7, %v21901_v9, %v15339_v5 }
 0xbeb   : > { %v18415_v32 = vpop.eup %18414  ;;  %v13358_v53 = vmin.f32 %v21969_v4, 0.0  ;;  %v21977_v27 = vadd.f32 %v17194_v54, %v21892_v10  ;;  %v13165_v48 = vpop.f32.mrb[91].mxu1  ;;  %18426 = vpow2.f32 %v13398_v28  ;;  %v13473_v12 = vsel %vm13313_vm9, %v21910_v37, %v15340_v7 }
 0xbec   : > { %v18417_v43 = vpop.eup %18416  ;;  %v15345_v40 = vadd.f32 -1.0, %v18415_v32  ;;  %v21980_v17 = vadd.f32 %v21892_v10, %v13165_v48  ;;  %v13356_v3 = vmin.f32 %v21974_v14, 0.0  ;;  %18428 = vpow2.f32 %v13394_v24 }
 0xbed   : > { %v18419_v46 = vpop.eup %18418  ;;  %v15343_v20 = vadd.f32 -1.0, %v18417_v43  ;;  %v13404_v18 = vmul.f32 1.442695, %v13358_v53  ;;  %v13359_v37 = vmin.f32 %v21977_v27, 0.0  ;;  %v13504_v25 = vpack.c.bf16 %v13473_v12, %v13472_v50 }
 0xbee   : > { %v18421_v35 = vpop.eup %18420  ;;  %v15346_v23 = vadd.f32 -1.0, %v18419_v46  ;;  %v21993_v57 = vsel %vm13318_vm10, %v21917_v51, %v15345_v40  ;;  %v13400_v38 = vmul.f32 1.442695, %v13356_v3  ;;  %v13357_v30 = vmin.f32 %v21980_v17, 0.0 }
 0xbef   : > { %v13476_v8 = vsel %vm13316_vm11, %v21921_v42, %v15343_v20  ;;  %v15344_v19 = vadd.f32 -1.0, %v18421_v35  ;;  %18430 = vpow2.f32 %v13404_v18  ;;  %v13406_v21 = vmul.f32 1.442695, %v13359_v37  ;;  %17217 = vmatprep.mubr.msk.bf16.mxu0 %vm10422_vm3, %v13504_v25 }
 0xbf0   : > { %v22001_v9 = vsel %vm13319_vm12, %v21926_v34, %v15346_v23  ;;  %v17197_v0 = vpop.f32.mrb[92].mxu1  ;;  %18432 = vpow2.f32 %v13400_v38  ;;  %v13402_v47 = vmul.f32 1.442695, %v13357_v30  ;;  %17218 = vmatmul.mubr.msk.bf16.vlgmr.msra.gmra.mrb[164].mxu0 %vm10422_vm3, %v13505_v15  ;;  %vm13323_vm1 = vcmp.gt.f32.partialorder %v21948_v62, 0.0 }
 0xbf1   : > { %v13477_v51 = vsel %vm13317_vm13, %v21930_v56, %v15344_v19  ;;  %v22009_v42 = vadd.f32 %v17197_v0, %v21892_v10  ;;  %v13178_v63 = vpop.f32.mrb[93].mxu1  ;;  %v13507_v44 = vpack.c.bf16 %v22001_v9, %v21993_v57  ;;  %18434 = vpow2.f32 %v13406_v21 }
 0xbf2   : > { %v22012_v34 = vadd.f32 %v21892_v10, %v13178_v63  ;;  %v17198_v6 = vpop.f32.mrb[94].mxu1  ;;  %v13506_v16 = vpack.c.bf16 %v13477_v51, %v13476_v8  ;;  %18436 = vpow2.f32 %v13402_v47  ;;  %vm13321_vm2 = vcmp.gt.f32.partialorder %v21963_v36, 0.0 }
 0xbf3   : > { %v13362_v31 = vmin.f32 %v22009_v42, 0.0  ;;  %v22017_v22 = vadd.f32 %v17198_v6, %v21892_v10  ;;  %v13181_v56 = vpop.f32.mrb[95].mxu1  ;;  %v18423_v45 = vpop.eup %18422  ;;  %vm13326_vm0 = vcmp.gt.f32.partialorder %v21969_v4, 0.0  ;;  %vm13324_vm4 = vcmp.gt.f32.partialorder %v21974_v14, 0.0 }
 0xbf4   : > { %v13360_v2 = vmin.f32 %v22012_v34, 0.0  ;;  %v18425_v52 = vpop.eup %18424  ;;  %17221 = vmatprep.mubr.msk.bf16.mxu0 %vm10422_vm3, %v13506_v16  ;;  %v22027_v59 = vadd.f32 %v21892_v10, %v13181_v56  ;;  %v15349_v29 = vadd.f32 -1.0, %v18423_v45  ;;  %vm13327_vm5 = vcmp.gt.f32.partialorder %v21977_v27, 0.0 }
 0xbf5   : > { %v13412_v11 = vmul.f32 1.442695, %v13362_v31  ;;  %v18427_v39 = vpop.eup %18426  ;;  %v13363_v41 = vmin.f32 %v22017_v22, 0.0  ;;  %v15347_v58 = vadd.f32 -1.0, %v18425_v52  ;;  %vm13325_vm6 = vcmp.gt.f32.partialorder %v21980_v17, 0.0 }
 0xbf6   : > { %v13408_v61 = vmul.f32 1.442695, %v13360_v2  ;;  %v15350_v13 = vadd.f32 -1.0, %v18427_v39  ;;  %v18429_v33 = vpop.eup %18428  ;;  %v13361_v5 = vmin.f32 %v22027_v59, 0.0  ;;  %v13482_v18 = vsel %vm13322_vm14, %v21937_v55, %v15349_v29 }
 0xbf7   : > { %18438 = vpow2.f32 %v13412_v11  ;;  %v13414_v1 = vmul.f32 1.442695, %v13363_v41  ;;  %v15348_v26 = vadd.f32 -1.0, %v18429_v33  ;;  %v13480_v3 = vsel %vm13320_vm15, %v21941_v60, %v15347_v58 }
 0xbf8   : > { %18440 = vpow2.f32 %v13408_v61  ;;  %v17201_v15 = vpop.f32.mrb[96].mxu1  ;;  %v13410_v54 = vmul.f32 1.442695, %v13361_v5  ;;  %v13483_v43 = vsel %vm13323_vm1, %v21948_v62, %v15350_v13  ;;  %17222 = vmatmul.mubr.msk.bf16.gmra.mrb[168].mxu0 %vm10422_vm3, %v13507_v44  ;;  %vm13330_vm7 = vcmp.gt.f32.partialorder %v22009_v42, 0.0 }
 0xbf9   : > { %v22034_v7 = vadd.f32 %v17201_v15, %v21892_v10  ;;  %v13194_v28 = vpop.f32.mrb[97].mxu1  ;;  %v18431_v49 = vpop.eup %18430  ;;  %18442 = vpow2.f32 %v13414_v1  ;;  %v13481_v40 = vsel %vm13321_vm2, %v21963_v36, %v15348_v26  ;;  %v13509_v8 = vpack.c.bf16 %v13483_v43, %v13482_v18 }
 0xbfa   : > { %v22038_v32 = vadd.f32 %v21892_v10, %v13194_v28  ;;  %v17202_v53 = vpop.f32.mrb[98].mxu1  ;;  %v18433_v48 = vpop.eup %18432  ;;  %18444 = vpow2.f32 %v13410_v54  ;;  %v15353_v62 = vadd.f32 -1.0, %v18431_v49  ;;  %v13508_v55 = vpack.c.bf16 %v13481_v40, %v13480_v3 }
 0xbfb   : > { %v13366_v24 = vmin.f32 %v22034_v7, 0.0  ;;  %v22044_v46 = vadd.f32 %v17202_v53, %v21892_v10  ;;  %v13197_v20 = vpop.f32.mrb[99].mxu1  ;;  %v18435_v12 = vpop.eup %18434  ;;  %v15351_v23 = vadd.f32 -1.0, %v18433_v48  ;;  %vm13328_vm8 = vcmp.gt.f32.partialorder %v22012_v34, 0.0 }
 0xbfc   : > { %v13364_v35 = vmin.f32 %v22038_v32, 0.0  ;;  %v22057_v57 = vadd.f32 %v21892_v10, %v13197_v20  ;;  %v18437_v19 = vpop.eup %18436  ;;  %v15354_v60 = vadd.f32 -1.0, %v18435_v12  ;;  %17225 = vmatprep.mubr.msk.bf16.mxu0 %vm10422_vm3, %v13508_v55  ;;  %v13486_v25 = vsel %vm13326_vm0, %v21969_v4, %v15353_v62 }
 0xbfd   : > { %v13420_v36 = vmul.f32 1.442695, %v13366_v24  ;;  %v13367_v50 = vmin.f32 %v22044_v46, 0.0  ;;  %v15352_v37 = vadd.f32 -1.0, %v18437_v19  ;;  %v13484_v16 = vsel %vm13324_vm4, %v21974_v14, %v15351_v23 }
 0xbfe   : > { %v13416_v38 = vmul.f32 1.442695, %v13364_v35  ;;  %v13365_v30 = vmin.f32 %v22057_v57, 0.0  ;;  %v13487_v63 = vsel %vm13327_vm5, %v21977_v27, %v15354_v60  ;;  %vm13331_vm9 = vcmp.gt.f32.partialorder %v22017_v22, 0.0 }
 0xbff   : > { %18446 = vpow2.f32 %v13420_v36  ;;  %v13422_v9 = vmul.f32 1.442695, %v13367_v50  ;;  %v13511_v31 = vpack.c.bf16 %v13487_v63, %v13486_v25  ;;  %v13485_v56 = vsel %vm13325_vm6, %v21980_v17, %v15352_v37 }
 0xc00   : > { %v17205_v0 = vpop.f32.mrb[100].mxu1  ;;  %18448 = vpow2.f32 %v13416_v38  ;;  %v13510_v45 = vpack.c.bf16 %v13485_v56, %v13484_v16  ;;  %v13418_v27 = vmul.f32 1.442695, %v13365_v30  ;;  %17226 = vmatmul.mubr.msk.bf16.gmra.mrb[172].mxu0 %vm10422_vm3, %v13509_v8  ;;  %vm13329_vm10 = vcmp.gt.f32.partialorder %v22027_v59, 0.0 }
 0xc01   : > { %v18439_v51 = vpop.eup %18438  ;;  %v22068_v21 = vadd.f32 %v17205_v0, %v21892_v10  ;;  %v13210_v47 = vpop.f32.mrb[101].mxu1  ;;  %18450 = vpow2.f32 %v13422_v9  ;;  %vm13334_vm11 = vcmp.gt.f32.partialorder %v22034_v7, 0.0  ;;  %vm13335_vm12 = vcmp.gt.f32.partialorder %v22044_v46, 0.0 }
 0xc02   : > { %v18441_v6 = vpop.eup %18440  ;;  %v17206_v44 = vpop.f32.mrb[102].mxu1  ;;  %v15357_v4 = vadd.f32 -1.0, %v18439_v51  ;;  %v22079_v14 = vadd.f32 %v21892_v10, %v13210_v47  ;;  %18452 = vpow2.f32 %v13418_v27  ;;  %17229 = vmatprep.mubr.msk.bf16.mxu0 %vm10422_vm3, %v13510_v45  ;;  %vm13332_vm13 = vcmp.gt.f32.partialorder %v22038_v32, 0.0 }
 0xc03   : > { %v13213_v2 = vpop.f32.mrb[103].mxu1  ;;  %v18443_v52 = vpop.eup %18442  ;;  %v13370_v11 = vmin.f32 %v22068_v21, 0.0  ;;  %v22082_v17 = vadd.f32 %v17206_v44, %v21892_v10  ;;  %v15355_v39 = vadd.f32 -1.0, %v18441_v6  ;;  %vm13333_vm14 = vcmp.gt.f32.partialorder %v22057_v57, 0.0 }
 0xc04   : > { %v15358_v61 = vadd.f32 -1.0, %v18443_v52  ;;  %v22086_v41 = vadd.f32 %v21892_v10, %v13213_v2  ;;  %v18445_v29 = vpop.eup %18444  ;;  %v13368_v33 = vmin.f32 %v22079_v14, 0.0  ;;  %v13490_v58 = vsel %vm13330_vm7, %v22009_v42, %v15357_v4 }
 0xc05   : > { %v13428_v13 = vmul.f32 1.442695, %v13370_v11  ;;  %v15356_v5 = vadd.f32 -1.0, %v18445_v29  ;;  %v13371_v15 = vmin.f32 %v22082_v17, 0.0  ;;  %v13488_v48 = vsel %vm13328_vm8, %v22012_v34, %v15355_v39 }
 0xc06   : > { %v13491_v1 = vsel %vm13331_vm9, %v22017_v22, %v15358_v61  ;;  %v13424_v28 = vmul.f32 1.442695, %v13368_v33  ;;  %v13369_v49 = vmin.f32 %v22086_v41, 0.0  ;;  %vm13338_vm15 = vcmp.gt.f32.partialorder %v22068_v21, 0.0 }
 0xc07   : > { %v13513_v26 = vpack.c.bf16 %v13491_v1, %v13490_v58  ;;  %18454 = vpow2.f32 %v13428_v13  ;;  %v13489_v43 = vsel %vm13329_vm10, %v22027_v59, %v15356_v5  ;;  %v13430_v40 = vmul.f32 1.442695, %v13371_v15 }
 0xc08   : > { %v17209_v54 = vpop.f32.mrb[104].mxu1  ;;  %v13512_v24 = vpack.c.bf16 %v13489_v43, %v13488_v48  ;;  %18456 = vpow2.f32 %v13424_v28  ;;  %v13426_v20 = vmul.f32 1.442695, %v13369_v49  ;;  %17230 = vmatmul.mubr.msk.bf16.gmra.mrb[176].mxu0 %vm10422_vm3, %v13511_v31  ;;  %vm13339_vm1 = vcmp.gt.f32.partialorder %v22082_v17, 0.0  ;;  %v22143_v49 = vld [vmem:[%s22429_s16] ss:$0 sm:$0xff] }
 0xc09   : > { %v18447_v53 = vpop.eup %18446  ;;  %v22102_v42 = vadd.f32 %v17209_v54, %v21892_v10  ;;  %v13226_v22 = vpop.f32.mrb[105].mxu1  ;;  %18458 = vpow2.f32 %v13430_v40  ;;  %vm13336_vm2 = vcmp.gt.f32.partialorder %v22079_v14, 0.0  ;;  %vm13337_vm0 = vcmp.gt.f32.partialorder %v22086_v41, 0.0 }
 0xc0a   : > { %v17210_v18 = vpop.f32.mrb[106].mxu1  ;;  %v18449_v3 = vpop.eup %18448  ;;  %v15361_v62 = vadd.f32 -1.0, %v18447_v53  ;;  %v22106_v35 = vadd.f32 %v21892_v10, %v13226_v22  ;;  %18460 = vpow2.f32 %v13426_v20  ;;  %17233 = vmatprep.mubr.msk.bf16.mxu0 %vm10422_vm3, %v13512_v24 }
 0xc0b   : > { %v13374_v36 = vmin.f32 %v22102_v42, 0.0  ;;  %v13229_v34 = vpop.f32.mrb[107].mxu1  ;;  %v18451_v50 = vpop.eup %18450  ;;  %v13311_v59 = vadd.f32 %v17210_v18, %v21892_v10  ;;  %v15359_v8 = vadd.f32 -1.0, %v18449_v3  ;;  %vm13342_vm4 = vcmp.gt.f32.partialorder %v22102_v42, 0.0 }
 0xc0c   : > { %v15362_v12 = vadd.f32 -1.0, %v18451_v50  ;;  %v13372_v55 = vmin.f32 %v22106_v35, 0.0  ;;  %v13309_v60 = vadd.f32 %v21892_v10, %v13229_v34  ;;  %v18453_v38 = vpop.eup %18452  ;;  %v13494_v9 = vsel %vm13334_vm11, %v22034_v7, %v15361_v62 }
 0xc0d   : > { %v13436_v23 = vmul.f32 1.442695, %v13374_v36  ;;  %v13375_v19 = vmin.f32 %v13311_v59, 0.0  ;;  %v15360_v51 = vadd.f32 -1.0, %v18453_v38  ;;  %v13492_v6 = vsel %vm13332_vm13, %v22038_v32, %v15359_v8 }
 0xc0e   : > { %v13495_v37 = vsel %vm13335_vm12, %v22044_v46, %v15362_v12  ;;  %v13432_v30 = vmul.f32 1.442695, %v13372_v55  ;;  %v13373_v63 = vmin.f32 %v13309_v60, 0.0  ;;  %vm13343_vm5 = vcmp.gt.f32.partialorder %v13311_v59, 0.0 }
 0xc0f   : > { %18462 = vpow2.f32 %v13436_v23  ;;  %v13515_v0 = vpack.c.bf16 %v13495_v37, %v13494_v9  ;;  %v13438_v25 = vmul.f32 1.442695, %v13375_v19  ;;  %v13493_v10 = vsel %vm13333_vm14, %v22057_v57, %v15360_v51 }
 0xc10   : > { %18464 = vpow2.f32 %v13432_v30  ;;  %v13514_v7 = vpack.c.bf16 %v13493_v10, %v13492_v6  ;;  %v13434_v16 = vmul.f32 1.442695, %v13373_v63  ;;  %17234 = vmatmul.mubr.msk.bf16.gmra.mrb[180].mxu0 %vm10422_vm3, %v13513_v26  ;;  %vm13340_vm6 = vcmp.gt.f32.partialorder %v22106_v35, 0.0 }
 0xc11   : > { %v18455_v47 = vpop.eup %18454  ;;  %18466 = vpow2.f32 %v13438_v25  ;;  %vm13341_vm7 = vcmp.gt.f32.partialorder %v13309_v60, 0.0 }
 0xc12   : > { %v18457_v46 = vpop.eup %18456  ;;  %v15365_v31 = vadd.f32 -1.0, %v18455_v47  ;;  %18468 = vpow2.f32 %v13434_v16  ;;  %17237 = vmatprep.mubr.msk.bf16.mxu0 %vm10422_vm3, %v13514_v7 }
 0xc13   : > { %v18459_v56 = vpop.eup %18458  ;;  %v15363_v44 = vadd.f32 -1.0, %v18457_v46 }
 0xc14   : > { %v18461_v45 = vpop.eup %18460  ;;  %v15366_v4 = vadd.f32 -1.0, %v18459_v56  ;;  %v13498_v57 = vsel %vm13338_vm15, %v22068_v21, %v15365_v31 }
 0xc15   : > { %v15364_v32 = vadd.f32 -1.0, %v18461_v45  ;;  %v13496_v52 = vsel %vm13336_vm2, %v22079_v14, %v15363_v44 }
 0xc16   : > { %v13499_v27 = vsel %vm13339_vm1, %v22082_v17, %v15366_v4 }
 0xc17   : > { %v13517_v11 = vpack.c.bf16 %v13499_v27, %v13498_v57  ;;  %v13497_v39 = vsel %vm13337_vm0, %v22086_v41, %v15364_v32 }
 0xc18   : > { %v13516_v61 = vpack.c.bf16 %v13497_v39, %v13496_v52  ;;  %17238 = vmatmul.mubr.msk.bf16.gmra.mrb[184].mxu0 %vm10422_vm3, %v13515_v0 }
 0xc19   : > { %v18463_v2 = vpop.eup %18462 }
 0xc1a   : > { %v18465_v29 = vpop.eup %18464  ;;  %v15369_v13 = vadd.f32 -1.0, %v18463_v2  ;;  %17241 = vmatprep.mubr.msk.bf16.mxu0 %vm10422_vm3, %v13516_v61 }
 0xc1b   : > { %v18467_v33 = vpop.eup %18466  ;;  %v15367_v21 = vadd.f32 -1.0, %v18465_v29 }
 0xc1c   : > { %v15370_v58 = vadd.f32 -1.0, %v18467_v33  ;;  %v18469_v17 = vpop.eup %18468  ;;  %v13502_v1 = vsel %vm13342_vm4, %v22102_v42, %v15369_v13 }
 0xc1d   : > { %v15368_v15 = vadd.f32 -1.0, %v18469_v17  ;;  %v13500_v41 = vsel %vm13340_vm6, %v22106_v35, %v15367_v21 }
 0xc1e   : > { %v13503_v14 = vsel %vm13343_vm5, %v13311_v59, %v15370_v58 }
 0xc1f   : > { %v13519_v5 = vpack.c.bf16 %v13503_v14, %v13502_v1  ;;  %v13501_v26 = vsel %vm13341_vm7, %v13309_v60, %v15368_v15 }
 0xc20   : > { %v13518_v28 = vpack.c.bf16 %v13501_v26, %v13500_v41  ;;  %17242 = vmatmul.mubr.msk.bf16.gmra.mrb[188].mxu0 %vm10422_vm3, %v13517_v11 }
 0xc22   : > { %17245 = vmatprep.mubr.msk.bf16.mxu0 %vm10422_vm3, %v13518_v28 }
 0xc28   : > { %17246 = vmatmul.mubr.msk.bf16.gmra.mrb[192].mxu0 %vm10422_vm3, %v13519_v5 }
 0xcc3   : > { %v17219_v54 = vpop.f32.mrb[164].mxu0 }
 0xcc4   : > { %v13642_v53 = vadd.f32 %v17219_v54, %v22143_v49  ;;  %v13633_v48 = vpop.f32.mrb[165].mxu0 }
 0xcc5   : > { %v13634_v43 = vadd.f32 %v22143_v49, %v13633_v48  ;;  %v17220_v40 = vpop.f32.mrb[166].mxu0 }
 0xcc6   : > { %v13794_v42 = vmin.f32 %v13642_v53, 0.0  ;;  %v22148_v22 = vadd.f32 %v17220_v40, %v22143_v49  ;;  %v13636_v24 = vpop.f32.mrb[167].mxu0  ;;  %vm13762_vm3 = vcmp.gt.f32.partialorder %v13642_v53, 0.0 }
 0xcc7   : > { %v13792_v20 = vmin.f32 %v13634_v43, 0.0  ;;  %v22151_v18 = vadd.f32 %v22143_v49, %v13636_v24  ;;  %vm13760_vm8 = vcmp.gt.f32.partialorder %v13634_v43, 0.0 }
 0xcc8   : > { %v13828_v3 = vmul.f32 1.442695, %v13794_v42  ;;  %v13795_v62 = vmin.f32 %v22148_v22, 0.0  ;;  %vm13763_vm9 = vcmp.gt.f32.partialorder %v22148_v22, 0.0 }
 0xcc9   : > { %v13824_v36 = vmul.f32 1.442695, %v13792_v20  ;;  %v13793_v35 = vmin.f32 %v22151_v18, 0.0  ;;  %vm13761_vm10 = vcmp.gt.f32.partialorder %v22151_v18, 0.0 }
 0xcca   : > { %18470 = vpow2.f32 %v13828_v3  ;;  %v13830_v34 = vmul.f32 1.442695, %v13795_v62 }
 0xccb   : > { %18472 = vpow2.f32 %v13824_v36  ;;  %v13826_v50 = vmul.f32 1.442695, %v13793_v35  ;;  %v17223_v59 = vpop.f32.mrb[168].mxu0 }
 0xccc   : > { %18474 = vpow2.f32 %v13830_v34  ;;  %v22156_v12 = vadd.f32 %v17223_v59, %v22143_v49  ;;  %v13649_v23 = vpop.f32.mrb[169].mxu0 }
 0xccd   : > { %18476 = vpow2.f32 %v13826_v50  ;;  %v22159_v55 = vadd.f32 %v22143_v49, %v13649_v23  ;;  %v17224_v8 = vpop.f32.mrb[170].mxu0 }
 0xcce   : > { %v13798_v19 = vmin.f32 %v22156_v12, 0.0  ;;  %v22163_v60 = vadd.f32 %v17224_v8, %v22143_v49  ;;  %v13652_v38 = vpop.f32.mrb[171].mxu0  ;;  %vm13766_vm11 = vcmp.gt.f32.partialorder %v22156_v12, 0.0 }
 0xccf   : > { %v13796_v9 = vmin.f32 %v22159_v55, 0.0  ;;  %v22168_v37 = vadd.f32 %v22143_v49, %v13652_v38  ;;  %vm13764_vm12 = vcmp.gt.f32.partialorder %v22159_v55, 0.0 }
 0xcd0   : > { %v13836_v30 = vmul.f32 1.442695, %v13798_v19  ;;  %v13799_v0 = vmin.f32 %v22163_v60, 0.0  ;;  %vm13767_vm13 = vcmp.gt.f32.partialorder %v22163_v60, 0.0 }
 0xcd1   : > { %v13832_v51 = vmul.f32 1.442695, %v13796_v9  ;;  %v13797_v25 = vmin.f32 %v22168_v37, 0.0  ;;  %vm13765_vm14 = vcmp.gt.f32.partialorder %v22168_v37, 0.0 }
 0xcd2   : > { %18478 = vpow2.f32 %v13836_v30  ;;  %v13838_v63 = vmul.f32 1.442695, %v13799_v0 }
 0xcd3   : > { %18480 = vpow2.f32 %v13832_v51  ;;  %v13834_v47 = vmul.f32 1.442695, %v13797_v25  ;;  %v17227_v6 = vpop.f32.mrb[172].mxu0 }
 0xcd4   : > { %v18471_v10 = vpop.eup %18470  ;;  %18482 = vpow2.f32 %v13838_v63  ;;  %v22175_v7 = vadd.f32 %v17227_v6, %v22143_v49  ;;  %v13665_v16 = vpop.f32.mrb[173].mxu0 }
 0xcd5   : > { %v18473_v46 = vpop.eup %18472  ;;  %v15393_v31 = vadd.f32 -1.0, %v18471_v10  ;;  %18484 = vpow2.f32 %v13834_v47  ;;  %v22178_v56 = vadd.f32 %v22143_v49, %v13665_v16  ;;  %v17228_v44 = vpop.f32.mrb[174].mxu0 }
 0xcd6   : > { %v18475_v45 = vpop.eup %18474  ;;  %v15391_v4 = vadd.f32 -1.0, %v18473_v46  ;;  %v13802_v32 = vmin.f32 %v22175_v7, 0.0  ;;  %v22182_v57 = vadd.f32 %v17228_v44, %v22143_v49  ;;  %v13668_v27 = vpop.f32.mrb[175].mxu0  ;;  %vm13770_vm15 = vcmp.gt.f32.partialorder %v22175_v7, 0.0 }
 0xcd7   : > { %v18477_v2 = vpop.eup %18476  ;;  %v13922_v52 = vsel %vm13762_vm3, %v13642_v53, %v15393_v31  ;;  %v15394_v11 = vadd.f32 -1.0, %v18475_v45  ;;  %v13800_v39 = vmin.f32 %v22178_v56, 0.0  ;;  %v22194_v17 = vadd.f32 %v22143_v49, %v13668_v27 }
 0xcd8   : > { %13954 = vst [vmem:[%s22186_s18 + $0x10] sm:$0xff] %v13922_v52  ;;  %v13920_v61 = vsel %vm13760_vm8, %v13634_v43, %v15391_v4  ;;  %v15392_v29 = vadd.f32 -1.0, %v18477_v2  ;;  %v13844_v13 = vmul.f32 1.442695, %v13802_v32  ;;  %v13803_v21 = vmin.f32 %v22182_v57, 0.0 }
 0xcd9   : > { %13952 = vst [vmem:[%s22186_s18] sm:$0xff] %v13920_v61  ;;  %v13923_v33 = vsel %vm13763_vm9, %v22148_v22, %v15394_v11  ;;  %v13840_v58 = vmul.f32 1.442695, %v13800_v39  ;;  %v13801_v5 = vmin.f32 %v22194_v17, 0.0  ;;  %vm13768_vm1 = vcmp.gt.f32.partialorder %v22178_v56, 0.0 }
 0xcda   : > { %13955 = vst [vmem:[%s22186_s18 + $0x18] sm:$0xff] %v13923_v33  ;;  %v13921_v1 = vsel %vm13761_vm10, %v22151_v18, %v15392_v29  ;;  %18486 = vpow2.f32 %v13844_v13  ;;  %v13846_v14 = vmul.f32 1.442695, %v13803_v21  ;;  %vm13771_vm2 = vcmp.gt.f32.partialorder %v22182_v57, 0.0 }
 0xcdb   : > { %13953 = vst [vmem:[%s22186_s18 + $0x8] sm:$0xff] %v13921_v1  ;;  %18488 = vpow2.f32 %v13840_v58  ;;  %v17231_v15 = vpop.f32.mrb[176].mxu0  ;;  %v13842_v48 = vmul.f32 1.442695, %v13801_v5  ;;  %vm13769_vm0 = vcmp.gt.f32.partialorder %v22194_v17, 0.0 }
 0xcdc   : > { %v18479_v41 = vpop.eup %18478  ;;  %v22202_v26 = vadd.f32 %v17231_v15, %v22143_v49  ;;  %v13681_v28 = vpop.f32.mrb[177].mxu0  ;;  %18490 = vpow2.f32 %v13846_v14 }
 0xcdd   : > { %v18481_v54 = vpop.eup %18480  ;;  %v15397_v53 = vadd.f32 -1.0, %v18479_v41  ;;  %v22205_v43 = vadd.f32 %v22143_v49, %v13681_v28  ;;  %v17232_v40 = vpop.f32.mrb[178].mxu0  ;;  %18492 = vpow2.f32 %v13842_v48 }
 0xcde   : > { %v18483_v42 = vpop.eup %18482  ;;  %v15395_v22 = vadd.f32 -1.0, %v18481_v54  ;;  %v13806_v24 = vmin.f32 %v22202_v26, 0.0  ;;  %v22210_v20 = vadd.f32 %v17232_v40, %v22143_v49  ;;  %v13684_v18 = vpop.f32.mrb[179].mxu0  ;;  %vm13774_vm4 = vcmp.gt.f32.partialorder %v22202_v26, 0.0 }
 0xcdf   : > { %v18485_v3 = vpop.eup %18484  ;;  %v13926_v62 = vsel %vm13766_vm11, %v22156_v12, %v15397_v53  ;;  %v15398_v36 = vadd.f32 -1.0, %v18483_v42  ;;  %v13804_v59 = vmin.f32 %v22205_v43, 0.0  ;;  %v22224_v12 = vadd.f32 %v22143_v49, %v13684_v18 }
 0xce0   : > { %13958 = vst [vmem:[%s22186_s18 + $0x30] sm:$0xff] %v13926_v62  ;;  %v13924_v35 = vsel %vm13764_vm12, %v22159_v55, %v15395_v22  ;;  %v15396_v34 = vadd.f32 -1.0, %v18485_v3  ;;  %v13852_v50 = vmul.f32 1.442695, %v13806_v24  ;;  %v13807_v8 = vmin.f32 %v22210_v20, 0.0 }
 0xce1   : > { %13956 = vst [vmem:[%s22186_s18 + $0x20] sm:$0xff] %v13924_v35  ;;  %v13927_v23 = vsel %vm13767_vm13, %v22163_v60, %v15398_v36  ;;  %v13848_v38 = vmul.f32 1.442695, %v13804_v59  ;;  %v13805_v9 = vmin.f32 %v22224_v12, 0.0  ;;  %vm13772_vm5 = vcmp.gt.f32.partialorder %v22205_v43, 0.0 }
 0xce2   : > { %13959 = vst [vmem:[%s22186_s18 + $0x38] sm:$0xff] %v13927_v23  ;;  %v13925_v19 = vsel %vm13765_vm14, %v22168_v37, %v15396_v34  ;;  %18494 = vpow2.f32 %v13852_v50  ;;  %v13854_v55 = vmul.f32 1.442695, %v13807_v8  ;;  %vm13775_vm6 = vcmp.gt.f32.partialorder %v22210_v20, 0.0 }
 0xce3   : > { %13957 = vst [vmem:[%s22186_s18 + $0x28] sm:$0xff] %v13925_v19  ;;  %v17235_v30 = vpop.f32.mrb[180].mxu0  ;;  %18496 = vpow2.f32 %v13848_v38  ;;  %v13850_v47 = vmul.f32 1.442695, %v13805_v9  ;;  %vm13773_vm7 = vcmp.gt.f32.partialorder %v22224_v12, 0.0 }
 0xce4   : > { %v18487_v0 = vpop.eup %18486  ;;  %v22231_v60 = vadd.f32 %v17235_v30, %v22143_v49  ;;  %v13697_v51 = vpop.f32.mrb[181].mxu0  ;;  %18498 = vpow2.f32 %v13854_v55 }
 0xce5   : > { %v18489_v25 = vpop.eup %18488  ;;  %v15401_v63 = vadd.f32 -1.0, %v18487_v0  ;;  %v22234_v37 = vadd.f32 %v22143_v49, %v13697_v51  ;;  %v17236_v6 = vpop.f32.mrb[182].mxu0  ;;  %18500 = vpow2.f32 %v13850_v47 }
 0xce6   : > { %v15399_v10 = vadd.f32 -1.0, %v18489_v25  ;;  %v13810_v16 = vmin.f32 %v22231_v60, 0.0  ;;  %v22239_v46 = vadd.f32 %v17236_v6, %v22143_v49  ;;  %v13700_v31 = vpop.f32.mrb[183].mxu0  ;;  %v18491_v44 = vpop.eup %18490  ;;  %vm13778_vm3 = vcmp.gt.f32.partialorder %v22231_v60, 0.0 }
 0xce7   : > { %v13930_v45 = vsel %vm13770_vm15, %v22175_v7, %v15401_v63  ;;  %v13808_v4 = vmin.f32 %v22234_v37, 0.0  ;;  %v15402_v27 = vadd.f32 -1.0, %v18491_v44  ;;  %v18493_v52 = vpop.eup %18492  ;;  %v22250_v7 = vadd.f32 %v22143_v49, %v13700_v31 }
 0xce8   : > { %13962 = vst [vmem:[%s22186_s18 + $0x50] sm:$0xff] %v13930_v45  ;;  %v13928_v32 = vsel %vm13768_vm1, %v22178_v56, %v15399_v10  ;;  %v13860_v2 = vmul.f32 1.442695, %v13810_v16  ;;  %v13811_v39 = vmin.f32 %v22239_v46, 0.0  ;;  %v15400_v29 = vadd.f32 -1.0, %v18493_v52 }
 0xce9   : > { %13960 = vst [vmem:[%s22186_s18 + $0x40] sm:$0xff] %v13928_v32  ;;  %v13856_v11 = vmul.f32 1.442695, %v13808_v4  ;;  %v13931_v61 = vsel %vm13771_vm2, %v22182_v57, %v15402_v27  ;;  %v13809_v13 = vmin.f32 %v22250_v7, 0.0  ;;  %vm13776_vm8 = vcmp.gt.f32.partialorder %v22234_v37, 0.0 }
 0xcea   : > { %18502 = vpow2.f32 %v13860_v2  ;;  %13963 = vst [vmem:[%s22186_s18 + $0x58] sm:$0xff] %v13931_v61  ;;  %v13862_v56 = vmul.f32 1.442695, %v13811_v39  ;;  %v13929_v21 = vsel %vm13769_vm0, %v22194_v17, %v15400_v29  ;;  %vm13779_vm9 = vcmp.gt.f32.partialorder %v22239_v46, 0.0 }
 0xceb   : > { %18504 = vpow2.f32 %v13856_v11  ;;  %v17239_v33 = vpop.f32.mrb[184].mxu0  ;;  %13961 = vst [vmem:[%s22186_s18 + $0x48] sm:$0xff] %v13929_v21  ;;  %v13858_v5 = vmul.f32 1.442695, %v13809_v13  ;;  %vm13777_vm10 = vcmp.gt.f32.partialorder %v22250_v7, 0.0 }
 0xcec   : > { %v18495_v58 = vpop.eup %18494  ;;  %v22258_v1 = vadd.f32 %v17239_v33, %v22143_v49  ;;  %v13713_v14 = vpop.f32.mrb[185].mxu0  ;;  %18506 = vpow2.f32 %v13862_v56 }
 0xced   : > { %v15405_v57 = vadd.f32 -1.0, %v18495_v58  ;;  %v22262_v15 = vadd.f32 %v22143_v49, %v13713_v14  ;;  %v17240_v41 = vpop.f32.mrb[186].mxu0  ;;  %v18497_v28 = vpop.eup %18496  ;;  %18508 = vpow2.f32 %v13858_v5 }
 0xcee   : > { %v13814_v54 = vmin.f32 %v22258_v1, 0.0  ;;  %v22267_v17 = vadd.f32 %v17240_v41, %v22143_v49  ;;  %v13716_v53 = vpop.f32.mrb[187].mxu0  ;;  %v18499_v48 = vpop.eup %18498  ;;  %v15403_v42 = vadd.f32 -1.0, %v18497_v28  ;;  %vm13782_vm11 = vcmp.gt.f32.partialorder %v22258_v1, 0.0 }
 0xcef   : > { %v13934_v40 = vsel %vm13774_vm4, %v22202_v26, %v15405_v57  ;;  %v15406_v22 = vadd.f32 -1.0, %v18499_v48  ;;  %v13812_v18 = vmin.f32 %v22262_v15, 0.0  ;;  %v18501_v3 = vpop.eup %18500  ;;  %v22277_v35 = vadd.f32 %v22143_v49, %v13716_v53 }
 0xcf0   : > { %13966 = vst [vmem:[%s22186_s18 + $0x70] sm:$0xff] %v13934_v40  ;;  %v13868_v24 = vmul.f32 1.442695, %v13814_v54  ;;  %v13932_v62 = vsel %vm13772_vm5, %v22205_v43, %v15403_v42  ;;  %v13815_v36 = vmin.f32 %v22267_v17, 0.0  ;;  %v15404_v34 = vadd.f32 -1.0, %v18501_v3 }
 0xcf1   : > { %13964 = vst [vmem:[%s22186_s18 + $0x60] sm:$0xff] %v13932_v62  ;;  %v13935_v26 = vsel %vm13775_vm6, %v22210_v20, %v15406_v22  ;;  %v13864_v50 = vmul.f32 1.442695, %v13812_v18  ;;  %v13813_v43 = vmin.f32 %v22277_v35, 0.0  ;;  %vm13780_vm12 = vcmp.gt.f32.partialorder %v22262_v15, 0.0 }
 0xcf2   : > { %18510 = vpow2.f32 %v13868_v24  ;;  %13967 = vst [vmem:[%s22186_s18 + $0x78] sm:$0xff] %v13935_v26  ;;  %v13870_v59 = vmul.f32 1.442695, %v13815_v36  ;;  %v13933_v19 = vsel %vm13773_vm7, %v22224_v12, %v15404_v34  ;;  %vm13783_vm13 = vcmp.gt.f32.partialorder %v22267_v17, 0.0 }
 0xcf3   : > { %v17243_v23 = vpop.f32.mrb[188].mxu0  ;;  %18512 = vpow2.f32 %v13864_v50  ;;  %13965 = vst [vmem:[%s22186_s18 + $0x68] sm:$0xff] %v13933_v19  ;;  %v13866_v30 = vmul.f32 1.442695, %v13813_v43  ;;  %vm13781_vm14 = vcmp.gt.f32.partialorder %v22277_v35, 0.0 }
 0xcf4   : > { %v18503_v8 = vpop.eup %18502  ;;  %v22286_v38 = vadd.f32 %v17243_v23, %v22143_v49  ;;  %v13729_v55 = vpop.f32.mrb[189].mxu0  ;;  %18514 = vpow2.f32 %v13870_v59 }
 0xcf5   : > { %v18505_v9 = vpop.eup %18504  ;;  %v15409_v20 = vadd.f32 -1.0, %v18503_v8  ;;  %v22290_v0 = vadd.f32 %v22143_v49, %v13729_v55  ;;  %v17244_v51 = vpop.f32.mrb[190].mxu0  ;;  %18516 = vpow2.f32 %v13866_v30 }
 0xcf6   : > { %v15407_v25 = vadd.f32 -1.0, %v18505_v9  ;;  %v13818_v12 = vmin.f32 %v22286_v38, 0.0  ;;  %v22295_v63 = vadd.f32 %v17244_v51, %v22143_v49  ;;  %v13732_v47 = vpop.f32.mrb[191].mxu0  ;;  %v18507_v6 = vpop.eup %18506  ;;  %vm13786_vm15 = vcmp.gt.f32.partialorder %v22286_v38, 0.0 }
 0xcf7   : > { %v13938_v10 = vsel %vm13778_vm3, %v22231_v60, %v15409_v20  ;;  %v13816_v16 = vmin.f32 %v22290_v0, 0.0  ;;  %v15410_v44 = vadd.f32 -1.0, %v18507_v6  ;;  %v18509_v4 = vpop.eup %18508  ;;  %v22306_v60 = vadd.f32 %v22143_v49, %v13732_v47 }
 0xcf8   : > { %13970 = vst [vmem:[%s22186_s18 + $0x90] sm:$0xff] %v13938_v10  ;;  %v13936_v31 = vsel %vm13776_vm8, %v22234_v37, %v15407_v25  ;;  %v13876_v45 = vmul.f32 1.442695, %v13818_v12  ;;  %v13819_v27 = vmin.f32 %v22295_v63, 0.0  ;;  %v15408_v52 = vadd.f32 -1.0, %v18509_v4 }
 0xcf9   : > { %13968 = vst [vmem:[%s22186_s18 + $0x80] sm:$0xff] %v13936_v31  ;;  %v13872_v32 = vmul.f32 1.442695, %v13816_v16  ;;  %v13939_v2 = vsel %vm13779_vm9, %v22239_v46, %v15410_v44  ;;  %v13817_v11 = vmin.f32 %v22306_v60, 0.0  ;;  %vm13784_vm1 = vcmp.gt.f32.partialorder %v22290_v0, 0.0 }
 0xcfa   : > { %18518 = vpow2.f32 %v13876_v45  ;;  %13971 = vst [vmem:[%s22186_s18 + $0x98] sm:$0xff] %v13939_v2  ;;  %v13878_v37 = vmul.f32 1.442695, %v13819_v27  ;;  %v13937_v29 = vsel %vm13777_vm10, %v22250_v7, %v15408_v52  ;;  %vm13787_vm2 = vcmp.gt.f32.partialorder %v22295_v63, 0.0 }
 0xcfb   : > { %18520 = vpow2.f32 %v13872_v32  ;;  %v17247_v39 = vpop.f32.mrb[192].mxu0  ;;  %13969 = vst [vmem:[%s22186_s18 + $0x88] sm:$0xff] %v13937_v29  ;;  %v13874_v33 = vmul.f32 1.442695, %v13817_v11  ;;  %vm13785_vm0 = vcmp.gt.f32.partialorder %v22306_v60, 0.0 }
 0xcfc   : > { %v18511_v61 = vpop.eup %18510  ;;  %v22314_v56 = vadd.f32 %v17247_v39, %v22143_v49  ;;  %v13745_v13 = vpop.f32.mrb[193].mxu0  ;;  %18522 = vpow2.f32 %v13878_v37 }
 0xcfd   : > { %v15413_v46 = vadd.f32 -1.0, %v18511_v61  ;;  %v22318_v58 = vadd.f32 %v22143_v49, %v13745_v13  ;;  %v17248_v21 = vpop.f32.mrb[194].mxu0  ;;  %v18513_v14 = vpop.eup %18512  ;;  %18524 = vpow2.f32 %v13874_v33 }
 0xcfe   : > { %v13822_v57 = vmin.f32 %v22314_v56, 0.0  ;;  %v22323_v7 = vadd.f32 %v17248_v21, %v22143_v49  ;;  %v13748_v5 = vpop.f32.mrb[195].mxu0  ;;  %v18515_v41 = vpop.eup %18514  ;;  %v15411_v54 = vadd.f32 -1.0, %v18513_v14  ;;  %vm13790_vm4 = vcmp.gt.f32.partialorder %v22314_v56, 0.0 }
 0xcff   : > { %v13942_v28 = vsel %vm13782_vm11, %v22258_v1, %v15413_v46  ;;  %v15414_v53 = vadd.f32 -1.0, %v18515_v41  ;;  %v13820_v40 = vmin.f32 %v22318_v58, 0.0  ;;  %v18517_v42 = vpop.eup %18516  ;;  %v13749_v1 = vadd.f32 %v22143_v49, %v13748_v5 }
 0xd00   : > { %13974 = vst [vmem:[%s22186_s18 + $0xb0] sm:$0xff] %v13942_v28  ;;  %v13884_v48 = vmul.f32 1.442695, %v13822_v57  ;;  %v13940_v22 = vsel %vm13780_vm12, %v22262_v15, %v15411_v54  ;;  %v13823_v24 = vmin.f32 %v22323_v7, 0.0  ;;  %v15412_v3 = vadd.f32 -1.0, %v18517_v42 }
 0xd01   : > { %13972 = vst [vmem:[%s22186_s18 + $0xa0] sm:$0xff] %v13940_v22  ;;  %v13943_v18 = vsel %vm13783_vm13, %v22267_v17, %v15414_v53  ;;  %v13880_v62 = vmul.f32 1.442695, %v13820_v40  ;;  %v13821_v26 = vmin.f32 %v13749_v1, 0.0  ;;  %vm13788_vm5 = vcmp.gt.f32.partialorder %v22318_v58, 0.0 }
 0xd02   : > { %18526 = vpow2.f32 %v13884_v48  ;;  %13975 = vst [vmem:[%s22186_s18 + $0xb8] sm:$0xff] %v13943_v18  ;;  %v13886_v36 = vmul.f32 1.442695, %v13823_v24  ;;  %v13941_v34 = vsel %vm13781_vm14, %v22277_v35, %v15412_v3  ;;  %vm13791_vm6 = vcmp.gt.f32.partialorder %v22323_v7, 0.0 }
 0xd03   : > { %18528 = vpow2.f32 %v13880_v62  ;;  %13973 = vst [vmem:[%s22186_s18 + $0xa8] sm:$0xff] %v13941_v34  ;;  %v13882_v17 = vmul.f32 1.442695, %v13821_v26  ;;  %vm13789_vm7 = vcmp.gt.f32.partialorder %v13749_v1, 0.0 }
 0xd04   : > { %v18519_v15 = vpop.eup %18518  ;;  %18530 = vpow2.f32 %v13886_v36 }
 0xd05   : > { %v18521_v50 = vpop.eup %18520  ;;  %v15417_v49 = vadd.f32 -1.0, %v18519_v15  ;;  %18532 = vpow2.f32 %v13882_v17 }
 0xd06   : > { %v15415_v59 = vadd.f32 -1.0, %v18521_v50  ;;  %v18523_v43 = vpop.eup %18522 }
 0xd07   : > { %v13946_v23 = vsel %vm13786_vm15, %v22286_v38, %v15417_v49  ;;  %v15418_v8 = vadd.f32 -1.0, %v18523_v43  ;;  %v18525_v19 = vpop.eup %18524 }
 0xd08   : > { %13978 = vst [vmem:[%s22186_s18 + $0xd0] sm:$0xff] %v13946_v23  ;;  %v13944_v35 = vsel %vm13784_vm1, %v22290_v0, %v15415_v59  ;;  %v15416_v9 = vadd.f32 -1.0, %v18525_v19 }
 0xd09   : > { %13976 = vst [vmem:[%s22186_s18 + $0xc0] sm:$0xff] %v13944_v35  ;;  %v13947_v55 = vsel %vm13787_vm2, %v22295_v63, %v15418_v8 }
 0xd0a   : > { %13979 = vst [vmem:[%s22186_s18 + $0xd8] sm:$0xff] %v13947_v55  ;;  %v13945_v20 = vsel %vm13785_vm0, %v22306_v60, %v15416_v9 }
 0xd0b   : > { %13977 = vst [vmem:[%s22186_s18 + $0xc8] sm:$0xff] %v13945_v20 }
 0xd0c   : > { %v18527_v38 = vpop.eup %18526 }
 0xd0d   : > { %v15421_v30 = vadd.f32 -1.0, %v18527_v38  ;;  %v18529_v0 = vpop.eup %18528 }
 0xd0e   : > { %v18531_v51 = vpop.eup %18530  ;;  %v15419_v12 = vadd.f32 -1.0, %v18529_v0 }
 0xd0f   : > { %v13950_v25 = vsel %vm13790_vm4, %v22314_v56, %v15421_v30  ;;  %v15422_v63 = vadd.f32 -1.0, %v18531_v51  ;;  %v18533_v47 = vpop.eup %18532 }
 0xd10   : > { %13982 = vst [vmem:[%s22186_s18 + $0xf0] sm:$0xff] %v13950_v25  ;;  %v13948_v6 = vsel %vm13788_vm5, %v22318_v58, %v15419_v12  ;;  %v15420_v16 = vadd.f32 -1.0, %v18533_v47 }
 0xd11   : > { %13980 = vst [vmem:[%s22186_s18 + $0xe0] sm:$0xff] %v13948_v6  ;;  %v13951_v10 = vsel %vm13791_vm6, %v22323_v7, %v15422_v63 }
 0xd12   : > { %13983 = vst [vmem:[%s22186_s18 + $0xf8] sm:$0xff] %v13951_v10  ;;  %v13949_v31 = vsel %vm13789_vm7, %v13749_v1, %v15420_v16 }
 0xd13   : > { %13981 = vst [vmem:[%s22186_s18 + $0xe8] sm:$0xff] %v13949_v31 }
 0xd14   : > { %18550 = shalt.err (!%p18547_p3)
}
 0xd15   : > { %s18551_s29 = scalar_lea.hbm %s22364_s28, 4096  ;;  %s18555_s20 = scalar_lea.hbm %s22430_s17, 8192 }
 0xd16   : > { %p18552_p4 = scmp.ne.s32.totalorder %s22364_s28, %s18551_s29  ;;  %p18556_p9 = scmp.lt.u32.totalorder %s22364_s28, %s22430_s17 }
 0xd17   : > { %p18557_p10 = scmp.lt.u32.totalorder %s18555_s20, %s18551_s29  ;;  %p18559_p12 = scmp.lt.u32.totalorder %s18551_s29, %s22364_s28 }
 0xd18   : > { %p18553_p7 = pnand %p18552_p4, %p18734_p5 }
 0xd19   : > { %p18558_p11 = por %p18557_p10, %p18556_p9 }
 0xd1a   : > { %p18554_p8 = pneg %p18553_p7 }
 0xd1b   : > { %p18560_p13 = por %p18559_p12, %p18558_p11 }
 0xd1d   : > { %p18561_p0 = pnand %p18560_p13, %p18554_p8 }
 0xd1f   : > { %18564 = shalt.err (!%p18561_p0)
}
 0xd20   : > { %s18604_s22 = smov 128   ;;  %s18605_s23 = smov 8  }
 0xd21   : > { %17967 = dma.vmem_to_hbm [thread:$0]  (%p18734_p5), %s22366_s0, 4096, %s22364_s28, %s22372_s19, %s18604_s22, %s18604_s22, %s18605_s23  }
 0xd22 PF: > { %s22447_s30 = sld [smem:[#allocation11_spill]]  ;;  %p17973_p1 = scmp.ge.s32.totalorder %s18599_s27, 2 }
 0xd24   : > { %p17970_p2 = pnand %p17973_p1, %p18738_p6 }
 0xd28   : > { %s14013_s26 = sand.u32 1, %s22447_s30  }
 0xd29   : > { %s14014_s29 = scalar_lea.sflag [#allocation9], %s14013_s26 }
 0xd2a   : > { %18582 = dma.done.wait (!%p17970_p2), %s14014_s29, 4096  }
 0xd2b   : > { %18584 = vsyncadd (!%p17970_p2), %s14014_s29, 4294963200  ;;  %s22449_s27 = sld [smem:[#allocation13_spill]]  ;;  %s22450_s20 = sld [smem:[#allocation12_spill]] }
 0xd2c   : > { %s22451_s26 = sld [smem:[#allocation14_spill]]  ;;  %s22452_s24 = smov %s18591_s25 }
 0xd31   : > { %p27_p3 = scmp.ge.s32.totalorder %s22449_s27, 4   ;;  %s22453_s25 = smov %s22450_s20 }
 0xd33   :  { %29 = sbr.rel (!%p27_p3) target bundleno = 6 (0x6), region = 186 }
 0xd3a   :  { %14019 = vsyncpa [#allocation9], 1 }
 0xd3b   :  { %14021 = vsyncpa [#allocation9 + $0x1], 1 }

</bundles_post_ra>
